<compile_context>
chip_gen: v7x
topology: tpu7x:2x2x1
jax: 0.10.0
libtpu: 0.0.40
codegen_flags: <defaults>
</compile_context>

<pallas_src>
import jax
import jax.numpy as jnp
from jax import lax
from jax.experimental import pallas as pl
from jax.experimental.pallas import tpu as pltpu

# ----------------------------------------------------------------------------
# Synthetic (small) ContactGraspNet config — consistent with the module:
#   input_normals = False, joint_heads = False, bin_offsets = True,
#   dir_vec_length_offset = False, asymmetric_model forced False in forward.
# ----------------------------------------------------------------------------
NUM_POINTS = 128
NPOINT_1, NPOINT_2 = 64, 32
RADIUS_1, RADIUS_2 = (0.5, 1.0), (1.0, 2.0)
NSAMPLE_1, NSAMPLE_2 = (8, 16), (8, 16)
MLP_LIST_1 = ((16, 16, 32), (16, 16, 32))   # layer1 MSG -> 64 ch
MLP_LIST_2 = ((32, 32, 64), (32, 32, 64))   # layer2 MSG -> 128 ch
SA3_MLP = (64, 128, 256)                    # layer3 group_all SA
FP_MLP_0 = (128, 128)
FP_MLP_1 = (128, 64)
FP_MLP_2 = (64, 128, 128)
OFFSET_BINS = tuple(0.01 * i for i in range(11))   # 11 edges -> 10 bins
NUM_BINS = len(OFFSET_BINS) - 1
HEAD_OUT = 3 + 3 + NUM_BINS + 1                     # dir | app | offset | seg


def _round_up(x, m):
    return (x + m - 1) // m * m


# ----------------------------------------------------------------------------
# Pallas kernel: fused multi-layer 1x1-conv MLP chain
#   y_l = relu( y_{l-1} @ W_l + b_l )   (BN(eval) pre-folded into W_l, b_l)
# All intermediates stay on-chip; matmuls in bf16 with f32 accumulation.
# ----------------------------------------------------------------------------
def _make_chain_kernel(num_layers, relu_flags):
    def kernel(x_ref, *refs):
        o_ref = refs[-1]
        h = x_ref[...]                                  # bf16 (TM, K)
        for li in range(num_layers):
            w = refs[2 * li][...]                       # bf16 (Kl, Nl)
            b = refs[2 * li + 1][...]                   # f32  (1, Nl)
            y = jnp.dot(h, w, preferred_element_type=jnp.float32) + b
            if relu_flags[li]:
                y = jnp.maximum(y, 0.0)
            h = y.astype(jnp.bfloat16) if li + 1 < num_layers else y
        o_ref[...] = h                                  # f32 (TM, N_last)
    return kernel


def fused_mlp_chain(x, layers, relu_flags):
    """Run a whole shared-MLP chain in one pallas_call.

    x: (M, K) float.  layers: [(w_bf16 (Kl, Nl), b_f32 (1, Nl)), ...] where the
    first layer's Kl may be sublane-padded (>= K, multiple of 8) at init time.
    """
    M, K = x.shape
    Kp = layers[0][0].shape[0]
    n_out = layers[-1][0].shape[1]

    # Row tiling: big tiles amortize per-step overhead; >=2 steps when possible
    # so v7x's two TensorCores both get work.  v5e stays happy at 128/256.
    if M >= 512:
        TM = 256
    elif M >= 128:
        TM = 128
    else:
        TM = _round_up(M, 8)
    Mp = _round_up(M, TM)

    if Mp == M and Kp == K:
        xp = x.astype(jnp.bfloat16)
    else:
        xp = jnp.zeros((Mp, Kp), jnp.bfloat16).at[:M, :K].set(x.astype(jnp.bfloat16))

    in_specs = [pl.BlockSpec((TM, Kp), lambda i: (i, 0))]
    args = [xp]
    for w, b in layers:
        kl, nl = w.shape
        in_specs.append(pl.BlockSpec((kl, nl), lambda i: (0, 0)))   # full-array block
        in_specs.append(pl.BlockSpec((1, nl), lambda i: (0, 0)))
        args.append(w)
        args.append(b)

    out = pl.pallas_call(
        _make_chain_kernel(len(layers), tuple(relu_flags)),
        out_shape=jax.ShapeDtypeStruct((Mp, n_out), jnp.float32),
        grid=(Mp // TM,),
        in_specs=in_specs,
        out_specs=pl.BlockSpec((TM, n_out), lambda i: (i, 0)),
        compiler_params=pltpu.CompilerParams(dimension_semantics=("parallel",)),
    )(*args)
    return out[:M] if Mp != M else out


# ----------------------------------------------------------------------------
# Small elementwise post-processing in plain JAX (3-wide vectors; fuses fine)
# ----------------------------------------------------------------------------
def _l2_normalize(v, eps=1e-12):
    # Matches F.normalize(p=2): v / max(||v||, eps)
    n = jnp.sqrt(jnp.sum(v * v, axis=-1, keepdims=True))
    return v / jnp.maximum(n, eps)


# ----------------------------------------------------------------------------
# PointNet++ geometry glue (plain JAX: data-dependent gathers / sampling)
# ----------------------------------------------------------------------------
def square_distance(src, dst):
    d = -2.0 * jnp.einsum("bnc,bmc->bnm", src, dst)
    d = d + jnp.sum(src ** 2, -1)[:, :, None]
    d = d + jnp.sum(dst ** 2, -1)[:, None, :]
    return d


def index_points(points, idx):
    return jax.vmap(lambda p, i: p[i])(points, idx)


def farthest_point_sample(xyz, npoint):
    # TODO(synk): PyTorch FPS starts from torch.randint; we start at index 0 (deterministic).
    B, N, _ = xyz.shape

    def body(i, state):
        centroids, distance, farthest = state
        centroids = centroids.at[:, i].set(farthest)
        centroid = xyz[jnp.arange(B), farthest, :][:, None, :]
        dist = jnp.sum((xyz - centroid) ** 2, -1)
        distance = jnp.minimum(distance, dist)
        farthest = jnp.argmax(distance, axis=-1).astype(jnp.int32)
        return centroids, distance, farthest

    init = (jnp.zeros((B, npoint), jnp.int32),
            jnp.full((B, N), 1e10, jnp.float32),
            jnp.zeros((B,), jnp.int32))
    centroids, _, _ = lax.fori_loop(0, npoint, body, init)
    return centroids


def query_ball_point(radius, nsample, xyz, new_xyz):
    B, N, _ = xyz.shape
    S = new_xyz.shape[1]
    sqrdists = square_distance(new_xyz, xyz)
    group_idx = jnp.broadcast_to(jnp.arange(N, dtype=jnp.int32), (B, S, N))
    group_idx = jnp.where(sqrdists > radius ** 2, N, group_idx)
    group_idx = jnp.sort(group_idx, axis=-1)[:, :, :nsample]
    group_first = jnp.broadcast_to(group_idx[:, :, :1], group_idx.shape)
    return jnp.where(group_idx == N, group_first, group_idx)


# ----------------------------------------------------------------------------
# PointNet++ modules (shared MLPs run through the fused Pallas chain kernel)
# ----------------------------------------------------------------------------
def sa_msg(xyz, points, npoint, radius_list, nsample_list, branch_params):
    """PointNetSetAbstractionMsg. xyz:(B,N,3) points:(B,N,D)|None -> (B,S,3),(B,S,sumC)."""
    B = xyz.shape[0]
    fps_idx = farthest_point_sample(xyz, npoint)
    new_xyz = index_points(xyz, fps_idx)
    out_list = []
    for radius, nsample, layers in zip(radius_list, nsample_list, branch_params):
        group_idx = query_ball_point(radius, nsample, xyz, new_xyz)
        grouped_xyz = index_points(xyz, group_idx) - new_xyz[:, :, None, :]
        if points is not None:
            grouped = jnp.concatenate(
                [index_points(points, group_idx), grouped_xyz], axis=-1)
        else:
            grouped = grouped_xyz
        x = grouped.reshape(B * npoint * nsample, grouped.shape[-1])
        x = fused_mlp_chain(x, layers, (True,) * len(layers))
        x = x.reshape(B, npoint, nsample, -1)
        out_list.append(jnp.max(x, axis=2))  # max over neighborhood
    return new_xyz, jnp.concatenate(out_list, axis=-1)


def sa_group_all(xyz, points, layers):
    """PointNetSetAbstraction(group_all=True)."""
    B, N, _ = xyz.shape
    grouped = jnp.concatenate([xyz, points], axis=-1)        # (B, N, 3+D)
    x = grouped.reshape(B * N, grouped.shape[-1])
    x = fused_mlp_chain(x, layers, (True,) * len(layers))
    new_points = jnp.max(x.reshape(B, 1, N, -1), axis=2)     # (B, 1, C')
    new_xyz = jnp.zeros((B, 1, 3), jnp.float32)
    return new_xyz, new_points


def feature_propagation(xyz1, xyz2, points1, points2, layers):
    """PointNetFeaturePropagation. All tensors channel-last."""
    B, N, _ = xyz1.shape
    S = xyz2.shape[1]
    if S == 1:
        interpolated = jnp.broadcast_to(points2, (B, N, points2.shape[-1]))
    else:
        dists = square_distance(xyz1, xyz2)
        idx = jnp.argsort(dists, axis=-1)[:, :, :3]
        d = jnp.take_along_axis(dists, idx, axis=-1)
        recip = 1.0 / (d + 1e-8)
        weight = recip / jnp.sum(recip, axis=2, keepdims=True)
        interpolated = jnp.sum(index_points(points2, idx) * weight[..., None], axis=2)
    new_points = interpolated if points1 is None else jnp.concatenate(
        [points1, interpolated], axis=-1)
    x = new_points.reshape(B * N, new_points.shape[-1])
    x = fused_mlp_chain(x, layers, (True,) * len(layers))
    return x.reshape(B, N, -1)


# ----------------------------------------------------------------------------
# Parameter init: fold eval-mode BatchNorm into the conv weight (w' = w*scale,
# b' = shift), cast weights to bf16, sublane-pad the first-layer K — all once.
# ----------------------------------------------------------------------------
def _conv_bn_folded(key, cin, cout):
    kw, kb = jax.random.split(key)
    w = jax.random.normal(kw, (cin, cout), jnp.float32) * (2.0 / cin) ** 0.5
    b = jax.random.normal(kb, (cout,), jnp.float32) * 0.01
    gamma = jnp.ones((cout,), jnp.float32)
    beta = jnp.zeros((cout,), jnp.float32)
    running_mean = jnp.zeros((cout,), jnp.float32)
    running_var = jnp.ones((cout,), jnp.float32)
    s = gamma / jnp.sqrt(running_var + 1e-5)
    return w * s[None, :], (b - running_mean) * s + beta


def _conv_plain(key, cin, cout):
    kw, kb = jax.random.split(key)
    w = jax.random.normal(kw, (cin, cout), jnp.float32) * (1.0 / cin) ** 0.5
    b = jax.random.normal(kb, (cout,), jnp.float32) * 0.01
    return w, b


def _as_layer(w, b, pad_k_to=None):
    cin, cout = w.shape
    if pad_k_to is not None and pad_k_to != cin:
        w = jnp.zeros((pad_k_to, cout), w.dtype).at[:cin].set(w)
    return w.astype(jnp.bfloat16), b.reshape(1, cout).astype(jnp.float32)


def _mlp_chain_params(key, cin, channels):
    layers = []
    first = True
    for cout in channels:
        key, sub = jax.random.split(key)
        w, b = _conv_bn_folded(sub, cin, cout)
        pad = _round_up(cin, 8) if first else None
        layers.append(_as_layer(w, b, pad_k_to=pad))
        cin = cout
        first = False
    return layers, key


def init_params(key):
    p = {}
    p['sa1'] = []
    for mlp in MLP_LIST_1:                       # in_channel = 0 -> xyz only (3)
        branch, key = _mlp_chain_params(key, 3, mlp)
        p['sa1'].append(branch)
    out1 = sum(m[-1] for m in MLP_LIST_1)        # 64
    p['sa2'] = []
    for mlp in MLP_LIST_2:
        branch, key = _mlp_chain_params(key, out1 + 3, mlp)
        p['sa2'].append(branch)
    out2 = sum(m[-1] for m in MLP_LIST_2)        # 128
    p['sa3'], key = _mlp_chain_params(key, out2 + 3, SA3_MLP)
    p['fp1'], key = _mlp_chain_params(key, out2 + SA3_MLP[-1], FP_MLP_0)
    p['fp2'], key = _mlp_chain_params(key, out1 + FP_MLP_0[-1], FP_MLP_1)
    p['fp3'], key = _mlp_chain_params(key, 3 + FP_MLP_1[-1], FP_MLP_2)

    def nxt():
        nonlocal key
        key, sub = jax.random.split(key)
        return sub

    # Individual head parameters (as in the module), then fused once at init.
    fc1_w, fc1_b = _conv_bn_folded(nxt(), 128, 128)
    fc3_w, fc3_b = _conv_plain(nxt(), 128, 3)
    fc1_app_w, fc1_app_b = _conv_bn_folded(nxt(), 128, 128)
    fc3_app_w, fc3_app_b = _conv_plain(nxt(), 128, 3)
    fc1_off_w, fc1_off_b = _conv_bn_folded(nxt(), 128, 128)
    fc2_off_w, fc2_off_b = _conv_plain(nxt(), 128, NUM_BINS)
    fc1_seg_w, fc1_seg_b = _conv_bn_folded(nxt(), 128, 128)
    fc2_seg_w, fc2_seg_b = _conv_plain(nxt(), 128, 1)

    # Stage 1: concat output channels -> single 128x512 matmul (full MXU width).
    w1 = jnp.concatenate([fc1_w, fc1_app_w, fc1_off_w, fc1_seg_w], axis=1)
    b1 = jnp.concatenate([fc1_b, fc1_app_b, fc1_off_b, fc1_seg_b], axis=0)
    # Stage 2: block-diagonal 512x17 keeps the four branches independent.
    w2 = jnp.zeros((512, HEAD_OUT), jnp.float32)
    w2 = w2.at[0:128, 0:3].set(fc3_w)
    w2 = w2.at[128:256, 3:6].set(fc3_app_w)
    w2 = w2.at[256:384, 6:6 + NUM_BINS].set(fc2_off_w)
    w2 = w2.at[384:512, 6 + NUM_BINS:HEAD_OUT].set(fc2_seg_w)
    b2 = jnp.concatenate([fc3_b, fc3_app_b, fc2_off_b, fc2_seg_b], axis=0)
    p['head_fused'] = [_as_layer(w1, b1), _as_layer(w2, b2)]
    return p


# ----------------------------------------------------------------------------
# Forward pass (mirrors ContactGraspNet.forward, eval mode)
# ----------------------------------------------------------------------------
def contact_graspnet_forward(point_cloud, params):
    # point_cloud: (B, 3, N) — same NCW layout the PyTorch module receives.
    l0_xyz = jnp.transpose(point_cloud[:, 0:3, :], (0, 2, 1)).astype(jnp.float32)
    l0_points = None                                  # input_normals == False

    l1_xyz, l1_points = sa_msg(l0_xyz, l0_points, NPOINT_1, RADIUS_1, NSAMPLE_1, params['sa1'])
    l2_xyz, l2_points = sa_msg(l1_xyz, l1_points, NPOINT_2, RADIUS_2, NSAMPLE_2, params['sa2'])
    # asymmetric_model forced False in the reference forward -> group_all SA + FP layers
    l3_xyz, l3_points = sa_group_all(l2_xyz, l2_points, params['sa3'])

    l2_points = feature_propagation(l2_xyz, l3_xyz, l2_points, l3_points, params['fp1'])
    l1_points = feature_propagation(l1_xyz, l2_xyz, l1_points, l2_points, params['fp2'])
    l0_feats = feature_propagation(l0_xyz, l1_xyz, l0_xyz, l1_points, params['fp3'])
    pred_points = l0_xyz

    B, N, _ = l0_xyz.shape
    x = l0_feats.reshape(B * N, -1)

    # All four heads (fc1->fc3 / fc1_app->fc3_app / fc1_off->fc2_off /
    # fc1_seg->fc2_seg) fused into one 2-layer Pallas chain; x read once.
    # TODO(synk): Dropout(p=0.7/0.5) omitted — reference path runs with is_training=False.
    head = fused_mlp_chain(x, params['head_fused'], (True, False))
    grasp_dir = head[:, 0:3]
    approach_dir = head[:, 3:6]
    grasp_offset = head[:, 6:6 + NUM_BINS]
    binary_seg = head[:, 6 + NUM_BINS:HEAD_OUT]

    # 3-vector post-processing in plain JAX (matches F.normalize + Gram-Schmidt).
    grasp_dir_n = _l2_normalize(grasp_dir)
    approach_orthog = _l2_normalize(
        approach_dir
        - jnp.sum(grasp_dir_n * approach_dir, axis=-1, keepdims=True) * grasp_dir_n)

    # Outputs already in the post-transpose (B, N, C) layout of the reference.
    end_points = {
        'grasp_dir_head': grasp_dir_n.reshape(B, N, 3),
        'binary_seg_head': binary_seg.reshape(B, N, 1),
        'binary_seg_pred': jax.nn.sigmoid(binary_seg).reshape(B, N, 1),
        'grasp_offset_head': grasp_offset.reshape(B, N, NUM_BINS),
        'grasp_offset_pred': jax.nn.sigmoid(grasp_offset).reshape(B, N, NUM_BINS),
        'approach_dir_head': approach_orthog.reshape(B, N, 3),
        'pred_points': pred_points,
    }
    return end_points


if __name__ == "__main__":
    key = jax.random.PRNGKey(0)
    k_pc, k_params = jax.random.split(key)
    B = 2
    point_cloud = jax.random.normal(k_pc, (B, 3, NUM_POINTS), jnp.float32)
    params = init_params(k_params)

    fwd = jax.jit(contact_graspnet_forward)
    end_points = jax.block_until_ready(fwd(point_cloud, params))

    expected = {
        'grasp_dir_head': (B, NUM_POINTS, 3),
        'binary_seg_head': (B, NUM_POINTS, 1),
        'binary_seg_pred': (B, NUM_POINTS, 1),
        'grasp_offset_head': (B, NUM_POINTS, NUM_BINS),
        'grasp_offset_pred': (B, NUM_POINTS, NUM_BINS),
        'approach_dir_head': (B, NUM_POINTS, 3),
        'pred_points': (B, NUM_POINTS, 3),
    }
    for name, shp in expected.items():
        assert end_points[name].shape == shp, (name, end_points[name].shape, shp)
        assert bool(jnp.all(jnp.isfinite(end_points[name]))), name
    print("KERNEL_OK")
</pallas_src>

<mosaic_0001>
module attributes {stable_mosaic.version = 11 : i64} {
  func.func @kernel(%arg0: i32, %arg1: memref<256x8xbf16, #tpu.memory_space<vmem>>, %arg2: memref<8x16xbf16, #tpu.memory_space<vmem>>, %arg3: memref<1x16xf32, #tpu.memory_space<vmem>>, %arg4: memref<16x16xbf16, #tpu.memory_space<vmem>>, %arg5: memref<1x16xf32, #tpu.memory_space<vmem>>, %arg6: memref<16x32xbf16, #tpu.memory_space<vmem>>, %arg7: memref<1x32xf32, #tpu.memory_space<vmem>>, %arg8: memref<256x32xf32, #tpu.memory_space<vmem>>) attributes {dimension_semantics = [#tpu.dimension_semantics<parallel>], iteration_bounds = array<i64: 8>, scalar_prefetch = 0 : i64, scratch_operands = 0 : i64, tpu.core_type = #tpu.core_type<tc>, window_params = [{transform_indices = @transform_0, window_bounds = array<i64: 256, 8>}, {pipeline_mode = #tpu.pipeline_mode<synchronous>, transform_indices = @transform_1, window_bounds = array<i64: 8, 16>}, {pipeline_mode = #tpu.pipeline_mode<synchronous>, transform_indices = @transform_2, window_bounds = array<i64: 1, 16>}, {pipeline_mode = #tpu.pipeline_mode<synchronous>, transform_indices = @transform_3, window_bounds = array<i64: 16, 16>}, {pipeline_mode = #tpu.pipeline_mode<synchronous>, transform_indices = @transform_4, window_bounds = array<i64: 1, 16>}, {pipeline_mode = #tpu.pipeline_mode<synchronous>, transform_indices = @transform_5, window_bounds = array<i64: 16, 32>}, {pipeline_mode = #tpu.pipeline_mode<synchronous>, transform_indices = @transform_6, window_bounds = array<i64: 1, 32>}, {transform_indices = @transform_7, window_bounds = array<i64: 256, 32>}]} {
    %c0 = arith.constant 0 : index
    %c0_0 = arith.constant 0 : index
    %0 = vector.load %arg1[%c0, %c0_0] : memref<256x8xbf16, #tpu.memory_space<vmem>>, vector<256x8xbf16>
    %c0_1 = arith.constant 0 : index
    %c0_2 = arith.constant 0 : index
    %1 = vector.load %arg2[%c0_1, %c0_2] : memref<8x16xbf16, #tpu.memory_space<vmem>>, vector<8x16xbf16>
    %c0_3 = arith.constant 0 : index
    %c0_4 = arith.constant 0 : index
    %2 = vector.load %arg3[%c0_3, %c0_4] : memref<1x16xf32, #tpu.memory_space<vmem>>, vector<1x16xf32>
    %cst = arith.constant dense<0.000000e+00> : vector<256x16xf32>
    %3 = tpu.matmul %0, %1, %cst {dimension_numbers = #tpu.dot_dimension_numbers<[1], [0], [0], [1], [0, 0, 1, 1], [], []>} : vector<256x8xbf16>, vector<8x16xbf16>, vector<256x16xf32> -> vector<256x16xf32>
    %4 = vector.broadcast %2 : vector<1x16xf32> to vector<256x16xf32>
    %5 = arith.addf %3, %4 : vector<256x16xf32>
    %cst_5 = arith.constant 0.000000e+00 : f32
    %6 = vector.broadcast %cst_5 : f32 to vector<256x16xf32>
    %7 = arith.maximumf %5, %6 : vector<256x16xf32>
    %8 = arith.truncf %7 : vector<256x16xf32> to vector<256x16xbf16>
    %c0_6 = arith.constant 0 : index
    %c0_7 = arith.constant 0 : index
    %9 = vector.load %arg4[%c0_6, %c0_7] : memref<16x16xbf16, #tpu.memory_space<vmem>>, vector<16x16xbf16>
    %c0_8 = arith.constant 0 : index
    %c0_9 = arith.constant 0 : index
    %10 = vector.load %arg5[%c0_8, %c0_9] : memref<1x16xf32, #tpu.memory_space<vmem>>, vector<1x16xf32>
    %cst_10 = arith.constant dense<0.000000e+00> : vector<256x16xf32>
    %11 = tpu.matmul %8, %9, %cst_10 {dimension_numbers = #tpu.dot_dimension_numbers<[1], [0], [0], [1], [0, 0, 1, 1], [], []>} : vector<256x16xbf16>, vector<16x16xbf16>, vector<256x16xf32> -> vector<256x16xf32>
    %12 = vector.broadcast %10 : vector<1x16xf32> to vector<256x16xf32>
    %13 = arith.addf %11, %12 : vector<256x16xf32>
    %cst_11 = arith.constant 0.000000e+00 : f32
    %14 = vector.broadcast %cst_11 : f32 to vector<256x16xf32>
    %15 = arith.maximumf %13, %14 : vector<256x16xf32>
    %16 = arith.truncf %15 : vector<256x16xf32> to vector<256x16xbf16>
    %c0_12 = arith.constant 0 : index
    %c0_13 = arith.constant 0 : index
    %17 = vector.load %arg6[%c0_12, %c0_13] : memref<16x32xbf16, #tpu.memory_space<vmem>>, vector<16x32xbf16>
    %c0_14 = arith.constant 0 : index
    %c0_15 = arith.constant 0 : index
    %18 = vector.load %arg7[%c0_14, %c0_15] : memref<1x32xf32, #tpu.memory_space<vmem>>, vector<1x32xf32>
    %cst_16 = arith.constant dense<0.000000e+00> : vector<256x32xf32>
    %19 = tpu.matmul %16, %17, %cst_16 {dimension_numbers = #tpu.dot_dimension_numbers<[1], [0], [0], [1], [0, 0, 1, 1], [], []>} : vector<256x16xbf16>, vector<16x32xbf16>, vector<256x32xf32> -> vector<256x32xf32>
    %20 = vector.broadcast %18 : vector<1x32xf32> to vector<256x32xf32>
    %21 = arith.addf %19, %20 : vector<256x32xf32>
    %cst_17 = arith.constant 0.000000e+00 : f32
    %22 = vector.broadcast %cst_17 : f32 to vector<256x32xf32>
    %23 = arith.maximumf %21, %22 : vector<256x32xf32>
    %c0_18 = arith.constant 0 : index
    %c0_19 = arith.constant 0 : index
    %24 = vector.load %arg8[%c0_18, %c0_19] : memref<256x32xf32, #tpu.memory_space<vmem>>, vector<256x32xf32>
    tpu.vector_store %arg8[%c0_18, %c0_19], %23 {strides = array<i32>} : memref<256x32xf32, #tpu.memory_space<vmem>>, vector<256x32xf32>,
    return
  }
  func.func @transform_0(%arg0: i32) -> (i32, i32) {
    %c0_i32 = arith.constant 0 : i32
    %c0_i32_0 = arith.constant 0 : i32
    return %arg0, %c0_i32 : i32, i32
  }
  func.func @transform_1(%arg0: i32) -> (i32, i32) {
    %c0_i32 = arith.constant 0 : i32
    %c0_i32_0 = arith.constant 0 : i32
    %c0_i32_1 = arith.constant 0 : i32
    return %c0_i32, %c0_i32_0 : i32, i32
  }
  func.func @transform_2(%arg0: i32) -> (i32, i32) {
    %c0_i32 = arith.constant 0 : i32
    %c0_i32_0 = arith.constant 0 : i32
    %c0_i32_1 = arith.constant 0 : i32
    return %c0_i32, %c0_i32_0 : i32, i32
  }
  func.func @transform_3(%arg0: i32) -> (i32, i32) {
    %c0_i32 = arith.constant 0 : i32
    %c0_i32_0 = arith.constant 0 : i32
    %c0_i32_1 = arith.constant 0 : i32
    return %c0_i32, %c0_i32_0 : i32, i32
  }
  func.func @transform_4(%arg0: i32) -> (i32, i32) {
    %c0_i32 = arith.constant 0 : i32
    %c0_i32_0 = arith.constant 0 : i32
    %c0_i32_1 = arith.constant 0 : i32
    return %c0_i32, %c0_i32_0 : i32, i32
  }
  func.func @transform_5(%arg0: i32) -> (i32, i32) {
    %c0_i32 = arith.constant 0 : i32
    %c0_i32_0 = arith.constant 0 : i32
    %c0_i32_1 = arith.constant 0 : i32
    return %c0_i32, %c0_i32_0 : i32, i32
  }
  func.func @transform_6(%arg0: i32) -> (i32, i32) {
    %c0_i32 = arith.constant 0 : i32
    %c0_i32_0 = arith.constant 0 : i32
    %c0_i32_1 = arith.constant 0 : i32
    return %c0_i32, %c0_i32_0 : i32, i32
  }
  func.func @transform_7(%arg0: i32) -> (i32, i32) {
    %c0_i32 = arith.constant 0 : i32
    %c0_i32_0 = arith.constant 0 : i32
    return %arg0, %c0_i32 : i32, i32
  }
}

module attributes {stable_mosaic.version = 11 : i64} {
  func.func @kernel(%arg0: i32, %arg1: memref<256x8xbf16, #tpu.memory_space<vmem>>, %arg2: memref<8x16xbf16, #tpu.memory_space<vmem>>, %arg3: memref<1x16xf32, #tpu.memory_space<vmem>>, %arg4: memref<16x16xbf16, #tpu.memory_space<vmem>>, %arg5: memref<1x16xf32, #tpu.memory_space<vmem>>, %arg6: memref<16x32xbf16, #tpu.memory_space<vmem>>, %arg7: memref<1x32xf32, #tpu.memory_space<vmem>>, %arg8: memref<256x32xf32, #tpu.memory_space<vmem>>) attributes {dimension_semantics = [#tpu.dimension_semantics<parallel>], iteration_bounds = array<i64: 4>, scalar_prefetch = 0 : i64, scratch_operands = 0 : i64, tpu.core_type = #tpu.core_type<tc>, window_params = [{transform_indices = @transform_0, window_bounds = array<i64: 256, 8>}, {pipeline_mode = #tpu.pipeline_mode<synchronous>, transform_indices = @transform_1, window_bounds = array<i64: 8, 16>}, {pipeline_mode = #tpu.pipeline_mode<synchronous>, transform_indices = @transform_2, window_bounds = array<i64: 1, 16>}, {pipeline_mode = #tpu.pipeline_mode<synchronous>, transform_indices = @transform_3, window_bounds = array<i64: 16, 16>}, {pipeline_mode = #tpu.pipeline_mode<synchronous>, transform_indices = @transform_4, window_bounds = array<i64: 1, 16>}, {pipeline_mode = #tpu.pipeline_mode<synchronous>, transform_indices = @transform_5, window_bounds = array<i64: 16, 32>}, {pipeline_mode = #tpu.pipeline_mode<synchronous>, transform_indices = @transform_6, window_bounds = array<i64: 1, 32>}, {transform_indices = @transform_7, window_bounds = array<i64: 256, 32>}]} {
    %c0 = arith.constant 0 : index
    %c0_0 = arith.constant 0 : index
    %0 = vector.load %arg1[%c0, %c0_0] : memref<256x8xbf16, #tpu.memory_space<vmem>>, vector<256x8xbf16>
    %c0_1 = arith.constant 0 : index
    %c0_2 = arith.constant 0 : index
    %1 = vector.load %arg2[%c0_1, %c0_2] : memref<8x16xbf16, #tpu.memory_space<vmem>>, vector<8x16xbf16>
    %c0_3 = arith.constant 0 : index
    %c0_4 = arith.constant 0 : index
    %2 = vector.load %arg3[%c0_3, %c0_4] : memref<1x16xf32, #tpu.memory_space<vmem>>, vector<1x16xf32>
    %cst = arith.constant dense<0.000000e+00> : vector<256x16xf32>
    %3 = tpu.matmul %0, %1, %cst {dimension_numbers = #tpu.dot_dimension_numbers<[1], [0], [0], [1], [0, 0, 1, 1], [], []>} : vector<256x8xbf16>, vector<8x16xbf16>, vector<256x16xf32> -> vector<256x16xf32>
    %4 = vector.broadcast %2 : vector<1x16xf32> to vector<256x16xf32>
    %5 = arith.addf %3, %4 : vector<256x16xf32>
    %cst_5 = arith.constant 0.000000e+00 : f32
    %6 = vector.broadcast %cst_5 : f32 to vector<256x16xf32>
    %7 = arith.maximumf %5, %6 : vector<256x16xf32>
    %8 = arith.truncf %7 : vector<256x16xf32> to vector<256x16xbf16>
    %c0_6 = arith.constant 0 : index
    %c0_7 = arith.constant 0 : index
    %9 = vector.load %arg4[%c0_6, %c0_7] : memref<16x16xbf16, #tpu.memory_space<vmem>>, vector<16x16xbf16>
    %c0_8 = arith.constant 0 : index
    %c0_9 = arith.constant 0 : index
    %10 = vector.load %arg5[%c0_8, %c0_9] : memref<1x16xf32, #tpu.memory_space<vmem>>, vector<1x16xf32>
    %cst_10 = arith.constant dense<0.000000e+00> : vector<256x16xf32>
    %11 = tpu.matmul %8, %9, %cst_10 {dimension_numbers = #tpu.dot_dimension_numbers<[1], [0], [0], [1], [0, 0, 1, 1], [], []>} : vector<256x16xbf16>, vector<16x16xbf16>, vector<256x16xf32> -> vector<256x16xf32>
    %12 = vector.broadcast %10 : vector<1x16xf32> to vector<256x16xf32>
    %13 = arith.addf %11, %12 : vector<256x16xf32>
    %cst_11 = arith.constant 0.000000e+00 : f32
    %14 = vector.broadcast %cst_11 : f32 to vector<256x16xf32>
    %15 = arith.maximumf %13, %14 : vector<256x16xf32>
    %16 = arith.truncf %15 : vector<256x16xf32> to vector<256x16xbf16>
    %c0_12 = arith.constant 0 : index
    %c0_13 = arith.constant 0 : index
    %17 = vector.load %arg6[%c0_12, %c0_13] : memref<16x32xbf16, #tpu.memory_space<vmem>>, vector<16x32xbf16>
    %c0_14 = arith.constant 0 : index
    %c0_15 = arith.constant 0 : index
    %18 = vector.load %arg7[%c0_14, %c0_15] : memref<1x32xf32, #tpu.memory_space<vmem>>, vector<1x32xf32>
    %cst_16 = arith.constant dense<0.000000e+00> : vector<256x32xf32>
    %19 = tpu.matmul %16, %17, %cst_16 {dimension_numbers = #tpu.dot_dimension_numbers<[1], [0], [0], [1], [0, 0, 1, 1], [], []>} : vector<256x16xbf16>, vector<16x32xbf16>, vector<256x32xf32> -> vector<256x32xf32>
    %20 = vector.broadcast %18 : vector<1x32xf32> to vector<256x32xf32>
    %21 = arith.addf %19, %20 : vector<256x32xf32>
    %cst_17 = arith.constant 0.000000e+00 : f32
    %22 = vector.broadcast %cst_17 : f32 to vector<256x32xf32>
    %23 = arith.maximumf %21, %22 : vector<256x32xf32>
    %c0_18 = arith.constant 0 : index
    %c0_19 = arith.constant 0 : index
    %24 = vector.load %arg8[%c0_18, %c0_19] : memref<256x32xf32, #tpu.memory_space<vmem>>, vector<256x32xf32>
    tpu.vector_store %arg8[%c0_18, %c0_19], %23 {strides = array<i32>} : memref<256x32xf32, #tpu.memory_space<vmem>>, vector<256x32xf32>,
    return
  }
  func.func @transform_0(%arg0: i32) -> (i32, i32) {
    %c0_i32 = arith.constant 0 : i32
    %c0_i32_0 = arith.constant 0 : i32
    return %arg0, %c0_i32 : i32, i32
  }
  func.func @transform_1(%arg0: i32) -> (i32, i32) {
    %c0_i32 = arith.constant 0 : i32
    %c0_i32_0 = arith.constant 0 : i32
    %c0_i32_1 = arith.constant 0 : i32
    return %c0_i32, %c0_i32_0 : i32, i32
  }
  func.func @transform_2(%arg0: i32) -> (i32, i32) {
    %c0_i32 = arith.constant 0 : i32
    %c0_i32_0 = arith.constant 0 : i32
    %c0_i32_1 = arith.constant 0 : i32
    return %c0_i32, %c0_i32_0 : i32, i32
  }
  func.func @transform_3(%arg0: i32) -> (i32, i32) {
    %c0_i32 = arith.constant 0 : i32
    %c0_i32_0 = arith.constant 0 : i32
    %c0_i32_1 = arith.constant 0 : i32
    return %c0_i32, %c0_i32_0 : i32, i32
  }
  func.func @transform_4(%arg0: i32) -> (i32, i32) {
    %c0_i32 = arith.constant 0 : i32
    %c0_i32_0 = arith.constant 0 : i32
    %c0_i32_1 = arith.constant 0 : i32
    return %c0_i32, %c0_i32_0 : i32, i32
  }
  func.func @transform_5(%arg0: i32) -> (i32, i32) {
    %c0_i32 = arith.constant 0 : i32
    %c0_i32_0 = arith.constant 0 : i32
    %c0_i32_1 = arith.constant 0 : i32
    return %c0_i32, %c0_i32_0 : i32, i32
  }
  func.func @transform_6(%arg0: i32) -> (i32, i32) {
    %c0_i32 = arith.constant 0 : i32
    %c0_i32_0 = arith.constant 0 : i32
    %c0_i32_1 = arith.constant 0 : i32
    return %c0_i32, %c0_i32_0 : i32, i32
  }
  func.func @transform_7(%arg0: i32) -> (i32, i32) {
    %c0_i32 = arith.constant 0 : i32
    %c0_i32_0 = arith.constant 0 : i32
    return %arg0, %c0_i32 : i32, i32
  }
}

module attributes {stable_mosaic.version = 11 : i64} {
  func.func @kernel(%arg0: i32, %arg1: memref<256x72xbf16, #tpu.memory_space<vmem>>, %arg2: memref<72x32xbf16, #tpu.memory_space<vmem>>, %arg3: memref<1x32xf32, #tpu.memory_space<vmem>>, %arg4: memref<32x32xbf16, #tpu.memory_space<vmem>>, %arg5: memref<1x32xf32, #tpu.memory_space<vmem>>, %arg6: memref<32x64xbf16, #tpu.memory_space<vmem>>, %arg7: memref<1x64xf32, #tpu.memory_space<vmem>>, %arg8: memref<256x64xf32, #tpu.memory_space<vmem>>) attributes {dimension_semantics = [#tpu.dimension_semantics<parallel>], iteration_bounds = array<i64: 2>, scalar_prefetch = 0 : i64, scratch_operands = 0 : i64, tpu.core_type = #tpu.core_type<tc>, window_params = [{transform_indices = @transform_0, window_bounds = array<i64: 256, 72>}, {pipeline_mode = #tpu.pipeline_mode<synchronous>, transform_indices = @transform_1, window_bounds = array<i64: 72, 32>}, {pipeline_mode = #tpu.pipeline_mode<synchronous>, transform_indices = @transform_2, window_bounds = array<i64: 1, 32>}, {pipeline_mode = #tpu.pipeline_mode<synchronous>, transform_indices = @transform_3, window_bounds = array<i64: 32, 32>}, {pipeline_mode = #tpu.pipeline_mode<synchronous>, transform_indices = @transform_4, window_bounds = array<i64: 1, 32>}, {pipeline_mode = #tpu.pipeline_mode<synchronous>, transform_indices = @transform_5, window_bounds = array<i64: 32, 64>}, {pipeline_mode = #tpu.pipeline_mode<synchronous>, transform_indices = @transform_6, window_bounds = array<i64: 1, 64>}, {transform_indices = @transform_7, window_bounds = array<i64: 256, 64>}]} {
    %c0 = arith.constant 0 : index
    %c0_0 = arith.constant 0 : index
    %0 = vector.load %arg1[%c0, %c0_0] : memref<256x72xbf16, #tpu.memory_space<vmem>>, vector<256x72xbf16>
    %c0_1 = arith.constant 0 : index
    %c0_2 = arith.constant 0 : index
    %1 = vector.load %arg2[%c0_1, %c0_2] : memref<72x32xbf16, #tpu.memory_space<vmem>>, vector<72x32xbf16>
    %c0_3 = arith.constant 0 : index
    %c0_4 = arith.constant 0 : index
    %2 = vector.load %arg3[%c0_3, %c0_4] : memref<1x32xf32, #tpu.memory_space<vmem>>, vector<1x32xf32>
    %cst = arith.constant dense<0.000000e+00> : vector<256x32xf32>
    %3 = tpu.matmul %0, %1, %cst {dimension_numbers = #tpu.dot_dimension_numbers<[1], [0], [0], [1], [0, 0, 1, 1], [], []>} : vector<256x72xbf16>, vector<72x32xbf16>, vector<256x32xf32> -> vector<256x32xf32>
    %4 = vector.broadcast %2 : vector<1x32xf32> to vector<256x32xf32>
    %5 = arith.addf %3, %4 : vector<256x32xf32>
    %cst_5 = arith.constant 0.000000e+00 : f32
    %6 = vector.broadcast %cst_5 : f32 to vector<256x32xf32>
    %7 = arith.maximumf %5, %6 : vector<256x32xf32>
    %8 = arith.truncf %7 : vector<256x32xf32> to vector<256x32xbf16>
    %c0_6 = arith.constant 0 : index
    %c0_7 = arith.constant 0 : index
    %9 = vector.load %arg4[%c0_6, %c0_7] : memref<32x32xbf16, #tpu.memory_space<vmem>>, vector<32x32xbf16>
    %c0_8 = arith.constant 0 : index
    %c0_9 = arith.constant 0 : index
    %10 = vector.load %arg5[%c0_8, %c0_9] : memref<1x32xf32, #tpu.memory_space<vmem>>, vector<1x32xf32>
    %cst_10 = arith.constant dense<0.000000e+00> : vector<256x32xf32>
    %11 = tpu.matmul %8, %9, %cst_10 {dimension_numbers = #tpu.dot_dimension_numbers<[1], [0], [0], [1], [0, 0, 1, 1], [], []>} : vector<256x32xbf16>, vector<32x32xbf16>, vector<256x32xf32> -> vector<256x32xf32>
    %12 = vector.broadcast %10 : vector<1x32xf32> to vector<256x32xf32>
    %13 = arith.addf %11, %12 : vector<256x32xf32>
    %cst_11 = arith.constant 0.000000e+00 : f32
    %14 = vector.broadcast %cst_11 : f32 to vector<256x32xf32>
    %15 = arith.maximumf %13, %14 : vector<256x32xf32>
    %16 = arith.truncf %15 : vector<256x32xf32> to vector<256x32xbf16>
    %c0_12 = arith.constant 0 : index
    %c0_13 = arith.constant 0 : index
    %17 = vector.load %arg6[%c0_12, %c0_13] : memref<32x64xbf16, #tpu.memory_space<vmem>>, vector<32x64xbf16>
    %c0_14 = arith.constant 0 : index
    %c0_15 = arith.constant 0 : index
    %18 = vector.load %arg7[%c0_14, %c0_15] : memref<1x64xf32, #tpu.memory_space<vmem>>, vector<1x64xf32>
    %cst_16 = arith.constant dense<0.000000e+00> : vector<256x64xf32>
    %19 = tpu.matmul %16, %17, %cst_16 {dimension_numbers = #tpu.dot_dimension_numbers<[1], [0], [0], [1], [0, 0, 1, 1], [], []>} : vector<256x32xbf16>, vector<32x64xbf16>, vector<256x64xf32> -> vector<256x64xf32>
    %20 = vector.broadcast %18 : vector<1x64xf32> to vector<256x64xf32>
    %21 = arith.addf %19, %20 : vector<256x64xf32>
    %cst_17 = arith.constant 0.000000e+00 : f32
    %22 = vector.broadcast %cst_17 : f32 to vector<256x64xf32>
    %23 = arith.maximumf %21, %22 : vector<256x64xf32>
    %c0_18 = arith.constant 0 : index
    %c0_19 = arith.constant 0 : index
    %24 = vector.load %arg8[%c0_18, %c0_19] : memref<256x64xf32, #tpu.memory_space<vmem>>, vector<256x64xf32>
    tpu.vector_store %arg8[%c0_18, %c0_19], %23 {strides = array<i32>} : memref<256x64xf32, #tpu.memory_space<vmem>>, vector<256x64xf32>,
    return
  }
  func.func @transform_0(%arg0: i32) -> (i32, i32) {
    %c0_i32 = arith.constant 0 : i32
    %c0_i32_0 = arith.constant 0 : i32
    return %arg0, %c0_i32 : i32, i32
  }
  func.func @transform_1(%arg0: i32) -> (i32, i32) {
    %c0_i32 = arith.constant 0 : i32
    %c0_i32_0 = arith.constant 0 : i32
    %c0_i32_1 = arith.constant 0 : i32
    return %c0_i32, %c0_i32_0 : i32, i32
  }
  func.func @transform_2(%arg0: i32) -> (i32, i32) {
    %c0_i32 = arith.constant 0 : i32
    %c0_i32_0 = arith.constant 0 : i32
    %c0_i32_1 = arith.constant 0 : i32
    return %c0_i32, %c0_i32_0 : i32, i32
  }
  func.func @transform_3(%arg0: i32) -> (i32, i32) {
    %c0_i32 = arith.constant 0 : i32
    %c0_i32_0 = arith.constant 0 : i32
    %c0_i32_1 = arith.constant 0 : i32
    return %c0_i32, %c0_i32_0 : i32, i32
  }
  func.func @transform_4(%arg0: i32) -> (i32, i32) {
    %c0_i32 = arith.constant 0 : i32
    %c0_i32_0 = arith.constant 0 : i32
    %c0_i32_1 = arith.constant 0 : i32
    return %c0_i32, %c0_i32_0 : i32, i32
  }
  func.func @transform_5(%arg0: i32) -> (i32, i32) {
    %c0_i32 = arith.constant 0 : i32
    %c0_i32_0 = arith.constant 0 : i32
    %c0_i32_1 = arith.constant 0 : i32
    return %c0_i32, %c0_i32_0 : i32, i32
  }
  func.func @transform_6(%arg0: i32) -> (i32, i32) {
    %c0_i32 = arith.constant 0 : i32
    %c0_i32_0 = arith.constant 0 : i32
    %c0_i32_1 = arith.constant 0 : i32
    return %c0_i32, %c0_i32_0 : i32, i32
  }
  func.func @transform_7(%arg0: i32) -> (i32, i32) {
    %c0_i32 = arith.constant 0 : i32
    %c0_i32_0 = arith.constant 0 : i32
    return %arg0, %c0_i32 : i32, i32
  }
}

module attributes {stable_mosaic.version = 11 : i64} {
  func.func @kernel(%arg0: i32, %arg1: memref<256x72xbf16, #tpu.memory_space<vmem>>, %arg2: memref<72x32xbf16, #tpu.memory_space<vmem>>, %arg3: memref<1x32xf32, #tpu.memory_space<vmem>>, %arg4: memref<32x32xbf16, #tpu.memory_space<vmem>>, %arg5: memref<1x32xf32, #tpu.memory_space<vmem>>, %arg6: memref<32x64xbf16, #tpu.memory_space<vmem>>, %arg7: memref<1x64xf32, #tpu.memory_space<vmem>>, %arg8: memref<256x64xf32, #tpu.memory_space<vmem>>) attributes {dimension_semantics = [#tpu.dimension_semantics<parallel>], iteration_bounds = array<i64: 4>, scalar_prefetch = 0 : i64, scratch_operands = 0 : i64, tpu.core_type = #tpu.core_type<tc>, window_params = [{transform_indices = @transform_0, window_bounds = array<i64: 256, 72>}, {pipeline_mode = #tpu.pipeline_mode<synchronous>, transform_indices = @transform_1, window_bounds = array<i64: 72, 32>}, {pipeline_mode = #tpu.pipeline_mode<synchronous>, transform_indices = @transform_2, window_bounds = array<i64: 1, 32>}, {pipeline_mode = #tpu.pipeline_mode<synchronous>, transform_indices = @transform_3, window_bounds = array<i64: 32, 32>}, {pipeline_mode = #tpu.pipeline_mode<synchronous>, transform_indices = @transform_4, window_bounds = array<i64: 1, 32>}, {pipeline_mode = #tpu.pipeline_mode<synchronous>, transform_indices = @transform_5, window_bounds = array<i64: 32, 64>}, {pipeline_mode = #tpu.pipeline_mode<synchronous>, transform_indices = @transform_6, window_bounds = array<i64: 1, 64>}, {transform_indices = @transform_7, window_bounds = array<i64: 256, 64>}]} {
    %c0 = arith.constant 0 : index
    %c0_0 = arith.constant 0 : index
    %0 = vector.load %arg1[%c0, %c0_0] : memref<256x72xbf16, #tpu.memory_space<vmem>>, vector<256x72xbf16>
    %c0_1 = arith.constant 0 : index
    %c0_2 = arith.constant 0 : index
    %1 = vector.load %arg2[%c0_1, %c0_2] : memref<72x32xbf16, #tpu.memory_space<vmem>>, vector<72x32xbf16>
    %c0_3 = arith.constant 0 : index
    %c0_4 = arith.constant 0 : index
    %2 = vector.load %arg3[%c0_3, %c0_4] : memref<1x32xf32, #tpu.memory_space<vmem>>, vector<1x32xf32>
    %cst = arith.constant dense<0.000000e+00> : vector<256x32xf32>
    %3 = tpu.matmul %0, %1, %cst {dimension_numbers = #tpu.dot_dimension_numbers<[1], [0], [0], [1], [0, 0, 1, 1], [], []>} : vector<256x72xbf16>, vector<72x32xbf16>, vector<256x32xf32> -> vector<256x32xf32>
    %4 = vector.broadcast %2 : vector<1x32xf32> to vector<256x32xf32>
    %5 = arith.addf %3, %4 : vector<256x32xf32>
    %cst_5 = arith.constant 0.000000e+00 : f32
    %6 = vector.broadcast %cst_5 : f32 to vector<256x32xf32>
    %7 = arith.maximumf %5, %6 : vector<256x32xf32>
    %8 = arith.truncf %7 : vector<256x32xf32> to vector<256x32xbf16>
    %c0_6 = arith.constant 0 : index
    %c0_7 = arith.constant 0 : index
    %9 = vector.load %arg4[%c0_6, %c0_7] : memref<32x32xbf16, #tpu.memory_space<vmem>>, vector<32x32xbf16>
    %c0_8 = arith.constant 0 : index
    %c0_9 = arith.constant 0 : index
    %10 = vector.load %arg5[%c0_8, %c0_9] : memref<1x32xf32, #tpu.memory_space<vmem>>, vector<1x32xf32>
    %cst_10 = arith.constant dense<0.000000e+00> : vector<256x32xf32>
    %11 = tpu.matmul %8, %9, %cst_10 {dimension_numbers = #tpu.dot_dimension_numbers<[1], [0], [0], [1], [0, 0, 1, 1], [], []>} : vector<256x32xbf16>, vector<32x32xbf16>, vector<256x32xf32> -> vector<256x32xf32>
    %12 = vector.broadcast %10 : vector<1x32xf32> to vector<256x32xf32>
    %13 = arith.addf %11, %12 : vector<256x32xf32>
    %cst_11 = arith.constant 0.000000e+00 : f32
    %14 = vector.broadcast %cst_11 : f32 to vector<256x32xf32>
    %15 = arith.maximumf %13, %14 : vector<256x32xf32>
    %16 = arith.truncf %15 : vector<256x32xf32> to vector<256x32xbf16>
    %c0_12 = arith.constant 0 : index
    %c0_13 = arith.constant 0 : index
    %17 = vector.load %arg6[%c0_12, %c0_13] : memref<32x64xbf16, #tpu.memory_space<vmem>>, vector<32x64xbf16>
    %c0_14 = arith.constant 0 : index
    %c0_15 = arith.constant 0 : index
    %18 = vector.load %arg7[%c0_14, %c0_15] : memref<1x64xf32, #tpu.memory_space<vmem>>, vector<1x64xf32>
    %cst_16 = arith.constant dense<0.000000e+00> : vector<256x64xf32>
    %19 = tpu.matmul %16, %17, %cst_16 {dimension_numbers = #tpu.dot_dimension_numbers<[1], [0], [0], [1], [0, 0, 1, 1], [], []>} : vector<256x32xbf16>, vector<32x64xbf16>, vector<256x64xf32> -> vector<256x64xf32>
    %20 = vector.broadcast %18 : vector<1x64xf32> to vector<256x64xf32>
    %21 = arith.addf %19, %20 : vector<256x64xf32>
    %cst_17 = arith.constant 0.000000e+00 : f32
    %22 = vector.broadcast %cst_17 : f32 to vector<256x64xf32>
    %23 = arith.maximumf %21, %22 : vector<256x64xf32>
    %c0_18 = arith.constant 0 : index
    %c0_19 = arith.constant 0 : index
    %24 = vector.load %arg8[%c0_18, %c0_19] : memref<256x64xf32, #tpu.memory_space<vmem>>, vector<256x64xf32>
    tpu.vector_store %arg8[%c0_18, %c0_19], %23 {strides = array<i32>} : memref<256x64xf32, #tpu.memory_space<vmem>>, vector<256x64xf32>,
    return
  }
  func.func @transform_0(%arg0: i32) -> (i32, i32) {
    %c0_i32 = arith.constant 0 : i32
    %c0_i32_0 = arith.constant 0 : i32
    return %arg0, %c0_i32 : i32, i32
  }
  func.func @transform_1(%arg0: i32) -> (i32, i32) {
    %c0_i32 = arith.constant 0 : i32
    %c0_i32_0 = arith.constant 0 : i32
    %c0_i32_1 = arith.constant 0 : i32
    return %c0_i32, %c0_i32_0 : i32, i32
  }
  func.func @transform_2(%arg0: i32) -> (i32, i32) {
    %c0_i32 = arith.constant 0 : i32
    %c0_i32_0 = arith.constant 0 : i32
    %c0_i32_1 = arith.constant 0 : i32
    return %c0_i32, %c0_i32_0 : i32, i32
  }
  func.func @transform_3(%arg0: i32) -> (i32, i32) {
    %c0_i32 = arith.constant 0 : i32
    %c0_i32_0 = arith.constant 0 : i32
    %c0_i32_1 = arith.constant 0 : i32
    return %c0_i32, %c0_i32_0 : i32, i32
  }
  func.func @transform_4(%arg0: i32) -> (i32, i32) {
    %c0_i32 = arith.constant 0 : i32
    %c0_i32_0 = arith.constant 0 : i32
    %c0_i32_1 = arith.constant 0 : i32
    return %c0_i32, %c0_i32_0 : i32, i32
  }
  func.func @transform_5(%arg0: i32) -> (i32, i32) {
    %c0_i32 = arith.constant 0 : i32
    %c0_i32_0 = arith.constant 0 : i32
    %c0_i32_1 = arith.constant 0 : i32
    return %c0_i32, %c0_i32_0 : i32, i32
  }
  func.func @transform_6(%arg0: i32) -> (i32, i32) {
    %c0_i32 = arith.constant 0 : i32
    %c0_i32_0 = arith.constant 0 : i32
    %c0_i32_1 = arith.constant 0 : i32
    return %c0_i32, %c0_i32_0 : i32, i32
  }
  func.func @transform_7(%arg0: i32) -> (i32, i32) {
    %c0_i32 = arith.constant 0 : i32
    %c0_i32_0 = arith.constant 0 : i32
    return %arg0, %c0_i32 : i32, i32
  }
}

module attributes {stable_mosaic.version = 11 : i64} {
  func.func @kernel(%arg0: i32, %arg1: memref<64x384xbf16, #tpu.memory_space<vmem>>, %arg2: memref<384x128xbf16, #tpu.memory_space<vmem>>, %arg3: memref<1x128xf32, #tpu.memory_space<vmem>>, %arg4: memref<128x128xbf16, #tpu.memory_space<vmem>>, %arg5: memref<1x128xf32, #tpu.memory_space<vmem>>, %arg6: memref<64x128xf32, #tpu.memory_space<vmem>>) attributes {dimension_semantics = [#tpu.dimension_semantics<parallel>], iteration_bounds = array<i64: 1>, scalar_prefetch = 0 : i64, scratch_operands = 0 : i64, tpu.core_type = #tpu.core_type<tc>, window_params = [{transform_indices = @transform_0, window_bounds = array<i64: 64, 384>}, {pipeline_mode = #tpu.pipeline_mode<synchronous>, transform_indices = @transform_1, window_bounds = array<i64: 384, 128>}, {pipeline_mode = #tpu.pipeline_mode<synchronous>, transform_indices = @transform_2, window_bounds = array<i64: 1, 128>}, {pipeline_mode = #tpu.pipeline_mode<synchronous>, transform_indices = @transform_3, window_bounds = array<i64: 128, 128>}, {pipeline_mode = #tpu.pipeline_mode<synchronous>, transform_indices = @transform_4, window_bounds = array<i64: 1, 128>}, {transform_indices = @transform_5, window_bounds = array<i64: 64, 128>}]} {
    %c0 = arith.constant 0 : index
    %c0_0 = arith.constant 0 : index
    %0 = vector.load %arg1[%c0, %c0_0] : memref<64x384xbf16, #tpu.memory_space<vmem>>, vector<64x384xbf16>
    %c0_1 = arith.constant 0 : index
    %c0_2 = arith.constant 0 : index
    %1 = vector.load %arg2[%c0_1, %c0_2] : memref<384x128xbf16, #tpu.memory_space<vmem>>, vector<384x128xbf16>
    %c0_3 = arith.constant 0 : index
    %c0_4 = arith.constant 0 : index
    %2 = vector.load %arg3[%c0_3, %c0_4] : memref<1x128xf32, #tpu.memory_space<vmem>>, vector<1x128xf32>
    %cst = arith.constant dense<0.000000e+00> : vector<64x128xf32>
    %3 = tpu.matmul %0, %1, %cst {dimension_numbers = #tpu.dot_dimension_numbers<[1], [0], [0], [1], [0, 0, 1, 1], [], []>} : vector<64x384xbf16>, vector<384x128xbf16>, vector<64x128xf32> -> vector<64x128xf32>
    %4 = vector.broadcast %2 : vector<1x128xf32> to vector<64x128xf32>
    %5 = arith.addf %3, %4 : vector<64x128xf32>
    %cst_5 = arith.constant 0.000000e+00 : f32
    %6 = vector.broadcast %cst_5 : f32 to vector<64x128xf32>
    %7 = arith.maximumf %5, %6 : vector<64x128xf32>
    %8 = arith.truncf %7 : vector<64x128xf32> to vector<64x128xbf16>
    %c0_6 = arith.constant 0 : index
    %c0_7 = arith.constant 0 : index
    %9 = vector.load %arg4[%c0_6, %c0_7] : memref<128x128xbf16, #tpu.memory_space<vmem>>, vector<128x128xbf16>
    %c0_8 = arith.constant 0 : index
    %c0_9 = arith.constant 0 : index
    %10 = vector.load %arg5[%c0_8, %c0_9] : memref<1x128xf32, #tpu.memory_space<vmem>>, vector<1x128xf32>
    %cst_10 = arith.constant dense<0.000000e+00> : vector<64x128xf32>
    %11 = tpu.matmul %8, %9, %cst_10 {dimension_numbers = #tpu.dot_dimension_numbers<[1], [0], [0], [1], [0, 0, 1, 1], [], []>} : vector<64x128xbf16>, vector<128x128xbf16>, vector<64x128xf32> -> vector<64x128xf32>
    %12 = vector.broadcast %10 : vector<1x128xf32> to vector<64x128xf32>
    %13 = arith.addf %11, %12 : vector<64x128xf32>
    %cst_11 = arith.constant 0.000000e+00 : f32
    %14 = vector.broadcast %cst_11 : f32 to vector<64x128xf32>
    %15 = arith.maximumf %13, %14 : vector<64x128xf32>
    %c0_12 = arith.constant 0 : index
    %c0_13 = arith.constant 0 : index
    %16 = vector.load %arg6[%c0_12, %c0_13] : memref<64x128xf32, #tpu.memory_space<vmem>>, vector<64x128xf32>
    tpu.vector_store %arg6[%c0_12, %c0_13], %15 {strides = array<i32>} : memref<64x128xf32, #tpu.memory_space<vmem>>, vector<64x128xf32>,
    return
  }
  func.func @transform_0(%arg0: i32) -> (i32, i32) {
    %c0_i32 = arith.constant 0 : i32
    %c0_i32_0 = arith.constant 0 : i32
    return %arg0, %c0_i32 : i32, i32
  }
  func.func @transform_1(%arg0: i32) -> (i32, i32) {
    %c0_i32 = arith.constant 0 : i32
    %c0_i32_0 = arith.constant 0 : i32
    %c0_i32_1 = arith.constant 0 : i32
    return %c0_i32, %c0_i32_0 : i32, i32
  }
  func.func @transform_2(%arg0: i32) -> (i32, i32) {
    %c0_i32 = arith.constant 0 : i32
    %c0_i32_0 = arith.constant 0 : i32
    %c0_i32_1 = arith.constant 0 : i32
    return %c0_i32, %c0_i32_0 : i32, i32
  }
  func.func @transform_3(%arg0: i32) -> (i32, i32) {
    %c0_i32 = arith.constant 0 : i32
    %c0_i32_0 = arith.constant 0 : i32
    %c0_i32_1 = arith.constant 0 : i32
    return %c0_i32, %c0_i32_0 : i32, i32
  }
  func.func @transform_4(%arg0: i32) -> (i32, i32) {
    %c0_i32 = arith.constant 0 : i32
    %c0_i32_0 = arith.constant 0 : i32
    %c0_i32_1 = arith.constant 0 : i32
    return %c0_i32, %c0_i32_0 : i32, i32
  }
  func.func @transform_5(%arg0: i32) -> (i32, i32) {
    %c0_i32 = arith.constant 0 : i32
    %c0_i32_0 = arith.constant 0 : i32
    return %arg0, %c0_i32 : i32, i32
  }
}

module attributes {stable_mosaic.version = 11 : i64} {
  func.func @kernel(%arg0: i32, %arg1: memref<64x136xbf16, #tpu.memory_space<vmem>>, %arg2: memref<136x64xbf16, #tpu.memory_space<vmem>>, %arg3: memref<1x64xf32, #tpu.memory_space<vmem>>, %arg4: memref<64x128xbf16, #tpu.memory_space<vmem>>, %arg5: memref<1x128xf32, #tpu.memory_space<vmem>>, %arg6: memref<128x256xbf16, #tpu.memory_space<vmem>>, %arg7: memref<1x256xf32, #tpu.memory_space<vmem>>, %arg8: memref<64x256xf32, #tpu.memory_space<vmem>>) attributes {dimension_semantics = [#tpu.dimension_semantics<parallel>], iteration_bounds = array<i64: 1>, scalar_prefetch = 0 : i64, scratch_operands = 0 : i64, tpu.core_type = #tpu.core_type<tc>, window_params = [{transform_indices = @transform_0, window_bounds = array<i64: 64, 136>}, {pipeline_mode = #tpu.pipeline_mode<synchronous>, transform_indices = @transform_1, window_bounds = array<i64: 136, 64>}, {pipeline_mode = #tpu.pipeline_mode<synchronous>, transform_indices = @transform_2, window_bounds = array<i64: 1, 64>}, {pipeline_mode = #tpu.pipeline_mode<synchronous>, transform_indices = @transform_3, window_bounds = array<i64: 64, 128>}, {pipeline_mode = #tpu.pipeline_mode<synchronous>, transform_indices = @transform_4, window_bounds = array<i64: 1, 128>}, {pipeline_mode = #tpu.pipeline_mode<synchronous>, transform_indices = @transform_5, window_bounds = array<i64: 128, 256>}, {pipeline_mode = #tpu.pipeline_mode<synchronous>, transform_indices = @transform_6, window_bounds = array<i64: 1, 256>}, {transform_indices = @transform_7, window_bounds = array<i64: 64, 256>}]} {
    %c0 = arith.constant 0 : index
    %c0_0 = arith.constant 0 : index
    %0 = vector.load %arg1[%c0, %c0_0] : memref<64x136xbf16, #tpu.memory_space<vmem>>, vector<64x136xbf16>
    %c0_1 = arith.constant 0 : index
    %c0_2 = arith.constant 0 : index
    %1 = vector.load %arg2[%c0_1, %c0_2] : memref<136x64xbf16, #tpu.memory_space<vmem>>, vector<136x64xbf16>
    %c0_3 = arith.constant 0 : index
    %c0_4 = arith.constant 0 : index
    %2 = vector.load %arg3[%c0_3, %c0_4] : memref<1x64xf32, #tpu.memory_space<vmem>>, vector<1x64xf32>
    %cst = arith.constant dense<0.000000e+00> : vector<64x64xf32>
    %3 = tpu.matmul %0, %1, %cst {dimension_numbers = #tpu.dot_dimension_numbers<[1], [0], [0], [1], [0, 0, 1, 1], [], []>} : vector<64x136xbf16>, vector<136x64xbf16>, vector<64x64xf32> -> vector<64x64xf32>
    %4 = vector.broadcast %2 : vector<1x64xf32> to vector<64x64xf32>
    %5 = arith.addf %3, %4 : vector<64x64xf32>
    %cst_5 = arith.constant 0.000000e+00 : f32
    %6 = vector.broadcast %cst_5 : f32 to vector<64x64xf32>
    %7 = arith.maximumf %5, %6 : vector<64x64xf32>
    %8 = arith.truncf %7 : vector<64x64xf32> to vector<64x64xbf16>
    %c0_6 = arith.constant 0 : index
    %c0_7 = arith.constant 0 : index
    %9 = vector.load %arg4[%c0_6, %c0_7] : memref<64x128xbf16, #tpu.memory_space<vmem>>, vector<64x128xbf16>
    %c0_8 = arith.constant 0 : index
    %c0_9 = arith.constant 0 : index
    %10 = vector.load %arg5[%c0_8, %c0_9] : memref<1x128xf32, #tpu.memory_space<vmem>>, vector<1x128xf32>
    %cst_10 = arith.constant dense<0.000000e+00> : vector<64x128xf32>
    %11 = tpu.matmul %8, %9, %cst_10 {dimension_numbers = #tpu.dot_dimension_numbers<[1], [0], [0], [1], [0, 0, 1, 1], [], []>} : vector<64x64xbf16>, vector<64x128xbf16>, vector<64x128xf32> -> vector<64x128xf32>
    %12 = vector.broadcast %10 : vector<1x128xf32> to vector<64x128xf32>
    %13 = arith.addf %11, %12 : vector<64x128xf32>
    %cst_11 = arith.constant 0.000000e+00 : f32
    %14 = vector.broadcast %cst_11 : f32 to vector<64x128xf32>
    %15 = arith.maximumf %13, %14 : vector<64x128xf32>
    %16 = arith.truncf %15 : vector<64x128xf32> to vector<64x128xbf16>
    %c0_12 = arith.constant 0 : index
    %c0_13 = arith.constant 0 : index
    %17 = vector.load %arg6[%c0_12, %c0_13] : memref<128x256xbf16, #tpu.memory_space<vmem>>, vector<128x256xbf16>
    %c0_14 = arith.constant 0 : index
    %c0_15 = arith.constant 0 : index
    %18 = vector.load %arg7[%c0_14, %c0_15] : memref<1x256xf32, #tpu.memory_space<vmem>>, vector<1x256xf32>
    %cst_16 = arith.constant dense<0.000000e+00> : vector<64x256xf32>
    %19 = tpu.matmul %16, %17, %cst_16 {dimension_numbers = #tpu.dot_dimension_numbers<[1], [0], [0], [1], [0, 0, 1, 1], [], []>} : vector<64x128xbf16>, vector<128x256xbf16>, vector<64x256xf32> -> vector<64x256xf32>
    %20 = vector.broadcast %18 : vector<1x256xf32> to vector<64x256xf32>
    %21 = arith.addf %19, %20 : vector<64x256xf32>
    %cst_17 = arith.constant 0.000000e+00 : f32
    %22 = vector.broadcast %cst_17 : f32 to vector<64x256xf32>
    %23 = arith.maximumf %21, %22 : vector<64x256xf32>
    %c0_18 = arith.constant 0 : index
    %c0_19 = arith.constant 0 : index
    %24 = vector.load %arg8[%c0_18, %c0_19] : memref<64x256xf32, #tpu.memory_space<vmem>>, vector<64x256xf32>
    tpu.vector_store %arg8[%c0_18, %c0_19], %23 {strides = array<i32>} : memref<64x256xf32, #tpu.memory_space<vmem>>, vector<64x256xf32>,
    return
  }
  func.func @transform_0(%arg0: i32) -> (i32, i32) {
    %c0_i32 = arith.constant 0 : i32
    %c0_i32_0 = arith.constant 0 : i32
    return %arg0, %c0_i32 : i32, i32
  }
  func.func @transform_1(%arg0: i32) -> (i32, i32) {
    %c0_i32 = arith.constant 0 : i32
    %c0_i32_0 = arith.constant 0 : i32
    %c0_i32_1 = arith.constant 0 : i32
    return %c0_i32, %c0_i32_0 : i32, i32
  }
  func.func @transform_2(%arg0: i32) -> (i32, i32) {
    %c0_i32 = arith.constant 0 : i32
    %c0_i32_0 = arith.constant 0 : i32
    %c0_i32_1 = arith.constant 0 : i32
    return %c0_i32, %c0_i32_0 : i32, i32
  }
  func.func @transform_3(%arg0: i32) -> (i32, i32) {
    %c0_i32 = arith.constant 0 : i32
    %c0_i32_0 = arith.constant 0 : i32
    %c0_i32_1 = arith.constant 0 : i32
    return %c0_i32, %c0_i32_0 : i32, i32
  }
  func.func @transform_4(%arg0: i32) -> (i32, i32) {
    %c0_i32 = arith.constant 0 : i32
    %c0_i32_0 = arith.constant 0 : i32
    %c0_i32_1 = arith.constant 0 : i32
    return %c0_i32, %c0_i32_0 : i32, i32
  }
  func.func @transform_5(%arg0: i32) -> (i32, i32) {
    %c0_i32 = arith.constant 0 : i32
    %c0_i32_0 = arith.constant 0 : i32
    %c0_i32_1 = arith.constant 0 : i32
    return %c0_i32, %c0_i32_0 : i32, i32
  }
  func.func @transform_6(%arg0: i32) -> (i32, i32) {
    %c0_i32 = arith.constant 0 : i32
    %c0_i32_0 = arith.constant 0 : i32
    %c0_i32_1 = arith.constant 0 : i32
    return %c0_i32, %c0_i32_0 : i32, i32
  }
  func.func @transform_7(%arg0: i32) -> (i32, i32) {
    %c0_i32 = arith.constant 0 : i32
    %c0_i32_0 = arith.constant 0 : i32
    return %arg0, %c0_i32 : i32, i32
  }
}

module attributes {stable_mosaic.version = 11 : i64} {
  func.func @kernel(%arg0: i32, %arg1: memref<128x192xbf16, #tpu.memory_space<vmem>>, %arg2: memref<192x128xbf16, #tpu.memory_space<vmem>>, %arg3: memref<1x128xf32, #tpu.memory_space<vmem>>, %arg4: memref<128x64xbf16, #tpu.memory_space<vmem>>, %arg5: memref<1x64xf32, #tpu.memory_space<vmem>>, %arg6: memref<128x64xf32, #tpu.memory_space<vmem>>) attributes {dimension_semantics = [#tpu.dimension_semantics<parallel>], iteration_bounds = array<i64: 1>, scalar_prefetch = 0 : i64, scratch_operands = 0 : i64, tpu.core_type = #tpu.core_type<tc>, window_params = [{transform_indices = @transform_0, window_bounds = array<i64: 128, 192>}, {pipeline_mode = #tpu.pipeline_mode<synchronous>, transform_indices = @transform_1, window_bounds = array<i64: 192, 128>}, {pipeline_mode = #tpu.pipeline_mode<synchronous>, transform_indices = @transform_2, window_bounds = array<i64: 1, 128>}, {pipeline_mode = #tpu.pipeline_mode<synchronous>, transform_indices = @transform_3, window_bounds = array<i64: 128, 64>}, {pipeline_mode = #tpu.pipeline_mode<synchronous>, transform_indices = @transform_4, window_bounds = array<i64: 1, 64>}, {transform_indices = @transform_5, window_bounds = array<i64: 128, 64>}]} {
    %c0 = arith.constant 0 : index
    %c0_0 = arith.constant 0 : index
    %0 = vector.load %arg1[%c0, %c0_0] : memref<128x192xbf16, #tpu.memory_space<vmem>>, vector<128x192xbf16>
    %c0_1 = arith.constant 0 : index
    %c0_2 = arith.constant 0 : index
    %1 = vector.load %arg2[%c0_1, %c0_2] : memref<192x128xbf16, #tpu.memory_space<vmem>>, vector<192x128xbf16>
    %c0_3 = arith.constant 0 : index
    %c0_4 = arith.constant 0 : index
    %2 = vector.load %arg3[%c0_3, %c0_4] : memref<1x128xf32, #tpu.memory_space<vmem>>, vector<1x128xf32>
    %cst = arith.constant dense<0.000000e+00> : vector<128x128xf32>
    %3 = tpu.matmul %0, %1, %cst {dimension_numbers = #tpu.dot_dimension_numbers<[1], [0], [0], [1], [0, 0, 1, 1], [], []>} : vector<128x192xbf16>, vector<192x128xbf16>, vector<128x128xf32> -> vector<128x128xf32>
    %4 = vector.broadcast %2 : vector<1x128xf32> to vector<128x128xf32>
    %5 = arith.addf %3, %4 : vector<128x128xf32>
    %cst_5 = arith.constant 0.000000e+00 : f32
    %6 = vector.broadcast %cst_5 : f32 to vector<128x128xf32>
    %7 = arith.maximumf %5, %6 : vector<128x128xf32>
    %8 = arith.truncf %7 : vector<128x128xf32> to vector<128x128xbf16>
    %c0_6 = arith.constant 0 : index
    %c0_7 = arith.constant 0 : index
    %9 = vector.load %arg4[%c0_6, %c0_7] : memref<128x64xbf16, #tpu.memory_space<vmem>>, vector<128x64xbf16>
    %c0_8 = arith.constant 0 : index
    %c0_9 = arith.constant 0 : index
    %10 = vector.load %arg5[%c0_8, %c0_9] : memref<1x64xf32, #tpu.memory_space<vmem>>, vector<1x64xf32>
    %cst_10 = arith.constant dense<0.000000e+00> : vector<128x64xf32>
    %11 = tpu.matmul %8, %9, %cst_10 {dimension_numbers = #tpu.dot_dimension_numbers<[1], [0], [0], [1], [0, 0, 1, 1], [], []>} : vector<128x128xbf16>, vector<128x64xbf16>, vector<128x64xf32> -> vector<128x64xf32>
    %12 = vector.broadcast %10 : vector<1x64xf32> to vector<128x64xf32>
    %13 = arith.addf %11, %12 : vector<128x64xf32>
    %cst_11 = arith.constant 0.000000e+00 : f32
    %14 = vector.broadcast %cst_11 : f32 to vector<128x64xf32>
    %15 = arith.maximumf %13, %14 : vector<128x64xf32>
    %c0_12 = arith.constant 0 : index
    %c0_13 = arith.constant 0 : index
    %16 = vector.load %arg6[%c0_12, %c0_13] : memref<128x64xf32, #tpu.memory_space<vmem>>, vector<128x64xf32>
    tpu.vector_store %arg6[%c0_12, %c0_13], %15 {strides = array<i32>} : memref<128x64xf32, #tpu.memory_space<vmem>>, vector<128x64xf32>,
    return
  }
  func.func @transform_0(%arg0: i32) -> (i32, i32) {
    %c0_i32 = arith.constant 0 : i32
    %c0_i32_0 = arith.constant 0 : i32
    return %arg0, %c0_i32 : i32, i32
  }
  func.func @transform_1(%arg0: i32) -> (i32, i32) {
    %c0_i32 = arith.constant 0 : i32
    %c0_i32_0 = arith.constant 0 : i32
    %c0_i32_1 = arith.constant 0 : i32
    return %c0_i32, %c0_i32_0 : i32, i32
  }
  func.func @transform_2(%arg0: i32) -> (i32, i32) {
    %c0_i32 = arith.constant 0 : i32
    %c0_i32_0 = arith.constant 0 : i32
    %c0_i32_1 = arith.constant 0 : i32
    return %c0_i32, %c0_i32_0 : i32, i32
  }
  func.func @transform_3(%arg0: i32) -> (i32, i32) {
    %c0_i32 = arith.constant 0 : i32
    %c0_i32_0 = arith.constant 0 : i32
    %c0_i32_1 = arith.constant 0 : i32
    return %c0_i32, %c0_i32_0 : i32, i32
  }
  func.func @transform_4(%arg0: i32) -> (i32, i32) {
    %c0_i32 = arith.constant 0 : i32
    %c0_i32_0 = arith.constant 0 : i32
    %c0_i32_1 = arith.constant 0 : i32
    return %c0_i32, %c0_i32_0 : i32, i32
  }
  func.func @transform_5(%arg0: i32) -> (i32, i32) {
    %c0_i32 = arith.constant 0 : i32
    %c0_i32_0 = arith.constant 0 : i32
    return %arg0, %c0_i32 : i32, i32
  }
}

module attributes {stable_mosaic.version = 11 : i64} {
  func.func @kernel(%arg0: i32, %arg1: memref<128x72xbf16, #tpu.memory_space<vmem>>, %arg2: memref<72x64xbf16, #tpu.memory_space<vmem>>, %arg3: memref<1x64xf32, #tpu.memory_space<vmem>>, %arg4: memref<64x128xbf16, #tpu.memory_space<vmem>>, %arg5: memref<1x128xf32, #tpu.memory_space<vmem>>, %arg6: memref<128x128xbf16, #tpu.memory_space<vmem>>, %arg7: memref<1x128xf32, #tpu.memory_space<vmem>>, %arg8: memref<128x128xf32, #tpu.memory_space<vmem>>) attributes {dimension_semantics = [#tpu.dimension_semantics<parallel>], iteration_bounds = array<i64: 2>, scalar_prefetch = 0 : i64, scratch_operands = 0 : i64, tpu.core_type = #tpu.core_type<tc>, window_params = [{transform_indices = @transform_0, window_bounds = array<i64: 128, 72>}, {pipeline_mode = #tpu.pipeline_mode<synchronous>, transform_indices = @transform_1, window_bounds = array<i64: 72, 64>}, {pipeline_mode = #tpu.pipeline_mode<synchronous>, transform_indices = @transform_2, window_bounds = array<i64: 1, 64>}, {pipeline_mode = #tpu.pipeline_mode<synchronous>, transform_indices = @transform_3, window_bounds = array<i64: 64, 128>}, {pipeline_mode = #tpu.pipeline_mode<synchronous>, transform_indices = @transform_4, window_bounds = array<i64: 1, 128>}, {pipeline_mode = #tpu.pipeline_mode<synchronous>, transform_indices = @transform_5, window_bounds = array<i64: 128, 128>}, {pipeline_mode = #tpu.pipeline_mode<synchronous>, transform_indices = @transform_6, window_bounds = array<i64: 1, 128>}, {transform_indices = @transform_7, window_bounds = array<i64: 128, 128>}]} {
    %c0 = arith.constant 0 : index
    %c0_0 = arith.constant 0 : index
    %0 = vector.load %arg1[%c0, %c0_0] : memref<128x72xbf16, #tpu.memory_space<vmem>>, vector<128x72xbf16>
    %c0_1 = arith.constant 0 : index
    %c0_2 = arith.constant 0 : index
    %1 = vector.load %arg2[%c0_1, %c0_2] : memref<72x64xbf16, #tpu.memory_space<vmem>>, vector<72x64xbf16>
    %c0_3 = arith.constant 0 : index
    %c0_4 = arith.constant 0 : index
    %2 = vector.load %arg3[%c0_3, %c0_4] : memref<1x64xf32, #tpu.memory_space<vmem>>, vector<1x64xf32>
    %cst = arith.constant dense<0.000000e+00> : vector<128x64xf32>
    %3 = tpu.matmul %0, %1, %cst {dimension_numbers = #tpu.dot_dimension_numbers<[1], [0], [0], [1], [0, 0, 1, 1], [], []>} : vector<128x72xbf16>, vector<72x64xbf16>, vector<128x64xf32> -> vector<128x64xf32>
    %4 = vector.broadcast %2 : vector<1x64xf32> to vector<128x64xf32>
    %5 = arith.addf %3, %4 : vector<128x64xf32>
    %cst_5 = arith.constant 0.000000e+00 : f32
    %6 = vector.broadcast %cst_5 : f32 to vector<128x64xf32>
    %7 = arith.maximumf %5, %6 : vector<128x64xf32>
    %8 = arith.truncf %7 : vector<128x64xf32> to vector<128x64xbf16>
    %c0_6 = arith.constant 0 : index
    %c0_7 = arith.constant 0 : index
    %9 = vector.load %arg4[%c0_6, %c0_7] : memref<64x128xbf16, #tpu.memory_space<vmem>>, vector<64x128xbf16>
    %c0_8 = arith.constant 0 : index
    %c0_9 = arith.constant 0 : index
    %10 = vector.load %arg5[%c0_8, %c0_9] : memref<1x128xf32, #tpu.memory_space<vmem>>, vector<1x128xf32>
    %cst_10 = arith.constant dense<0.000000e+00> : vector<128x128xf32>
    %11 = tpu.matmul %8, %9, %cst_10 {dimension_numbers = #tpu.dot_dimension_numbers<[1], [0], [0], [1], [0, 0, 1, 1], [], []>} : vector<128x64xbf16>, vector<64x128xbf16>, vector<128x128xf32> -> vector<128x128xf32>
    %12 = vector.broadcast %10 : vector<1x128xf32> to vector<128x128xf32>
    %13 = arith.addf %11, %12 : vector<128x128xf32>
    %cst_11 = arith.constant 0.000000e+00 : f32
    %14 = vector.broadcast %cst_11 : f32 to vector<128x128xf32>
    %15 = arith.maximumf %13, %14 : vector<128x128xf32>
    %16 = arith.truncf %15 : vector<128x128xf32> to vector<128x128xbf16>
    %c0_12 = arith.constant 0 : index
    %c0_13 = arith.constant 0 : index
    %17 = vector.load %arg6[%c0_12, %c0_13] : memref<128x128xbf16, #tpu.memory_space<vmem>>, vector<128x128xbf16>
    %c0_14 = arith.constant 0 : index
    %c0_15 = arith.constant 0 : index
    %18 = vector.load %arg7[%c0_14, %c0_15] : memref<1x128xf32, #tpu.memory_space<vmem>>, vector<1x128xf32>
    %cst_16 = arith.constant dense<0.000000e+00> : vector<128x128xf32>
    %19 = tpu.matmul %16, %17, %cst_16 {dimension_numbers = #tpu.dot_dimension_numbers<[1], [0], [0], [1], [0, 0, 1, 1], [], []>} : vector<128x128xbf16>, vector<128x128xbf16>, vector<128x128xf32> -> vector<128x128xf32>
    %20 = vector.broadcast %18 : vector<1x128xf32> to vector<128x128xf32>
    %21 = arith.addf %19, %20 : vector<128x128xf32>
    %cst_17 = arith.constant 0.000000e+00 : f32
    %22 = vector.broadcast %cst_17 : f32 to vector<128x128xf32>
    %23 = arith.maximumf %21, %22 : vector<128x128xf32>
    %c0_18 = arith.constant 0 : index
    %c0_19 = arith.constant 0 : index
    %24 = vector.load %arg8[%c0_18, %c0_19] : memref<128x128xf32, #tpu.memory_space<vmem>>, vector<128x128xf32>
    tpu.vector_store %arg8[%c0_18, %c0_19], %23 {strides = array<i32>} : memref<128x128xf32, #tpu.memory_space<vmem>>, vector<128x128xf32>,
    return
  }
  func.func @transform_0(%arg0: i32) -> (i32, i32) {
    %c0_i32 = arith.constant 0 : i32
    %c0_i32_0 = arith.constant 0 : i32
    return %arg0, %c0_i32 : i32, i32
  }
  func.func @transform_1(%arg0: i32) -> (i32, i32) {
    %c0_i32 = arith.constant 0 : i32
    %c0_i32_0 = arith.constant 0 : i32
    %c0_i32_1 = arith.constant 0 : i32
    return %c0_i32, %c0_i32_0 : i32, i32
  }
  func.func @transform_2(%arg0: i32) -> (i32, i32) {
    %c0_i32 = arith.constant 0 : i32
    %c0_i32_0 = arith.constant 0 : i32
    %c0_i32_1 = arith.constant 0 : i32
    return %c0_i32, %c0_i32_0 : i32, i32
  }
  func.func @transform_3(%arg0: i32) -> (i32, i32) {
    %c0_i32 = arith.constant 0 : i32
    %c0_i32_0 = arith.constant 0 : i32
    %c0_i32_1 = arith.constant 0 : i32
    return %c0_i32, %c0_i32_0 : i32, i32
  }
  func.func @transform_4(%arg0: i32) -> (i32, i32) {
    %c0_i32 = arith.constant 0 : i32
    %c0_i32_0 = arith.constant 0 : i32
    %c0_i32_1 = arith.constant 0 : i32
    return %c0_i32, %c0_i32_0 : i32, i32
  }
  func.func @transform_5(%arg0: i32) -> (i32, i32) {
    %c0_i32 = arith.constant 0 : i32
    %c0_i32_0 = arith.constant 0 : i32
    %c0_i32_1 = arith.constant 0 : i32
    return %c0_i32, %c0_i32_0 : i32, i32
  }
  func.func @transform_6(%arg0: i32) -> (i32, i32) {
    %c0_i32 = arith.constant 0 : i32
    %c0_i32_0 = arith.constant 0 : i32
    %c0_i32_1 = arith.constant 0 : i32
    return %c0_i32, %c0_i32_0 : i32, i32
  }
  func.func @transform_7(%arg0: i32) -> (i32, i32) {
    %c0_i32 = arith.constant 0 : i32
    %c0_i32_0 = arith.constant 0 : i32
    return %arg0, %c0_i32 : i32, i32
  }
}

module attributes {stable_mosaic.version = 11 : i64} {
  func.func @kernel(%arg0: i32, %arg1: memref<128x128xbf16, #tpu.memory_space<vmem>>, %arg2: memref<128x512xbf16, #tpu.memory_space<vmem>>, %arg3: memref<1x512xf32, #tpu.memory_space<vmem>>, %arg4: memref<512x17xbf16, #tpu.memory_space<vmem>>, %arg5: memref<1x17xf32, #tpu.memory_space<vmem>>, %arg6: memref<128x17xf32, #tpu.memory_space<vmem>>) attributes {dimension_semantics = [#tpu.dimension_semantics<parallel>], iteration_bounds = array<i64: 2>, scalar_prefetch = 0 : i64, scratch_operands = 0 : i64, tpu.core_type = #tpu.core_type<tc>, window_params = [{transform_indices = @transform_0, window_bounds = array<i64: 128, 128>}, {pipeline_mode = #tpu.pipeline_mode<synchronous>, transform_indices = @transform_1, window_bounds = array<i64: 128, 512>}, {pipeline_mode = #tpu.pipeline_mode<synchronous>, transform_indices = @transform_2, window_bounds = array<i64: 1, 512>}, {pipeline_mode = #tpu.pipeline_mode<synchronous>, transform_indices = @transform_3, window_bounds = array<i64: 512, 17>}, {pipeline_mode = #tpu.pipeline_mode<synchronous>, transform_indices = @transform_4, window_bounds = array<i64: 1, 17>}, {transform_indices = @transform_5, window_bounds = array<i64: 128, 17>}]} {
    %c0 = arith.constant 0 : index
    %c0_0 = arith.constant 0 : index
    %0 = vector.load %arg1[%c0, %c0_0] : memref<128x128xbf16, #tpu.memory_space<vmem>>, vector<128x128xbf16>
    %c0_1 = arith.constant 0 : index
    %c0_2 = arith.constant 0 : index
    %1 = vector.load %arg2[%c0_1, %c0_2] : memref<128x512xbf16, #tpu.memory_space<vmem>>, vector<128x512xbf16>
    %c0_3 = arith.constant 0 : index
    %c0_4 = arith.constant 0 : index
    %2 = vector.load %arg3[%c0_3, %c0_4] : memref<1x512xf32, #tpu.memory_space<vmem>>, vector<1x512xf32>
    %cst = arith.constant dense<0.000000e+00> : vector<128x512xf32>
    %3 = tpu.matmul %0, %1, %cst {dimension_numbers = #tpu.dot_dimension_numbers<[1], [0], [0], [1], [0, 0, 1, 1], [], []>} : vector<128x128xbf16>, vector<128x512xbf16>, vector<128x512xf32> -> vector<128x512xf32>
    %4 = vector.broadcast %2 : vector<1x512xf32> to vector<128x512xf32>
    %5 = arith.addf %3, %4 : vector<128x512xf32>
    %cst_5 = arith.constant 0.000000e+00 : f32
    %6 = vector.broadcast %cst_5 : f32 to vector<128x512xf32>
    %7 = arith.maximumf %5, %6 : vector<128x512xf32>
    %8 = arith.truncf %7 : vector<128x512xf32> to vector<128x512xbf16>
    %c0_6 = arith.constant 0 : index
    %c0_7 = arith.constant 0 : index
    %9 = vector.load %arg4[%c0_6, %c0_7] : memref<512x17xbf16, #tpu.memory_space<vmem>>, vector<512x17xbf16>
    %c0_8 = arith.constant 0 : index
    %c0_9 = arith.constant 0 : index
    %10 = vector.load %arg5[%c0_8, %c0_9] : memref<1x17xf32, #tpu.memory_space<vmem>>, vector<1x17xf32>
    %cst_10 = arith.constant dense<0.000000e+00> : vector<128x17xf32>
    %11 = tpu.matmul %8, %9, %cst_10 {dimension_numbers = #tpu.dot_dimension_numbers<[1], [0], [0], [1], [0, 0, 1, 1], [], []>} : vector<128x512xbf16>, vector<512x17xbf16>, vector<128x17xf32> -> vector<128x17xf32>
    %12 = vector.broadcast %10 : vector<1x17xf32> to vector<128x17xf32>
    %13 = arith.addf %11, %12 : vector<128x17xf32>
    %c0_11 = arith.constant 0 : index
    %c0_12 = arith.constant 0 : index
    %14 = vector.load %arg6[%c0_11, %c0_12] : memref<128x17xf32, #tpu.memory_space<vmem>>, vector<128x17xf32>
    tpu.vector_store %arg6[%c0_11, %c0_12], %13 {strides = array<i32>} : memref<128x17xf32, #tpu.memory_space<vmem>>, vector<128x17xf32>,
    return
  }
  func.func @transform_0(%arg0: i32) -> (i32, i32) {
    %c0_i32 = arith.constant 0 : i32
    %c0_i32_0 = arith.constant 0 : i32
    return %arg0, %c0_i32 : i32, i32
  }
  func.func @transform_1(%arg0: i32) -> (i32, i32) {
    %c0_i32 = arith.constant 0 : i32
    %c0_i32_0 = arith.constant 0 : i32
    %c0_i32_1 = arith.constant 0 : i32
    return %c0_i32, %c0_i32_0 : i32, i32
  }
  func.func @transform_2(%arg0: i32) -> (i32, i32) {
    %c0_i32 = arith.constant 0 : i32
    %c0_i32_0 = arith.constant 0 : i32
    %c0_i32_1 = arith.constant 0 : i32
    return %c0_i32, %c0_i32_0 : i32, i32
  }
  func.func @transform_3(%arg0: i32) -> (i32, i32) {
    %c0_i32 = arith.constant 0 : i32
    %c0_i32_0 = arith.constant 0 : i32
    %c0_i32_1 = arith.constant 0 : i32
    return %c0_i32, %c0_i32_0 : i32, i32
  }
  func.func @transform_4(%arg0: i32) -> (i32, i32) {
    %c0_i32 = arith.constant 0 : i32
    %c0_i32_0 = arith.constant 0 : i32
    %c0_i32_1 = arith.constant 0 : i32
    return %c0_i32, %c0_i32_0 : i32, i32
  }
  func.func @transform_5(%arg0: i32) -> (i32, i32) {
    %c0_i32 = arith.constant 0 : i32
    %c0_i32_0 = arith.constant 0 : i32
    return %arg0, %c0_i32 : i32, i32
  }
}

</mosaic_0001>

<bundles_post_ra>
// kernel: custom-call.28
= control target key start
LH: loop header
LB: loop body
LE: loop exit
PB: predicated region body
PF: predicated region fallthrough
CT: control target
= control target key end

     0   :  { %s6_s0 = inlined_call_operand.vmem [shape: f32[2,128], index: 0, kind: output, shape index: {}]  }

// kernel: contact_graspnet_forward.10
= control target key start
LH: loop header
LB: loop body
LE: loop exit
PB: predicated region body
PF: predicated region fallthrough
CT: control target
= control target key end

     0   :  { %s1594_s24 = smov 0   ;;  %s1873_s0 = inlined_call_operand.vmem [shape: bf16[2048,8], index: 0, kind: input, shape index: {}]   ;;  %s1874_s1 = inlined_call_operand.vmem [shape: bf16[8,16], index: 1, kind: input, shape index: {}]   ;;  %s1875_s2 = inlined_call_operand.vmem [shape: f32[1,16], index: 2, kind: input, shape index: {}]   ;;  %s1876_s3 = inlined_call_operand.vmem [shape: bf16[16,16], index: 3, kind: input, shape index: {}]   ;;  %s1877_s4 = inlined_call_operand.vmem [shape: f32[1,16], index: 4, kind: input, shape index: {}]   ;;  %s1878_s5 = inlined_call_operand.vmem [shape: bf16[16,32], index: 5, kind: input, shape index: {}]   ;;  %s1879_s6 = inlined_call_operand.vmem [shape: f32[1,32], index: 6, kind: input, shape index: {}]   ;;  %s1880_s7 = inlined_call_operand.vmem [shape: f32[2048,32], index: 7, kind: output, shape index: {}]  }
   0x1 LB: > { %s1283_s25 = sadd.s32 4294967295, %s1552_s24   ;;  %p1287_p0 = scmp.ge.s32.totalorder %s1552_s24, 1  ;;  %s1552_s24 = sphi %s1594_s24, %s17_s24  }
   0x2   : > { %p238_p1 = scmp.lt.s32.totalorder %s1552_s24, 9 }
   0x4   : > { %p239_p2 = pnand %p1287_p0, %p238_p1 }
   0x5   : > { %v315_v0 = vld [vmem:[%s1874_s1] sm:$0xf] (!%p239_p2)  ;;  %vm452_vm0 = vcmask (!%p239_p2), 1043456   ;;  %s1288_s28 = sshll.u32 (!%p239_p2), %s1283_s25, 5  ;;  %vm403_vm1 = vcmask (!%p239_p2), 64512   ;;  %vm680_vm2 = vcmask (!%p239_p2), 130048  }
   0x6   : > { %242 = sbr.rel (%p239_p2) target bundleno = 738 (0x2e2), region = 48  ;;  %v1544_v1 = vld [vmem:[%s1876_s3] sm:$0xff] (!%p239_p2)   ;;  %1518 = vmatprep.subr.msk.bf16.mxu0 (!%p239_p2), %vm452_vm0, %v315_v0  ;;  %v454_v2 = vsel (!%p239_p2), %vm452_vm0, %v315_v0, 0  ;;  %p271_p3 = scmp.lt.s32.totalorder (!%p239_p2), %s1288_s28, 255  ;;  %1519 = vmatprep.subr.msk.bf16.mxu1 (!%p239_p2), %vm452_vm0, %v315_v0  ;;  %vm1194_vm3 = vcmask (!%p239_p2), 261120  }
   0x7   : > { %1415 = vmatpush3.bf16.msra.mxu0 (!%p239_p2), %v454_v2  ;;  %1517 = vmatpush3.bf16.msra.mxu1 (!%p239_p2), %v454_v2  ;;  %v1545_v19 = vld [vmem:[%s1878_s5] sm:$0xff] (!%p239_p2)  }
   0x8   : > { %1448 = vmatprep.subr.bf16.mxu1 (!%p239_p2), %v1544_v1  ;;  %1482 = vmatprep.subr.bf16.mxu0 (!%p239_p2), %v1545_v19  ;;  %v1654_v20 = vld [vmem:[%s1875_s2] ss:$0 sm:$0xff] (!%p239_p2) }
   0xd   : > { %s1882_s28 = smov (!%p271_p3, %s1288_s28), 255 }
   0xe   : > { %s1289_s8 = sshll.u32 %s1882_s28, 2  ;;  %s1291_s20 = sshll.u32 %s1882_s28, 3 }
   0xf   : > { %s1614_s11 = scalar_lea.vmem %s1873_s0, %s1289_s8  ;;  %s1773_s23 = scalar_lea.vmem %s1880_s7, %s1291_s20 }
  0x10   : > { %v1528_v3 = vld [vmem:[%s1614_s11] sm:$0xff]   ;;  %v1529_v4 = vld [vmem:[%s1614_s11 + $0x8] sm:$0xff]   ;;  %v1530_v5 = vld [vmem:[%s1614_s11 + $0x10] sm:$0xff]  }
  0x11   : > { %1416 = vmatprep.mubr.msk.bf16.mxu0 %vm403_vm1, %v1528_v3  ;;  %v1531_v6 = vld [vmem:[%s1614_s11 + $0x18] sm:$0xff]   ;;  %v1532_v7 = vld [vmem:[%s1614_s11 + $0x20] sm:$0xff]   ;;  %v1537_v9 = vld [vmem:[%s1614_s11 + $0x48] sm:$0xff]  }
  0x12   : > { %1417 = vmatmul.mubr.msk.bf16.vlgmr.msra.gmra.mrb[0].mxu0 %vm403_vm1, %v1529_v4  ;;  %v1536_v8 = vld [vmem:[%s1614_s11 + $0x40] sm:$0xff]   ;;  %v1538_v10 = vld [vmem:[%s1614_s11 + $0x50] sm:$0xff]   ;;  %v1533_v11 = vld [vmem:[%s1614_s11 + $0x28] sm:$0xff]  }
  0x13   : > { %1420 = vmatprep.mubr.msk.bf16.mxu0 %vm403_vm1, %v1530_v5  ;;  %1432 = vmatprep.mubr.msk.bf16.mxu1 %vm403_vm1, %v1536_v8  ;;  %v1539_v12 = vld [vmem:[%s1614_s11 + $0x58] sm:$0xff]   ;;  %v1534_v13 = vld [vmem:[%s1614_s11 + $0x30] sm:$0xff]   ;;  %v1540_v14 = vld [vmem:[%s1614_s11 + $0x60] sm:$0xff]  }
  0x14   : > { %1433 = vmatmul.mubr.msk.bf16.vlgmr.msra.gmra.mrb[0].mxu1 %vm403_vm1, %v1537_v9  ;;  %v1535_v15 = vld [vmem:[%s1614_s11 + $0x38] sm:$0xff]   ;;  %v1541_v16 = vld [vmem:[%s1614_s11 + $0x68] sm:$0xff]   ;;  %v1542_v17 = vld [vmem:[%s1614_s11 + $0x70] sm:$0xff]   ;;  %1483 = vmatpush3.bf16.msra.mxu0 %v1545_v19 }
  0x15   : > { %1436 = vmatprep.mubr.msk.bf16.mxu1 %vm403_vm1, %v1538_v10  ;;  %1449 = vmatpush3.bf16.msra.mxu1 %v1544_v1  ;;  %v1543_v18 = vld [vmem:[%s1614_s11 + $0x78] sm:$0xff]  }
  0x1a   : > { %1421 = vmatmul.mubr.msk.bf16.gmra.mrb[4].mxu0 %vm403_vm1, %v1531_v6 }
  0x1b   : > { %1424 = vmatprep.mubr.msk.bf16.mxu0 %vm403_vm1, %v1532_v7 }
  0x1c   : > { %1437 = vmatmul.mubr.msk.bf16.gmra.mrb[4].mxu1 %vm403_vm1, %v1539_v12 }
  0x1d   : > { %1440 = vmatprep.mubr.msk.bf16.mxu1 %vm403_vm1, %v1540_v14 }
  0x22   : > { %1425 = vmatmul.mubr.msk.bf16.gmra.mrb[8].mxu0 %vm403_vm1, %v1533_v11 }
  0x23   : > { %1428 = vmatprep.mubr.msk.bf16.mxu0 %vm403_vm1, %v1534_v13 }
  0x24   : > { %1441 = vmatmul.mubr.msk.bf16.gmra.mrb[8].mxu1 %vm403_vm1, %v1541_v16 }
  0x25   : > { %1444 = vmatprep.mubr.msk.bf16.mxu1 %vm403_vm1, %v1542_v17 }
  0x2a   : > { %1429 = vmatmul.mubr.msk.bf16.gmra.mrb[12].mxu0 %vm403_vm1, %v1535_v15 }
  0x2c   : > { %1445 = vmatmul.mubr.msk.bf16.gmra.mrb[12].mxu1 %vm403_vm1, %v1543_v18 }
  0xe5   : > { %v1418_v21 = vpop.f32.mrb[0].mxu0 }
  0xe6   : > { %v499_v22 = vadd.f32 %v1418_v21, %v1654_v20  ;;  %v490_v23 = vpop.f32.mrb[1].mxu0 }
  0xe7   : > { %v491_v24 = vadd.f32 %v1654_v20, %v490_v23  ;;  %v1419_v25 = vpop.f32.mrb[2].mxu0  ;;  %v1434_v36 = vpop.f32.mrb[0].mxu1 }
  0xe8   : > { %v502_v26 = vadd.f32 %v1419_v25, %v1654_v20  ;;  %v493_v27 = vpop.f32.mrb[3].mxu0  ;;  %v619_v29 = vmax.f32 %v499_v22, 0.0  ;;  %v563_v39 = vadd.f32 %v1434_v36, %v1654_v20  ;;  %v554_v40 = vpop.f32.mrb[1].mxu1 }
  0xe9   : > { %v494_v28 = vadd.f32 %v1654_v20, %v493_v27  ;;  %v617_v31 = vmax.f32 %v491_v24, 0.0  ;;  %v555_v43 = vadd.f32 %v1654_v20, %v554_v40  ;;  %v1435_v44 = vpop.f32.mrb[2].mxu1 }
  0xea   : > { %v620_v30 = vmax.f32 %v502_v26, 0.0  ;;  %v635_v47 = vmax.f32 %v563_v39, 0.0  ;;  %v566_v48 = vadd.f32 %v1435_v44, %v1654_v20  ;;  %v557_v49 = vpop.f32.mrb[3].mxu1 }
  0xeb   : > { %v618_v32 = vmax.f32 %v494_v28, 0.0  ;;  %v633_v51 = vmax.f32 %v555_v43, 0.0  ;;  %v558_v52 = vadd.f32 %v1654_v20, %v557_v49 }
  0xec   : > { %v650_v33 = vpack.c.bf16 %v620_v30, %v619_v29  ;;  %v636_v55 = vmax.f32 %v566_v48, 0.0 }
  0xed   : > { %v649_v34 = vpack.c.bf16 %v618_v32, %v617_v31  ;;  %v1422_v35 = vpop.f32.mrb[4].mxu0  ;;  %v634_v58 = vmax.f32 %v558_v52, 0.0 }
  0xee   : > { %v515_v37 = vadd.f32 %v1422_v35, %v1654_v20  ;;  %v506_v38 = vpop.f32.mrb[5].mxu0  ;;  %v1670_v60 = vpack.c.bf16 %v636_v55, %v635_v47 }
  0xef   : > { %v507_v41 = vadd.f32 %v1654_v20, %v506_v38  ;;  %v1423_v42 = vpop.f32.mrb[6].mxu0  ;;  %1450 = vmatprep.mubr.msk.bf16.mxu1 %vm680_vm2, %v649_v34  ;;  %v1672_v63 = vpack.c.bf16 %v634_v58, %v633_v51  ;;  %v1438_v0 = vpop.f32.mrb[4].mxu1 }
  0xf0   : > { %v518_v45 = vadd.f32 %v1423_v42, %v1654_v20  ;;  %v509_v46 = vpop.f32.mrb[7].mxu0  ;;  %1451 = vmatmul.mubr.msk.bf16.vlgmr.msra.gmra.mrb[16].mxu1 %vm680_vm2, %v650_v33  ;;  %v623_v53 = vmax.f32 %v515_v37, 0.0  ;;  %v579_v3 = vadd.f32 %v1438_v0, %v1654_v20  ;;  %v570_v4 = vpop.f32.mrb[5].mxu1 }
  0xf1   : > { %v510_v50 = vadd.f32 %v1654_v20, %v509_v46  ;;  %v621_v56 = vmax.f32 %v507_v41, 0.0  ;;  %v571_v7 = vadd.f32 %v1654_v20, %v570_v4  ;;  %v1439_v8 = vpop.f32.mrb[6].mxu1 }
  0xf2   : > { %v624_v54 = vmax.f32 %v518_v45, 0.0  ;;  %v639_v11 = vmax.f32 %v579_v3, 0.0  ;;  %v582_v12 = vadd.f32 %v1439_v8, %v1654_v20  ;;  %v573_v13 = vpop.f32.mrb[7].mxu1 }
  0xf3   : > { %v622_v57 = vmax.f32 %v510_v50, 0.0  ;;  %v637_v15 = vmax.f32 %v571_v7, 0.0  ;;  %v574_v16 = vadd.f32 %v1654_v20, %v573_v13 }
  0xf4   : > { %v652_v59 = vpack.c.bf16 %v624_v54, %v623_v53  ;;  %v640_v19 = vmax.f32 %v582_v12, 0.0 }
  0xf5   : > { %v651_v61 = vpack.c.bf16 %v622_v57, %v621_v56  ;;  %v1426_v62 = vpop.f32.mrb[8].mxu0  ;;  %v638_v23 = vmax.f32 %v574_v16, 0.0 }
  0xf6   : > { %v531_v1 = vadd.f32 %v1426_v62, %v1654_v20  ;;  %v522_v2 = vpop.f32.mrb[9].mxu0  ;;  %v660_v25 = vpack.c.bf16 %v640_v19, %v639_v11 }
  0xf7   : > { %v523_v5 = vadd.f32 %v1654_v20, %v522_v2  ;;  %v1427_v6 = vpop.f32.mrb[10].mxu0  ;;  %1454 = vmatprep.mubr.msk.bf16.mxu1 %vm680_vm2, %v651_v61  ;;  %v659_v28 = vpack.c.bf16 %v638_v23, %v637_v15  ;;  %v1442_v29 = vpop.f32.mrb[8].mxu1 }
  0xf8   : > { %v534_v9 = vadd.f32 %v1427_v6, %v1654_v20  ;;  %v525_v10 = vpop.f32.mrb[11].mxu0  ;;  %1455 = vmatmul.mubr.msk.bf16.gmra.mrb[20].mxu1 %vm680_vm2, %v652_v59  ;;  %v627_v17 = vmax.f32 %v531_v1, 0.0  ;;  %v595_v32 = vadd.f32 %v1442_v29, %v1654_v20  ;;  %v586_v33 = vpop.f32.mrb[9].mxu1 }
  0xf9   : > { %v526_v14 = vadd.f32 %v1654_v20, %v525_v10  ;;  %v625_v21 = vmax.f32 %v523_v5, 0.0  ;;  %v587_v36 = vadd.f32 %v1654_v20, %v586_v33  ;;  %v1443_v37 = vpop.f32.mrb[10].mxu1 }
  0xfa   : > { %v628_v18 = vmax.f32 %v534_v9, 0.0  ;;  %v643_v40 = vmax.f32 %v595_v32, 0.0  ;;  %v598_v41 = vadd.f32 %v1443_v37, %v1654_v20  ;;  %v589_v42 = vpop.f32.mrb[11].mxu1 }
  0xfb   : > { %v626_v22 = vmax.f32 %v526_v14, 0.0  ;;  %v641_v44 = vmax.f32 %v587_v36, 0.0  ;;  %v590_v45 = vadd.f32 %v1654_v20, %v589_v42 }
  0xfc   : > { %v654_v24 = vpack.c.bf16 %v628_v18, %v627_v17  ;;  %v644_v48 = vmax.f32 %v598_v41, 0.0 }
  0xfd   : > { %v653_v26 = vpack.c.bf16 %v626_v22, %v625_v21  ;;  %v1430_v27 = vpop.f32.mrb[12].mxu0  ;;  %v642_v51 = vmax.f32 %v590_v45, 0.0 }
  0xfe   : > { %v547_v30 = vadd.f32 %v1430_v27, %v1654_v20  ;;  %v538_v31 = vpop.f32.mrb[13].mxu0  ;;  %v662_v53 = vpack.c.bf16 %v644_v48, %v643_v40 }
  0xff   : > { %v539_v34 = vadd.f32 %v1654_v20, %v538_v31  ;;  %v1431_v35 = vpop.f32.mrb[14].mxu0  ;;  %1458 = vmatprep.mubr.msk.bf16.mxu1 %vm680_vm2, %v653_v26  ;;  %v661_v55 = vpack.c.bf16 %v642_v51, %v641_v44  ;;  %v1446_v56 = vpop.f32.mrb[12].mxu1 }
 0x100   : > { %v550_v38 = vadd.f32 %v1431_v35, %v1654_v20  ;;  %v541_v39 = vpop.f32.mrb[15].mxu0  ;;  %1459 = vmatmul.mubr.msk.bf16.gmra.mrb[24].mxu1 %vm680_vm2, %v654_v24  ;;  %v631_v46 = vmax.f32 %v547_v30, 0.0  ;;  %v611_v57 = vadd.f32 %v1446_v56, %v1654_v20  ;;  %v602_v58 = vpop.f32.mrb[13].mxu1 }
 0x101   : > { %v542_v43 = vadd.f32 %v1654_v20, %v541_v39  ;;  %v629_v49 = vmax.f32 %v539_v34, 0.0  ;;  %v603_v59 = vadd.f32 %v1654_v20, %v602_v58  ;;  %v1447_v61 = vpop.f32.mrb[14].mxu1 }
 0x102   : > { %v632_v47 = vmax.f32 %v550_v38, 0.0  ;;  %v647_v62 = vmax.f32 %v611_v57, 0.0  ;;  %v614_v0 = vadd.f32 %v1447_v61, %v1654_v20  ;;  %v605_v1 = vpop.f32.mrb[15].mxu1 }
 0x103   : > { %v630_v50 = vmax.f32 %v542_v43, 0.0  ;;  %v645_v2 = vmax.f32 %v603_v59, 0.0  ;;  %v606_v3 = vadd.f32 %v1654_v20, %v605_v1  ;;  %v1713_v20 = vld [vmem:[%s1877_s4] ss:$0 sm:$0xff] }
 0x104   : > { %v656_v52 = vpack.c.bf16 %v632_v47, %v631_v46  ;;  %v648_v4 = vmax.f32 %v614_v0, 0.0 }
 0x105   : > { %v655_v54 = vpack.c.bf16 %v630_v50, %v629_v49  ;;  %v646_v5 = vmax.f32 %v606_v3, 0.0 }
 0x106   : > { %v664_v6 = vpack.c.bf16 %v648_v4, %v647_v62 }
 0x107   : > { %1462 = vmatprep.mubr.msk.bf16.mxu1 %vm680_vm2, %v655_v54  ;;  %v663_v7 = vpack.c.bf16 %v646_v5, %v645_v2 }
 0x108   : > { %1463 = vmatmul.mubr.msk.bf16.gmra.mrb[28].mxu1 %vm680_vm2, %v656_v52 }
 0x109   : > { %1466 = vmatprep.mubr.msk.bf16.mxu1 %vm680_vm2, %v1672_v63 }
 0x110   : > { %1467 = vmatmul.mubr.msk.bf16.gmra.mrb[32].mxu1 %vm680_vm2, %v1670_v60 }
 0x111   : > { %1470 = vmatprep.mubr.msk.bf16.mxu1 %vm680_vm2, %v659_v28 }
 0x118   : > { %1471 = vmatmul.mubr.msk.bf16.gmra.mrb[36].mxu1 %vm680_vm2, %v660_v25 }
 0x119   : > { %1474 = vmatprep.mubr.msk.bf16.mxu1 %vm680_vm2, %v661_v55 }
 0x120   : > { %1475 = vmatmul.mubr.msk.bf16.gmra.mrb[40].mxu1 %vm680_vm2, %v662_v53 }
 0x121   : > { %1478 = vmatprep.mubr.msk.bf16.mxu1 %vm680_vm2, %v663_v7 }
 0x128   : > { %1479 = vmatmul.mubr.msk.bf16.gmra.mrb[44].mxu1 %vm680_vm2, %v664_v6 }
 0x1c3   : > { %v1452_v63 = vpop.f32.mrb[16].mxu1 }
 0x1c4   : > { %v772_v60 = vadd.f32 %v1452_v63, %v1713_v20  ;;  %v763_v8 = vpop.f32.mrb[17].mxu1 }
 0x1c5   : > { %v764_v9 = vadd.f32 %v1713_v20, %v763_v8  ;;  %v1453_v10 = vpop.f32.mrb[18].mxu1 }
 0x1c6   : > { %v775_v11 = vadd.f32 %v1453_v10, %v1713_v20  ;;  %v766_v12 = vpop.f32.mrb[19].mxu1  ;;  %v892_v14 = vmax.f32 %v772_v60, 0.0 }
 0x1c7   : > { %v767_v13 = vadd.f32 %v1713_v20, %v766_v12  ;;  %v890_v16 = vmax.f32 %v764_v9, 0.0 }
 0x1c8   : > { %v893_v15 = vmax.f32 %v775_v11, 0.0 }
 0x1c9   : > { %v891_v17 = vmax.f32 %v767_v13, 0.0 }
 0x1ca   : > { %v923_v18 = vpack.c.bf16 %v893_v15, %v892_v14 }
 0x1cb   : > { %v922_v19 = vpack.c.bf16 %v891_v17, %v890_v16  ;;  %v1456_v21 = vpop.f32.mrb[20].mxu1 }
 0x1cc   : > { %v788_v22 = vadd.f32 %v1456_v21, %v1713_v20  ;;  %v779_v23 = vpop.f32.mrb[21].mxu1 }
 0x1cd   : > { %v780_v24 = vadd.f32 %v1713_v20, %v779_v23  ;;  %v1457_v25 = vpop.f32.mrb[22].mxu1  ;;  %1484 = vmatprep.mubr.msk.bf16.mxu0 %vm680_vm2, %v922_v19 }
 0x1ce   : > { %v791_v26 = vadd.f32 %v1457_v25, %v1713_v20  ;;  %v782_v27 = vpop.f32.mrb[23].mxu1  ;;  %1485 = vmatmul.mubr.msk.bf16.vlgmr.msra.gmra.mrb[16].mxu0 %vm680_vm2, %v923_v18  ;;  %v896_v29 = vmax.f32 %v788_v22, 0.0 }
 0x1cf   : > { %v783_v28 = vadd.f32 %v1713_v20, %v782_v27  ;;  %v894_v31 = vmax.f32 %v780_v24, 0.0 }
 0x1d0   : > { %v897_v30 = vmax.f32 %v791_v26, 0.0 }
 0x1d1   : > { %v895_v32 = vmax.f32 %v783_v28, 0.0 }
 0x1d2   : > { %v925_v33 = vpack.c.bf16 %v897_v30, %v896_v29 }
 0x1d3   : > { %v924_v34 = vpack.c.bf16 %v895_v32, %v894_v31  ;;  %v1460_v35 = vpop.f32.mrb[24].mxu1 }
 0x1d4   : > { %v804_v36 = vadd.f32 %v1460_v35, %v1713_v20  ;;  %v795_v37 = vpop.f32.mrb[25].mxu1 }
 0x1d5   : > { %v796_v38 = vadd.f32 %v1713_v20, %v795_v37  ;;  %v1461_v39 = vpop.f32.mrb[26].mxu1  ;;  %1488 = vmatprep.mubr.msk.bf16.mxu0 %vm680_vm2, %v924_v34 }
 0x1d6   : > { %v807_v40 = vadd.f32 %v1461_v39, %v1713_v20  ;;  %v798_v41 = vpop.f32.mrb[27].mxu1  ;;  %1489 = vmatmul.mubr.msk.bf16.gmra.mrb[20].mxu0 %vm680_vm2, %v925_v33  ;;  %v900_v43 = vmax.f32 %v804_v36, 0.0 }
 0x1d7   : > { %v799_v42 = vadd.f32 %v1713_v20, %v798_v41  ;;  %v898_v45 = vmax.f32 %v796_v38, 0.0 }
 0x1d8   : > { %v901_v44 = vmax.f32 %v807_v40, 0.0 }
 0x1d9   : > { %v899_v46 = vmax.f32 %v799_v42, 0.0 }
 0x1da   : > { %v927_v47 = vpack.c.bf16 %v901_v44, %v900_v43 }
 0x1db   : > { %v926_v48 = vpack.c.bf16 %v899_v46, %v898_v45  ;;  %v1464_v49 = vpop.f32.mrb[28].mxu1 }
 0x1dc   : > { %v820_v50 = vadd.f32 %v1464_v49, %v1713_v20  ;;  %v811_v51 = vpop.f32.mrb[29].mxu1 }
 0x1dd   : > { %v812_v52 = vadd.f32 %v1713_v20, %v811_v51  ;;  %v1465_v53 = vpop.f32.mrb[30].mxu1  ;;  %1492 = vmatprep.mubr.msk.bf16.mxu0 %vm680_vm2, %v926_v48 }
 0x1de   : > { %v823_v54 = vadd.f32 %v1465_v53, %v1713_v20  ;;  %v814_v55 = vpop.f32.mrb[31].mxu1  ;;  %1493 = vmatmul.mubr.msk.bf16.gmra.mrb[24].mxu0 %vm680_vm2, %v927_v47  ;;  %v904_v57 = vmax.f32 %v820_v50, 0.0 }
 0x1df   : > { %v815_v56 = vadd.f32 %v1713_v20, %v814_v55  ;;  %v902_v59 = vmax.f32 %v812_v52, 0.0 }
 0x1e0   : > { %v905_v58 = vmax.f32 %v823_v54, 0.0 }
 0x1e1   : > { %v903_v61 = vmax.f32 %v815_v56, 0.0  ;;  %v1766_v56 = vld [vmem:[%s1879_s6] ss:$0 sm:$0xff] }
 0x1e2   : > { %v929_v62 = vpack.c.bf16 %v905_v58, %v904_v57 }
 0x1e3   : > { %v928_v0 = vpack.c.bf16 %v903_v61, %v902_v59  ;;  %v1468_v1 = vpop.f32.mrb[32].mxu1 }
 0x1e4   : > { %v836_v2 = vadd.f32 %v1468_v1, %v1713_v20  ;;  %v827_v3 = vpop.f32.mrb[33].mxu1 }
 0x1e5   : > { %v828_v4 = vadd.f32 %v1713_v20, %v827_v3  ;;  %v1469_v5 = vpop.f32.mrb[34].mxu1  ;;  %1496 = vmatprep.mubr.msk.bf16.mxu0 %vm680_vm2, %v928_v0 }
 0x1e6   : > { %v839_v6 = vadd.f32 %v1469_v5, %v1713_v20  ;;  %v830_v7 = vpop.f32.mrb[35].mxu1  ;;  %1497 = vmatmul.mubr.msk.bf16.gmra.mrb[28].mxu0 %vm680_vm2, %v929_v62  ;;  %v908_v60 = vmax.f32 %v836_v2, 0.0 }
 0x1e7   : > { %v831_v63 = vadd.f32 %v1713_v20, %v830_v7  ;;  %v906_v9 = vmax.f32 %v828_v4, 0.0 }
 0x1e8   : > { %v909_v8 = vmax.f32 %v839_v6, 0.0 }
 0x1e9   : > { %v907_v10 = vmax.f32 %v831_v63, 0.0 }
 0x1ea   : > { %v931_v11 = vpack.c.bf16 %v909_v8, %v908_v60 }
 0x1eb   : > { %v930_v12 = vpack.c.bf16 %v907_v10, %v906_v9  ;;  %v1472_v13 = vpop.f32.mrb[36].mxu1 }
 0x1ec   : > { %v852_v14 = vadd.f32 %v1472_v13, %v1713_v20  ;;  %v843_v15 = vpop.f32.mrb[37].mxu1 }
 0x1ed   : > { %v844_v16 = vadd.f32 %v1713_v20, %v843_v15  ;;  %v1473_v17 = vpop.f32.mrb[38].mxu1  ;;  %1500 = vmatprep.mubr.msk.bf16.mxu0 %vm680_vm2, %v930_v12 }
 0x1ee   : > { %v855_v18 = vadd.f32 %v1473_v17, %v1713_v20  ;;  %v846_v19 = vpop.f32.mrb[39].mxu1  ;;  %1501 = vmatmul.mubr.msk.bf16.gmra.mrb[32].mxu0 %vm680_vm2, %v931_v11  ;;  %v912_v22 = vmax.f32 %v852_v14, 0.0 }
 0x1ef   : > { %v847_v21 = vadd.f32 %v1713_v20, %v846_v19  ;;  %v910_v24 = vmax.f32 %v844_v16, 0.0 }
 0x1f0   : > { %v913_v23 = vmax.f32 %v855_v18, 0.0 }
 0x1f1   : > { %v911_v25 = vmax.f32 %v847_v21, 0.0 }
 0x1f2   : > { %v933_v26 = vpack.c.bf16 %v913_v23, %v912_v22 }
 0x1f3   : > { %v932_v27 = vpack.c.bf16 %v911_v25, %v910_v24  ;;  %v1476_v28 = vpop.f32.mrb[40].mxu1 }
 0x1f4   : > { %v868_v29 = vadd.f32 %v1476_v28, %v1713_v20  ;;  %v859_v30 = vpop.f32.mrb[41].mxu1 }
 0x1f5   : > { %v860_v31 = vadd.f32 %v1713_v20, %v859_v30  ;;  %v1477_v32 = vpop.f32.mrb[42].mxu1  ;;  %1504 = vmatprep.mubr.msk.bf16.mxu0 %vm680_vm2, %v932_v27 }
 0x1f6   : > { %v871_v33 = vadd.f32 %v1477_v32, %v1713_v20  ;;  %v862_v34 = vpop.f32.mrb[43].mxu1  ;;  %1505 = vmatmul.mubr.msk.bf16.gmra.mrb[36].mxu0 %vm680_vm2, %v933_v26  ;;  %v916_v36 = vmax.f32 %v868_v29, 0.0 }
 0x1f7   : > { %v863_v35 = vadd.f32 %v1713_v20, %v862_v34  ;;  %v914_v38 = vmax.f32 %v860_v31, 0.0 }
 0x1f8   : > { %v917_v37 = vmax.f32 %v871_v33, 0.0 }
 0x1f9   : > { %v915_v39 = vmax.f32 %v863_v35, 0.0 }
 0x1fa   : > { %v935_v40 = vpack.c.bf16 %v917_v37, %v916_v36 }
 0x1fb   : > { %v934_v41 = vpack.c.bf16 %v915_v39, %v914_v38  ;;  %v1480_v42 = vpop.f32.mrb[44].mxu1 }
 0x1fc   : > { %v884_v43 = vadd.f32 %v1480_v42, %v1713_v20  ;;  %v875_v44 = vpop.f32.mrb[45].mxu1 }
 0x1fd   : > { %v876_v45 = vadd.f32 %v1713_v20, %v875_v44  ;;  %v1481_v46 = vpop.f32.mrb[46].mxu1  ;;  %1508 = vmatprep.mubr.msk.bf16.mxu0 %vm680_vm2, %v934_v41 }
 0x1fe   : > { %v887_v47 = vadd.f32 %v1481_v46, %v1713_v20  ;;  %v878_v48 = vpop.f32.mrb[47].mxu1  ;;  %1509 = vmatmul.mubr.msk.bf16.gmra.mrb[40].mxu0 %vm680_vm2, %v935_v40  ;;  %v920_v50 = vmax.f32 %v884_v43, 0.0 }
 0x1ff   : > { %v879_v49 = vadd.f32 %v1713_v20, %v878_v48  ;;  %v918_v52 = vmax.f32 %v876_v45, 0.0 }
 0x200   : > { %v921_v51 = vmax.f32 %v887_v47, 0.0 }
 0x201   : > { %v919_v53 = vmax.f32 %v879_v49, 0.0 }
 0x202   : > { %v937_v54 = vpack.c.bf16 %v921_v51, %v920_v50 }
 0x203   : > { %v936_v55 = vpack.c.bf16 %v919_v53, %v918_v52 }
 0x205   : > { %1512 = vmatprep.mubr.msk.bf16.mxu0 %vm680_vm2, %v936_v55 }
 0x206   : > { %1513 = vmatmul.mubr.msk.bf16.gmra.mrb[44].mxu0 %vm680_vm2, %v937_v54 }
 0x2a1   : > { %v1486_v57 = vpop.f32.mrb[16].mxu0 }
 0x2a2   : > { %v1044_v58 = vadd.f32 %v1486_v57, %v1766_v56  ;;  %v1035_v20 = vpop.f32.mrb[17].mxu0 }
 0x2a3   : > { %v1036_v59 = vadd.f32 %v1766_v56, %v1035_v20  ;;  %v1487_v61 = vpop.f32.mrb[18].mxu0 }
 0x2a4   : > { %v1164_v62 = vmax.f32 %v1044_v58, 0.0  ;;  %v1047_v0 = vadd.f32 %v1487_v61, %v1766_v56  ;;  %v1038_v1 = vpop.f32.mrb[19].mxu0 }
 0x2a5   : > { %v1162_v2 = vmax.f32 %v1036_v59, 0.0  ;;  %v1039_v3 = vadd.f32 %v1766_v56, %v1038_v1 }
 0x2a6   : > { %1197 = vst.msk [vmem:[%s1773_s23 + $0x10] sm:$0xff] %vm1194_vm3, %v1164_v62  ;;  %v1165_v4 = vmax.f32 %v1047_v0, 0.0 }
 0x2a7   : > { %1195 = vst.msk [vmem:[%s1773_s23] sm:$0xff] %vm1194_vm3, %v1162_v2  ;;  %v1163_v5 = vmax.f32 %v1039_v3, 0.0 }
 0x2a8   : > { %1198 = vst.msk [vmem:[%s1773_s23 + $0x18] sm:$0xff] %vm1194_vm3, %v1165_v4 }
 0x2a9   : > { %1196 = vst.msk [vmem:[%s1773_s23 + $0x8] sm:$0xff] %vm1194_vm3, %v1163_v5  ;;  %v1490_v6 = vpop.f32.mrb[20].mxu0 }
 0x2aa   : > { %v1060_v7 = vadd.f32 %v1490_v6, %v1766_v56  ;;  %v1051_v63 = vpop.f32.mrb[21].mxu0 }
 0x2ab   : > { %v1052_v60 = vadd.f32 %v1766_v56, %v1051_v63  ;;  %v1491_v8 = vpop.f32.mrb[22].mxu0 }
 0x2ac   : > { %v1168_v9 = vmax.f32 %v1060_v7, 0.0  ;;  %v1063_v10 = vadd.f32 %v1491_v8, %v1766_v56  ;;  %v1054_v11 = vpop.f32.mrb[23].mxu0 }
 0x2ad   : > { %v1166_v12 = vmax.f32 %v1052_v60, 0.0  ;;  %v1055_v13 = vadd.f32 %v1766_v56, %v1054_v11 }
 0x2ae   : > { %1201 = vst.msk [vmem:[%s1773_s23 + $0x30] sm:$0xff] %vm1194_vm3, %v1168_v9  ;;  %v1169_v14 = vmax.f32 %v1063_v10, 0.0 }
 0x2af   : > { %1199 = vst.msk [vmem:[%s1773_s23 + $0x20] sm:$0xff] %vm1194_vm3, %v1166_v12  ;;  %v1167_v15 = vmax.f32 %v1055_v13, 0.0 }
 0x2b0   : > { %1202 = vst.msk [vmem:[%s1773_s23 + $0x38] sm:$0xff] %vm1194_vm3, %v1169_v14 }
 0x2b1   : > { %1200 = vst.msk [vmem:[%s1773_s23 + $0x28] sm:$0xff] %vm1194_vm3, %v1167_v15  ;;  %v1494_v16 = vpop.f32.mrb[24].mxu0 }
 0x2b2   : > { %v1076_v17 = vadd.f32 %v1494_v16, %v1766_v56  ;;  %v1067_v18 = vpop.f32.mrb[25].mxu0 }
 0x2b3   : > { %v1068_v19 = vadd.f32 %v1766_v56, %v1067_v18  ;;  %v1495_v21 = vpop.f32.mrb[26].mxu0 }
 0x2b4   : > { %v1172_v22 = vmax.f32 %v1076_v17, 0.0  ;;  %v1079_v23 = vadd.f32 %v1495_v21, %v1766_v56  ;;  %v1070_v24 = vpop.f32.mrb[27].mxu0 }
 0x2b5   : > { %v1170_v25 = vmax.f32 %v1068_v19, 0.0  ;;  %v1071_v26 = vadd.f32 %v1766_v56, %v1070_v24 }
 0x2b6   : > { %1205 = vst.msk [vmem:[%s1773_s23 + $0x50] sm:$0xff] %vm1194_vm3, %v1172_v22  ;;  %v1173_v27 = vmax.f32 %v1079_v23, 0.0 }
 0x2b7   : > { %1203 = vst.msk [vmem:[%s1773_s23 + $0x40] sm:$0xff] %vm1194_vm3, %v1170_v25  ;;  %v1171_v28 = vmax.f32 %v1071_v26, 0.0 }
 0x2b8   : > { %1206 = vst.msk [vmem:[%s1773_s23 + $0x58] sm:$0xff] %vm1194_vm3, %v1173_v27 }
 0x2b9   : > { %1204 = vst.msk [vmem:[%s1773_s23 + $0x48] sm:$0xff] %vm1194_vm3, %v1171_v28  ;;  %v1498_v29 = vpop.f32.mrb[28].mxu0 }
 0x2ba   : > { %v1092_v30 = vadd.f32 %v1498_v29, %v1766_v56  ;;  %v1083_v31 = vpop.f32.mrb[29].mxu0 }
 0x2bb   : > { %v1084_v32 = vadd.f32 %v1766_v56, %v1083_v31  ;;  %v1499_v33 = vpop.f32.mrb[30].mxu0 }
 0x2bc   : > { %v1176_v34 = vmax.f32 %v1092_v30, 0.0  ;;  %v1095_v35 = vadd.f32 %v1499_v33, %v1766_v56  ;;  %v1086_v36 = vpop.f32.mrb[31].mxu0 }
 0x2bd   : > { %v1174_v37 = vmax.f32 %v1084_v32, 0.0  ;;  %v1087_v38 = vadd.f32 %v1766_v56, %v1086_v36 }
 0x2be   : > { %1209 = vst.msk [vmem:[%s1773_s23 + $0x70] sm:$0xff] %vm1194_vm3, %v1176_v34  ;;  %v1177_v39 = vmax.f32 %v1095_v35, 0.0 }
 0x2bf   : > { %1207 = vst.msk [vmem:[%s1773_s23 + $0x60] sm:$0xff] %vm1194_vm3, %v1174_v37  ;;  %v1175_v40 = vmax.f32 %v1087_v38, 0.0 }
 0x2c0   : > { %1210 = vst.msk [vmem:[%s1773_s23 + $0x78] sm:$0xff] %vm1194_vm3, %v1177_v39 }
 0x2c1   : > { %1208 = vst.msk [vmem:[%s1773_s23 + $0x68] sm:$0xff] %vm1194_vm3, %v1175_v40  ;;  %v1502_v41 = vpop.f32.mrb[32].mxu0 }
 0x2c2   : > { %v1108_v42 = vadd.f32 %v1502_v41, %v1766_v56  ;;  %v1099_v43 = vpop.f32.mrb[33].mxu0 }
 0x2c3   : > { %v1100_v44 = vadd.f32 %v1766_v56, %v1099_v43  ;;  %v1503_v45 = vpop.f32.mrb[34].mxu0 }
 0x2c4   : > { %v1180_v46 = vmax.f32 %v1108_v42, 0.0  ;;  %v1111_v47 = vadd.f32 %v1503_v45, %v1766_v56  ;;  %v1102_v48 = vpop.f32.mrb[35].mxu0 }
 0x2c5   : > { %v1178_v49 = vmax.f32 %v1100_v44, 0.0  ;;  %v1103_v50 = vadd.f32 %v1766_v56, %v1102_v48 }
 0x2c6   : > { %1213 = vst.msk [vmem:[%s1773_s23 + $0x90] sm:$0xff] %vm1194_vm3, %v1180_v46  ;;  %v1181_v51 = vmax.f32 %v1111_v47, 0.0 }
 0x2c7   : > { %1211 = vst.msk [vmem:[%s1773_s23 + $0x80] sm:$0xff] %vm1194_vm3, %v1178_v49  ;;  %v1179_v52 = vmax.f32 %v1103_v50, 0.0 }
 0x2c8   : > { %1214 = vst.msk [vmem:[%s1773_s23 + $0x98] sm:$0xff] %vm1194_vm3, %v1181_v51 }
 0x2c9   : > { %1212 = vst.msk [vmem:[%s1773_s23 + $0x88] sm:$0xff] %vm1194_vm3, %v1179_v52  ;;  %v1506_v53 = vpop.f32.mrb[36].mxu0 }
 0x2ca   : > { %v1124_v54 = vadd.f32 %v1506_v53, %v1766_v56  ;;  %v1115_v55 = vpop.f32.mrb[37].mxu0 }
 0x2cb   : > { %v1116_v57 = vadd.f32 %v1766_v56, %v1115_v55  ;;  %v1507_v58 = vpop.f32.mrb[38].mxu0 }
 0x2cc   : > { %v1184_v20 = vmax.f32 %v1124_v54, 0.0  ;;  %v1127_v59 = vadd.f32 %v1507_v58, %v1766_v56  ;;  %v1118_v61 = vpop.f32.mrb[39].mxu0 }
 0x2cd   : > { %v1182_v62 = vmax.f32 %v1116_v57, 0.0  ;;  %v1119_v0 = vadd.f32 %v1766_v56, %v1118_v61 }
 0x2ce   : > { %1217 = vst.msk [vmem:[%s1773_s23 + $0xb0] sm:$0xff] %vm1194_vm3, %v1184_v20  ;;  %v1185_v1 = vmax.f32 %v1127_v59, 0.0 }
 0x2cf   : > { %1215 = vst.msk [vmem:[%s1773_s23 + $0xa0] sm:$0xff] %vm1194_vm3, %v1182_v62  ;;  %v1183_v2 = vmax.f32 %v1119_v0, 0.0 }
 0x2d0   : > { %1218 = vst.msk [vmem:[%s1773_s23 + $0xb8] sm:$0xff] %vm1194_vm3, %v1185_v1 }
 0x2d1   : > { %1216 = vst.msk [vmem:[%s1773_s23 + $0xa8] sm:$0xff] %vm1194_vm3, %v1183_v2  ;;  %v1510_v3 = vpop.f32.mrb[40].mxu0 }
 0x2d2   : > { %v1140_v4 = vadd.f32 %v1510_v3, %v1766_v56  ;;  %v1131_v5 = vpop.f32.mrb[41].mxu0 }
 0x2d3   : > { %v1132_v6 = vadd.f32 %v1766_v56, %v1131_v5  ;;  %v1511_v7 = vpop.f32.mrb[42].mxu0 }
 0x2d4   : > { %v1188_v63 = vmax.f32 %v1140_v4, 0.0  ;;  %v1143_v60 = vadd.f32 %v1511_v7, %v1766_v56  ;;  %v1134_v8 = vpop.f32.mrb[43].mxu0 }
 0x2d5   : > { %v1186_v9 = vmax.f32 %v1132_v6, 0.0  ;;  %v1135_v10 = vadd.f32 %v1766_v56, %v1134_v8 }
 0x2d6   : > { %1221 = vst.msk [vmem:[%s1773_s23 + $0xd0] sm:$0xff] %vm1194_vm3, %v1188_v63  ;;  %v1189_v11 = vmax.f32 %v1143_v60, 0.0 }
 0x2d7   : > { %1219 = vst.msk [vmem:[%s1773_s23 + $0xc0] sm:$0xff] %vm1194_vm3, %v1186_v9  ;;  %v1187_v12 = vmax.f32 %v1135_v10, 0.0 }
 0x2d8   : > { %1222 = vst.msk [vmem:[%s1773_s23 + $0xd8] sm:$0xff] %vm1194_vm3, %v1189_v11 }
 0x2d9   : > { %1220 = vst.msk [vmem:[%s1773_s23 + $0xc8] sm:$0xff] %vm1194_vm3, %v1187_v12  ;;  %v1514_v13 = vpop.f32.mrb[44].mxu0 }
 0x2da   : > { %v1156_v14 = vadd.f32 %v1514_v13, %v1766_v56  ;;  %v1147_v15 = vpop.f32.mrb[45].mxu0 }
 0x2db   : > { %v1148_v16 = vadd.f32 %v1766_v56, %v1147_v15  ;;  %v1515_v17 = vpop.f32.mrb[46].mxu0 }
 0x2dc   : > { %v1192_v18 = vmax.f32 %v1156_v14, 0.0  ;;  %v1159_v19 = vadd.f32 %v1515_v17, %v1766_v56  ;;  %v1150_v21 = vpop.f32.mrb[47].mxu0 }
 0x2dd   : > { %v1190_v22 = vmax.f32 %v1148_v16, 0.0  ;;  %v1151_v23 = vadd.f32 %v1766_v56, %v1150_v21 }
 0x2de   : > { %1225 = vst.msk [vmem:[%s1773_s23 + $0xf0] sm:$0xff] %vm1194_vm3, %v1192_v18  ;;  %v1193_v24 = vmax.f32 %v1159_v19, 0.0 }
 0x2df   : > { %1223 = vst.msk [vmem:[%s1773_s23 + $0xe0] sm:$0xff] %vm1194_vm3, %v1190_v22  ;;  %v1191_v25 = vmax.f32 %v1151_v23, 0.0 }
 0x2e0   : > { %1226 = vst.msk [vmem:[%s1773_s23 + $0xf8] sm:$0xff] %vm1194_vm3, %v1193_v24 }
 0x2e1   : > { %1224 = vst.msk [vmem:[%s1773_s23 + $0xe8] sm:$0xff] %vm1194_vm3, %v1191_v25 }
 0x2e2 PF: > { %s17_s24 = sadd.s32 1, %s1552_s24  }
 0x2e3   : > { %p14_p4 = scmp.ge.s32.totalorder %s17_s24, 10  }
 0x2e5   :  { %16 = sbr.rel (!%p14_p4) target bundleno = 1 (0x1), region = 78 }

// kernel: custom-call.29
= control target key start
LH: loop header
LB: loop body
LE: loop exit
PB: predicated region body
PF: predicated region fallthrough
CT: control target
= control target key end

     0   :  { %s6_s0 = inlined_call_operand.vmem [shape: f32[2,64], index: 0, kind: output, shape index: {}]  }

// kernel: contact_graspnet_forward.9
= control target key start
LH: loop header
LB: loop body
LE: loop exit
PB: predicated region body
PF: predicated region fallthrough
CT: control target
= control target key end

     0   :  { %s1594_s24 = smov 0   ;;  %s1873_s0 = inlined_call_operand.vmem [shape: bf16[1024,8], index: 0, kind: input, shape index: {}]   ;;  %s1874_s1 = inlined_call_operand.vmem [shape: bf16[8,16], index: 1, kind: input, shape index: {}]   ;;  %s1875_s2 = inlined_call_operand.vmem [shape: f32[1,16], index: 2, kind: input, shape index: {}]   ;;  %s1876_s3 = inlined_call_operand.vmem [shape: bf16[16,16], index: 3, kind: input, shape index: {}]   ;;  %s1877_s4 = inlined_call_operand.vmem [shape: f32[1,16], index: 4, kind: input, shape index: {}]   ;;  %s1878_s5 = inlined_call_operand.vmem [shape: bf16[16,32], index: 5, kind: input, shape index: {}]   ;;  %s1879_s6 = inlined_call_operand.vmem [shape: f32[1,32], index: 6, kind: input, shape index: {}]   ;;  %s1880_s7 = inlined_call_operand.vmem [shape: f32[1024,32], index: 7, kind: output, shape index: {}]  }
   0x1 LB: > { %s1283_s25 = sadd.s32 4294967295, %s1552_s24   ;;  %p1287_p0 = scmp.ge.s32.totalorder %s1552_s24, 1  ;;  %s1552_s24 = sphi %s1594_s24, %s17_s24  }
   0x2   : > { %p238_p1 = scmp.lt.s32.totalorder %s1552_s24, 5 }
   0x4   : > { %p239_p2 = pnand %p1287_p0, %p238_p1 }
   0x5   : > { %v315_v0 = vld [vmem:[%s1874_s1] sm:$0xf] (!%p239_p2)  ;;  %vm452_vm0 = vcmask (!%p239_p2), 1043456   ;;  %s1288_s28 = sshll.u32 (!%p239_p2), %s1283_s25, 5  ;;  %vm403_vm1 = vcmask (!%p239_p2), 64512   ;;  %vm680_vm2 = vcmask (!%p239_p2), 130048  }
   0x6   : > { %242 = sbr.rel (%p239_p2) target bundleno = 738 (0x2e2), region = 48  ;;  %v1544_v1 = vld [vmem:[%s1876_s3] sm:$0xff] (!%p239_p2)   ;;  %1518 = vmatprep.subr.msk.bf16.mxu0 (!%p239_p2), %vm452_vm0, %v315_v0  ;;  %v454_v2 = vsel (!%p239_p2), %vm452_vm0, %v315_v0, 0  ;;  %p271_p3 = scmp.lt.s32.totalorder (!%p239_p2), %s1288_s28, 127  ;;  %1519 = vmatprep.subr.msk.bf16.mxu1 (!%p239_p2), %vm452_vm0, %v315_v0  ;;  %vm1194_vm3 = vcmask (!%p239_p2), 261120  }
   0x7   : > { %1415 = vmatpush3.bf16.msra.mxu0 (!%p239_p2), %v454_v2  ;;  %1517 = vmatpush3.bf16.msra.mxu1 (!%p239_p2), %v454_v2  ;;  %v1545_v19 = vld [vmem:[%s1878_s5] sm:$0xff] (!%p239_p2)  }
   0x8   : > { %1448 = vmatprep.subr.bf16.mxu1 (!%p239_p2), %v1544_v1  ;;  %1482 = vmatprep.subr.bf16.mxu0 (!%p239_p2), %v1545_v19  ;;  %v1654_v20 = vld [vmem:[%s1875_s2] ss:$0 sm:$0xff] (!%p239_p2) }
   0xd   : > { %s1882_s28 = smov (!%p271_p3, %s1288_s28), 127 }
   0xe   : > { %s1289_s8 = sshll.u32 %s1882_s28, 2  ;;  %s1291_s20 = sshll.u32 %s1882_s28, 3 }
   0xf   : > { %s1614_s11 = scalar_lea.vmem %s1873_s0, %s1289_s8  ;;  %s1773_s23 = scalar_lea.vmem %s1880_s7, %s1291_s20 }
  0x10   : > { %v1528_v3 = vld [vmem:[%s1614_s11] sm:$0xff]   ;;  %v1529_v4 = vld [vmem:[%s1614_s11 + $0x8] sm:$0xff]   ;;  %v1530_v5 = vld [vmem:[%s1614_s11 + $0x10] sm:$0xff]  }
  0x11   : > { %1416 = vmatprep.mubr.msk.bf16.mxu0 %vm403_vm1, %v1528_v3  ;;  %v1531_v6 = vld [vmem:[%s1614_s11 + $0x18] sm:$0xff]   ;;  %v1532_v7 = vld [vmem:[%s1614_s11 + $0x20] sm:$0xff]   ;;  %v1537_v9 = vld [vmem:[%s1614_s11 + $0x48] sm:$0xff]  }
  0x12   : > { %1417 = vmatmul.mubr.msk.bf16.vlgmr.msra.gmra.mrb[0].mxu0 %vm403_vm1, %v1529_v4  ;;  %v1536_v8 = vld [vmem:[%s1614_s11 + $0x40] sm:$0xff]   ;;  %v1538_v10 = vld [vmem:[%s1614_s11 + $0x50] sm:$0xff]   ;;  %v1533_v11 = vld [vmem:[%s1614_s11 + $0x28] sm:$0xff]  }
  0x13   : > { %1420 = vmatprep.mubr.msk.bf16.mxu0 %vm403_vm1, %v1530_v5  ;;  %1432 = vmatprep.mubr.msk.bf16.mxu1 %vm403_vm1, %v1536_v8  ;;  %v1539_v12 = vld [vmem:[%s1614_s11 + $0x58] sm:$0xff]   ;;  %v1534_v13 = vld [vmem:[%s1614_s11 + $0x30] sm:$0xff]   ;;  %v1540_v14 = vld [vmem:[%s1614_s11 + $0x60] sm:$0xff]  }
  0x14   : > { %1433 = vmatmul.mubr.msk.bf16.vlgmr.msra.gmra.mrb[0].mxu1 %vm403_vm1, %v1537_v9  ;;  %v1535_v15 = vld [vmem:[%s1614_s11 + $0x38] sm:$0xff]   ;;  %v1541_v16 = vld [vmem:[%s1614_s11 + $0x68] sm:$0xff]   ;;  %v1542_v17 = vld [vmem:[%s1614_s11 + $0x70] sm:$0xff]   ;;  %1483 = vmatpush3.bf16.msra.mxu0 %v1545_v19 }
  0x15   : > { %1436 = vmatprep.mubr.msk.bf16.mxu1 %vm403_vm1, %v1538_v10  ;;  %1449 = vmatpush3.bf16.msra.mxu1 %v1544_v1  ;;  %v1543_v18 = vld [vmem:[%s1614_s11 + $0x78] sm:$0xff]  }
  0x1a   : > { %1421 = vmatmul.mubr.msk.bf16.gmra.mrb[4].mxu0 %vm403_vm1, %v1531_v6 }
  0x1b   : > { %1424 = vmatprep.mubr.msk.bf16.mxu0 %vm403_vm1, %v1532_v7 }
  0x1c   : > { %1437 = vmatmul.mubr.msk.bf16.gmra.mrb[4].mxu1 %vm403_vm1, %v1539_v12 }
  0x1d   : > { %1440 = vmatprep.mubr.msk.bf16.mxu1 %vm403_vm1, %v1540_v14 }
  0x22   : > { %1425 = vmatmul.mubr.msk.bf16.gmra.mrb[8].mxu0 %vm403_vm1, %v1533_v11 }
  0x23   : > { %1428 = vmatprep.mubr.msk.bf16.mxu0 %vm403_vm1, %v1534_v13 }
  0x24   : > { %1441 = vmatmul.mubr.msk.bf16.gmra.mrb[8].mxu1 %vm403_vm1, %v1541_v16 }
  0x25   : > { %1444 = vmatprep.mubr.msk.bf16.mxu1 %vm403_vm1, %v1542_v17 }
  0x2a   : > { %1429 = vmatmul.mubr.msk.bf16.gmra.mrb[12].mxu0 %vm403_vm1, %v1535_v15 }
  0x2c   : > { %1445 = vmatmul.mubr.msk.bf16.gmra.mrb[12].mxu1 %vm403_vm1, %v1543_v18 }
  0xe5   : > { %v1418_v21 = vpop.f32.mrb[0].mxu0 }
  0xe6   : > { %v499_v22 = vadd.f32 %v1418_v21, %v1654_v20  ;;  %v490_v23 = vpop.f32.mrb[1].mxu0 }
  0xe7   : > { %v491_v24 = vadd.f32 %v1654_v20, %v490_v23  ;;  %v1419_v25 = vpop.f32.mrb[2].mxu0  ;;  %v1434_v36 = vpop.f32.mrb[0].mxu1 }
  0xe8   : > { %v502_v26 = vadd.f32 %v1419_v25, %v1654_v20  ;;  %v493_v27 = vpop.f32.mrb[3].mxu0  ;;  %v619_v29 = vmax.f32 %v499_v22, 0.0  ;;  %v563_v39 = vadd.f32 %v1434_v36, %v1654_v20  ;;  %v554_v40 = vpop.f32.mrb[1].mxu1 }
  0xe9   : > { %v494_v28 = vadd.f32 %v1654_v20, %v493_v27  ;;  %v617_v31 = vmax.f32 %v491_v24, 0.0  ;;  %v555_v43 = vadd.f32 %v1654_v20, %v554_v40  ;;  %v1435_v44 = vpop.f32.mrb[2].mxu1 }
  0xea   : > { %v620_v30 = vmax.f32 %v502_v26, 0.0  ;;  %v635_v47 = vmax.f32 %v563_v39, 0.0  ;;  %v566_v48 = vadd.f32 %v1435_v44, %v1654_v20  ;;  %v557_v49 = vpop.f32.mrb[3].mxu1 }
  0xeb   : > { %v618_v32 = vmax.f32 %v494_v28, 0.0  ;;  %v633_v51 = vmax.f32 %v555_v43, 0.0  ;;  %v558_v52 = vadd.f32 %v1654_v20, %v557_v49 }
  0xec   : > { %v650_v33 = vpack.c.bf16 %v620_v30, %v619_v29  ;;  %v636_v55 = vmax.f32 %v566_v48, 0.0 }
  0xed   : > { %v649_v34 = vpack.c.bf16 %v618_v32, %v617_v31  ;;  %v1422_v35 = vpop.f32.mrb[4].mxu0  ;;  %v634_v58 = vmax.f32 %v558_v52, 0.0 }
  0xee   : > { %v515_v37 = vadd.f32 %v1422_v35, %v1654_v20  ;;  %v506_v38 = vpop.f32.mrb[5].mxu0  ;;  %v1670_v60 = vpack.c.bf16 %v636_v55, %v635_v47 }
  0xef   : > { %v507_v41 = vadd.f32 %v1654_v20, %v506_v38  ;;  %v1423_v42 = vpop.f32.mrb[6].mxu0  ;;  %1450 = vmatprep.mubr.msk.bf16.mxu1 %vm680_vm2, %v649_v34  ;;  %v1672_v63 = vpack.c.bf16 %v634_v58, %v633_v51  ;;  %v1438_v0 = vpop.f32.mrb[4].mxu1 }
  0xf0   : > { %v518_v45 = vadd.f32 %v1423_v42, %v1654_v20  ;;  %v509_v46 = vpop.f32.mrb[7].mxu0  ;;  %1451 = vmatmul.mubr.msk.bf16.vlgmr.msra.gmra.mrb[16].mxu1 %vm680_vm2, %v650_v33  ;;  %v623_v53 = vmax.f32 %v515_v37, 0.0  ;;  %v579_v3 = vadd.f32 %v1438_v0, %v1654_v20  ;;  %v570_v4 = vpop.f32.mrb[5].mxu1 }
  0xf1   : > { %v510_v50 = vadd.f32 %v1654_v20, %v509_v46  ;;  %v621_v56 = vmax.f32 %v507_v41, 0.0  ;;  %v571_v7 = vadd.f32 %v1654_v20, %v570_v4  ;;  %v1439_v8 = vpop.f32.mrb[6].mxu1 }
  0xf2   : > { %v624_v54 = vmax.f32 %v518_v45, 0.0  ;;  %v639_v11 = vmax.f32 %v579_v3, 0.0  ;;  %v582_v12 = vadd.f32 %v1439_v8, %v1654_v20  ;;  %v573_v13 = vpop.f32.mrb[7].mxu1 }
  0xf3   : > { %v622_v57 = vmax.f32 %v510_v50, 0.0  ;;  %v637_v15 = vmax.f32 %v571_v7, 0.0  ;;  %v574_v16 = vadd.f32 %v1654_v20, %v573_v13 }
  0xf4   : > { %v652_v59 = vpack.c.bf16 %v624_v54, %v623_v53  ;;  %v640_v19 = vmax.f32 %v582_v12, 0.0 }
  0xf5   : > { %v651_v61 = vpack.c.bf16 %v622_v57, %v621_v56  ;;  %v1426_v62 = vpop.f32.mrb[8].mxu0  ;;  %v638_v23 = vmax.f32 %v574_v16, 0.0 }
  0xf6   : > { %v531_v1 = vadd.f32 %v1426_v62, %v1654_v20  ;;  %v522_v2 = vpop.f32.mrb[9].mxu0  ;;  %v660_v25 = vpack.c.bf16 %v640_v19, %v639_v11 }
  0xf7   : > { %v523_v5 = vadd.f32 %v1654_v20, %v522_v2  ;;  %v1427_v6 = vpop.f32.mrb[10].mxu0  ;;  %1454 = vmatprep.mubr.msk.bf16.mxu1 %vm680_vm2, %v651_v61  ;;  %v659_v28 = vpack.c.bf16 %v638_v23, %v637_v15  ;;  %v1442_v29 = vpop.f32.mrb[8].mxu1 }
  0xf8   : > { %v534_v9 = vadd.f32 %v1427_v6, %v1654_v20  ;;  %v525_v10 = vpop.f32.mrb[11].mxu0  ;;  %1455 = vmatmul.mubr.msk.bf16.gmra.mrb[20].mxu1 %vm680_vm2, %v652_v59  ;;  %v627_v17 = vmax.f32 %v531_v1, 0.0  ;;  %v595_v32 = vadd.f32 %v1442_v29, %v1654_v20  ;;  %v586_v33 = vpop.f32.mrb[9].mxu1 }
  0xf9   : > { %v526_v14 = vadd.f32 %v1654_v20, %v525_v10  ;;  %v625_v21 = vmax.f32 %v523_v5, 0.0  ;;  %v587_v36 = vadd.f32 %v1654_v20, %v586_v33  ;;  %v1443_v37 = vpop.f32.mrb[10].mxu1 }
  0xfa   : > { %v628_v18 = vmax.f32 %v534_v9, 0.0  ;;  %v643_v40 = vmax.f32 %v595_v32, 0.0  ;;  %v598_v41 = vadd.f32 %v1443_v37, %v1654_v20  ;;  %v589_v42 = vpop.f32.mrb[11].mxu1 }
  0xfb   : > { %v626_v22 = vmax.f32 %v526_v14, 0.0  ;;  %v641_v44 = vmax.f32 %v587_v36, 0.0  ;;  %v590_v45 = vadd.f32 %v1654_v20, %v589_v42 }
  0xfc   : > { %v654_v24 = vpack.c.bf16 %v628_v18, %v627_v17  ;;  %v644_v48 = vmax.f32 %v598_v41, 0.0 }
  0xfd   : > { %v653_v26 = vpack.c.bf16 %v626_v22, %v625_v21  ;;  %v1430_v27 = vpop.f32.mrb[12].mxu0  ;;  %v642_v51 = vmax.f32 %v590_v45, 0.0 }
  0xfe   : > { %v547_v30 = vadd.f32 %v1430_v27, %v1654_v20  ;;  %v538_v31 = vpop.f32.mrb[13].mxu0  ;;  %v662_v53 = vpack.c.bf16 %v644_v48, %v643_v40 }
  0xff   : > { %v539_v34 = vadd.f32 %v1654_v20, %v538_v31  ;;  %v1431_v35 = vpop.f32.mrb[14].mxu0  ;;  %1458 = vmatprep.mubr.msk.bf16.mxu1 %vm680_vm2, %v653_v26  ;;  %v661_v55 = vpack.c.bf16 %v642_v51, %v641_v44  ;;  %v1446_v56 = vpop.f32.mrb[12].mxu1 }
 0x100   : > { %v550_v38 = vadd.f32 %v1431_v35, %v1654_v20  ;;  %v541_v39 = vpop.f32.mrb[15].mxu0  ;;  %1459 = vmatmul.mubr.msk.bf16.gmra.mrb[24].mxu1 %vm680_vm2, %v654_v24  ;;  %v631_v46 = vmax.f32 %v547_v30, 0.0  ;;  %v611_v57 = vadd.f32 %v1446_v56, %v1654_v20  ;;  %v602_v58 = vpop.f32.mrb[13].mxu1 }
 0x101   : > { %v542_v43 = vadd.f32 %v1654_v20, %v541_v39  ;;  %v629_v49 = vmax.f32 %v539_v34, 0.0  ;;  %v603_v59 = vadd.f32 %v1654_v20, %v602_v58  ;;  %v1447_v61 = vpop.f32.mrb[14].mxu1 }
 0x102   : > { %v632_v47 = vmax.f32 %v550_v38, 0.0  ;;  %v647_v62 = vmax.f32 %v611_v57, 0.0  ;;  %v614_v0 = vadd.f32 %v1447_v61, %v1654_v20  ;;  %v605_v1 = vpop.f32.mrb[15].mxu1 }
 0x103   : > { %v630_v50 = vmax.f32 %v542_v43, 0.0  ;;  %v645_v2 = vmax.f32 %v603_v59, 0.0  ;;  %v606_v3 = vadd.f32 %v1654_v20, %v605_v1  ;;  %v1713_v20 = vld [vmem:[%s1877_s4] ss:$0 sm:$0xff] }
 0x104   : > { %v656_v52 = vpack.c.bf16 %v632_v47, %v631_v46  ;;  %v648_v4 = vmax.f32 %v614_v0, 0.0 }
 0x105   : > { %v655_v54 = vpack.c.bf16 %v630_v50, %v629_v49  ;;  %v646_v5 = vmax.f32 %v606_v3, 0.0 }
 0x106   : > { %v664_v6 = vpack.c.bf16 %v648_v4, %v647_v62 }
 0x107   : > { %1462 = vmatprep.mubr.msk.bf16.mxu1 %vm680_vm2, %v655_v54  ;;  %v663_v7 = vpack.c.bf16 %v646_v5, %v645_v2 }
 0x108   : > { %1463 = vmatmul.mubr.msk.bf16.gmra.mrb[28].mxu1 %vm680_vm2, %v656_v52 }
 0x109   : > { %1466 = vmatprep.mubr.msk.bf16.mxu1 %vm680_vm2, %v1672_v63 }
 0x110   : > { %1467 = vmatmul.mubr.msk.bf16.gmra.mrb[32].mxu1 %vm680_vm2, %v1670_v60 }
 0x111   : > { %1470 = vmatprep.mubr.msk.bf16.mxu1 %vm680_vm2, %v659_v28 }
 0x118   : > { %1471 = vmatmul.mubr.msk.bf16.gmra.mrb[36].mxu1 %vm680_vm2, %v660_v25 }
 0x119   : > { %1474 = vmatprep.mubr.msk.bf16.mxu1 %vm680_vm2, %v661_v55 }
 0x120   : > { %1475 = vmatmul.mubr.msk.bf16.gmra.mrb[40].mxu1 %vm680_vm2, %v662_v53 }
 0x121   : > { %1478 = vmatprep.mubr.msk.bf16.mxu1 %vm680_vm2, %v663_v7 }
 0x128   : > { %1479 = vmatmul.mubr.msk.bf16.gmra.mrb[44].mxu1 %vm680_vm2, %v664_v6 }
 0x1c3   : > { %v1452_v63 = vpop.f32.mrb[16].mxu1 }
 0x1c4   : > { %v772_v60 = vadd.f32 %v1452_v63, %v1713_v20  ;;  %v763_v8 = vpop.f32.mrb[17].mxu1 }
 0x1c5   : > { %v764_v9 = vadd.f32 %v1713_v20, %v763_v8  ;;  %v1453_v10 = vpop.f32.mrb[18].mxu1 }
 0x1c6   : > { %v775_v11 = vadd.f32 %v1453_v10, %v1713_v20  ;;  %v766_v12 = vpop.f32.mrb[19].mxu1  ;;  %v892_v14 = vmax.f32 %v772_v60, 0.0 }
 0x1c7   : > { %v767_v13 = vadd.f32 %v1713_v20, %v766_v12  ;;  %v890_v16 = vmax.f32 %v764_v9, 0.0 }
 0x1c8   : > { %v893_v15 = vmax.f32 %v775_v11, 0.0 }
 0x1c9   : > { %v891_v17 = vmax.f32 %v767_v13, 0.0 }
 0x1ca   : > { %v923_v18 = vpack.c.bf16 %v893_v15, %v892_v14 }
 0x1cb   : > { %v922_v19 = vpack.c.bf16 %v891_v17, %v890_v16  ;;  %v1456_v21 = vpop.f32.mrb[20].mxu1 }
 0x1cc   : > { %v788_v22 = vadd.f32 %v1456_v21, %v1713_v20  ;;  %v779_v23 = vpop.f32.mrb[21].mxu1 }
 0x1cd   : > { %v780_v24 = vadd.f32 %v1713_v20, %v779_v23  ;;  %v1457_v25 = vpop.f32.mrb[22].mxu1  ;;  %1484 = vmatprep.mubr.msk.bf16.mxu0 %vm680_vm2, %v922_v19 }
 0x1ce   : > { %v791_v26 = vadd.f32 %v1457_v25, %v1713_v20  ;;  %v782_v27 = vpop.f32.mrb[23].mxu1  ;;  %1485 = vmatmul.mubr.msk.bf16.vlgmr.msra.gmra.mrb[16].mxu0 %vm680_vm2, %v923_v18  ;;  %v896_v29 = vmax.f32 %v788_v22, 0.0 }
 0x1cf   : > { %v783_v28 = vadd.f32 %v1713_v20, %v782_v27  ;;  %v894_v31 = vmax.f32 %v780_v24, 0.0 }
 0x1d0   : > { %v897_v30 = vmax.f32 %v791_v26, 0.0 }
 0x1d1   : > { %v895_v32 = vmax.f32 %v783_v28, 0.0 }
 0x1d2   : > { %v925_v33 = vpack.c.bf16 %v897_v30, %v896_v29 }
 0x1d3   : > { %v924_v34 = vpack.c.bf16 %v895_v32, %v894_v31  ;;  %v1460_v35 = vpop.f32.mrb[24].mxu1 }
 0x1d4   : > { %v804_v36 = vadd.f32 %v1460_v35, %v1713_v20  ;;  %v795_v37 = vpop.f32.mrb[25].mxu1 }
 0x1d5   : > { %v796_v38 = vadd.f32 %v1713_v20, %v795_v37  ;;  %v1461_v39 = vpop.f32.mrb[26].mxu1  ;;  %1488 = vmatprep.mubr.msk.bf16.mxu0 %vm680_vm2, %v924_v34 }
 0x1d6   : > { %v807_v40 = vadd.f32 %v1461_v39, %v1713_v20  ;;  %v798_v41 = vpop.f32.mrb[27].mxu1  ;;  %1489 = vmatmul.mubr.msk.bf16.gmra.mrb[20].mxu0 %vm680_vm2, %v925_v33  ;;  %v900_v43 = vmax.f32 %v804_v36, 0.0 }
 0x1d7   : > { %v799_v42 = vadd.f32 %v1713_v20, %v798_v41  ;;  %v898_v45 = vmax.f32 %v796_v38, 0.0 }
 0x1d8   : > { %v901_v44 = vmax.f32 %v807_v40, 0.0 }
 0x1d9   : > { %v899_v46 = vmax.f32 %v799_v42, 0.0 }
 0x1da   : > { %v927_v47 = vpack.c.bf16 %v901_v44, %v900_v43 }
 0x1db   : > { %v926_v48 = vpack.c.bf16 %v899_v46, %v898_v45  ;;  %v1464_v49 = vpop.f32.mrb[28].mxu1 }
 0x1dc   : > { %v820_v50 = vadd.f32 %v1464_v49, %v1713_v20  ;;  %v811_v51 = vpop.f32.mrb[29].mxu1 }
 0x1dd   : > { %v812_v52 = vadd.f32 %v1713_v20, %v811_v51  ;;  %v1465_v53 = vpop.f32.mrb[30].mxu1  ;;  %1492 = vmatprep.mubr.msk.bf16.mxu0 %vm680_vm2, %v926_v48 }
 0x1de   : > { %v823_v54 = vadd.f32 %v1465_v53, %v1713_v20  ;;  %v814_v55 = vpop.f32.mrb[31].mxu1  ;;  %1493 = vmatmul.mubr.msk.bf16.gmra.mrb[24].mxu0 %vm680_vm2, %v927_v47  ;;  %v904_v57 = vmax.f32 %v820_v50, 0.0 }
 0x1df   : > { %v815_v56 = vadd.f32 %v1713_v20, %v814_v55  ;;  %v902_v59 = vmax.f32 %v812_v52, 0.0 }
 0x1e0   : > { %v905_v58 = vmax.f32 %v823_v54, 0.0 }
 0x1e1   : > { %v903_v61 = vmax.f32 %v815_v56, 0.0  ;;  %v1766_v56 = vld [vmem:[%s1879_s6] ss:$0 sm:$0xff] }
 0x1e2   : > { %v929_v62 = vpack.c.bf16 %v905_v58, %v904_v57 }
 0x1e3   : > { %v928_v0 = vpack.c.bf16 %v903_v61, %v902_v59  ;;  %v1468_v1 = vpop.f32.mrb[32].mxu1 }
 0x1e4   : > { %v836_v2 = vadd.f32 %v1468_v1, %v1713_v20  ;;  %v827_v3 = vpop.f32.mrb[33].mxu1 }
 0x1e5   : > { %v828_v4 = vadd.f32 %v1713_v20, %v827_v3  ;;  %v1469_v5 = vpop.f32.mrb[34].mxu1  ;;  %1496 = vmatprep.mubr.msk.bf16.mxu0 %vm680_vm2, %v928_v0 }
 0x1e6   : > { %v839_v6 = vadd.f32 %v1469_v5, %v1713_v20  ;;  %v830_v7 = vpop.f32.mrb[35].mxu1  ;;  %1497 = vmatmul.mubr.msk.bf16.gmra.mrb[28].mxu0 %vm680_vm2, %v929_v62  ;;  %v908_v60 = vmax.f32 %v836_v2, 0.0 }
 0x1e7   : > { %v831_v63 = vadd.f32 %v1713_v20, %v830_v7  ;;  %v906_v9 = vmax.f32 %v828_v4, 0.0 }
 0x1e8   : > { %v909_v8 = vmax.f32 %v839_v6, 0.0 }
 0x1e9   : > { %v907_v10 = vmax.f32 %v831_v63, 0.0 }
 0x1ea   : > { %v931_v11 = vpack.c.bf16 %v909_v8, %v908_v60 }
 0x1eb   : > { %v930_v12 = vpack.c.bf16 %v907_v10, %v906_v9  ;;  %v1472_v13 = vpop.f32.mrb[36].mxu1 }
 0x1ec   : > { %v852_v14 = vadd.f32 %v1472_v13, %v1713_v20  ;;  %v843_v15 = vpop.f32.mrb[37].mxu1 }
 0x1ed   : > { %v844_v16 = vadd.f32 %v1713_v20, %v843_v15  ;;  %v1473_v17 = vpop.f32.mrb[38].mxu1  ;;  %1500 = vmatprep.mubr.msk.bf16.mxu0 %vm680_vm2, %v930_v12 }
 0x1ee   : > { %v855_v18 = vadd.f32 %v1473_v17, %v1713_v20  ;;  %v846_v19 = vpop.f32.mrb[39].mxu1  ;;  %1501 = vmatmul.mubr.msk.bf16.gmra.mrb[32].mxu0 %vm680_vm2, %v931_v11  ;;  %v912_v22 = vmax.f32 %v852_v14, 0.0 }
 0x1ef   : > { %v847_v21 = vadd.f32 %v1713_v20, %v846_v19  ;;  %v910_v24 = vmax.f32 %v844_v16, 0.0 }
 0x1f0   : > { %v913_v23 = vmax.f32 %v855_v18, 0.0 }
 0x1f1   : > { %v911_v25 = vmax.f32 %v847_v21, 0.0 }
 0x1f2   : > { %v933_v26 = vpack.c.bf16 %v913_v23, %v912_v22 }
 0x1f3   : > { %v932_v27 = vpack.c.bf16 %v911_v25, %v910_v24  ;;  %v1476_v28 = vpop.f32.mrb[40].mxu1 }
 0x1f4   : > { %v868_v29 = vadd.f32 %v1476_v28, %v1713_v20  ;;  %v859_v30 = vpop.f32.mrb[41].mxu1 }
 0x1f5   : > { %v860_v31 = vadd.f32 %v1713_v20, %v859_v30  ;;  %v1477_v32 = vpop.f32.mrb[42].mxu1  ;;  %1504 = vmatprep.mubr.msk.bf16.mxu0 %vm680_vm2, %v932_v27 }
 0x1f6   : > { %v871_v33 = vadd.f32 %v1477_v32, %v1713_v20  ;;  %v862_v34 = vpop.f32.mrb[43].mxu1  ;;  %1505 = vmatmul.mubr.msk.bf16.gmra.mrb[36].mxu0 %vm680_vm2, %v933_v26  ;;  %v916_v36 = vmax.f32 %v868_v29, 0.0 }
 0x1f7   : > { %v863_v35 = vadd.f32 %v1713_v20, %v862_v34  ;;  %v914_v38 = vmax.f32 %v860_v31, 0.0 }
 0x1f8   : > { %v917_v37 = vmax.f32 %v871_v33, 0.0 }
 0x1f9   : > { %v915_v39 = vmax.f32 %v863_v35, 0.0 }
 0x1fa   : > { %v935_v40 = vpack.c.bf16 %v917_v37, %v916_v36 }
 0x1fb   : > { %v934_v41 = vpack.c.bf16 %v915_v39, %v914_v38  ;;  %v1480_v42 = vpop.f32.mrb[44].mxu1 }
 0x1fc   : > { %v884_v43 = vadd.f32 %v1480_v42, %v1713_v20  ;;  %v875_v44 = vpop.f32.mrb[45].mxu1 }
 0x1fd   : > { %v876_v45 = vadd.f32 %v1713_v20, %v875_v44  ;;  %v1481_v46 = vpop.f32.mrb[46].mxu1  ;;  %1508 = vmatprep.mubr.msk.bf16.mxu0 %vm680_vm2, %v934_v41 }
 0x1fe   : > { %v887_v47 = vadd.f32 %v1481_v46, %v1713_v20  ;;  %v878_v48 = vpop.f32.mrb[47].mxu1  ;;  %1509 = vmatmul.mubr.msk.bf16.gmra.mrb[40].mxu0 %vm680_vm2, %v935_v40  ;;  %v920_v50 = vmax.f32 %v884_v43, 0.0 }
 0x1ff   : > { %v879_v49 = vadd.f32 %v1713_v20, %v878_v48  ;;  %v918_v52 = vmax.f32 %v876_v45, 0.0 }
 0x200   : > { %v921_v51 = vmax.f32 %v887_v47, 0.0 }
 0x201   : > { %v919_v53 = vmax.f32 %v879_v49, 0.0 }
 0x202   : > { %v937_v54 = vpack.c.bf16 %v921_v51, %v920_v50 }
 0x203   : > { %v936_v55 = vpack.c.bf16 %v919_v53, %v918_v52 }
 0x205   : > { %1512 = vmatprep.mubr.msk.bf16.mxu0 %vm680_vm2, %v936_v55 }
 0x206   : > { %1513 = vmatmul.mubr.msk.bf16.gmra.mrb[44].mxu0 %vm680_vm2, %v937_v54 }
 0x2a1   : > { %v1486_v57 = vpop.f32.mrb[16].mxu0 }
 0x2a2   : > { %v1044_v58 = vadd.f32 %v1486_v57, %v1766_v56  ;;  %v1035_v20 = vpop.f32.mrb[17].mxu0 }
 0x2a3   : > { %v1036_v59 = vadd.f32 %v1766_v56, %v1035_v20  ;;  %v1487_v61 = vpop.f32.mrb[18].mxu0 }
 0x2a4   : > { %v1164_v62 = vmax.f32 %v1044_v58, 0.0  ;;  %v1047_v0 = vadd.f32 %v1487_v61, %v1766_v56  ;;  %v1038_v1 = vpop.f32.mrb[19].mxu0 }
 0x2a5   : > { %v1162_v2 = vmax.f32 %v1036_v59, 0.0  ;;  %v1039_v3 = vadd.f32 %v1766_v56, %v1038_v1 }
 0x2a6   : > { %1197 = vst.msk [vmem:[%s1773_s23 + $0x10] sm:$0xff] %vm1194_vm3, %v1164_v62  ;;  %v1165_v4 = vmax.f32 %v1047_v0, 0.0 }
 0x2a7   : > { %1195 = vst.msk [vmem:[%s1773_s23] sm:$0xff] %vm1194_vm3, %v1162_v2  ;;  %v1163_v5 = vmax.f32 %v1039_v3, 0.0 }
 0x2a8   : > { %1198 = vst.msk [vmem:[%s1773_s23 + $0x18] sm:$0xff] %vm1194_vm3, %v1165_v4 }
 0x2a9   : > { %1196 = vst.msk [vmem:[%s1773_s23 + $0x8] sm:$0xff] %vm1194_vm3, %v1163_v5  ;;  %v1490_v6 = vpop.f32.mrb[20].mxu0 }
 0x2aa   : > { %v1060_v7 = vadd.f32 %v1490_v6, %v1766_v56  ;;  %v1051_v63 = vpop.f32.mrb[21].mxu0 }
 0x2ab   : > { %v1052_v60 = vadd.f32 %v1766_v56, %v1051_v63  ;;  %v1491_v8 = vpop.f32.mrb[22].mxu0 }
 0x2ac   : > { %v1168_v9 = vmax.f32 %v1060_v7, 0.0  ;;  %v1063_v10 = vadd.f32 %v1491_v8, %v1766_v56  ;;  %v1054_v11 = vpop.f32.mrb[23].mxu0 }
 0x2ad   : > { %v1166_v12 = vmax.f32 %v1052_v60, 0.0  ;;  %v1055_v13 = vadd.f32 %v1766_v56, %v1054_v11 }
 0x2ae   : > { %1201 = vst.msk [vmem:[%s1773_s23 + $0x30] sm:$0xff] %vm1194_vm3, %v1168_v9  ;;  %v1169_v14 = vmax.f32 %v1063_v10, 0.0 }
 0x2af   : > { %1199 = vst.msk [vmem:[%s1773_s23 + $0x20] sm:$0xff] %vm1194_vm3, %v1166_v12  ;;  %v1167_v15 = vmax.f32 %v1055_v13, 0.0 }
 0x2b0   : > { %1202 = vst.msk [vmem:[%s1773_s23 + $0x38] sm:$0xff] %vm1194_vm3, %v1169_v14 }
 0x2b1   : > { %1200 = vst.msk [vmem:[%s1773_s23 + $0x28] sm:$0xff] %vm1194_vm3, %v1167_v15  ;;  %v1494_v16 = vpop.f32.mrb[24].mxu0 }
 0x2b2   : > { %v1076_v17 = vadd.f32 %v1494_v16, %v1766_v56  ;;  %v1067_v18 = vpop.f32.mrb[25].mxu0 }
 0x2b3   : > { %v1068_v19 = vadd.f32 %v1766_v56, %v1067_v18  ;;  %v1495_v21 = vpop.f32.mrb[26].mxu0 }
 0x2b4   : > { %v1172_v22 = vmax.f32 %v1076_v17, 0.0  ;;  %v1079_v23 = vadd.f32 %v1495_v21, %v1766_v56  ;;  %v1070_v24 = vpop.f32.mrb[27].mxu0 }
 0x2b5   : > { %v1170_v25 = vmax.f32 %v1068_v19, 0.0  ;;  %v1071_v26 = vadd.f32 %v1766_v56, %v1070_v24 }
 0x2b6   : > { %1205 = vst.msk [vmem:[%s1773_s23 + $0x50] sm:$0xff] %vm1194_vm3, %v1172_v22  ;;  %v1173_v27 = vmax.f32 %v1079_v23, 0.0 }
 0x2b7   : > { %1203 = vst.msk [vmem:[%s1773_s23 + $0x40] sm:$0xff] %vm1194_vm3, %v1170_v25  ;;  %v1171_v28 = vmax.f32 %v1071_v26, 0.0 }
 0x2b8   : > { %1206 = vst.msk [vmem:[%s1773_s23 + $0x58] sm:$0xff] %vm1194_vm3, %v1173_v27 }
 0x2b9   : > { %1204 = vst.msk [vmem:[%s1773_s23 + $0x48] sm:$0xff] %vm1194_vm3, %v1171_v28  ;;  %v1498_v29 = vpop.f32.mrb[28].mxu0 }
 0x2ba   : > { %v1092_v30 = vadd.f32 %v1498_v29, %v1766_v56  ;;  %v1083_v31 = vpop.f32.mrb[29].mxu0 }
 0x2bb   : > { %v1084_v32 = vadd.f32 %v1766_v56, %v1083_v31  ;;  %v1499_v33 = vpop.f32.mrb[30].mxu0 }
 0x2bc   : > { %v1176_v34 = vmax.f32 %v1092_v30, 0.0  ;;  %v1095_v35 = vadd.f32 %v1499_v33, %v1766_v56  ;;  %v1086_v36 = vpop.f32.mrb[31].mxu0 }
 0x2bd   : > { %v1174_v37 = vmax.f32 %v1084_v32, 0.0  ;;  %v1087_v38 = vadd.f32 %v1766_v56, %v1086_v36 }
 0x2be   : > { %1209 = vst.msk [vmem:[%s1773_s23 + $0x70] sm:$0xff] %vm1194_vm3, %v1176_v34  ;;  %v1177_v39 = vmax.f32 %v1095_v35, 0.0 }
 0x2bf   : > { %1207 = vst.msk [vmem:[%s1773_s23 + $0x60] sm:$0xff] %vm1194_vm3, %v1174_v37  ;;  %v1175_v40 = vmax.f32 %v1087_v38, 0.0 }
 0x2c0   : > { %1210 = vst.msk [vmem:[%s1773_s23 + $0x78] sm:$0xff] %vm1194_vm3, %v1177_v39 }
 0x2c1   : > { %1208 = vst.msk [vmem:[%s1773_s23 + $0x68] sm:$0xff] %vm1194_vm3, %v1175_v40  ;;  %v1502_v41 = vpop.f32.mrb[32].mxu0 }
 0x2c2   : > { %v1108_v42 = vadd.f32 %v1502_v41, %v1766_v56  ;;  %v1099_v43 = vpop.f32.mrb[33].mxu0 }
 0x2c3   : > { %v1100_v44 = vadd.f32 %v1766_v56, %v1099_v43  ;;  %v1503_v45 = vpop.f32.mrb[34].mxu0 }
 0x2c4   : > { %v1180_v46 = vmax.f32 %v1108_v42, 0.0  ;;  %v1111_v47 = vadd.f32 %v1503_v45, %v1766_v56  ;;  %v1102_v48 = vpop.f32.mrb[35].mxu0 }
 0x2c5   : > { %v1178_v49 = vmax.f32 %v1100_v44, 0.0  ;;  %v1103_v50 = vadd.f32 %v1766_v56, %v1102_v48 }
 0x2c6   : > { %1213 = vst.msk [vmem:[%s1773_s23 + $0x90] sm:$0xff] %vm1194_vm3, %v1180_v46  ;;  %v1181_v51 = vmax.f32 %v1111_v47, 0.0 }
 0x2c7   : > { %1211 = vst.msk [vmem:[%s1773_s23 + $0x80] sm:$0xff] %vm1194_vm3, %v1178_v49  ;;  %v1179_v52 = vmax.f32 %v1103_v50, 0.0 }
 0x2c8   : > { %1214 = vst.msk [vmem:[%s1773_s23 + $0x98] sm:$0xff] %vm1194_vm3, %v1181_v51 }
 0x2c9   : > { %1212 = vst.msk [vmem:[%s1773_s23 + $0x88] sm:$0xff] %vm1194_vm3, %v1179_v52  ;;  %v1506_v53 = vpop.f32.mrb[36].mxu0 }
 0x2ca   : > { %v1124_v54 = vadd.f32 %v1506_v53, %v1766_v56  ;;  %v1115_v55 = vpop.f32.mrb[37].mxu0 }
 0x2cb   : > { %v1116_v57 = vadd.f32 %v1766_v56, %v1115_v55  ;;  %v1507_v58 = vpop.f32.mrb[38].mxu0 }
 0x2cc   : > { %v1184_v20 = vmax.f32 %v1124_v54, 0.0  ;;  %v1127_v59 = vadd.f32 %v1507_v58, %v1766_v56  ;;  %v1118_v61 = vpop.f32.mrb[39].mxu0 }
 0x2cd   : > { %v1182_v62 = vmax.f32 %v1116_v57, 0.0  ;;  %v1119_v0 = vadd.f32 %v1766_v56, %v1118_v61 }
 0x2ce   : > { %1217 = vst.msk [vmem:[%s1773_s23 + $0xb0] sm:$0xff] %vm1194_vm3, %v1184_v20  ;;  %v1185_v1 = vmax.f32 %v1127_v59, 0.0 }
 0x2cf   : > { %1215 = vst.msk [vmem:[%s1773_s23 + $0xa0] sm:$0xff] %vm1194_vm3, %v1182_v62  ;;  %v1183_v2 = vmax.f32 %v1119_v0, 0.0 }
 0x2d0   : > { %1218 = vst.msk [vmem:[%s1773_s23 + $0xb8] sm:$0xff] %vm1194_vm3, %v1185_v1 }
 0x2d1   : > { %1216 = vst.msk [vmem:[%s1773_s23 + $0xa8] sm:$0xff] %vm1194_vm3, %v1183_v2  ;;  %v1510_v3 = vpop.f32.mrb[40].mxu0 }
 0x2d2   : > { %v1140_v4 = vadd.f32 %v1510_v3, %v1766_v56  ;;  %v1131_v5 = vpop.f32.mrb[41].mxu0 }
 0x2d3   : > { %v1132_v6 = vadd.f32 %v1766_v56, %v1131_v5  ;;  %v1511_v7 = vpop.f32.mrb[42].mxu0 }
 0x2d4   : > { %v1188_v63 = vmax.f32 %v1140_v4, 0.0  ;;  %v1143_v60 = vadd.f32 %v1511_v7, %v1766_v56  ;;  %v1134_v8 = vpop.f32.mrb[43].mxu0 }
 0x2d5   : > { %v1186_v9 = vmax.f32 %v1132_v6, 0.0  ;;  %v1135_v10 = vadd.f32 %v1766_v56, %v1134_v8 }
 0x2d6   : > { %1221 = vst.msk [vmem:[%s1773_s23 + $0xd0] sm:$0xff] %vm1194_vm3, %v1188_v63  ;;  %v1189_v11 = vmax.f32 %v1143_v60, 0.0 }
 0x2d7   : > { %1219 = vst.msk [vmem:[%s1773_s23 + $0xc0] sm:$0xff] %vm1194_vm3, %v1186_v9  ;;  %v1187_v12 = vmax.f32 %v1135_v10, 0.0 }
 0x2d8   : > { %1222 = vst.msk [vmem:[%s1773_s23 + $0xd8] sm:$0xff] %vm1194_vm3, %v1189_v11 }
 0x2d9   : > { %1220 = vst.msk [vmem:[%s1773_s23 + $0xc8] sm:$0xff] %vm1194_vm3, %v1187_v12  ;;  %v1514_v13 = vpop.f32.mrb[44].mxu0 }
 0x2da   : > { %v1156_v14 = vadd.f32 %v1514_v13, %v1766_v56  ;;  %v1147_v15 = vpop.f32.mrb[45].mxu0 }
 0x2db   : > { %v1148_v16 = vadd.f32 %v1766_v56, %v1147_v15  ;;  %v1515_v17 = vpop.f32.mrb[46].mxu0 }
 0x2dc   : > { %v1192_v18 = vmax.f32 %v1156_v14, 0.0  ;;  %v1159_v19 = vadd.f32 %v1515_v17, %v1766_v56  ;;  %v1150_v21 = vpop.f32.mrb[47].mxu0 }
 0x2dd   : > { %v1190_v22 = vmax.f32 %v1148_v16, 0.0  ;;  %v1151_v23 = vadd.f32 %v1766_v56, %v1150_v21 }
 0x2de   : > { %1225 = vst.msk [vmem:[%s1773_s23 + $0xf0] sm:$0xff] %vm1194_vm3, %v1192_v18  ;;  %v1193_v24 = vmax.f32 %v1159_v19, 0.0 }
 0x2df   : > { %1223 = vst.msk [vmem:[%s1773_s23 + $0xe0] sm:$0xff] %vm1194_vm3, %v1190_v22  ;;  %v1191_v25 = vmax.f32 %v1151_v23, 0.0 }
 0x2e0   : > { %1226 = vst.msk [vmem:[%s1773_s23 + $0xf8] sm:$0xff] %vm1194_vm3, %v1193_v24 }
 0x2e1   : > { %1224 = vst.msk [vmem:[%s1773_s23 + $0xe8] sm:$0xff] %vm1194_vm3, %v1191_v25 }
 0x2e2 PF: > { %s17_s24 = sadd.s32 1, %s1552_s24  }
 0x2e3   : > { %p14_p4 = scmp.ge.s32.totalorder %s17_s24, 6  }
 0x2e5   :  { %16 = sbr.rel (!%p14_p4) target bundleno = 1 (0x1), region = 78 }

// kernel: contact_graspnet_forward.11
= control target key start
LH: loop header
LB: loop body
LE: loop exit
PB: predicated region body
PF: predicated region fallthrough
CT: control target
= control target key end

     0   :  { %s1678_s24 = smov 0   ;;  %s1973_s0 = inlined_call_operand.vmem [shape: bf16[512,72], index: 0, kind: input, shape index: {}]   ;;  %s1974_s1 = inlined_call_operand.vmem [shape: bf16[72,32], index: 1, kind: input, shape index: {}]   ;;  %s1975_s2 = inlined_call_operand.vmem [shape: f32[1,32], index: 2, kind: input, shape index: {}]   ;;  %s1976_s3 = inlined_call_operand.vmem [shape: bf16[32,32], index: 3, kind: input, shape index: {}]   ;;  %s1977_s4 = inlined_call_operand.vmem [shape: f32[1,32], index: 4, kind: input, shape index: {}]   ;;  %s1978_s5 = inlined_call_operand.vmem [shape: bf16[32,64], index: 5, kind: input, shape index: {}]   ;;  %s1979_s6 = inlined_call_operand.vmem [shape: f32[1,64], index: 6, kind: input, shape index: {}]   ;;  %s1980_s7 = inlined_call_operand.vmem [shape: f32[512,64], index: 7, kind: output, shape index: {}]  }
   0x1 LB: > { %s1334_s25 = sadd.s32 4294967295, %s1636_s24   ;;  %p1338_p0 = scmp.ge.s32.totalorder %s1636_s24, 1  ;;  %s1636_s24 = sphi %s1678_s24, %s17_s24  }
   0x2   : > { %p238_p1 = scmp.lt.s32.totalorder %s1636_s24, 3 }
   0x4   : > { %p239_p2 = pnand %p1338_p0, %p238_p1 }
   0x5   : > { %v1605_v0 = vld [vmem:[%s1974_s1] sm:$0xff] (!%p239_p2)   ;;  %v1606_v1 = vld [vmem:[%s1974_s1 + $0x8] sm:$0xff] (!%p239_p2)   ;;  %s1339_s30 = sshll.u32 (!%p239_p2), %s1334_s25, 5  ;;  %v1607_v2 = vld [vmem:[%s1974_s1 + $0x10] sm:$0xff] (!%p239_p2)   ;;  %vm438_vm0 = vcmask (!%p239_p2), 588800   ;;  %vm487_vm1 = vcmask (!%p239_p2), 1043456  }
   0x6   : > { %242 = sbr.rel (%p239_p2) target bundleno = 746 (0x2ea), region = 48  ;;  %1478 = vmatprep.subr.bf16.mxu0 (!%p239_p2), %v1605_v0  ;;  %p271_p3 = scmp.lt.s32.totalorder (!%p239_p2), %s1339_s30, 63  ;;  %v1626_v3 = vld [vmem:[%s1976_s3] sm:$0xff] (!%p239_p2)   ;;  %v1608_v4 = vld [vmem:[%s1974_s1 + $0x18] sm:$0xff] (!%p239_p2)   ;;  %v1627_v5 = vld [vmem:[%s1976_s3 + $0x8] sm:$0xff] (!%p239_p2)   ;;  %vm723_vm2 = vcmask (!%p239_p2), 261120  }
   0x7   : > { %1479 = vmatpush3.bf16.msra.mxu0 (!%p239_p2), %v1605_v0  ;;  %1592 = vmatprep.subr.bf16.mxu1 (!%p239_p2), %v1626_v3  ;;  %v1609_v7 = vld [vmem:[%s1974_s1 + $0x20] ss:$0 sps:$4 sm:$0xff] (!%p239_p2)   ;;  %vm1245_vm3 = vcmask (!%p239_p2), 523264  }
   0x8   : > { %1480 = vmatprep.subr.bf16.mxu0 (!%p239_p2), %v1606_v1  ;;  %1594 = vmatpush3.bf16.msra.mxu1 (!%p239_p2), %v1626_v3  ;;  %v489_v8 = vsel (!%p239_p2), %vm487_vm1, %v1609_v7, 0  ;;  %v1750_v24 = vld [vmem:[%s1978_s5] sm:$0xff] (!%p239_p2)  }
   0x9   : > { %1593 = vmatprep.subr.bf16.mxu1 (!%p239_p2), %v1627_v5  ;;  %v1756_v25 = vld [vmem:[%s1975_s2] ss:$0 sm:$0xff] (!%p239_p2) }
   0xb   : > { %1481 = vmatpush3.bf16.msra.mxu0 (!%p239_p2), %v1606_v1 }
   0xc   : > { %1482 = vmatprep.subr.bf16.mxu0 (!%p239_p2), %v1607_v2  ;;  %1595 = vmatpush3.bf16.msra.mxu1 (!%p239_p2), %v1627_v5 }
   0xd   : > { %s1982_s30 = smov (!%p271_p3, %s1339_s30), 63  ;;  %1556 = vmatprep.subr.bf16.mxu1 %v1750_v24 }
   0xe   : > { %s1340_s14 = sshll.u32 %s1982_s30, 2  ;;  %s1342_s11 = sshll.u32 %s1982_s30, 3 }
   0xf   : > { %s1710_s19 = scalar_lea.vmem %s1973_s0, %s1340_s14  ;;  %1483 = vmatpush3.bf16.msra.mxu0 %v1607_v2  ;;  %s1873_s14 = scalar_lea.vmem %s1980_s7, %s1342_s11 }
  0x10   : > { %v1610_v6 = vld [vmem:[%s1710_s19] sm:$0xff]   ;;  %1484 = vmatprep.subr.bf16.mxu0 %v1608_v4  ;;  %v1611_v9 = vld [vmem:[%s1710_s19 + $0x8] sm:$0xff]   ;;  %v1612_v10 = vld [vmem:[%s1710_s19 + $0x10] sm:$0xff]  }
  0x11   : > { %1488 = vmatprep.mubr.msk.bf16.mxu0 %vm438_vm0, %v1610_v6  ;;  %v1613_v11 = vld [vmem:[%s1710_s19 + $0x18] sm:$0xff]   ;;  %v1614_v12 = vld [vmem:[%s1710_s19 + $0x20] sm:$0xff]   ;;  %v1615_v13 = vld [vmem:[%s1710_s19 + $0x28] sm:$0xff]  }
  0x12   : > { %v1616_v14 = vld [vmem:[%s1710_s19 + $0x30] sm:$0xff]   ;;  %v1617_v15 = vld [vmem:[%s1710_s19 + $0x38] sm:$0xff]   ;;  %v1618_v16 = vld [vmem:[%s1710_s19 + $0x40] sm:$0xff]  }
  0x13   : > { %1485 = vmatpush3.bf16.msra.mxu0 %v1608_v4  ;;  %v1619_v17 = vld [vmem:[%s1710_s19 + $0x48] sm:$0xff]   ;;  %v1620_v18 = vld [vmem:[%s1710_s19 + $0x50] sm:$0xff]   ;;  %v1621_v19 = vld [vmem:[%s1710_s19 + $0x58] sm:$0xff]  }
  0x14   : > { %1596 = vmatprep.subr.msk.bf16.mxu0 %vm487_vm1, %v1609_v7  ;;  %v1622_v20 = vld [vmem:[%s1710_s19 + $0x60] sm:$0xff]   ;;  %v1623_v21 = vld [vmem:[%s1710_s19 + $0x68] sm:$0xff]   ;;  %v1624_v22 = vld [vmem:[%s1710_s19 + $0x70] sm:$0xff]  }
  0x15   : > { %v1625_v23 = vld [vmem:[%s1710_s19 + $0x78] sm:$0xff]  }
  0x17   : > { %1487 = vmatpush3.bf16.msra.mxu0 %v489_v8 }
  0x18   : > { %1520 = vmatprep.subr.bf16.mxu0 %v1626_v3 }
  0x1a   : > { %1489 = vmatmul.mubr.msk.bf16.vlgmr.msra.gmra.mrb[0].mxu0 %vm438_vm0, %v1611_v9 }
  0x1b   : > { %1492 = vmatprep.mubr.msk.bf16.mxu0 %vm438_vm0, %v1612_v10  ;;  %1521 = vmatpush3.bf16.msra.mxu0 %v1626_v3 }
  0x1c   : > { %1522 = vmatprep.subr.bf16.mxu0 %v1627_v5 }
  0x1f   : > { %1523 = vmatpush3.bf16.msra.mxu0 %v1627_v5 }
  0x22   : > { %1493 = vmatmul.mubr.msk.bf16.gmra.mrb[4].mxu0 %vm438_vm0, %v1613_v11 }
  0x23   : > { %1496 = vmatprep.mubr.msk.bf16.mxu0 %vm438_vm0, %v1614_v12 }
  0x2a   : > { %1497 = vmatmul.mubr.msk.bf16.gmra.mrb[8].mxu0 %vm438_vm0, %v1615_v13 }
  0x2b   : > { %1500 = vmatprep.mubr.msk.bf16.mxu0 %vm438_vm0, %v1616_v14 }
  0x32   : > { %1501 = vmatmul.mubr.msk.bf16.gmra.mrb[12].mxu0 %vm438_vm0, %v1617_v15 }
  0x33   : > { %1504 = vmatprep.mubr.msk.bf16.mxu0 %vm438_vm0, %v1618_v16 }
  0x3a   : > { %1505 = vmatmul.mubr.msk.bf16.gmra.mrb[16].mxu0 %vm438_vm0, %v1619_v17 }
  0x3b   : > { %1508 = vmatprep.mubr.msk.bf16.mxu0 %vm438_vm0, %v1620_v18 }
  0x42   : > { %1509 = vmatmul.mubr.msk.bf16.gmra.mrb[20].mxu0 %vm438_vm0, %v1621_v19 }
  0x43   : > { %1512 = vmatprep.mubr.msk.bf16.mxu0 %vm438_vm0, %v1622_v20 }
  0x4a   : > { %1513 = vmatmul.mubr.msk.bf16.gmra.mrb[24].mxu0 %vm438_vm0, %v1623_v21  ;;  %v1629_v21 = vld [vmem:[%s1978_s5 + $0x8] sm:$0xff]  }
  0x4b   : > { %1516 = vmatprep.mubr.msk.bf16.mxu0 %vm438_vm0, %v1624_v22 }
  0x52   : > { %1517 = vmatmul.mubr.msk.bf16.gmra.mrb[28].mxu0 %vm438_vm0, %v1625_v23 }
  0xed   : > { %v1490_v26 = vpop.f32.mrb[0].mxu0 }
  0xee   : > { %v534_v27 = vadd.f32 %v1490_v26, %v1756_v25  ;;  %v525_v28 = vpop.f32.mrb[1].mxu0 }
  0xef   : > { %v526_v29 = vadd.f32 %v1756_v25, %v525_v28  ;;  %v1491_v30 = vpop.f32.mrb[2].mxu0 }
  0xf0   : > { %v537_v31 = vadd.f32 %v1491_v30, %v1756_v25  ;;  %v528_v32 = vpop.f32.mrb[3].mxu0  ;;  %v654_v34 = vmax.f32 %v534_v27, 0.0 }
  0xf1   : > { %v529_v33 = vadd.f32 %v1756_v25, %v528_v32  ;;  %v652_v36 = vmax.f32 %v526_v29, 0.0 }
  0xf2   : > { %v655_v35 = vmax.f32 %v537_v31, 0.0 }
  0xf3   : > { %v653_v37 = vmax.f32 %v529_v33, 0.0 }
  0xf4   : > { %v685_v38 = vpack.c.bf16 %v655_v35, %v654_v34 }
  0xf5   : > { %v684_v39 = vpack.c.bf16 %v653_v37, %v652_v36  ;;  %v1494_v40 = vpop.f32.mrb[4].mxu0 }
  0xf6   : > { %v550_v41 = vadd.f32 %v1494_v40, %v1756_v25  ;;  %v541_v42 = vpop.f32.mrb[5].mxu0 }
  0xf7   : > { %v542_v43 = vadd.f32 %v1756_v25, %v541_v42  ;;  %v1495_v44 = vpop.f32.mrb[6].mxu0  ;;  %1524 = vmatprep.mubr.msk.bf16.mxu0 %vm723_vm2, %v684_v39 }
  0xf8   : > { %v553_v45 = vadd.f32 %v1495_v44, %v1756_v25  ;;  %v544_v46 = vpop.f32.mrb[7].mxu0  ;;  %1525 = vmatmul.mubr.msk.bf16.vlgmr.msra.gmra.mrb[32].mxu0 %vm723_vm2, %v685_v38  ;;  %v658_v48 = vmax.f32 %v550_v41, 0.0 }
  0xf9   : > { %v545_v47 = vadd.f32 %v1756_v25, %v544_v46  ;;  %v656_v50 = vmax.f32 %v542_v43, 0.0 }
  0xfa   : > { %v659_v49 = vmax.f32 %v553_v45, 0.0 }
  0xfb   : > { %v657_v51 = vmax.f32 %v545_v47, 0.0 }
  0xfc   : > { %v687_v52 = vpack.c.bf16 %v659_v49, %v658_v48 }
  0xfd   : > { %v686_v53 = vpack.c.bf16 %v657_v51, %v656_v50  ;;  %v1498_v54 = vpop.f32.mrb[8].mxu0 }
  0xfe   : > { %v566_v55 = vadd.f32 %v1498_v54, %v1756_v25  ;;  %v557_v56 = vpop.f32.mrb[9].mxu0 }
  0xff   : > { %v558_v57 = vadd.f32 %v1756_v25, %v557_v56  ;;  %v1499_v58 = vpop.f32.mrb[10].mxu0  ;;  %1528 = vmatprep.mubr.msk.bf16.mxu0 %vm723_vm2, %v686_v53 }
 0x100   : > { %v569_v59 = vadd.f32 %v1499_v58, %v1756_v25  ;;  %v560_v60 = vpop.f32.mrb[11].mxu0  ;;  %1529 = vmatmul.mubr.msk.bf16.gmra.mrb[36].mxu0 %vm723_vm2, %v687_v52  ;;  %v662_v62 = vmax.f32 %v566_v55, 0.0 }
 0x101   : > { %v561_v61 = vadd.f32 %v1756_v25, %v560_v60  ;;  %v660_v0 = vmax.f32 %v558_v57, 0.0 }
 0x102   : > { %v663_v63 = vmax.f32 %v569_v59, 0.0 }
 0x103   : > { %v661_v1 = vmax.f32 %v561_v61, 0.0 }
 0x104   : > { %v689_v2 = vpack.c.bf16 %v663_v63, %v662_v62 }
 0x105   : > { %v688_v3 = vpack.c.bf16 %v661_v1, %v660_v0  ;;  %v1502_v4 = vpop.f32.mrb[12].mxu0 }
 0x106   : > { %v582_v5 = vadd.f32 %v1502_v4, %v1756_v25  ;;  %v573_v6 = vpop.f32.mrb[13].mxu0 }
 0x107   : > { %v574_v7 = vadd.f32 %v1756_v25, %v573_v6  ;;  %v1503_v8 = vpop.f32.mrb[14].mxu0  ;;  %1532 = vmatprep.mubr.msk.bf16.mxu0 %vm723_vm2, %v688_v3 }
 0x108   : > { %v585_v9 = vadd.f32 %v1503_v8, %v1756_v25  ;;  %v576_v10 = vpop.f32.mrb[15].mxu0  ;;  %1533 = vmatmul.mubr.msk.bf16.gmra.mrb[40].mxu0 %vm723_vm2, %v689_v2  ;;  %v666_v12 = vmax.f32 %v582_v5, 0.0 }
 0x109   : > { %v577_v11 = vadd.f32 %v1756_v25, %v576_v10  ;;  %v664_v14 = vmax.f32 %v574_v7, 0.0 }
 0x10a   : > { %v667_v13 = vmax.f32 %v585_v9, 0.0 }
 0x10b   : > { %v665_v15 = vmax.f32 %v577_v11, 0.0 }
 0x10c   : > { %v691_v16 = vpack.c.bf16 %v667_v13, %v666_v12  ;;  %v1813_v12 = vld [vmem:[%s1977_s4] ss:$0 sm:$0xff] }
 0x10d   : > { %v1506_v17 = vpop.f32.mrb[16].mxu0  ;;  %v690_v18 = vpack.c.bf16 %v665_v15, %v664_v14 }
 0x10e   : > { %v598_v19 = vadd.f32 %v1506_v17, %v1756_v25  ;;  %v589_v20 = vpop.f32.mrb[17].mxu0 }
 0x10f   : > { %v590_v22 = vadd.f32 %v1756_v25, %v589_v20  ;;  %v1507_v23 = vpop.f32.mrb[18].mxu0  ;;  %1536 = vmatprep.mubr.msk.bf16.mxu1 %vm723_vm2, %v690_v18 }
 0x110   : > { %v601_v26 = vadd.f32 %v1507_v23, %v1756_v25  ;;  %v592_v27 = vpop.f32.mrb[19].mxu0  ;;  %1537 = vmatmul.mubr.msk.bf16.vlgmr.msra.gmra.mrb[0].mxu1 %vm723_vm2, %v691_v16  ;;  %v670_v29 = vmax.f32 %v598_v19, 0.0 }
 0x111   : > { %v593_v28 = vadd.f32 %v1756_v25, %v592_v27  ;;  %1557 = vmatpush3.bf16.msra.mxu1 %v1750_v24  ;;  %v668_v31 = vmax.f32 %v590_v22, 0.0 }
 0x112   : > { %v671_v30 = vmax.f32 %v601_v26, 0.0  ;;  %1558 = vmatprep.subr.bf16.mxu1 %v1629_v21 }
 0x113   : > { %v669_v32 = vmax.f32 %v593_v28, 0.0 }
 0x114   : > { %v693_v33 = vpack.c.bf16 %v671_v30, %v670_v29 }
 0x115   : > { %v692_v34 = vpack.c.bf16 %v669_v32, %v668_v31  ;;  %v1510_v35 = vpop.f32.mrb[20].mxu0  ;;  %1559 = vmatpush3.bf16.msra.mxu1 %v1629_v21 }
 0x116   : > { %v614_v36 = vadd.f32 %v1510_v35, %v1756_v25  ;;  %v605_v37 = vpop.f32.mrb[21].mxu0 }
 0x117   : > { %v606_v38 = vadd.f32 %v1756_v25, %v605_v37  ;;  %v1511_v39 = vpop.f32.mrb[22].mxu0  ;;  %1540 = vmatprep.mubr.msk.bf16.mxu1 %vm723_vm2, %v692_v34 }
 0x118   : > { %v617_v40 = vadd.f32 %v1511_v39, %v1756_v25  ;;  %v608_v24 = vpop.f32.mrb[23].mxu0  ;;  %1541 = vmatmul.mubr.msk.bf16.gmra.mrb[4].mxu1 %vm723_vm2, %v693_v33  ;;  %v674_v42 = vmax.f32 %v614_v36, 0.0 }
 0x119   : > { %v609_v41 = vadd.f32 %v1756_v25, %v608_v24  ;;  %v672_v44 = vmax.f32 %v606_v38, 0.0 }
 0x11a   : > { %v675_v43 = vmax.f32 %v617_v40, 0.0 }
 0x11b   : > { %v673_v45 = vmax.f32 %v609_v41, 0.0 }
 0x11c   : > { %v695_v46 = vpack.c.bf16 %v675_v43, %v674_v42 }
 0x11d   : > { %v694_v47 = vpack.c.bf16 %v673_v45, %v672_v44  ;;  %v1514_v48 = vpop.f32.mrb[24].mxu0 }
 0x11e   : > { %v630_v49 = vadd.f32 %v1514_v48, %v1756_v25  ;;  %v621_v50 = vpop.f32.mrb[25].mxu0 }
 0x11f   : > { %v622_v51 = vadd.f32 %v1756_v25, %v621_v50  ;;  %v1515_v52 = vpop.f32.mrb[26].mxu0  ;;  %1544 = vmatprep.mubr.msk.bf16.mxu1 %vm723_vm2, %v694_v47 }
 0x120   : > { %v633_v53 = vadd.f32 %v1515_v52, %v1756_v25  ;;  %v624_v54 = vpop.f32.mrb[27].mxu0  ;;  %1545 = vmatmul.mubr.msk.bf16.gmra.mrb[8].mxu1 %vm723_vm2, %v695_v46  ;;  %v678_v56 = vmax.f32 %v630_v49, 0.0 }
 0x121   : > { %v625_v55 = vadd.f32 %v1756_v25, %v624_v54  ;;  %v676_v58 = vmax.f32 %v622_v51, 0.0 }
 0x122   : > { %v679_v57 = vmax.f32 %v633_v53, 0.0 }
 0x123   : > { %v677_v59 = vmax.f32 %v625_v55, 0.0 }
 0x124   : > { %v697_v60 = vpack.c.bf16 %v679_v57, %v678_v56 }
 0x125   : > { %v696_v61 = vpack.c.bf16 %v677_v59, %v676_v58  ;;  %v1518_v62 = vpop.f32.mrb[28].mxu0 }
 0x126   : > { %v646_v63 = vadd.f32 %v1518_v62, %v1756_v25  ;;  %v637_v0 = vpop.f32.mrb[29].mxu0 }
 0x127   : > { %v638_v1 = vadd.f32 %v1756_v25, %v637_v0  ;;  %v1519_v2 = vpop.f32.mrb[30].mxu0  ;;  %1548 = vmatprep.mubr.msk.bf16.mxu1 %vm723_vm2, %v696_v61 }
 0x128   : > { %v649_v3 = vadd.f32 %v1519_v2, %v1756_v25  ;;  %v640_v4 = vpop.f32.mrb[31].mxu0  ;;  %1549 = vmatmul.mubr.msk.bf16.gmra.mrb[12].mxu1 %vm723_vm2, %v697_v60  ;;  %v682_v6 = vmax.f32 %v646_v63, 0.0 }
 0x129   : > { %v641_v5 = vadd.f32 %v1756_v25, %v640_v4  ;;  %v680_v8 = vmax.f32 %v638_v1, 0.0 }
 0x12a   : > { %v683_v7 = vmax.f32 %v649_v3, 0.0 }
 0x12b   : > { %v681_v9 = vmax.f32 %v641_v5, 0.0 }
 0x12c   : > { %v699_v10 = vpack.c.bf16 %v683_v7, %v682_v6 }
 0x12d   : > { %v698_v11 = vpack.c.bf16 %v681_v9, %v680_v8 }
 0x12f   : > { %1552 = vmatprep.mubr.msk.bf16.mxu1 %vm723_vm2, %v698_v11 }
 0x130   : > { %1553 = vmatmul.mubr.msk.bf16.gmra.mrb[16].mxu1 %vm723_vm2, %v699_v10 }
 0x1cb   : > { %v1526_v13 = vpop.f32.mrb[32].mxu0 }
 0x1cc   : > { %v815_v14 = vadd.f32 %v1526_v13, %v1813_v12  ;;  %v806_v15 = vpop.f32.mrb[33].mxu0 }
 0x1cd   : > { %v807_v25 = vadd.f32 %v1813_v12, %v806_v15  ;;  %v1527_v16 = vpop.f32.mrb[34].mxu0 }
 0x1ce   : > { %v818_v17 = vadd.f32 %v1527_v16, %v1813_v12  ;;  %v809_v18 = vpop.f32.mrb[35].mxu0  ;;  %v935_v20 = vmax.f32 %v815_v14, 0.0 }
 0x1cf   : > { %v810_v19 = vadd.f32 %v1813_v12, %v809_v18  ;;  %v933_v22 = vmax.f32 %v807_v25, 0.0 }
 0x1d0   : > { %v936_v21 = vmax.f32 %v818_v17, 0.0 }
 0x1d1   : > { %v934_v23 = vmax.f32 %v810_v19, 0.0 }
 0x1d2   : > { %v966_v26 = vpack.c.bf16 %v936_v21, %v935_v20 }
 0x1d3   : > { %v965_v27 = vpack.c.bf16 %v934_v23, %v933_v22  ;;  %v1530_v28 = vpop.f32.mrb[36].mxu0 }
 0x1d4   : > { %v831_v29 = vadd.f32 %v1530_v28, %v1813_v12  ;;  %v822_v30 = vpop.f32.mrb[37].mxu0 }
 0x1d5   : > { %v823_v31 = vadd.f32 %v1813_v12, %v822_v30  ;;  %v1531_v32 = vpop.f32.mrb[38].mxu0  ;;  %1560 = vmatprep.mubr.msk.bf16.mxu1 %vm723_vm2, %v965_v27 }
 0x1d6   : > { %v834_v33 = vadd.f32 %v1531_v32, %v1813_v12  ;;  %v825_v34 = vpop.f32.mrb[39].mxu0  ;;  %1561 = vmatmul.mubr.msk.bf16.vlgmr.msra.gmra.mrb[20].mxu1 %vm723_vm2, %v966_v26  ;;  %v939_v36 = vmax.f32 %v831_v29, 0.0 }
 0x1d7   : > { %v826_v35 = vadd.f32 %v1813_v12, %v825_v34  ;;  %v937_v38 = vmax.f32 %v823_v31, 0.0 }
 0x1d8   : > { %v940_v37 = vmax.f32 %v834_v33, 0.0 }
 0x1d9   : > { %v938_v39 = vmax.f32 %v826_v35, 0.0 }
 0x1da   : > { %v968_v40 = vpack.c.bf16 %v940_v37, %v939_v36 }
 0x1db   : > { %v967_v24 = vpack.c.bf16 %v938_v39, %v937_v38  ;;  %v1534_v41 = vpop.f32.mrb[40].mxu0 }
 0x1dc   : > { %v847_v42 = vadd.f32 %v1534_v41, %v1813_v12  ;;  %v838_v43 = vpop.f32.mrb[41].mxu0 }
 0x1dd   : > { %v839_v44 = vadd.f32 %v1813_v12, %v838_v43  ;;  %v1535_v45 = vpop.f32.mrb[42].mxu0  ;;  %1564 = vmatprep.mubr.msk.bf16.mxu1 %vm723_vm2, %v967_v24 }
 0x1de   : > { %v850_v46 = vadd.f32 %v1535_v45, %v1813_v12  ;;  %v841_v47 = vpop.f32.mrb[43].mxu0  ;;  %1565 = vmatmul.mubr.msk.bf16.gmra.mrb[24].mxu1 %vm723_vm2, %v968_v40  ;;  %v943_v49 = vmax.f32 %v847_v42, 0.0 }
 0x1df   : > { %v842_v48 = vadd.f32 %v1813_v12, %v841_v47  ;;  %v941_v51 = vmax.f32 %v839_v44, 0.0 }
 0x1e0   : > { %v944_v50 = vmax.f32 %v850_v46, 0.0 }
 0x1e1   : > { %v942_v52 = vmax.f32 %v842_v48, 0.0 }
 0x1e2   : > { %v970_v53 = vpack.c.bf16 %v944_v50, %v943_v49 }
 0x1e3   : > { %v969_v54 = vpack.c.bf16 %v942_v52, %v941_v51  ;;  %v1538_v55 = vpop.f32.mrb[0].mxu1 }
 0x1e4   : > { %v863_v56 = vadd.f32 %v1538_v55, %v1813_v12  ;;  %v854_v57 = vpop.f32.mrb[1].mxu1 }
 0x1e5   : > { %v855_v58 = vadd.f32 %v1813_v12, %v854_v57  ;;  %v1539_v59 = vpop.f32.mrb[2].mxu1  ;;  %1568 = vmatprep.mubr.msk.bf16.mxu1 %vm723_vm2, %v969_v54 }
 0x1e6   : > { %v866_v60 = vadd.f32 %v1539_v59, %v1813_v12  ;;  %v857_v61 = vpop.f32.mrb[3].mxu1  ;;  %1569 = vmatmul.mubr.msk.bf16.gmra.mrb[28].mxu1 %vm723_vm2, %v970_v53  ;;  %v947_v63 = vmax.f32 %v863_v56, 0.0 }
 0x1e7   : > { %v858_v62 = vadd.f32 %v1813_v12, %v857_v61  ;;  %v945_v1 = vmax.f32 %v855_v58, 0.0 }
 0x1e8   : > { %v948_v0 = vmax.f32 %v866_v60, 0.0 }
 0x1e9   : > { %v946_v2 = vmax.f32 %v858_v62, 0.0  ;;  %v1866_v62 = vld [vmem:[%s1979_s6] ss:$0 sm:$0xff] }
 0x1ea   : > { %v972_v3 = vpack.c.bf16 %v948_v0, %v947_v63 }
 0x1eb   : > { %v971_v4 = vpack.c.bf16 %v946_v2, %v945_v1  ;;  %v1542_v5 = vpop.f32.mrb[4].mxu1 }
 0x1ec   : > { %v879_v6 = vadd.f32 %v1542_v5, %v1813_v12  ;;  %v870_v7 = vpop.f32.mrb[5].mxu1 }
 0x1ed   : > { %v871_v8 = vadd.f32 %v1813_v12, %v870_v7  ;;  %v1543_v9 = vpop.f32.mrb[6].mxu1  ;;  %1572 = vmatprep.mubr.msk.bf16.mxu1 %vm723_vm2, %v971_v4 }
 0x1ee   : > { %v882_v10 = vadd.f32 %v1543_v9, %v1813_v12  ;;  %v873_v11 = vpop.f32.mrb[7].mxu1  ;;  %1573 = vmatmul.mubr.msk.bf16.gmra.mrb[32].mxu1 %vm723_vm2, %v972_v3  ;;  %v951_v14 = vmax.f32 %v879_v6, 0.0 }
 0x1ef   : > { %v874_v13 = vadd.f32 %v1813_v12, %v873_v11  ;;  %v949_v25 = vmax.f32 %v871_v8, 0.0 }
 0x1f0   : > { %v952_v15 = vmax.f32 %v882_v10, 0.0 }
 0x1f1   : > { %v950_v16 = vmax.f32 %v874_v13, 0.0 }
 0x1f2   : > { %v974_v17 = vpack.c.bf16 %v952_v15, %v951_v14 }
 0x1f3   : > { %v973_v18 = vpack.c.bf16 %v950_v16, %v949_v25  ;;  %v1546_v19 = vpop.f32.mrb[8].mxu1 }
 0x1f4   : > { %v895_v20 = vadd.f32 %v1546_v19, %v1813_v12  ;;  %v886_v21 = vpop.f32.mrb[9].mxu1 }
 0x1f5   : > { %v887_v22 = vadd.f32 %v1813_v12, %v886_v21  ;;  %v1547_v23 = vpop.f32.mrb[10].mxu1  ;;  %1576 = vmatprep.mubr.msk.bf16.mxu1 %vm723_vm2, %v973_v18 }
 0x1f6   : > { %v898_v26 = vadd.f32 %v1547_v23, %v1813_v12  ;;  %v889_v27 = vpop.f32.mrb[11].mxu1  ;;  %1577 = vmatmul.mubr.msk.bf16.gmra.mrb[36].mxu1 %vm723_vm2, %v974_v17  ;;  %v955_v29 = vmax.f32 %v895_v20, 0.0 }
 0x1f7   : > { %v890_v28 = vadd.f32 %v1813_v12, %v889_v27  ;;  %v953_v31 = vmax.f32 %v887_v22, 0.0 }
 0x1f8   : > { %v956_v30 = vmax.f32 %v898_v26, 0.0 }
 0x1f9   : > { %v954_v32 = vmax.f32 %v890_v28, 0.0 }
 0x1fa   : > { %v976_v33 = vpack.c.bf16 %v956_v30, %v955_v29 }
 0x1fb   : > { %v975_v34 = vpack.c.bf16 %v954_v32, %v953_v31  ;;  %v1550_v35 = vpop.f32.mrb[12].mxu1 }
 0x1fc   : > { %v911_v36 = vadd.f32 %v1550_v35, %v1813_v12  ;;  %v902_v37 = vpop.f32.mrb[13].mxu1 }
 0x1fd   : > { %v903_v38 = vadd.f32 %v1813_v12, %v902_v37  ;;  %v1551_v39 = vpop.f32.mrb[14].mxu1  ;;  %1580 = vmatprep.mubr.msk.bf16.mxu1 %vm723_vm2, %v975_v34 }
 0x1fe   : > { %v914_v40 = vadd.f32 %v1551_v39, %v1813_v12  ;;  %v905_v24 = vpop.f32.mrb[15].mxu1  ;;  %1581 = vmatmul.mubr.msk.bf16.gmra.mrb[40].mxu1 %vm723_vm2, %v976_v33  ;;  %v959_v42 = vmax.f32 %v911_v36, 0.0 }
 0x1ff   : > { %v906_v41 = vadd.f32 %v1813_v12, %v905_v24  ;;  %v957_v44 = vmax.f32 %v903_v38, 0.0 }
 0x200   : > { %v960_v43 = vmax.f32 %v914_v40, 0.0 }
 0x201   : > { %v958_v45 = vmax.f32 %v906_v41, 0.0 }
 0x202   : > { %v978_v46 = vpack.c.bf16 %v960_v43, %v959_v42 }
 0x203   : > { %v977_v47 = vpack.c.bf16 %v958_v45, %v957_v44  ;;  %v1554_v48 = vpop.f32.mrb[16].mxu1 }
 0x204   : > { %v927_v49 = vadd.f32 %v1554_v48, %v1813_v12  ;;  %v918_v50 = vpop.f32.mrb[17].mxu1 }
 0x205   : > { %v919_v51 = vadd.f32 %v1813_v12, %v918_v50  ;;  %v1555_v52 = vpop.f32.mrb[18].mxu1  ;;  %1584 = vmatprep.mubr.msk.bf16.mxu1 %vm723_vm2, %v977_v47 }
 0x206   : > { %v930_v53 = vadd.f32 %v1555_v52, %v1813_v12  ;;  %v921_v54 = vpop.f32.mrb[19].mxu1  ;;  %1585 = vmatmul.mubr.msk.bf16.gmra.mrb[44].mxu1 %vm723_vm2, %v978_v46  ;;  %v963_v56 = vmax.f32 %v927_v49, 0.0 }
 0x207   : > { %v922_v55 = vadd.f32 %v1813_v12, %v921_v54  ;;  %v961_v58 = vmax.f32 %v919_v51, 0.0 }
 0x208   : > { %v964_v57 = vmax.f32 %v930_v53, 0.0 }
 0x209   : > { %v962_v59 = vmax.f32 %v922_v55, 0.0 }
 0x20a   : > { %v980_v60 = vpack.c.bf16 %v964_v57, %v963_v56 }
 0x20b   : > { %v979_v61 = vpack.c.bf16 %v962_v59, %v961_v58 }
 0x20d   : > { %1588 = vmatprep.mubr.msk.bf16.mxu1 %vm723_vm2, %v979_v61 }
 0x20e   : > { %1589 = vmatmul.mubr.msk.bf16.gmra.mrb[48].mxu1 %vm723_vm2, %v980_v60 }
 0x2a9   : > { %v1562_v63 = vpop.f32.mrb[20].mxu1 }
 0x2aa   : > { %v1095_v0 = vadd.f32 %v1562_v63, %v1866_v62  ;;  %v1086_v12 = vpop.f32.mrb[21].mxu1 }
 0x2ab   : > { %v1087_v1 = vadd.f32 %v1866_v62, %v1086_v12  ;;  %v1563_v2 = vpop.f32.mrb[22].mxu1 }
 0x2ac   : > { %v1215_v3 = vmax.f32 %v1095_v0, 0.0  ;;  %v1098_v4 = vadd.f32 %v1563_v2, %v1866_v62  ;;  %v1089_v5 = vpop.f32.mrb[23].mxu1 }
 0x2ad   : > { %v1213_v6 = vmax.f32 %v1087_v1, 0.0  ;;  %v1090_v7 = vadd.f32 %v1866_v62, %v1089_v5 }
 0x2ae   : > { %1248 = vst.msk [vmem:[%s1873_s14 + $0x10] sm:$0xff] %vm1245_vm3, %v1215_v3  ;;  %v1216_v8 = vmax.f32 %v1098_v4, 0.0 }
 0x2af   : > { %1246 = vst.msk [vmem:[%s1873_s14] sm:$0xff] %vm1245_vm3, %v1213_v6  ;;  %v1214_v9 = vmax.f32 %v1090_v7, 0.0 }
 0x2b0   : > { %1249 = vst.msk [vmem:[%s1873_s14 + $0x18] sm:$0xff] %vm1245_vm3, %v1216_v8 }
 0x2b1   : > { %1247 = vst.msk [vmem:[%s1873_s14 + $0x8] sm:$0xff] %vm1245_vm3, %v1214_v9  ;;  %v1566_v10 = vpop.f32.mrb[24].mxu1 }
 0x2b2   : > { %v1111_v11 = vadd.f32 %v1566_v10, %v1866_v62  ;;  %v1102_v13 = vpop.f32.mrb[25].mxu1 }
 0x2b3   : > { %v1103_v14 = vadd.f32 %v1866_v62, %v1102_v13  ;;  %v1567_v15 = vpop.f32.mrb[26].mxu1 }
 0x2b4   : > { %v1219_v25 = vmax.f32 %v1111_v11, 0.0  ;;  %v1114_v16 = vadd.f32 %v1567_v15, %v1866_v62  ;;  %v1105_v17 = vpop.f32.mrb[27].mxu1 }
 0x2b5   : > { %v1217_v18 = vmax.f32 %v1103_v14, 0.0  ;;  %v1106_v19 = vadd.f32 %v1866_v62, %v1105_v17 }
 0x2b6   : > { %1252 = vst.msk [vmem:[%s1873_s14 + $0x30] sm:$0xff] %vm1245_vm3, %v1219_v25  ;;  %v1220_v20 = vmax.f32 %v1114_v16, 0.0 }
 0x2b7   : > { %1250 = vst.msk [vmem:[%s1873_s14 + $0x20] sm:$0xff] %vm1245_vm3, %v1217_v18  ;;  %v1218_v21 = vmax.f32 %v1106_v19, 0.0 }
 0x2b8   : > { %1253 = vst.msk [vmem:[%s1873_s14 + $0x38] sm:$0xff] %vm1245_vm3, %v1220_v20 }
 0x2b9   : > { %1251 = vst.msk [vmem:[%s1873_s14 + $0x28] sm:$0xff] %vm1245_vm3, %v1218_v21  ;;  %v1570_v22 = vpop.f32.mrb[28].mxu1 }
 0x2ba   : > { %v1127_v23 = vadd.f32 %v1570_v22, %v1866_v62  ;;  %v1118_v26 = vpop.f32.mrb[29].mxu1 }
 0x2bb   : > { %v1119_v27 = vadd.f32 %v1866_v62, %v1118_v26  ;;  %v1571_v28 = vpop.f32.mrb[30].mxu1 }
 0x2bc   : > { %v1223_v29 = vmax.f32 %v1127_v23, 0.0  ;;  %v1130_v30 = vadd.f32 %v1571_v28, %v1866_v62  ;;  %v1121_v31 = vpop.f32.mrb[31].mxu1 }
 0x2bd   : > { %v1221_v32 = vmax.f32 %v1119_v27, 0.0  ;;  %v1122_v33 = vadd.f32 %v1866_v62, %v1121_v31 }
 0x2be   : > { %1256 = vst.msk [vmem:[%s1873_s14 + $0x50] sm:$0xff] %vm1245_vm3, %v1223_v29  ;;  %v1224_v34 = vmax.f32 %v1130_v30, 0.0 }
 0x2bf   : > { %1254 = vst.msk [vmem:[%s1873_s14 + $0x40] sm:$0xff] %vm1245_vm3, %v1221_v32  ;;  %v1222_v35 = vmax.f32 %v1122_v33, 0.0 }
 0x2c0   : > { %1257 = vst.msk [vmem:[%s1873_s14 + $0x58] sm:$0xff] %vm1245_vm3, %v1224_v34 }
 0x2c1   : > { %1255 = vst.msk [vmem:[%s1873_s14 + $0x48] sm:$0xff] %vm1245_vm3, %v1222_v35  ;;  %v1574_v36 = vpop.f32.mrb[32].mxu1 }
 0x2c2   : > { %v1143_v37 = vadd.f32 %v1574_v36, %v1866_v62  ;;  %v1134_v38 = vpop.f32.mrb[33].mxu1 }
 0x2c3   : > { %v1135_v39 = vadd.f32 %v1866_v62, %v1134_v38  ;;  %v1575_v40 = vpop.f32.mrb[34].mxu1 }
 0x2c4   : > { %v1227_v24 = vmax.f32 %v1143_v37, 0.0  ;;  %v1146_v41 = vadd.f32 %v1575_v40, %v1866_v62  ;;  %v1137_v42 = vpop.f32.mrb[35].mxu1 }
 0x2c5   : > { %v1225_v43 = vmax.f32 %v1135_v39, 0.0  ;;  %v1138_v44 = vadd.f32 %v1866_v62, %v1137_v42 }
 0x2c6   : > { %1260 = vst.msk [vmem:[%s1873_s14 + $0x70] sm:$0xff] %vm1245_vm3, %v1227_v24  ;;  %v1228_v45 = vmax.f32 %v1146_v41, 0.0 }
 0x2c7   : > { %1258 = vst.msk [vmem:[%s1873_s14 + $0x60] sm:$0xff] %vm1245_vm3, %v1225_v43  ;;  %v1226_v46 = vmax.f32 %v1138_v44, 0.0 }
 0x2c8   : > { %1261 = vst.msk [vmem:[%s1873_s14 + $0x78] sm:$0xff] %vm1245_vm3, %v1228_v45 }
 0x2c9   : > { %1259 = vst.msk [vmem:[%s1873_s14 + $0x68] sm:$0xff] %vm1245_vm3, %v1226_v46  ;;  %v1578_v47 = vpop.f32.mrb[36].mxu1 }
 0x2ca   : > { %v1159_v48 = vadd.f32 %v1578_v47, %v1866_v62  ;;  %v1150_v49 = vpop.f32.mrb[37].mxu1 }
 0x2cb   : > { %v1151_v50 = vadd.f32 %v1866_v62, %v1150_v49  ;;  %v1579_v51 = vpop.f32.mrb[38].mxu1 }
 0x2cc   : > { %v1231_v52 = vmax.f32 %v1159_v48, 0.0  ;;  %v1162_v53 = vadd.f32 %v1579_v51, %v1866_v62  ;;  %v1153_v54 = vpop.f32.mrb[39].mxu1 }
 0x2cd   : > { %v1229_v55 = vmax.f32 %v1151_v50, 0.0  ;;  %v1154_v56 = vadd.f32 %v1866_v62, %v1153_v54 }
 0x2ce   : > { %1264 = vst.msk [vmem:[%s1873_s14 + $0x90] sm:$0xff] %vm1245_vm3, %v1231_v52  ;;  %v1232_v57 = vmax.f32 %v1162_v53, 0.0 }
 0x2cf   : > { %1262 = vst.msk [vmem:[%s1873_s14 + $0x80] sm:$0xff] %vm1245_vm3, %v1229_v55  ;;  %v1230_v58 = vmax.f32 %v1154_v56, 0.0 }
 0x2d0   : > { %1265 = vst.msk [vmem:[%s1873_s14 + $0x98] sm:$0xff] %vm1245_vm3, %v1232_v57 }
 0x2d1   : > { %1263 = vst.msk [vmem:[%s1873_s14 + $0x88] sm:$0xff] %vm1245_vm3, %v1230_v58  ;;  %v1582_v59 = vpop.f32.mrb[40].mxu1 }
 0x2d2   : > { %v1175_v60 = vadd.f32 %v1582_v59, %v1866_v62  ;;  %v1166_v61 = vpop.f32.mrb[41].mxu1 }
 0x2d3   : > { %v1167_v63 = vadd.f32 %v1866_v62, %v1166_v61  ;;  %v1583_v0 = vpop.f32.mrb[42].mxu1 }
 0x2d4   : > { %v1235_v12 = vmax.f32 %v1175_v60, 0.0  ;;  %v1178_v1 = vadd.f32 %v1583_v0, %v1866_v62  ;;  %v1169_v2 = vpop.f32.mrb[43].mxu1 }
 0x2d5   : > { %v1233_v3 = vmax.f32 %v1167_v63, 0.0  ;;  %v1170_v4 = vadd.f32 %v1866_v62, %v1169_v2 }
 0x2d6   : > { %1268 = vst.msk [vmem:[%s1873_s14 + $0xb0] sm:$0xff] %vm1245_vm3, %v1235_v12  ;;  %v1236_v5 = vmax.f32 %v1178_v1, 0.0 }
 0x2d7   : > { %1266 = vst.msk [vmem:[%s1873_s14 + $0xa0] sm:$0xff] %vm1245_vm3, %v1233_v3  ;;  %v1234_v6 = vmax.f32 %v1170_v4, 0.0 }
 0x2d8   : > { %1269 = vst.msk [vmem:[%s1873_s14 + $0xb8] sm:$0xff] %vm1245_vm3, %v1236_v5 }
 0x2d9   : > { %1267 = vst.msk [vmem:[%s1873_s14 + $0xa8] sm:$0xff] %vm1245_vm3, %v1234_v6  ;;  %v1586_v7 = vpop.f32.mrb[44].mxu1 }
 0x2da   : > { %v1191_v8 = vadd.f32 %v1586_v7, %v1866_v62  ;;  %v1182_v9 = vpop.f32.mrb[45].mxu1 }
 0x2db   : > { %v1183_v10 = vadd.f32 %v1866_v62, %v1182_v9  ;;  %v1587_v11 = vpop.f32.mrb[46].mxu1 }
 0x2dc   : > { %v1239_v13 = vmax.f32 %v1191_v8, 0.0  ;;  %v1194_v14 = vadd.f32 %v1587_v11, %v1866_v62  ;;  %v1185_v15 = vpop.f32.mrb[47].mxu1 }
 0x2dd   : > { %v1237_v25 = vmax.f32 %v1183_v10, 0.0  ;;  %v1186_v16 = vadd.f32 %v1866_v62, %v1185_v15 }
 0x2de   : > { %1272 = vst.msk [vmem:[%s1873_s14 + $0xd0] sm:$0xff] %vm1245_vm3, %v1239_v13  ;;  %v1240_v17 = vmax.f32 %v1194_v14, 0.0 }
 0x2df   : > { %1270 = vst.msk [vmem:[%s1873_s14 + $0xc0] sm:$0xff] %vm1245_vm3, %v1237_v25  ;;  %v1238_v18 = vmax.f32 %v1186_v16, 0.0 }
 0x2e0   : > { %1273 = vst.msk [vmem:[%s1873_s14 + $0xd8] sm:$0xff] %vm1245_vm3, %v1240_v17 }
 0x2e1   : > { %1271 = vst.msk [vmem:[%s1873_s14 + $0xc8] sm:$0xff] %vm1245_vm3, %v1238_v18  ;;  %v1590_v19 = vpop.f32.mrb[48].mxu1 }
 0x2e2   : > { %v1207_v20 = vadd.f32 %v1590_v19, %v1866_v62  ;;  %v1198_v21 = vpop.f32.mrb[49].mxu1 }
 0x2e3   : > { %v1199_v22 = vadd.f32 %v1866_v62, %v1198_v21  ;;  %v1591_v23 = vpop.f32.mrb[50].mxu1 }
 0x2e4   : > { %v1243_v26 = vmax.f32 %v1207_v20, 0.0  ;;  %v1210_v27 = vadd.f32 %v1591_v23, %v1866_v62  ;;  %v1201_v28 = vpop.f32.mrb[51].mxu1 }
 0x2e5   : > { %v1241_v29 = vmax.f32 %v1199_v22, 0.0  ;;  %v1202_v30 = vadd.f32 %v1866_v62, %v1201_v28 }
 0x2e6   : > { %1276 = vst.msk [vmem:[%s1873_s14 + $0xf0] sm:$0xff] %vm1245_vm3, %v1243_v26  ;;  %v1244_v31 = vmax.f32 %v1210_v27, 0.0 }
 0x2e7   : > { %1274 = vst.msk [vmem:[%s1873_s14 + $0xe0] sm:$0xff] %vm1245_vm3, %v1241_v29  ;;  %v1242_v32 = vmax.f32 %v1202_v30, 0.0 }
 0x2e8   : > { %1277 = vst.msk [vmem:[%s1873_s14 + $0xf8] sm:$0xff] %vm1245_vm3, %v1244_v31 }
 0x2e9   : > { %1275 = vst.msk [vmem:[%s1873_s14 + $0xe8] sm:$0xff] %vm1245_vm3, %v1242_v32 }
 0x2ea PF: > { %s17_s24 = sadd.s32 1, %s1636_s24  }
 0x2eb   : > { %p14_p4 = scmp.ge.s32.totalorder %s17_s24, 4  }
 0x2ed   :  { %16 = sbr.rel (!%p14_p4) target bundleno = 1 (0x1), region = 78 }

// kernel: contact_graspnet_forward.12
= control target key start
LH: loop header
LB: loop body
LE: loop exit
PB: predicated region body
PF: predicated region fallthrough
CT: control target
= control target key end

     0   :  { %s1678_s24 = smov 0   ;;  %s1973_s0 = inlined_call_operand.vmem [shape: bf16[1024,72], index: 0, kind: input, shape index: {}]   ;;  %s1974_s1 = inlined_call_operand.vmem [shape: bf16[72,32], index: 1, kind: input, shape index: {}]   ;;  %s1975_s2 = inlined_call_operand.vmem [shape: f32[1,32], index: 2, kind: input, shape index: {}]   ;;  %s1976_s3 = inlined_call_operand.vmem [shape: bf16[32,32], index: 3, kind: input, shape index: {}]   ;;  %s1977_s4 = inlined_call_operand.vmem [shape: f32[1,32], index: 4, kind: input, shape index: {}]   ;;  %s1978_s5 = inlined_call_operand.vmem [shape: bf16[32,64], index: 5, kind: input, shape index: {}]   ;;  %s1979_s6 = inlined_call_operand.vmem [shape: f32[1,64], index: 6, kind: input, shape index: {}]   ;;  %s1980_s7 = inlined_call_operand.vmem [shape: f32[1024,64], index: 7, kind: output, shape index: {}]  }
   0x1 LB: > { %s1334_s25 = sadd.s32 4294967295, %s1636_s24   ;;  %p1338_p0 = scmp.ge.s32.totalorder %s1636_s24, 1  ;;  %s1636_s24 = sphi %s1678_s24, %s17_s24  }
   0x2   : > { %p238_p1 = scmp.lt.s32.totalorder %s1636_s24, 5 }
   0x4   : > { %p239_p2 = pnand %p1338_p0, %p238_p1 }
   0x5   : > { %v1605_v0 = vld [vmem:[%s1974_s1] sm:$0xff] (!%p239_p2)   ;;  %v1606_v1 = vld [vmem:[%s1974_s1 + $0x8] sm:$0xff] (!%p239_p2)   ;;  %s1339_s30 = sshll.u32 (!%p239_p2), %s1334_s25, 5  ;;  %v1607_v2 = vld [vmem:[%s1974_s1 + $0x10] sm:$0xff] (!%p239_p2)   ;;  %vm438_vm0 = vcmask (!%p239_p2), 588800   ;;  %vm487_vm1 = vcmask (!%p239_p2), 1043456  }
   0x6   : > { %242 = sbr.rel (%p239_p2) target bundleno = 746 (0x2ea), region = 48  ;;  %1478 = vmatprep.subr.bf16.mxu0 (!%p239_p2), %v1605_v0  ;;  %p271_p3 = scmp.lt.s32.totalorder (!%p239_p2), %s1339_s30, 127  ;;  %v1626_v3 = vld [vmem:[%s1976_s3] sm:$0xff] (!%p239_p2)   ;;  %v1608_v4 = vld [vmem:[%s1974_s1 + $0x18] sm:$0xff] (!%p239_p2)   ;;  %v1627_v5 = vld [vmem:[%s1976_s3 + $0x8] sm:$0xff] (!%p239_p2)   ;;  %vm723_vm2 = vcmask (!%p239_p2), 261120  }
   0x7   : > { %1479 = vmatpush3.bf16.msra.mxu0 (!%p239_p2), %v1605_v0  ;;  %1592 = vmatprep.subr.bf16.mxu1 (!%p239_p2), %v1626_v3  ;;  %v1609_v7 = vld [vmem:[%s1974_s1 + $0x20] ss:$0 sps:$4 sm:$0xff] (!%p239_p2)   ;;  %vm1245_vm3 = vcmask (!%p239_p2), 523264  }
   0x8   : > { %1480 = vmatprep.subr.bf16.mxu0 (!%p239_p2), %v1606_v1  ;;  %1594 = vmatpush3.bf16.msra.mxu1 (!%p239_p2), %v1626_v3  ;;  %v489_v8 = vsel (!%p239_p2), %vm487_vm1, %v1609_v7, 0  ;;  %v1750_v24 = vld [vmem:[%s1978_s5] sm:$0xff] (!%p239_p2)  }
   0x9   : > { %1593 = vmatprep.subr.bf16.mxu1 (!%p239_p2), %v1627_v5  ;;  %v1756_v25 = vld [vmem:[%s1975_s2] ss:$0 sm:$0xff] (!%p239_p2) }
   0xb   : > { %1481 = vmatpush3.bf16.msra.mxu0 (!%p239_p2), %v1606_v1 }
   0xc   : > { %1482 = vmatprep.subr.bf16.mxu0 (!%p239_p2), %v1607_v2  ;;  %1595 = vmatpush3.bf16.msra.mxu1 (!%p239_p2), %v1627_v5 }
   0xd   : > { %s1982_s30 = smov (!%p271_p3, %s1339_s30), 127  ;;  %1556 = vmatprep.subr.bf16.mxu1 %v1750_v24 }
   0xe   : > { %s1340_s14 = sshll.u32 %s1982_s30, 2  ;;  %s1342_s11 = sshll.u32 %s1982_s30, 3 }
   0xf   : > { %s1710_s19 = scalar_lea.vmem %s1973_s0, %s1340_s14  ;;  %1483 = vmatpush3.bf16.msra.mxu0 %v1607_v2  ;;  %s1873_s14 = scalar_lea.vmem %s1980_s7, %s1342_s11 }
  0x10   : > { %v1610_v6 = vld [vmem:[%s1710_s19] sm:$0xff]   ;;  %1484 = vmatprep.subr.bf16.mxu0 %v1608_v4  ;;  %v1611_v9 = vld [vmem:[%s1710_s19 + $0x8] sm:$0xff]   ;;  %v1612_v10 = vld [vmem:[%s1710_s19 + $0x10] sm:$0xff]  }
  0x11   : > { %1488 = vmatprep.mubr.msk.bf16.mxu0 %vm438_vm0, %v1610_v6  ;;  %v1613_v11 = vld [vmem:[%s1710_s19 + $0x18] sm:$0xff]   ;;  %v1614_v12 = vld [vmem:[%s1710_s19 + $0x20] sm:$0xff]   ;;  %v1615_v13 = vld [vmem:[%s1710_s19 + $0x28] sm:$0xff]  }
  0x12   : > { %v1616_v14 = vld [vmem:[%s1710_s19 + $0x30] sm:$0xff]   ;;  %v1617_v15 = vld [vmem:[%s1710_s19 + $0x38] sm:$0xff]   ;;  %v1618_v16 = vld [vmem:[%s1710_s19 + $0x40] sm:$0xff]  }
  0x13   : > { %1485 = vmatpush3.bf16.msra.mxu0 %v1608_v4  ;;  %v1619_v17 = vld [vmem:[%s1710_s19 + $0x48] sm:$0xff]   ;;  %v1620_v18 = vld [vmem:[%s1710_s19 + $0x50] sm:$0xff]   ;;  %v1621_v19 = vld [vmem:[%s1710_s19 + $0x58] sm:$0xff]  }
  0x14   : > { %1596 = vmatprep.subr.msk.bf16.mxu0 %vm487_vm1, %v1609_v7  ;;  %v1622_v20 = vld [vmem:[%s1710_s19 + $0x60] sm:$0xff]   ;;  %v1623_v21 = vld [vmem:[%s1710_s19 + $0x68] sm:$0xff]   ;;  %v1624_v22 = vld [vmem:[%s1710_s19 + $0x70] sm:$0xff]  }
  0x15   : > { %v1625_v23 = vld [vmem:[%s1710_s19 + $0x78] sm:$0xff]  }
  0x17   : > { %1487 = vmatpush3.bf16.msra.mxu0 %v489_v8 }
  0x18   : > { %1520 = vmatprep.subr.bf16.mxu0 %v1626_v3 }
  0x1a   : > { %1489 = vmatmul.mubr.msk.bf16.vlgmr.msra.gmra.mrb[0].mxu0 %vm438_vm0, %v1611_v9 }
  0x1b   : > { %1492 = vmatprep.mubr.msk.bf16.mxu0 %vm438_vm0, %v1612_v10  ;;  %1521 = vmatpush3.bf16.msra.mxu0 %v1626_v3 }
  0x1c   : > { %1522 = vmatprep.subr.bf16.mxu0 %v1627_v5 }
  0x1f   : > { %1523 = vmatpush3.bf16.msra.mxu0 %v1627_v5 }
  0x22   : > { %1493 = vmatmul.mubr.msk.bf16.gmra.mrb[4].mxu0 %vm438_vm0, %v1613_v11 }
  0x23   : > { %1496 = vmatprep.mubr.msk.bf16.mxu0 %vm438_vm0, %v1614_v12 }
  0x2a   : > { %1497 = vmatmul.mubr.msk.bf16.gmra.mrb[8].mxu0 %vm438_vm0, %v1615_v13 }
  0x2b   : > { %1500 = vmatprep.mubr.msk.bf16.mxu0 %vm438_vm0, %v1616_v14 }
  0x32   : > { %1501 = vmatmul.mubr.msk.bf16.gmra.mrb[12].mxu0 %vm438_vm0, %v1617_v15 }
  0x33   : > { %1504 = vmatprep.mubr.msk.bf16.mxu0 %vm438_vm0, %v1618_v16 }
  0x3a   : > { %1505 = vmatmul.mubr.msk.bf16.gmra.mrb[16].mxu0 %vm438_vm0, %v1619_v17 }
  0x3b   : > { %1508 = vmatprep.mubr.msk.bf16.mxu0 %vm438_vm0, %v1620_v18 }
  0x42   : > { %1509 = vmatmul.mubr.msk.bf16.gmra.mrb[20].mxu0 %vm438_vm0, %v1621_v19 }
  0x43   : > { %1512 = vmatprep.mubr.msk.bf16.mxu0 %vm438_vm0, %v1622_v20 }
  0x4a   : > { %1513 = vmatmul.mubr.msk.bf16.gmra.mrb[24].mxu0 %vm438_vm0, %v1623_v21  ;;  %v1629_v21 = vld [vmem:[%s1978_s5 + $0x8] sm:$0xff]  }
  0x4b   : > { %1516 = vmatprep.mubr.msk.bf16.mxu0 %vm438_vm0, %v1624_v22 }
  0x52   : > { %1517 = vmatmul.mubr.msk.bf16.gmra.mrb[28].mxu0 %vm438_vm0, %v1625_v23 }
  0xed   : > { %v1490_v26 = vpop.f32.mrb[0].mxu0 }
  0xee   : > { %v534_v27 = vadd.f32 %v1490_v26, %v1756_v25  ;;  %v525_v28 = vpop.f32.mrb[1].mxu0 }
  0xef   : > { %v526_v29 = vadd.f32 %v1756_v25, %v525_v28  ;;  %v1491_v30 = vpop.f32.mrb[2].mxu0 }
  0xf0   : > { %v537_v31 = vadd.f32 %v1491_v30, %v1756_v25  ;;  %v528_v32 = vpop.f32.mrb[3].mxu0  ;;  %v654_v34 = vmax.f32 %v534_v27, 0.0 }
  0xf1   : > { %v529_v33 = vadd.f32 %v1756_v25, %v528_v32  ;;  %v652_v36 = vmax.f32 %v526_v29, 0.0 }
  0xf2   : > { %v655_v35 = vmax.f32 %v537_v31, 0.0 }
  0xf3   : > { %v653_v37 = vmax.f32 %v529_v33, 0.0 }
  0xf4   : > { %v685_v38 = vpack.c.bf16 %v655_v35, %v654_v34 }
  0xf5   : > { %v684_v39 = vpack.c.bf16 %v653_v37, %v652_v36  ;;  %v1494_v40 = vpop.f32.mrb[4].mxu0 }
  0xf6   : > { %v550_v41 = vadd.f32 %v1494_v40, %v1756_v25  ;;  %v541_v42 = vpop.f32.mrb[5].mxu0 }
  0xf7   : > { %v542_v43 = vadd.f32 %v1756_v25, %v541_v42  ;;  %v1495_v44 = vpop.f32.mrb[6].mxu0  ;;  %1524 = vmatprep.mubr.msk.bf16.mxu0 %vm723_vm2, %v684_v39 }
  0xf8   : > { %v553_v45 = vadd.f32 %v1495_v44, %v1756_v25  ;;  %v544_v46 = vpop.f32.mrb[7].mxu0  ;;  %1525 = vmatmul.mubr.msk.bf16.vlgmr.msra.gmra.mrb[32].mxu0 %vm723_vm2, %v685_v38  ;;  %v658_v48 = vmax.f32 %v550_v41, 0.0 }
  0xf9   : > { %v545_v47 = vadd.f32 %v1756_v25, %v544_v46  ;;  %v656_v50 = vmax.f32 %v542_v43, 0.0 }
  0xfa   : > { %v659_v49 = vmax.f32 %v553_v45, 0.0 }
  0xfb   : > { %v657_v51 = vmax.f32 %v545_v47, 0.0 }
  0xfc   : > { %v687_v52 = vpack.c.bf16 %v659_v49, %v658_v48 }
  0xfd   : > { %v686_v53 = vpack.c.bf16 %v657_v51, %v656_v50  ;;  %v1498_v54 = vpop.f32.mrb[8].mxu0 }
  0xfe   : > { %v566_v55 = vadd.f32 %v1498_v54, %v1756_v25  ;;  %v557_v56 = vpop.f32.mrb[9].mxu0 }
  0xff   : > { %v558_v57 = vadd.f32 %v1756_v25, %v557_v56  ;;  %v1499_v58 = vpop.f32.mrb[10].mxu0  ;;  %1528 = vmatprep.mubr.msk.bf16.mxu0 %vm723_vm2, %v686_v53 }
 0x100   : > { %v569_v59 = vadd.f32 %v1499_v58, %v1756_v25  ;;  %v560_v60 = vpop.f32.mrb[11].mxu0  ;;  %1529 = vmatmul.mubr.msk.bf16.gmra.mrb[36].mxu0 %vm723_vm2, %v687_v52  ;;  %v662_v62 = vmax.f32 %v566_v55, 0.0 }
 0x101   : > { %v561_v61 = vadd.f32 %v1756_v25, %v560_v60  ;;  %v660_v0 = vmax.f32 %v558_v57, 0.0 }
 0x102   : > { %v663_v63 = vmax.f32 %v569_v59, 0.0 }
 0x103   : > { %v661_v1 = vmax.f32 %v561_v61, 0.0 }
 0x104   : > { %v689_v2 = vpack.c.bf16 %v663_v63, %v662_v62 }
 0x105   : > { %v688_v3 = vpack.c.bf16 %v661_v1, %v660_v0  ;;  %v1502_v4 = vpop.f32.mrb[12].mxu0 }
 0x106   : > { %v582_v5 = vadd.f32 %v1502_v4, %v1756_v25  ;;  %v573_v6 = vpop.f32.mrb[13].mxu0 }
 0x107   : > { %v574_v7 = vadd.f32 %v1756_v25, %v573_v6  ;;  %v1503_v8 = vpop.f32.mrb[14].mxu0  ;;  %1532 = vmatprep.mubr.msk.bf16.mxu0 %vm723_vm2, %v688_v3 }
 0x108   : > { %v585_v9 = vadd.f32 %v1503_v8, %v1756_v25  ;;  %v576_v10 = vpop.f32.mrb[15].mxu0  ;;  %1533 = vmatmul.mubr.msk.bf16.gmra.mrb[40].mxu0 %vm723_vm2, %v689_v2  ;;  %v666_v12 = vmax.f32 %v582_v5, 0.0 }
 0x109   : > { %v577_v11 = vadd.f32 %v1756_v25, %v576_v10  ;;  %v664_v14 = vmax.f32 %v574_v7, 0.0 }
 0x10a   : > { %v667_v13 = vmax.f32 %v585_v9, 0.0 }
 0x10b   : > { %v665_v15 = vmax.f32 %v577_v11, 0.0 }
 0x10c   : > { %v691_v16 = vpack.c.bf16 %v667_v13, %v666_v12  ;;  %v1813_v12 = vld [vmem:[%s1977_s4] ss:$0 sm:$0xff] }
 0x10d   : > { %v1506_v17 = vpop.f32.mrb[16].mxu0  ;;  %v690_v18 = vpack.c.bf16 %v665_v15, %v664_v14 }
 0x10e   : > { %v598_v19 = vadd.f32 %v1506_v17, %v1756_v25  ;;  %v589_v20 = vpop.f32.mrb[17].mxu0 }
 0x10f   : > { %v590_v22 = vadd.f32 %v1756_v25, %v589_v20  ;;  %v1507_v23 = vpop.f32.mrb[18].mxu0  ;;  %1536 = vmatprep.mubr.msk.bf16.mxu1 %vm723_vm2, %v690_v18 }
 0x110   : > { %v601_v26 = vadd.f32 %v1507_v23, %v1756_v25  ;;  %v592_v27 = vpop.f32.mrb[19].mxu0  ;;  %1537 = vmatmul.mubr.msk.bf16.vlgmr.msra.gmra.mrb[0].mxu1 %vm723_vm2, %v691_v16  ;;  %v670_v29 = vmax.f32 %v598_v19, 0.0 }
 0x111   : > { %v593_v28 = vadd.f32 %v1756_v25, %v592_v27  ;;  %1557 = vmatpush3.bf16.msra.mxu1 %v1750_v24  ;;  %v668_v31 = vmax.f32 %v590_v22, 0.0 }
 0x112   : > { %v671_v30 = vmax.f32 %v601_v26, 0.0  ;;  %1558 = vmatprep.subr.bf16.mxu1 %v1629_v21 }
 0x113   : > { %v669_v32 = vmax.f32 %v593_v28, 0.0 }
 0x114   : > { %v693_v33 = vpack.c.bf16 %v671_v30, %v670_v29 }
 0x115   : > { %v692_v34 = vpack.c.bf16 %v669_v32, %v668_v31  ;;  %v1510_v35 = vpop.f32.mrb[20].mxu0  ;;  %1559 = vmatpush3.bf16.msra.mxu1 %v1629_v21 }
 0x116   : > { %v614_v36 = vadd.f32 %v1510_v35, %v1756_v25  ;;  %v605_v37 = vpop.f32.mrb[21].mxu0 }
 0x117   : > { %v606_v38 = vadd.f32 %v1756_v25, %v605_v37  ;;  %v1511_v39 = vpop.f32.mrb[22].mxu0  ;;  %1540 = vmatprep.mubr.msk.bf16.mxu1 %vm723_vm2, %v692_v34 }
 0x118   : > { %v617_v40 = vadd.f32 %v1511_v39, %v1756_v25  ;;  %v608_v24 = vpop.f32.mrb[23].mxu0  ;;  %1541 = vmatmul.mubr.msk.bf16.gmra.mrb[4].mxu1 %vm723_vm2, %v693_v33  ;;  %v674_v42 = vmax.f32 %v614_v36, 0.0 }
 0x119   : > { %v609_v41 = vadd.f32 %v1756_v25, %v608_v24  ;;  %v672_v44 = vmax.f32 %v606_v38, 0.0 }
 0x11a   : > { %v675_v43 = vmax.f32 %v617_v40, 0.0 }
 0x11b   : > { %v673_v45 = vmax.f32 %v609_v41, 0.0 }
 0x11c   : > { %v695_v46 = vpack.c.bf16 %v675_v43, %v674_v42 }
 0x11d   : > { %v694_v47 = vpack.c.bf16 %v673_v45, %v672_v44  ;;  %v1514_v48 = vpop.f32.mrb[24].mxu0 }
 0x11e   : > { %v630_v49 = vadd.f32 %v1514_v48, %v1756_v25  ;;  %v621_v50 = vpop.f32.mrb[25].mxu0 }
 0x11f   : > { %v622_v51 = vadd.f32 %v1756_v25, %v621_v50  ;;  %v1515_v52 = vpop.f32.mrb[26].mxu0  ;;  %1544 = vmatprep.mubr.msk.bf16.mxu1 %vm723_vm2, %v694_v47 }
 0x120   : > { %v633_v53 = vadd.f32 %v1515_v52, %v1756_v25  ;;  %v624_v54 = vpop.f32.mrb[27].mxu0  ;;  %1545 = vmatmul.mubr.msk.bf16.gmra.mrb[8].mxu1 %vm723_vm2, %v695_v46  ;;  %v678_v56 = vmax.f32 %v630_v49, 0.0 }
 0x121   : > { %v625_v55 = vadd.f32 %v1756_v25, %v624_v54  ;;  %v676_v58 = vmax.f32 %v622_v51, 0.0 }
 0x122   : > { %v679_v57 = vmax.f32 %v633_v53, 0.0 }
 0x123   : > { %v677_v59 = vmax.f32 %v625_v55, 0.0 }
 0x124   : > { %v697_v60 = vpack.c.bf16 %v679_v57, %v678_v56 }
 0x125   : > { %v696_v61 = vpack.c.bf16 %v677_v59, %v676_v58  ;;  %v1518_v62 = vpop.f32.mrb[28].mxu0 }
 0x126   : > { %v646_v63 = vadd.f32 %v1518_v62, %v1756_v25  ;;  %v637_v0 = vpop.f32.mrb[29].mxu0 }
 0x127   : > { %v638_v1 = vadd.f32 %v1756_v25, %v637_v0  ;;  %v1519_v2 = vpop.f32.mrb[30].mxu0  ;;  %1548 = vmatprep.mubr.msk.bf16.mxu1 %vm723_vm2, %v696_v61 }
 0x128   : > { %v649_v3 = vadd.f32 %v1519_v2, %v1756_v25  ;;  %v640_v4 = vpop.f32.mrb[31].mxu0  ;;  %1549 = vmatmul.mubr.msk.bf16.gmra.mrb[12].mxu1 %vm723_vm2, %v697_v60  ;;  %v682_v6 = vmax.f32 %v646_v63, 0.0 }
 0x129   : > { %v641_v5 = vadd.f32 %v1756_v25, %v640_v4  ;;  %v680_v8 = vmax.f32 %v638_v1, 0.0 }
 0x12a   : > { %v683_v7 = vmax.f32 %v649_v3, 0.0 }
 0x12b   : > { %v681_v9 = vmax.f32 %v641_v5, 0.0 }
 0x12c   : > { %v699_v10 = vpack.c.bf16 %v683_v7, %v682_v6 }
 0x12d   : > { %v698_v11 = vpack.c.bf16 %v681_v9, %v680_v8 }
 0x12f   : > { %1552 = vmatprep.mubr.msk.bf16.mxu1 %vm723_vm2, %v698_v11 }
 0x130   : > { %1553 = vmatmul.mubr.msk.bf16.gmra.mrb[16].mxu1 %vm723_vm2, %v699_v10 }
 0x1cb   : > { %v1526_v13 = vpop.f32.mrb[32].mxu0 }
 0x1cc   : > { %v815_v14 = vadd.f32 %v1526_v13, %v1813_v12  ;;  %v806_v15 = vpop.f32.mrb[33].mxu0 }
 0x1cd   : > { %v807_v25 = vadd.f32 %v1813_v12, %v806_v15  ;;  %v1527_v16 = vpop.f32.mrb[34].mxu0 }
 0x1ce   : > { %v818_v17 = vadd.f32 %v1527_v16, %v1813_v12  ;;  %v809_v18 = vpop.f32.mrb[35].mxu0  ;;  %v935_v20 = vmax.f32 %v815_v14, 0.0 }
 0x1cf   : > { %v810_v19 = vadd.f32 %v1813_v12, %v809_v18  ;;  %v933_v22 = vmax.f32 %v807_v25, 0.0 }
 0x1d0   : > { %v936_v21 = vmax.f32 %v818_v17, 0.0 }
 0x1d1   : > { %v934_v23 = vmax.f32 %v810_v19, 0.0 }
 0x1d2   : > { %v966_v26 = vpack.c.bf16 %v936_v21, %v935_v20 }
 0x1d3   : > { %v965_v27 = vpack.c.bf16 %v934_v23, %v933_v22  ;;  %v1530_v28 = vpop.f32.mrb[36].mxu0 }
 0x1d4   : > { %v831_v29 = vadd.f32 %v1530_v28, %v1813_v12  ;;  %v822_v30 = vpop.f32.mrb[37].mxu0 }
 0x1d5   : > { %v823_v31 = vadd.f32 %v1813_v12, %v822_v30  ;;  %v1531_v32 = vpop.f32.mrb[38].mxu0  ;;  %1560 = vmatprep.mubr.msk.bf16.mxu1 %vm723_vm2, %v965_v27 }
 0x1d6   : > { %v834_v33 = vadd.f32 %v1531_v32, %v1813_v12  ;;  %v825_v34 = vpop.f32.mrb[39].mxu0  ;;  %1561 = vmatmul.mubr.msk.bf16.vlgmr.msra.gmra.mrb[20].mxu1 %vm723_vm2, %v966_v26  ;;  %v939_v36 = vmax.f32 %v831_v29, 0.0 }
 0x1d7   : > { %v826_v35 = vadd.f32 %v1813_v12, %v825_v34  ;;  %v937_v38 = vmax.f32 %v823_v31, 0.0 }
 0x1d8   : > { %v940_v37 = vmax.f32 %v834_v33, 0.0 }
 0x1d9   : > { %v938_v39 = vmax.f32 %v826_v35, 0.0 }
 0x1da   : > { %v968_v40 = vpack.c.bf16 %v940_v37, %v939_v36 }
 0x1db   : > { %v967_v24 = vpack.c.bf16 %v938_v39, %v937_v38  ;;  %v1534_v41 = vpop.f32.mrb[40].mxu0 }
 0x1dc   : > { %v847_v42 = vadd.f32 %v1534_v41, %v1813_v12  ;;  %v838_v43 = vpop.f32.mrb[41].mxu0 }
 0x1dd   : > { %v839_v44 = vadd.f32 %v1813_v12, %v838_v43  ;;  %v1535_v45 = vpop.f32.mrb[42].mxu0  ;;  %1564 = vmatprep.mubr.msk.bf16.mxu1 %vm723_vm2, %v967_v24 }
 0x1de   : > { %v850_v46 = vadd.f32 %v1535_v45, %v1813_v12  ;;  %v841_v47 = vpop.f32.mrb[43].mxu0  ;;  %1565 = vmatmul.mubr.msk.bf16.gmra.mrb[24].mxu1 %vm723_vm2, %v968_v40  ;;  %v943_v49 = vmax.f32 %v847_v42, 0.0 }
 0x1df   : > { %v842_v48 = vadd.f32 %v1813_v12, %v841_v47  ;;  %v941_v51 = vmax.f32 %v839_v44, 0.0 }
 0x1e0   : > { %v944_v50 = vmax.f32 %v850_v46, 0.0 }
 0x1e1   : > { %v942_v52 = vmax.f32 %v842_v48, 0.0 }
 0x1e2   : > { %v970_v53 = vpack.c.bf16 %v944_v50, %v943_v49 }
 0x1e3   : > { %v969_v54 = vpack.c.bf16 %v942_v52, %v941_v51  ;;  %v1538_v55 = vpop.f32.mrb[0].mxu1 }
 0x1e4   : > { %v863_v56 = vadd.f32 %v1538_v55, %v1813_v12  ;;  %v854_v57 = vpop.f32.mrb[1].mxu1 }
 0x1e5   : > { %v855_v58 = vadd.f32 %v1813_v12, %v854_v57  ;;  %v1539_v59 = vpop.f32.mrb[2].mxu1  ;;  %1568 = vmatprep.mubr.msk.bf16.mxu1 %vm723_vm2, %v969_v54 }
 0x1e6   : > { %v866_v60 = vadd.f32 %v1539_v59, %v1813_v12  ;;  %v857_v61 = vpop.f32.mrb[3].mxu1  ;;  %1569 = vmatmul.mubr.msk.bf16.gmra.mrb[28].mxu1 %vm723_vm2, %v970_v53  ;;  %v947_v63 = vmax.f32 %v863_v56, 0.0 }
 0x1e7   : > { %v858_v62 = vadd.f32 %v1813_v12, %v857_v61  ;;  %v945_v1 = vmax.f32 %v855_v58, 0.0 }
 0x1e8   : > { %v948_v0 = vmax.f32 %v866_v60, 0.0 }
 0x1e9   : > { %v946_v2 = vmax.f32 %v858_v62, 0.0  ;;  %v1866_v62 = vld [vmem:[%s1979_s6] ss:$0 sm:$0xff] }
 0x1ea   : > { %v972_v3 = vpack.c.bf16 %v948_v0, %v947_v63 }
 0x1eb   : > { %v971_v4 = vpack.c.bf16 %v946_v2, %v945_v1  ;;  %v1542_v5 = vpop.f32.mrb[4].mxu1 }
 0x1ec   : > { %v879_v6 = vadd.f32 %v1542_v5, %v1813_v12  ;;  %v870_v7 = vpop.f32.mrb[5].mxu1 }
 0x1ed   : > { %v871_v8 = vadd.f32 %v1813_v12, %v870_v7  ;;  %v1543_v9 = vpop.f32.mrb[6].mxu1  ;;  %1572 = vmatprep.mubr.msk.bf16.mxu1 %vm723_vm2, %v971_v4 }
 0x1ee   : > { %v882_v10 = vadd.f32 %v1543_v9, %v1813_v12  ;;  %v873_v11 = vpop.f32.mrb[7].mxu1  ;;  %1573 = vmatmul.mubr.msk.bf16.gmra.mrb[32].mxu1 %vm723_vm2, %v972_v3  ;;  %v951_v14 = vmax.f32 %v879_v6, 0.0 }
 0x1ef   : > { %v874_v13 = vadd.f32 %v1813_v12, %v873_v11  ;;  %v949_v25 = vmax.f32 %v871_v8, 0.0 }
 0x1f0   : > { %v952_v15 = vmax.f32 %v882_v10, 0.0 }
 0x1f1   : > { %v950_v16 = vmax.f32 %v874_v13, 0.0 }
 0x1f2   : > { %v974_v17 = vpack.c.bf16 %v952_v15, %v951_v14 }
 0x1f3   : > { %v973_v18 = vpack.c.bf16 %v950_v16, %v949_v25  ;;  %v1546_v19 = vpop.f32.mrb[8].mxu1 }
 0x1f4   : > { %v895_v20 = vadd.f32 %v1546_v19, %v1813_v12  ;;  %v886_v21 = vpop.f32.mrb[9].mxu1 }
 0x1f5   : > { %v887_v22 = vadd.f32 %v1813_v12, %v886_v21  ;;  %v1547_v23 = vpop.f32.mrb[10].mxu1  ;;  %1576 = vmatprep.mubr.msk.bf16.mxu1 %vm723_vm2, %v973_v18 }
 0x1f6   : > { %v898_v26 = vadd.f32 %v1547_v23, %v1813_v12  ;;  %v889_v27 = vpop.f32.mrb[11].mxu1  ;;  %1577 = vmatmul.mubr.msk.bf16.gmra.mrb[36].mxu1 %vm723_vm2, %v974_v17  ;;  %v955_v29 = vmax.f32 %v895_v20, 0.0 }
 0x1f7   : > { %v890_v28 = vadd.f32 %v1813_v12, %v889_v27  ;;  %v953_v31 = vmax.f32 %v887_v22, 0.0 }
 0x1f8   : > { %v956_v30 = vmax.f32 %v898_v26, 0.0 }
 0x1f9   : > { %v954_v32 = vmax.f32 %v890_v28, 0.0 }
 0x1fa   : > { %v976_v33 = vpack.c.bf16 %v956_v30, %v955_v29 }
 0x1fb   : > { %v975_v34 = vpack.c.bf16 %v954_v32, %v953_v31  ;;  %v1550_v35 = vpop.f32.mrb[12].mxu1 }
 0x1fc   : > { %v911_v36 = vadd.f32 %v1550_v35, %v1813_v12  ;;  %v902_v37 = vpop.f32.mrb[13].mxu1 }
 0x1fd   : > { %v903_v38 = vadd.f32 %v1813_v12, %v902_v37  ;;  %v1551_v39 = vpop.f32.mrb[14].mxu1  ;;  %1580 = vmatprep.mubr.msk.bf16.mxu1 %vm723_vm2, %v975_v34 }
 0x1fe   : > { %v914_v40 = vadd.f32 %v1551_v39, %v1813_v12  ;;  %v905_v24 = vpop.f32.mrb[15].mxu1  ;;  %1581 = vmatmul.mubr.msk.bf16.gmra.mrb[40].mxu1 %vm723_vm2, %v976_v33  ;;  %v959_v42 = vmax.f32 %v911_v36, 0.0 }
 0x1ff   : > { %v906_v41 = vadd.f32 %v1813_v12, %v905_v24  ;;  %v957_v44 = vmax.f32 %v903_v38, 0.0 }
 0x200   : > { %v960_v43 = vmax.f32 %v914_v40, 0.0 }
 0x201   : > { %v958_v45 = vmax.f32 %v906_v41, 0.0 }
 0x202   : > { %v978_v46 = vpack.c.bf16 %v960_v43, %v959_v42 }
 0x203   : > { %v977_v47 = vpack.c.bf16 %v958_v45, %v957_v44  ;;  %v1554_v48 = vpop.f32.mrb[16].mxu1 }
 0x204   : > { %v927_v49 = vadd.f32 %v1554_v48, %v1813_v12  ;;  %v918_v50 = vpop.f32.mrb[17].mxu1 }
 0x205   : > { %v919_v51 = vadd.f32 %v1813_v12, %v918_v50  ;;  %v1555_v52 = vpop.f32.mrb[18].mxu1  ;;  %1584 = vmatprep.mubr.msk.bf16.mxu1 %vm723_vm2, %v977_v47 }
 0x206   : > { %v930_v53 = vadd.f32 %v1555_v52, %v1813_v12  ;;  %v921_v54 = vpop.f32.mrb[19].mxu1  ;;  %1585 = vmatmul.mubr.msk.bf16.gmra.mrb[44].mxu1 %vm723_vm2, %v978_v46  ;;  %v963_v56 = vmax.f32 %v927_v49, 0.0 }
 0x207   : > { %v922_v55 = vadd.f32 %v1813_v12, %v921_v54  ;;  %v961_v58 = vmax.f32 %v919_v51, 0.0 }
 0x208   : > { %v964_v57 = vmax.f32 %v930_v53, 0.0 }
 0x209   : > { %v962_v59 = vmax.f32 %v922_v55, 0.0 }
 0x20a   : > { %v980_v60 = vpack.c.bf16 %v964_v57, %v963_v56 }
 0x20b   : > { %v979_v61 = vpack.c.bf16 %v962_v59, %v961_v58 }
 0x20d   : > { %1588 = vmatprep.mubr.msk.bf16.mxu1 %vm723_vm2, %v979_v61 }
 0x20e   : > { %1589 = vmatmul.mubr.msk.bf16.gmra.mrb[48].mxu1 %vm723_vm2, %v980_v60 }
 0x2a9   : > { %v1562_v63 = vpop.f32.mrb[20].mxu1 }
 0x2aa   : > { %v1095_v0 = vadd.f32 %v1562_v63, %v1866_v62  ;;  %v1086_v12 = vpop.f32.mrb[21].mxu1 }
 0x2ab   : > { %v1087_v1 = vadd.f32 %v1866_v62, %v1086_v12  ;;  %v1563_v2 = vpop.f32.mrb[22].mxu1 }
 0x2ac   : > { %v1215_v3 = vmax.f32 %v1095_v0, 0.0  ;;  %v1098_v4 = vadd.f32 %v1563_v2, %v1866_v62  ;;  %v1089_v5 = vpop.f32.mrb[23].mxu1 }
 0x2ad   : > { %v1213_v6 = vmax.f32 %v1087_v1, 0.0  ;;  %v1090_v7 = vadd.f32 %v1866_v62, %v1089_v5 }
 0x2ae   : > { %1248 = vst.msk [vmem:[%s1873_s14 + $0x10] sm:$0xff] %vm1245_vm3, %v1215_v3  ;;  %v1216_v8 = vmax.f32 %v1098_v4, 0.0 }
 0x2af   : > { %1246 = vst.msk [vmem:[%s1873_s14] sm:$0xff] %vm1245_vm3, %v1213_v6  ;;  %v1214_v9 = vmax.f32 %v1090_v7, 0.0 }
 0x2b0   : > { %1249 = vst.msk [vmem:[%s1873_s14 + $0x18] sm:$0xff] %vm1245_vm3, %v1216_v8 }
 0x2b1   : > { %1247 = vst.msk [vmem:[%s1873_s14 + $0x8] sm:$0xff] %vm1245_vm3, %v1214_v9  ;;  %v1566_v10 = vpop.f32.mrb[24].mxu1 }
 0x2b2   : > { %v1111_v11 = vadd.f32 %v1566_v10, %v1866_v62  ;;  %v1102_v13 = vpop.f32.mrb[25].mxu1 }
 0x2b3   : > { %v1103_v14 = vadd.f32 %v1866_v62, %v1102_v13  ;;  %v1567_v15 = vpop.f32.mrb[26].mxu1 }
 0x2b4   : > { %v1219_v25 = vmax.f32 %v1111_v11, 0.0  ;;  %v1114_v16 = vadd.f32 %v1567_v15, %v1866_v62  ;;  %v1105_v17 = vpop.f32.mrb[27].mxu1 }
 0x2b5   : > { %v1217_v18 = vmax.f32 %v1103_v14, 0.0  ;;  %v1106_v19 = vadd.f32 %v1866_v62, %v1105_v17 }
 0x2b6   : > { %1252 = vst.msk [vmem:[%s1873_s14 + $0x30] sm:$0xff] %vm1245_vm3, %v1219_v25  ;;  %v1220_v20 = vmax.f32 %v1114_v16, 0.0 }
 0x2b7   : > { %1250 = vst.msk [vmem:[%s1873_s14 + $0x20] sm:$0xff] %vm1245_vm3, %v1217_v18  ;;  %v1218_v21 = vmax.f32 %v1106_v19, 0.0 }
 0x2b8   : > { %1253 = vst.msk [vmem:[%s1873_s14 + $0x38] sm:$0xff] %vm1245_vm3, %v1220_v20 }
 0x2b9   : > { %1251 = vst.msk [vmem:[%s1873_s14 + $0x28] sm:$0xff] %vm1245_vm3, %v1218_v21  ;;  %v1570_v22 = vpop.f32.mrb[28].mxu1 }
 0x2ba   : > { %v1127_v23 = vadd.f32 %v1570_v22, %v1866_v62  ;;  %v1118_v26 = vpop.f32.mrb[29].mxu1 }
 0x2bb   : > { %v1119_v27 = vadd.f32 %v1866_v62, %v1118_v26  ;;  %v1571_v28 = vpop.f32.mrb[30].mxu1 }
 0x2bc   : > { %v1223_v29 = vmax.f32 %v1127_v23, 0.0  ;;  %v1130_v30 = vadd.f32 %v1571_v28, %v1866_v62  ;;  %v1121_v31 = vpop.f32.mrb[31].mxu1 }
 0x2bd   : > { %v1221_v32 = vmax.f32 %v1119_v27, 0.0  ;;  %v1122_v33 = vadd.f32 %v1866_v62, %v1121_v31 }
 0x2be   : > { %1256 = vst.msk [vmem:[%s1873_s14 + $0x50] sm:$0xff] %vm1245_vm3, %v1223_v29  ;;  %v1224_v34 = vmax.f32 %v1130_v30, 0.0 }
 0x2bf   : > { %1254 = vst.msk [vmem:[%s1873_s14 + $0x40] sm:$0xff] %vm1245_vm3, %v1221_v32  ;;  %v1222_v35 = vmax.f32 %v1122_v33, 0.0 }
 0x2c0   : > { %1257 = vst.msk [vmem:[%s1873_s14 + $0x58] sm:$0xff] %vm1245_vm3, %v1224_v34 }
 0x2c1   : > { %1255 = vst.msk [vmem:[%s1873_s14 + $0x48] sm:$0xff] %vm1245_vm3, %v1222_v35  ;;  %v1574_v36 = vpop.f32.mrb[32].mxu1 }
 0x2c2   : > { %v1143_v37 = vadd.f32 %v1574_v36, %v1866_v62  ;;  %v1134_v38 = vpop.f32.mrb[33].mxu1 }
 0x2c3   : > { %v1135_v39 = vadd.f32 %v1866_v62, %v1134_v38  ;;  %v1575_v40 = vpop.f32.mrb[34].mxu1 }
 0x2c4   : > { %v1227_v24 = vmax.f32 %v1143_v37, 0.0  ;;  %v1146_v41 = vadd.f32 %v1575_v40, %v1866_v62  ;;  %v1137_v42 = vpop.f32.mrb[35].mxu1 }
 0x2c5   : > { %v1225_v43 = vmax.f32 %v1135_v39, 0.0  ;;  %v1138_v44 = vadd.f32 %v1866_v62, %v1137_v42 }
 0x2c6   : > { %1260 = vst.msk [vmem:[%s1873_s14 + $0x70] sm:$0xff] %vm1245_vm3, %v1227_v24  ;;  %v1228_v45 = vmax.f32 %v1146_v41, 0.0 }
 0x2c7   : > { %1258 = vst.msk [vmem:[%s1873_s14 + $0x60] sm:$0xff] %vm1245_vm3, %v1225_v43  ;;  %v1226_v46 = vmax.f32 %v1138_v44, 0.0 }
 0x2c8   : > { %1261 = vst.msk [vmem:[%s1873_s14 + $0x78] sm:$0xff] %vm1245_vm3, %v1228_v45 }
 0x2c9   : > { %1259 = vst.msk [vmem:[%s1873_s14 + $0x68] sm:$0xff] %vm1245_vm3, %v1226_v46  ;;  %v1578_v47 = vpop.f32.mrb[36].mxu1 }
 0x2ca   : > { %v1159_v48 = vadd.f32 %v1578_v47, %v1866_v62  ;;  %v1150_v49 = vpop.f32.mrb[37].mxu1 }
 0x2cb   : > { %v1151_v50 = vadd.f32 %v1866_v62, %v1150_v49  ;;  %v1579_v51 = vpop.f32.mrb[38].mxu1 }
 0x2cc   : > { %v1231_v52 = vmax.f32 %v1159_v48, 0.0  ;;  %v1162_v53 = vadd.f32 %v1579_v51, %v1866_v62  ;;  %v1153_v54 = vpop.f32.mrb[39].mxu1 }
 0x2cd   : > { %v1229_v55 = vmax.f32 %v1151_v50, 0.0  ;;  %v1154_v56 = vadd.f32 %v1866_v62, %v1153_v54 }
 0x2ce   : > { %1264 = vst.msk [vmem:[%s1873_s14 + $0x90] sm:$0xff] %vm1245_vm3, %v1231_v52  ;;  %v1232_v57 = vmax.f32 %v1162_v53, 0.0 }
 0x2cf   : > { %1262 = vst.msk [vmem:[%s1873_s14 + $0x80] sm:$0xff] %vm1245_vm3, %v1229_v55  ;;  %v1230_v58 = vmax.f32 %v1154_v56, 0.0 }
 0x2d0   : > { %1265 = vst.msk [vmem:[%s1873_s14 + $0x98] sm:$0xff] %vm1245_vm3, %v1232_v57 }
 0x2d1   : > { %1263 = vst.msk [vmem:[%s1873_s14 + $0x88] sm:$0xff] %vm1245_vm3, %v1230_v58  ;;  %v1582_v59 = vpop.f32.mrb[40].mxu1 }
 0x2d2   : > { %v1175_v60 = vadd.f32 %v1582_v59, %v1866_v62  ;;  %v1166_v61 = vpop.f32.mrb[41].mxu1 }
 0x2d3   : > { %v1167_v63 = vadd.f32 %v1866_v62, %v1166_v61  ;;  %v1583_v0 = vpop.f32.mrb[42].mxu1 }
 0x2d4   : > { %v1235_v12 = vmax.f32 %v1175_v60, 0.0  ;;  %v1178_v1 = vadd.f32 %v1583_v0, %v1866_v62  ;;  %v1169_v2 = vpop.f32.mrb[43].mxu1 }
 0x2d5   : > { %v1233_v3 = vmax.f32 %v1167_v63, 0.0  ;;  %v1170_v4 = vadd.f32 %v1866_v62, %v1169_v2 }
 0x2d6   : > { %1268 = vst.msk [vmem:[%s1873_s14 + $0xb0] sm:$0xff] %vm1245_vm3, %v1235_v12  ;;  %v1236_v5 = vmax.f32 %v1178_v1, 0.0 }
 0x2d7   : > { %1266 = vst.msk [vmem:[%s1873_s14 + $0xa0] sm:$0xff] %vm1245_vm3, %v1233_v3  ;;  %v1234_v6 = vmax.f32 %v1170_v4, 0.0 }
 0x2d8   : > { %1269 = vst.msk [vmem:[%s1873_s14 + $0xb8] sm:$0xff] %vm1245_vm3, %v1236_v5 }
 0x2d9   : > { %1267 = vst.msk [vmem:[%s1873_s14 + $0xa8] sm:$0xff] %vm1245_vm3, %v1234_v6  ;;  %v1586_v7 = vpop.f32.mrb[44].mxu1 }
 0x2da   : > { %v1191_v8 = vadd.f32 %v1586_v7, %v1866_v62  ;;  %v1182_v9 = vpop.f32.mrb[45].mxu1 }
 0x2db   : > { %v1183_v10 = vadd.f32 %v1866_v62, %v1182_v9  ;;  %v1587_v11 = vpop.f32.mrb[46].mxu1 }
 0x2dc   : > { %v1239_v13 = vmax.f32 %v1191_v8, 0.0  ;;  %v1194_v14 = vadd.f32 %v1587_v11, %v1866_v62  ;;  %v1185_v15 = vpop.f32.mrb[47].mxu1 }
 0x2dd   : > { %v1237_v25 = vmax.f32 %v1183_v10, 0.0  ;;  %v1186_v16 = vadd.f32 %v1866_v62, %v1185_v15 }
 0x2de   : > { %1272 = vst.msk [vmem:[%s1873_s14 + $0xd0] sm:$0xff] %vm1245_vm3, %v1239_v13  ;;  %v1240_v17 = vmax.f32 %v1194_v14, 0.0 }
 0x2df   : > { %1270 = vst.msk [vmem:[%s1873_s14 + $0xc0] sm:$0xff] %vm1245_vm3, %v1237_v25  ;;  %v1238_v18 = vmax.f32 %v1186_v16, 0.0 }
 0x2e0   : > { %1273 = vst.msk [vmem:[%s1873_s14 + $0xd8] sm:$0xff] %vm1245_vm3, %v1240_v17 }
 0x2e1   : > { %1271 = vst.msk [vmem:[%s1873_s14 + $0xc8] sm:$0xff] %vm1245_vm3, %v1238_v18  ;;  %v1590_v19 = vpop.f32.mrb[48].mxu1 }
 0x2e2   : > { %v1207_v20 = vadd.f32 %v1590_v19, %v1866_v62  ;;  %v1198_v21 = vpop.f32.mrb[49].mxu1 }
 0x2e3   : > { %v1199_v22 = vadd.f32 %v1866_v62, %v1198_v21  ;;  %v1591_v23 = vpop.f32.mrb[50].mxu1 }
 0x2e4   : > { %v1243_v26 = vmax.f32 %v1207_v20, 0.0  ;;  %v1210_v27 = vadd.f32 %v1591_v23, %v1866_v62  ;;  %v1201_v28 = vpop.f32.mrb[51].mxu1 }
 0x2e5   : > { %v1241_v29 = vmax.f32 %v1199_v22, 0.0  ;;  %v1202_v30 = vadd.f32 %v1866_v62, %v1201_v28 }
 0x2e6   : > { %1276 = vst.msk [vmem:[%s1873_s14 + $0xf0] sm:$0xff] %vm1245_vm3, %v1243_v26  ;;  %v1244_v31 = vmax.f32 %v1210_v27, 0.0 }
 0x2e7   : > { %1274 = vst.msk [vmem:[%s1873_s14 + $0xe0] sm:$0xff] %vm1245_vm3, %v1241_v29  ;;  %v1242_v32 = vmax.f32 %v1202_v30, 0.0 }
 0x2e8   : > { %1277 = vst.msk [vmem:[%s1873_s14 + $0xf8] sm:$0xff] %vm1245_vm3, %v1244_v31 }
 0x2e9   : > { %1275 = vst.msk [vmem:[%s1873_s14 + $0xe8] sm:$0xff] %vm1245_vm3, %v1242_v32 }
 0x2ea PF: > { %s17_s24 = sadd.s32 1, %s1636_s24  }
 0x2eb   : > { %p14_p4 = scmp.ge.s32.totalorder %s17_s24, 6  }
 0x2ed   :  { %16 = sbr.rel (!%p14_p4) target bundleno = 1 (0x1), region = 78 }

// kernel: contact_graspnet_forward.14
= control target key start
LH: loop header
LB: loop body
LE: loop exit
PB: predicated region body
PF: predicated region fallthrough
CT: control target
= control target key end

     0   :  { %s1012_s1 = inlined_call_operand.vmem [shape: bf16[384,128], index: 1, kind: input, shape index: {}]   ;;  %s1013_s0 = inlined_call_operand.vmem [shape: bf16[64,384], index: 0, kind: input, shape index: {}]   ;;  %s1014_s3 = inlined_call_operand.vmem [shape: bf16[128,128], index: 3, kind: input, shape index: {}]   ;;  %s1015_s2 = inlined_call_operand.vmem [shape: f32[1,128], index: 2, kind: input, shape index: {}]   ;;  %s1016_s4 = inlined_call_operand.vmem [shape: f32[1,128], index: 4, kind: input, shape index: {}]   ;;  %s1017_s5 = inlined_call_operand.vmem [shape: f32[64,128], index: 5, kind: output, shape index: {}]  }
   0x1   :  { %v772_v0 = vld [vmem:[%s1012_s1 + $0x40] sm:$0xff]   ;;  %v774_v2 = vld [vmem:[%s1012_s1 + $0x48] sm:$0xff]   ;;  %v777_v5 = vld [vmem:[%s1012_s1 + $0x50] sm:$0xff]  }
   0x2   :  { %v773_v1 = vld [vmem:[%s1012_s1] sm:$0xff]   ;;  %644 = vmatprep.subr.bf16.mxu0 %v772_v0  ;;  %v776_v4 = vld [vmem:[%s1012_s1 + $0x8] sm:$0xff]   ;;  %v779_v7 = vld [vmem:[%s1012_s1 + $0x10] sm:$0xff]  }
   0x3   :  { %645 = vmatpush3.bf16.msra.mxu0 %v773_v1  ;;  %v775_v3 = vld [vmem:[%s1012_s1 + $0x80] sm:$0xff]   ;;  %v778_v6 = vld [vmem:[%s1012_s1 + $0x88] sm:$0xff]   ;;  %v780_v8 = vld [vmem:[%s1012_s1 + $0x58] sm:$0xff]  }
   0x4   :  { %646 = vmatprep.subr.bf16.mxu0 %v774_v2  ;;  %708 = vmatprep.subr.bf16.mxu1 %v775_v3  ;;  %v781_v9 = vld [vmem:[%s1012_s1 + $0x90] sm:$0xff]   ;;  %v782_v10 = vld [vmem:[%s1012_s1 + $0x18] sm:$0xff]   ;;  %v783_v11 = vld [vmem:[%s1012_s1 + $0x60] sm:$0xff]  }
   0x5   :  { %709 = vmatpush3.bf16.msra.mxu1 %v775_v3  ;;  %v784_v12 = vld [vmem:[%s1012_s1 + $0x98] sm:$0xff]   ;;  %v785_v13 = vld [vmem:[%s1012_s1 + $0x20] sm:$0xff]   ;;  %v786_v15 = vld [vmem:[%s1012_s1 + $0x68] sm:$0xff]  }
   0x6   :  { %710 = vmatprep.subr.bf16.mxu1 %v778_v6  ;;  %v787_v14 = vld [vmem:[%s1012_s1 + $0xa0] sm:$0xff]   ;;  %v788_v16 = vld [vmem:[%s1012_s1 + $0x28] sm:$0xff]   ;;  %v789_v18 = vld [vmem:[%s1012_s1 + $0x70] sm:$0xff]  }
   0x7   :  { %647 = vmatpush3.bf16.msra.mxu0 %v776_v4  ;;  %v790_v17 = vld [vmem:[%s1012_s1 + $0xa8] sm:$0xff]   ;;  %v791_v19 = vld [vmem:[%s1012_s1 + $0x30] sm:$0xff]   ;;  %v792_v20 = vld [vmem:[%s1012_s1 + $0x78] sm:$0xff]  }
   0x8   :  { %648 = vmatprep.subr.bf16.mxu0 %v777_v5  ;;  %v793_v21 = vld [vmem:[%s1012_s1 + $0xb0] sm:$0xff]   ;;  %v794_v23 = vld [vmem:[%s1012_s1 + $0x38] sm:$0xff]   ;;  %v795_v26 = vld [vmem:[%s1013_s0] ss:$12 sps:$4 sm:$0xff]  }
   0x9   :  { %711 = vmatpush3.bf16.msra.mxu1 %v778_v6  ;;  %v797_v22 = vld [vmem:[%s1013_s0 + $0x4] ss:$12 sps:$4 sm:$0xff]   ;;  %v799_v24 = vld [vmem:[%s1013_s0 + $0x8] ss:$12 sps:$4 sm:$0xff]   ;;  %v798_v25 = vld [vmem:[%s1012_s1 + $0xb8] sm:$0xff]  }
   0xa   :  { %712 = vmatprep.subr.bf16.mxu1 %v781_v9  ;;  %332 = vmatprep.mubr.bf16.mxu0 %v797_v22  ;;  %v801_v27 = vld [vmem:[%s1013_s0 + $0x1c] ss:$12 sps:$4 sm:$0xff]   ;;  %v800_v28 = vld [vmem:[%s1013_s0 + $0x20] ss:$12 sps:$4 sm:$0xff]   ;;  %v807_v29 = vld [vmem:[%s1013_s0 + $0x38] ss:$12 sps:$4 sm:$0xff]  }
   0xb   :  { %649 = vmatpush3.bf16.msra.mxu0 %v779_v7  ;;  %724 = vmatprep.mubr.bf16.mxu1 %v799_v24  ;;  %v812_v30 = vld [vmem:[%s1014_s3] sm:$0xff]   ;;  %v813_v31 = vld [vmem:[%s1014_s3 + $0x8] sm:$0xff]   ;;  %v814_v33 = vld [vmem:[%s1014_s3 + $0x10] sm:$0xff]  }
   0xc   :  { %650 = vmatprep.subr.bf16.mxu0 %v780_v8  ;;  %v803_v32 = vld [vmem:[%s1013_s0 + $0x18] ss:$12 sps:$4 sm:$0xff]   ;;  %v804_v34 = vld [vmem:[%s1013_s0 + $0x34] ss:$12 sps:$4 sm:$0xff]   ;;  %v808_v35 = vld [vmem:[%s1013_s0 + $0x50] ss:$12 sps:$4 sm:$0xff]  }
   0xd   :  { %713 = vmatpush3.bf16.msra.mxu1 %v781_v9  ;;  %v806_v36 = vld [vmem:[%s1013_s0 + $0x30] ss:$12 sps:$4 sm:$0xff]   ;;  %v809_v37 = vld [vmem:[%s1013_s0 + $0x4c] ss:$12 sps:$4 sm:$0xff]   ;;  %v811_v38 = vld [vmem:[%s1013_s0 + $0x48] ss:$12 sps:$4 sm:$0xff]  }
   0xe   :  { %714 = vmatprep.subr.bf16.mxu1 %v784_v12  ;;  %v815_v39 = vld [vmem:[%s1014_s3 + $0x18] sm:$0xff]   ;;  %v816_v40 = vld [vmem:[%s1014_s3 + $0x20] sm:$0xff]   ;;  %v817_v41 = vld [vmem:[%s1014_s3 + $0x28] sm:$0xff]  }
   0xf   :  { %651 = vmatpush3.bf16.msra.mxu0 %v782_v10  ;;  %v818_v42 = vld [vmem:[%s1014_s3 + $0x30] sm:$0xff]   ;;  %v819_v43 = vld [vmem:[%s1014_s3 + $0x38] sm:$0xff]   ;;  %v598_v46 = vld [vmem:[%s1015_s2] ss:$0 sm:$0xff] }
  0x10   :  { %652 = vmatprep.subr.bf16.mxu0 %v783_v11 }
  0x11   :  { %715 = vmatpush3.bf16.msra.mxu1 %v784_v12 }
  0x12   :  { %716 = vmatprep.subr.bf16.mxu1 %v787_v14 }
  0x13   :  { %653 = vmatpush3.bf16.msra.mxu0 %v785_v13 }
  0x14   :  { %654 = vmatprep.subr.bf16.mxu0 %v786_v15 }
  0x15   :  { %717 = vmatpush3.bf16.msra.mxu1 %v787_v14 }
  0x16   :  { %718 = vmatprep.subr.bf16.mxu1 %v790_v17 }
  0x17   :  { %655 = vmatpush3.bf16.msra.mxu0 %v788_v16 }
  0x18   :  { %656 = vmatprep.subr.bf16.mxu0 %v789_v18 }
  0x19   :  { %719 = vmatpush3.bf16.msra.mxu1 %v790_v17 }
  0x1a   :  { %720 = vmatprep.subr.bf16.mxu1 %v793_v21 }
  0x1b   :  { %657 = vmatpush3.bf16.msra.mxu0 %v791_v19 }
  0x1c   :  { %658 = vmatprep.subr.bf16.mxu0 %v792_v20 }
  0x1d   :  { %721 = vmatpush3.bf16.msra.mxu1 %v793_v21 }
  0x1e   :  { %722 = vmatprep.subr.bf16.mxu1 %v798_v25 }
  0x1f   :  { %659 = vmatpush3.bf16.msra.mxu0 %v794_v23 }
  0x20   :  { %732 = vmatprep.subr.bf16.mxu0 %v812_v30 }
  0x21   :  { %723 = vmatpush3.bf16.msra.mxu1 %v798_v25 }
  0x22   :  { %333 = vmatmul.mubr.bf16.vlgmr.msra.gmra.mrb[0].mxu0 %v795_v26  ;;  %756 = vmatprep.subr.bf16.mxu1 %v812_v30 }
  0x23   :  { %340 = vmatprep.mubr.bf16.mxu0 %v801_v27  ;;  %733 = vmatpush3.bf16.msra.mxu0 %v812_v30 }
  0x24   :  { %725 = vmatmul.mubr.bf16.vlgmr.msra.gmra.mrb[0].mxu1 %v800_v28  ;;  %734 = vmatprep.subr.bf16.mxu0 %v813_v31 }
  0x25   :  { %728 = vmatprep.mubr.bf16.mxu1 %v807_v29  ;;  %764 = vmatpush3.bf16.msra.mxu1 %v812_v30 }
  0x26   :  { %757 = vmatprep.subr.bf16.mxu1 %v813_v31 }
  0x27   :  { %735 = vmatpush3.bf16.msra.mxu0 %v813_v31 }
  0x28   :  { %736 = vmatprep.subr.bf16.mxu0 %v814_v33 }
  0x29   :  { %765 = vmatpush3.bf16.msra.mxu1 %v813_v31 }
  0x2a   :  { %341 = vmatmul.mubr.bf16.gmra.mrb[4].mxu0 %v803_v32  ;;  %758 = vmatprep.subr.bf16.mxu1 %v814_v33 }
  0x2b   :  { %348 = vmatprep.mubr.bf16.mxu0 %v804_v34  ;;  %737 = vmatpush3.bf16.msra.mxu0 %v814_v33 }
  0x2c   :  { %729 = vmatmul.mubr.bf16.gmra.mrb[4].mxu1 %v808_v35  ;;  %738 = vmatprep.subr.bf16.mxu0 %v815_v39 }
  0x2d   :  { %766 = vmatpush3.bf16.msra.mxu1 %v814_v33 }
  0x2e   :  { %759 = vmatprep.subr.bf16.mxu1 %v815_v39 }
  0x2f   :  { %739 = vmatpush3.bf16.msra.mxu0 %v815_v39 }
  0x30   :  { %740 = vmatprep.subr.bf16.mxu0 %v816_v40 }
  0x31   :  { %767 = vmatpush3.bf16.msra.mxu1 %v815_v39 }
  0x32   :  { %349 = vmatmul.mubr.bf16.gmra.mrb[8].mxu0 %v806_v36  ;;  %760 = vmatprep.subr.bf16.mxu1 %v816_v40 }
  0x33   :  { %356 = vmatprep.mubr.bf16.mxu0 %v809_v37  ;;  %741 = vmatpush3.bf16.msra.mxu0 %v816_v40 }
  0x34   :  { %742 = vmatprep.subr.bf16.mxu0 %v817_v41 }
  0x35   :  { %768 = vmatpush3.bf16.msra.mxu1 %v816_v40 }
  0x36   :  { %761 = vmatprep.subr.bf16.mxu1 %v817_v41 }
  0x37   :  { %743 = vmatpush3.bf16.msra.mxu0 %v817_v41 }
  0x38   :  { %744 = vmatprep.subr.bf16.mxu0 %v818_v42 }
  0x39   :  { %769 = vmatpush3.bf16.msra.mxu1 %v817_v41  ;;  %v635_v41 = vld [vmem:[%s1016_s4] ss:$0 sm:$0xff] }
  0x3a   :  { %357 = vmatmul.mubr.bf16.gmra.mrb[12].mxu0 %v811_v38  ;;  %762 = vmatprep.subr.bf16.mxu1 %v818_v42 }
  0x3b   :  { %745 = vmatpush3.bf16.msra.mxu0 %v818_v42 }
  0x3c   :  { %746 = vmatprep.subr.bf16.mxu0 %v819_v43 }
  0x3d   :  { %770 = vmatpush3.bf16.msra.mxu1 %v818_v42 }
  0x3e   :  { %763 = vmatprep.subr.bf16.mxu1 %v819_v43 }
  0x3f   :  { %747 = vmatpush3.bf16.msra.mxu0 %v819_v43 }
  0x41   :  { %771 = vmatpush3.bf16.msra.mxu1 %v819_v43 }
  0xf5   :  { %v660_v44 = vpop.f32.mrb[0].mxu0 }
  0xf6   :  { %v661_v45 = vpop.f32.mrb[1].mxu0 }
  0xf7   :  { %v662_v47 = vadd.f32 %v661_v45, %v660_v44  ;;  %v663_v48 = vpop.f32.mrb[2].mxu0  ;;  %v726_v50 = vpop.f32.mrb[0].mxu1 }
  0xf8   :  { %v664_v49 = vpop.f32.mrb[3].mxu0  ;;  %v399_v53 = vpop.f32.mrb[1].mxu1 }
  0xf9   :  { %v665_v51 = vadd.f32 %v664_v49, %v663_v48  ;;  %v335_v52 = vadd.f32 %v662_v47, %v598_v46  ;;  %v727_v54 = vpop.f32.mrb[2].mxu1 }
  0xfa   :  { %v402_v57 = vpop.f32.mrb[3].mxu1 }
  0xfb   :  { %v400_v55 = vadd.f32 %v399_v53, %v335_v52  ;;  %v338_v56 = vadd.f32 %v665_v51, %v598_v46 }
  0xfd   :  { %v403_v58 = vadd.f32 %v402_v57, %v338_v56  ;;  %v666_v59 = vpop.f32.mrb[4].mxu0  ;;  %v430_v61 = vmax.f32 %v400_v55, 0.0 }
  0xfe   :  { %v667_v60 = vpop.f32.mrb[5].mxu0 }
  0xff   :  { %v431_v62 = vmax.f32 %v403_v58, 0.0  ;;  %v668_v63 = vadd.f32 %v667_v60, %v666_v59  ;;  %v669_v0 = vpop.f32.mrb[6].mxu0  ;;  %v730_v2 = vpop.f32.mrb[4].mxu1 }
 0x100   :  { %v670_v1 = vpop.f32.mrb[7].mxu0  ;;  %v415_v6 = vpop.f32.mrb[5].mxu1 }
 0x101   :  { %v438_v3 = vpack.c.bf16 %v431_v62, %v430_v61  ;;  %v343_v4 = vadd.f32 %v668_v63, %v598_v46  ;;  %v671_v5 = vadd.f32 %v670_v1, %v669_v0  ;;  %v731_v7 = vpop.f32.mrb[6].mxu1 }
 0x102   :  { %v418_v10 = vpop.f32.mrb[7].mxu1 }
 0x103   :  { %v408_v8 = vadd.f32 %v726_v50, %v343_v4  ;;  %v346_v9 = vadd.f32 %v671_v5, %v598_v46  ;;  %748 = vmatprep.mubr.bf16.mxu0 %v438_v3 }
 0x105   :  { %v411_v11 = vadd.f32 %v727_v54, %v346_v9  ;;  %v672_v12 = vpop.f32.mrb[8].mxu0  ;;  %v432_v14 = vmax.f32 %v408_v8, 0.0 }
 0x106   :  { %v673_v13 = vpop.f32.mrb[9].mxu0 }
 0x107   :  { %v433_v15 = vmax.f32 %v411_v11, 0.0  ;;  %v674_v16 = vadd.f32 %v673_v13, %v672_v12  ;;  %v675_v17 = vpop.f32.mrb[10].mxu0 }
 0x108   :  { %v676_v18 = vpop.f32.mrb[11].mxu0 }
 0x109   :  { %v439_v19 = vpack.c.bf16 %v433_v15, %v432_v14  ;;  %v677_v20 = vadd.f32 %v676_v18, %v675_v17  ;;  %v351_v21 = vadd.f32 %v674_v16, %v598_v46 }
 0x10b   :  { %v416_v22 = vadd.f32 %v415_v6, %v351_v21  ;;  %749 = vmatmul.mubr.bf16.vlgmr.msra.gmra.mrb[16].mxu0 %v439_v19  ;;  %v354_v23 = vadd.f32 %v677_v20, %v598_v46 }
 0x10d   :  { %v419_v24 = vadd.f32 %v418_v10, %v354_v23  ;;  %v678_v25 = vpop.f32.mrb[12].mxu0  ;;  %v434_v27 = vmax.f32 %v416_v22, 0.0 }
 0x10e   :  { %v679_v26 = vpop.f32.mrb[13].mxu0 }
 0x10f   :  { %v435_v28 = vmax.f32 %v419_v24, 0.0  ;;  %v680_v29 = vadd.f32 %v679_v26, %v678_v25  ;;  %v681_v30 = vpop.f32.mrb[14].mxu0 }
 0x110   :  { %v682_v31 = vpop.f32.mrb[15].mxu0 }
 0x111   :  { %v440_v32 = vpack.c.bf16 %v435_v28, %v434_v27  ;;  %v359_v33 = vadd.f32 %v680_v29, %v598_v46  ;;  %v683_v34 = vadd.f32 %v682_v31, %v681_v30 }
 0x113   :  { %v424_v35 = vadd.f32 %v730_v2, %v359_v33  ;;  %v362_v36 = vadd.f32 %v683_v34, %v598_v46  ;;  %752 = vmatprep.mubr.bf16.mxu1 %v440_v32 }
 0x115   :  { %v427_v37 = vadd.f32 %v731_v7, %v362_v36  ;;  %v436_v38 = vmax.f32 %v424_v35, 0.0 }
 0x117   :  { %v437_v39 = vmax.f32 %v427_v37, 0.0 }
 0x119   :  { %v441_v40 = vpack.c.bf16 %v437_v39, %v436_v38 }
 0x11b   :  { %753 = vmatmul.mubr.bf16.vlgmr.msra.gmra.mrb[8].mxu1 %v441_v40 }
 0x1de   :  { %v750_v42 = vpop.f32.mrb[16].mxu0 }
 0x1df   :  { %v556_v43 = vadd.f32 %v750_v42, %v635_v41  ;;  %v547_v44 = vpop.f32.mrb[17].mxu0 }
 0x1e0   :  { %v548_v45 = vadd.f32 %v635_v41, %v547_v44  ;;  %v751_v47 = vpop.f32.mrb[18].mxu0 }
 0x1e1   :  { %v580_v48 = vmax.f32 %v556_v43, 0.0  ;;  %v559_v49 = vadd.f32 %v751_v47, %v635_v41  ;;  %v550_v50 = vpop.f32.mrb[19].mxu0 }
 0x1e2   :  { %v578_v51 = vmax.f32 %v548_v45, 0.0  ;;  %v551_v46 = vadd.f32 %v635_v41, %v550_v50 }
 0x1e3   :  { %588 = vst [vmem:[%s1017_s5 + $0x10] sm:$0xff] %v580_v48  ;;  %v581_v52 = vmax.f32 %v559_v49, 0.0 }
 0x1e4   :  { %586 = vst [vmem:[%s1017_s5] sm:$0xff] %v578_v51  ;;  %v579_v53 = vmax.f32 %v551_v46, 0.0 }
 0x1e5   :  { %589 = vst [vmem:[%s1017_s5 + $0x18] sm:$0xff] %v581_v52 }
 0x1e6   :  { %587 = vst [vmem:[%s1017_s5 + $0x8] sm:$0xff] %v579_v53 }
 0x1ee   :  { %v754_v54 = vpop.f32.mrb[8].mxu1 }
 0x1ef   :  { %v572_v55 = vadd.f32 %v754_v54, %v635_v41  ;;  %v563_v56 = vpop.f32.mrb[9].mxu1 }
 0x1f0   :  { %v564_v57 = vadd.f32 %v635_v41, %v563_v56  ;;  %v755_v58 = vpop.f32.mrb[10].mxu1 }
 0x1f1   :  { %v584_v59 = vmax.f32 %v572_v55, 0.0  ;;  %v575_v60 = vadd.f32 %v755_v58, %v635_v41  ;;  %v566_v61 = vpop.f32.mrb[11].mxu1 }
 0x1f2   :  { %v582_v62 = vmax.f32 %v564_v57, 0.0  ;;  %v567_v63 = vadd.f32 %v635_v41, %v566_v61 }
 0x1f3   :  { %592 = vst [vmem:[%s1017_s5 + $0x30] sm:$0xff] %v584_v59  ;;  %v585_v0 = vmax.f32 %v575_v60, 0.0 }
 0x1f4   :  { %590 = vst [vmem:[%s1017_s5 + $0x20] sm:$0xff] %v582_v62  ;;  %v583_v1 = vmax.f32 %v567_v63, 0.0 }
 0x1f5   :  { %593 = vst [vmem:[%s1017_s5 + $0x38] sm:$0xff] %v585_v0 }
 0x1f6   :  { %591 = vst [vmem:[%s1017_s5 + $0x28] sm:$0xff] %v583_v1 }

// kernel: contact_graspnet_forward.13
= control target key start
LH: loop header
LB: loop body
LE: loop exit
PB: predicated region body
PF: predicated region fallthrough
CT: control target
= control target key end

     0   :  { %v707_v0 = vmov 0   ;;  %vm146_vm0 = vcmask 64512   ;;  %vm159_vm1 = vcmask 1043456   ;;  %vm279_vm2 = vcmask 523264   ;;  %s937_s1 = inlined_call_operand.vmem [shape: bf16[136,64], index: 1, kind: input, shape index: {}]   ;;  %s938_s0 = inlined_call_operand.vmem [shape: bf16[64,136], index: 0, kind: input, shape index: {}]   ;;  %s939_s3 = inlined_call_operand.vmem [shape: bf16[64,128], index: 3, kind: input, shape index: {}]   ;;  %s940_s5 = inlined_call_operand.vmem [shape: bf16[128,256], index: 5, kind: input, shape index: {}]   ;;  %s941_s2 = inlined_call_operand.vmem [shape: f32[1,64], index: 2, kind: input, shape index: {}]   ;;  %s942_s4 = inlined_call_operand.vmem [shape: f32[1,128], index: 4, kind: input, shape index: {}]   ;;  %s943_s6 = inlined_call_operand.vmem [shape: f32[1,256], index: 6, kind: input, shape index: {}]   ;;  %s944_s7 = inlined_call_operand.vmem [shape: f32[64,256], index: 7, kind: output, shape index: {}]  }
   0x1   :  { %163 = vmatprep.subr.bf16.mxu0 %v707_v0  ;;  %v658_v1 = vld [vmem:[%s937_s1] sm:$0xff]   ;;  %v659_v2 = vld [vmem:[%s937_s1 + $0x8] sm:$0xff]   ;;  %v660_v3 = vld [vmem:[%s937_s1 + $0x10] sm:$0xff]  }
   0x2   :  { %164 = vmatpush1.bf16.msra.mxu0 %v658_v1  ;;  %v669_v4 = vld [vmem:[%s938_s0 + $0x4] ss:$8 sps:$4 sm:$0xff]   ;;  %v661_v5 = vld [vmem:[%s937_s1 + $0x18] sm:$0xff]   ;;  %v664_v8 = vld [vmem:[%s937_s1 + $0x30] sm:$0xff]  }
   0x3   :  { %165 = vmatprep.subr.bf16.mxu0 %v707_v0  ;;  %604 = vmatprep.mubr.msk.bf16.mxu0 %vm146_vm0, %v669_v4  ;;  %v662_v6 = vld [vmem:[%s937_s1 + $0x20] sm:$0xff]   ;;  %v663_v7 = vld [vmem:[%s937_s1 + $0x28] sm:$0xff]   ;;  %v665_v9 = vld [vmem:[%s937_s1 + $0x38] sm:$0xff]  }
   0x4   :  { %v666_v10 = vld [vmem:[%s937_s1 + $0x40] ss:$0 sps:$4 sm:$0xff]   ;;  %v670_v13 = vld [vmem:[%s938_s0 + $0x14] ss:$8 sps:$4 sm:$0xff]   ;;  %v672_v14 = vld [vmem:[%s938_s0 + $0x10] ss:$8 sps:$4 sm:$0xff]  }
   0x5   :  { %v161_v11 = vsel %vm159_vm1, %v666_v10, 0  ;;  %v667_v12 = vld [vmem:[%s938_s0] ss:$8 sps:$4 sm:$0xff]   ;;  %v673_v15 = vld [vmem:[%s938_s0 + $0x24] ss:$8 sps:$4 sm:$0xff]   ;;  %v681_v21 = vld [vmem:[%s939_s3 + $0x10] sm:$0xff]  }
   0x6   :  { %166 = vmatpush1.bf16.msra.mxu0 %v659_v2  ;;  %v675_v16 = vld [vmem:[%s938_s0 + $0x20] ss:$8 sps:$4 sm:$0xff]   ;;  %v676_v17 = vld [vmem:[%s938_s0 + $0x34] ss:$8 sps:$4 sm:$0xff]   ;;  %v678_v18 = vld [vmem:[%s938_s0 + $0x30] ss:$8 sps:$4 sm:$0xff]  }
   0x7   :  { %167 = vmatprep.subr.bf16.mxu0 %v707_v0  ;;  %v679_v19 = vld [vmem:[%s939_s3] sm:$0xff]   ;;  %v680_v20 = vld [vmem:[%s939_s3 + $0x8] sm:$0xff]   ;;  %v682_v22 = vld [vmem:[%s939_s3 + $0x18] sm:$0xff]  }
   0x8   :  { %641 = vmatprep.subr.bf16.mxu1 %v679_v19  ;;  %v685_v23 = vld [vmem:[%s940_s5 + $0x4] ss:$8 sps:$4 sm:$0xff]   ;;  %v586_v24 = vld [vmem:[%s941_s2] ss:$0 sm:$0xff]  ;;  %v688_v44 = vld [vmem:[%s940_s5 + $0x14] ss:$8 sps:$4 sm:$0xff]  }
   0x9   :  { %642 = vmatpush3.bf16.msra.mxu1 %v679_v19  ;;  %v683_v42 = vld [vmem:[%s940_s5] ss:$8 sps:$4 sm:$0xff]   ;;  %v686_v49 = vld [vmem:[%s940_s5 + $0x10] ss:$8 sps:$4 sm:$0xff]   ;;  %v691_v52 = vld [vmem:[%s940_s5 + $0x24] ss:$8 sps:$4 sm:$0xff]  }
   0xa   :  { %168 = vmatpush1.bf16.msra.mxu0 %v660_v3  ;;  %643 = vmatprep.subr.bf16.mxu1 %v680_v20  ;;  %v689_v55 = vld [vmem:[%s940_s5 + $0x20] ss:$8 sps:$4 sm:$0xff]   ;;  %v694_v57 = vld [vmem:[%s940_s5 + $0x34] ss:$8 sps:$4 sm:$0xff]   ;;  %v692_v62 = vld [vmem:[%s940_s5 + $0x30] ss:$8 sps:$4 sm:$0xff]  }
   0xb   :  { %169 = vmatprep.subr.bf16.mxu0 %v707_v0  ;;  %v697_v2 = vld [vmem:[%s940_s5 + $0x44] ss:$8 sps:$4 sm:$0xff]   ;;  %v701_v10 = vld [vmem:[%s940_s5 + $0x60] ss:$8 sps:$4 sm:$0xff]  }
   0xd   :  { %644 = vmatpush3.bf16.msra.mxu1 %v680_v20 }
   0xe   :  { %170 = vmatpush1.bf16.msra.mxu0 %v661_v5  ;;  %645 = vmatprep.subr.bf16.mxu1 %v681_v21  ;;  %v695_v5 = vld [vmem:[%s940_s5 + $0x40] ss:$8 sps:$4 sm:$0xff]  }
   0xf   :  { %171 = vmatprep.subr.bf16.mxu0 %v707_v0 }
  0x11   :  { %646 = vmatpush3.bf16.msra.mxu1 %v681_v21 }
  0x12   :  { %172 = vmatpush1.bf16.msra.mxu0 %v662_v6  ;;  %647 = vmatprep.subr.bf16.mxu1 %v682_v22 }
  0x13   :  { %173 = vmatprep.subr.bf16.mxu0 %v707_v0 }
  0x15   :  { %648 = vmatpush3.bf16.msra.mxu1 %v682_v22 }
  0x16   :  { %174 = vmatpush1.bf16.msra.mxu0 %v663_v7  ;;  %477 = vmatprep.subr.bf16.mxu1 %v685_v23  ;;  %v700_v7 = vld [vmem:[%s940_s5 + $0x54] ss:$8 sps:$4 sm:$0xff]  }
  0x17   :  { %175 = vmatprep.subr.bf16.mxu0 %v707_v0 }
  0x1a   :  { %176 = vmatpush1.bf16.msra.mxu0 %v664_v8  ;;  %v698_v8 = vld [vmem:[%s940_s5 + $0x50] ss:$8 sps:$4 sm:$0xff]  }
  0x1b   :  { %177 = vmatprep.subr.bf16.mxu0 %v707_v0 }
  0x1e   :  { %178 = vmatpush1.bf16.msra.mxu0 %v665_v9  ;;  %v703_v9 = vld [vmem:[%s940_s5 + $0x64] ss:$8 sps:$4 sm:$0xff]  }
  0x1f   :  { %179 = vmatprep.subr.bf16.mxu0 %v707_v0 }
  0x22   :  { %180 = vmatpush1.bf16.msra.mxu0 %v161_v11  ;;  %v706_v11 = vld [vmem:[%s940_s5 + $0x74] ss:$8 sps:$4 sm:$0xff]  }
  0x25   :  { %196 = vmatmul.mubr.bf16.vlgmr.msra.gmra.mrb[0].mxu0 %v667_v12  ;;  %v704_v12 = vld [vmem:[%s940_s5 + $0x70] ss:$8 sps:$4 sm:$0xff]  }
  0x26   :  { %605 = vmatprep.mubr.msk.bf16.mxu0 %vm146_vm0, %v670_v13  ;;  %v608_v13 = vld [vmem:[%s942_s4] ss:$0 sm:$0xff] }
  0x2d   :  { %204 = vmatmul.mubr.bf16.gmra.mrb[4].mxu0 %v672_v14 }
  0x2e   :  { %606 = vmatprep.mubr.msk.bf16.mxu0 %vm146_vm0, %v673_v15 }
  0x35   :  { %212 = vmatmul.mubr.bf16.gmra.mrb[8].mxu0 %v675_v16 }
  0x36   :  { %607 = vmatprep.mubr.msk.bf16.mxu0 %vm146_vm0, %v676_v17 }
  0x3d   :  { %220 = vmatmul.mubr.bf16.gmra.mrb[12].mxu0 %v678_v18 }
  0xf8   :  { %v197_v25 = vpop.f32.mrb[0].mxu0 }
  0xf9   :  { %v198_v26 = vadd.f32 %v586_v24, %v197_v25  ;;  %v199_v27 = vpop.f32.mrb[1].mxu0 }
  0xfa   :  { %v200_v28 = vpop.f32.mrb[2].mxu0 }
  0xfb   :  { %v201_v29 = vadd.f32 %v586_v24, %v200_v28  ;;  %v202_v30 = vpop.f32.mrb[3].mxu0  ;;  %v228_v31 = vmax.f32 %v198_v26, 0.0 }
  0xfd   :  { %v229_v32 = vmax.f32 %v201_v29, 0.0 }
  0xff   :  { %v236_v33 = vpack.c.bf16 %v229_v32, %v228_v31 }
 0x100   :  { %v205_v34 = vpop.f32.mrb[4].mxu0 }
 0x101   :  { %v206_v35 = vadd.f32 %v586_v24, %v205_v34  ;;  %v207_v36 = vpop.f32.mrb[5].mxu0  ;;  %649 = vmatprep.mubr.msk.bf16.mxu1 %vm279_vm2, %v236_v33 }
 0x102   :  { %v208_v37 = vpop.f32.mrb[6].mxu0 }
 0x103   :  { %v209_v38 = vadd.f32 %v586_v24, %v208_v37  ;;  %v210_v39 = vpop.f32.mrb[7].mxu0  ;;  %v230_v40 = vmax.f32 %v206_v35, 0.0 }
 0x105   :  { %v231_v41 = vmax.f32 %v209_v38, 0.0 }
 0x107   :  { %v237_v43 = vpack.c.bf16 %v231_v41, %v230_v40 }
 0x108   :  { %v213_v45 = vpop.f32.mrb[8].mxu0 }
 0x109   :  { %v214_v46 = vadd.f32 %v586_v24, %v213_v45  ;;  %v215_v47 = vpop.f32.mrb[9].mxu0  ;;  %650 = vmatmul.mubr.msk.bf16.vlgmr.msra.gmra.mrb[0].mxu1 %vm279_vm2, %v237_v43  ;;  %v385_v45 = vld [vmem:[%s943_s6] sm:$0x3] }
 0x10a   :  { %v216_v48 = vpop.f32.mrb[10].mxu0  ;;  %478 = vmatpush1.bf16.msra.mxu1 %v683_v42  ;;  %v387_v42 = vlaneseq }
 0x10b   :  { %v217_v50 = vadd.f32 %v586_v24, %v216_v48  ;;  %v218_v51 = vpop.f32.mrb[11].mxu0  ;;  %479 = vmatprep.subr.bf16.mxu1 %v688_v44  ;;  %v232_v53 = vmax.f32 %v214_v46, 0.0 }
 0x10c   :  { %v388_v43 = vshrl.u32 %v387_v42, 7 }
 0x10d   :  { %v233_v54 = vmax.f32 %v217_v50, 0.0 }
 0x10e   :  { %480 = vmatpush1.bf16.msra.mxu1 %v686_v49  ;;  %v389_v44 = vsub.s32 0, %v388_v43  ;;  %v393_v46 = vsub.s32 1, %v388_v43 }
 0x10f   :  { %v238_v56 = vpack.c.bf16 %v233_v54, %v232_v53  ;;  %481 = vmatprep.subr.bf16.mxu1 %v691_v52 }
 0x110   :  { %v221_v58 = vpop.f32.mrb[12].mxu0  ;;  %v390_v47 = vrot.slane %v385_v45, %v389_v44  ;;  %v394_v48 = vrot.slane %v385_v45, %v393_v46 }
 0x111   :  { %v222_v59 = vadd.f32 %v586_v24, %v221_v58  ;;  %v223_v60 = vpop.f32.mrb[13].mxu0  ;;  %653 = vmatprep.mubr.msk.bf16.mxu1 %vm279_vm2, %v238_v56 }
 0x112   :  { %v224_v61 = vpop.f32.mrb[14].mxu0  ;;  %482 = vmatpush1.bf16.msra.mxu1 %v689_v55 }
 0x113   :  { %v225_v63 = vadd.f32 %v586_v24, %v224_v61  ;;  %v226_v1 = vpop.f32.mrb[15].mxu0  ;;  %483 = vmatprep.subr.bf16.mxu1 %v694_v57  ;;  %v234_v3 = vmax.f32 %v222_v59, 0.0 }
 0x115   :  { %v235_v4 = vmax.f32 %v225_v63, 0.0 }
 0x116   :  { %484 = vmatpush1.bf16.msra.mxu1 %v692_v62 }
 0x117   :  { %v239_v6 = vpack.c.bf16 %v235_v4, %v234_v3  ;;  %485 = vmatprep.subr.bf16.mxu1 %v697_v2 }
 0x119   :  { %654 = vmatmul.mubr.msk.bf16.gmra.mrb[4].mxu1 %vm279_vm2, %v239_v6 }
 0x11a   :  { %486 = vmatpush1.bf16.msra.mxu1 %v695_v5  ;;  %509 = vmatprep.mubr.bf16.mxu1 %v707_v0 }
 0x11b   :  { %487 = vmatprep.subr.bf16.mxu1 %v700_v7 }
 0x11e   :  { %488 = vmatpush1.bf16.msra.mxu1 %v698_v8 }
 0x11f   :  { %489 = vmatprep.subr.bf16.mxu1 %v703_v9 }
 0x122   :  { %490 = vmatpush1.bf16.msra.mxu1 %v701_v10 }
 0x123   :  { %491 = vmatprep.subr.bf16.mxu1 %v706_v11 }
 0x126   :  { %492 = vmatpush1.bf16.msra.mxu1 %v704_v12 }
 0x1dc   :  { %v651_v14 = vpop.f32.mrb[0].mxu1 }
 0x1dd   :  { %v335_v15 = vadd.f32 %v651_v14, %v608_v13  ;;  %v326_v16 = vpop.f32.mrb[1].mxu1 }
 0x1de   :  { %v327_v17 = vadd.f32 %v608_v13, %v326_v16  ;;  %v652_v18 = vpop.f32.mrb[2].mxu1 }
 0x1df   :  { %v338_v19 = vadd.f32 %v652_v18, %v608_v13  ;;  %v329_v20 = vpop.f32.mrb[3].mxu1  ;;  %v359_v22 = vmax.f32 %v335_v15, 0.0 }
 0x1e0   :  { %v330_v21 = vadd.f32 %v608_v13, %v329_v20  ;;  %v357_v24 = vmax.f32 %v327_v17, 0.0 }
 0x1e1   :  { %v360_v23 = vmax.f32 %v338_v19, 0.0 }
 0x1e2   :  { %v358_v25 = vmax.f32 %v330_v21, 0.0 }
 0x1e3   :  { %v366_v26 = vpack.c.bf16 %v360_v23, %v359_v22 }
 0x1e4   :  { %v365_v27 = vpack.c.bf16 %v358_v25, %v357_v24 }
 0x1e6   :  { %510 = vmatmul.mubr.bf16.vlgmr.msra.gmra.mrb[8].mxu1 %v365_v27 }
 0x1e7   :  { %519 = vmatprep.mubr.bf16.mxu1 %v707_v0 }
 0x1ec   :  { %v655_v28 = vpop.f32.mrb[4].mxu1 }
 0x1ed   :  { %v351_v29 = vadd.f32 %v655_v28, %v608_v13  ;;  %v342_v30 = vpop.f32.mrb[5].mxu1 }
 0x1ee   :  { %v343_v31 = vadd.f32 %v608_v13, %v342_v30  ;;  %v656_v32 = vpop.f32.mrb[6].mxu1  ;;  %520 = vmatmul.mubr.bf16.gmra.mrb[12].mxu1 %v366_v26 }
 0x1ef   :  { %v354_v33 = vadd.f32 %v656_v32, %v608_v13  ;;  %v345_v34 = vpop.f32.mrb[7].mxu1  ;;  %529 = vmatprep.mubr.bf16.mxu1 %v707_v0  ;;  %v363_v36 = vmax.f32 %v351_v29, 0.0 }
 0x1f0   :  { %v346_v35 = vadd.f32 %v608_v13, %v345_v34  ;;  %v361_v38 = vmax.f32 %v343_v31, 0.0 }
 0x1f1   :  { %v364_v37 = vmax.f32 %v354_v33, 0.0 }
 0x1f2   :  { %v362_v39 = vmax.f32 %v346_v35, 0.0 }
 0x1f3   :  { %v368_v40 = vpack.c.bf16 %v364_v37, %v363_v36 }
 0x1f4   :  { %v367_v41 = vpack.c.bf16 %v362_v39, %v361_v38 }
 0x1f6   :  { %530 = vmatmul.mubr.bf16.gmra.mrb[16].mxu1 %v367_v41 }
 0x1f7   :  { %539 = vmatprep.mubr.bf16.mxu1 %v707_v0 }
 0x1fe   :  { %540 = vmatmul.mubr.bf16.gmra.mrb[20].mxu1 %v368_v40 }
 0x2b9   :  { %v511_v49 = vpop.f32.mrb[8].mxu1 }
 0x2ba   :  { %v512_v50 = vadd.f32 %v511_v49, %v390_v47  ;;  %v513_v51 = vpop.f32.mrb[9].mxu1 }
 0x2bb   :  { %v514_v52 = vadd.f32 %v513_v51, %v394_v48  ;;  %v515_v53 = vpop.f32.mrb[10].mxu1 }
 0x2bc   :  { %v550_v54 = vmax.f32 %v512_v50, 0.0  ;;  %v516_v55 = vadd.f32 %v515_v53, %v390_v47  ;;  %v517_v56 = vpop.f32.mrb[11].mxu1 }
 0x2bd   :  { %v551_v0 = vmax.f32 %v514_v52, 0.0  ;;  %v518_v57 = vadd.f32 %v517_v56, %v394_v48 }
 0x2be   :  { %566 = vst [vmem:[%s944_s7] sm:$0xff] %v550_v54  ;;  %v552_v58 = vmax.f32 %v516_v55, 0.0 }
 0x2bf   :  { %567 = vst [vmem:[%s944_s7 + $0x8] sm:$0xff] %v551_v0  ;;  %v553_v59 = vmax.f32 %v518_v57, 0.0 }
 0x2c0   :  { %568 = vst [vmem:[%s944_s7 + $0x10] sm:$0xff] %v552_v58 }
 0x2c1   :  { %569 = vst [vmem:[%s944_s7 + $0x18] sm:$0xff] %v553_v59  ;;  %v521_v60 = vpop.f32.mrb[12].mxu1 }
 0x2c2   :  { %v522_v61 = vadd.f32 %v521_v60, %v390_v47  ;;  %v523_v62 = vpop.f32.mrb[13].mxu1 }
 0x2c3   :  { %v524_v63 = vadd.f32 %v523_v62, %v394_v48  ;;  %v525_v1 = vpop.f32.mrb[14].mxu1 }
 0x2c4   :  { %v554_v2 = vmax.f32 %v522_v61, 0.0  ;;  %v526_v3 = vadd.f32 %v525_v1, %v390_v47  ;;  %v527_v4 = vpop.f32.mrb[15].mxu1 }
 0x2c5   :  { %v555_v5 = vmax.f32 %v524_v63, 0.0  ;;  %v528_v6 = vadd.f32 %v527_v4, %v394_v48 }
 0x2c6   :  { %570 = vst [vmem:[%s944_s7 + $0x20] sm:$0xff] %v554_v2  ;;  %v556_v7 = vmax.f32 %v526_v3, 0.0 }
 0x2c7   :  { %571 = vst [vmem:[%s944_s7 + $0x28] sm:$0xff] %v555_v5  ;;  %v557_v8 = vmax.f32 %v528_v6, 0.0 }
 0x2c8   :  { %572 = vst [vmem:[%s944_s7 + $0x30] sm:$0xff] %v556_v7 }
 0x2c9   :  { %573 = vst [vmem:[%s944_s7 + $0x38] sm:$0xff] %v557_v8  ;;  %v531_v9 = vpop.f32.mrb[16].mxu1 }
 0x2ca   :  { %v532_v10 = vadd.f32 %v531_v9, %v390_v47  ;;  %v533_v11 = vpop.f32.mrb[17].mxu1 }
 0x2cb   :  { %v534_v12 = vadd.f32 %v533_v11, %v394_v48  ;;  %v535_v13 = vpop.f32.mrb[18].mxu1 }
 0x2cc   :  { %v558_v14 = vmax.f32 %v532_v10, 0.0  ;;  %v536_v15 = vadd.f32 %v535_v13, %v390_v47  ;;  %v537_v16 = vpop.f32.mrb[19].mxu1 }
 0x2cd   :  { %v559_v17 = vmax.f32 %v534_v12, 0.0  ;;  %v538_v18 = vadd.f32 %v537_v16, %v394_v48 }
 0x2ce   :  { %574 = vst [vmem:[%s944_s7 + $0x40] sm:$0xff] %v558_v14  ;;  %v560_v19 = vmax.f32 %v536_v15, 0.0 }
 0x2cf   :  { %575 = vst [vmem:[%s944_s7 + $0x48] sm:$0xff] %v559_v17  ;;  %v561_v20 = vmax.f32 %v538_v18, 0.0 }
 0x2d0   :  { %576 = vst [vmem:[%s944_s7 + $0x50] sm:$0xff] %v560_v19 }
 0x2d1   :  { %577 = vst [vmem:[%s944_s7 + $0x58] sm:$0xff] %v561_v20  ;;  %v541_v21 = vpop.f32.mrb[20].mxu1 }
 0x2d2   :  { %v542_v22 = vadd.f32 %v541_v21, %v390_v47  ;;  %v543_v23 = vpop.f32.mrb[21].mxu1 }
 0x2d3   :  { %v544_v24 = vadd.f32 %v543_v23, %v394_v48  ;;  %v545_v25 = vpop.f32.mrb[22].mxu1 }
 0x2d4   :  { %v562_v26 = vmax.f32 %v542_v22, 0.0  ;;  %v546_v27 = vadd.f32 %v545_v25, %v390_v47  ;;  %v547_v28 = vpop.f32.mrb[23].mxu1 }
 0x2d5   :  { %v563_v29 = vmax.f32 %v544_v24, 0.0  ;;  %v548_v30 = vadd.f32 %v547_v28, %v394_v48 }
 0x2d6   :  { %578 = vst [vmem:[%s944_s7 + $0x60] sm:$0xff] %v562_v26  ;;  %v564_v31 = vmax.f32 %v546_v27, 0.0 }
 0x2d7   :  { %579 = vst [vmem:[%s944_s7 + $0x68] sm:$0xff] %v563_v29  ;;  %v565_v32 = vmax.f32 %v548_v30, 0.0 }
 0x2d8   :  { %580 = vst [vmem:[%s944_s7 + $0x70] sm:$0xff] %v564_v31 }
 0x2d9   :  { %581 = vst [vmem:[%s944_s7 + $0x78] sm:$0xff] %v565_v32 }

// kernel: contact_graspnet_forward.15
= control target key start
LH: loop header
LB: loop body
LE: loop exit
PB: predicated region body
PF: predicated region fallthrough
CT: control target
= control target key end

     0   :  { %v701_v0 = vmov 0   ;;  %vm212_vm0 = vcmask 523264   ;;  %s936_s1 = inlined_call_operand.vmem [shape: bf16[192,128], index: 1, kind: input, shape index: {}]   ;;  %s937_s0 = inlined_call_operand.vmem [shape: bf16[128,192], index: 0, kind: input, shape index: {}]   ;;  %s938_s3 = inlined_call_operand.vmem [shape: bf16[128,64], index: 3, kind: input, shape index: {}]   ;;  %s939_s2 = inlined_call_operand.vmem [shape: f32[1,128], index: 2, kind: input, shape index: {}]   ;;  %s940_s4 = inlined_call_operand.vmem [shape: f32[1,64], index: 4, kind: input, shape index: {}]   ;;  %s941_s5 = inlined_call_operand.vmem [shape: f32[128,64], index: 5, kind: output, shape index: {}]  }
   0x1   :  { %237 = vmatprep.subr.bf16.mxu0 %v701_v0  ;;  %v657_v1 = vld [vmem:[%s936_s1] sm:$0xff]   ;;  %v658_v2 = vld [vmem:[%s936_s1 + $0x8] sm:$0xff]   ;;  %v659_v3 = vld [vmem:[%s936_s1 + $0x10] sm:$0xff]  }
   0x2   :  { %238 = vmatpush1.bf16.msra.mxu0 %v657_v1  ;;  %v660_v4 = vld [vmem:[%s936_s1 + $0x18] sm:$0xff]   ;;  %v671_v5 = vld [vmem:[%s937_s0 + $0x4] ss:$8 sps:$4 sm:$0xff]   ;;  %v663_v8 = vld [vmem:[%s936_s1 + $0x30] sm:$0xff]  }
   0x3   :  { %239 = vmatprep.subr.bf16.mxu0 %v701_v0  ;;  %v661_v6 = vld [vmem:[%s936_s1 + $0x20] sm:$0xff]   ;;  %591 = vmatprep.mubr.msk.bf16.mxu0 %vm212_vm0, %v671_v5  ;;  %v662_v7 = vld [vmem:[%s936_s1 + $0x28] sm:$0xff]   ;;  %v664_v11 = vld [vmem:[%s936_s1 + $0x38] sm:$0xff]  }
   0x4   :  { %v693_v9 = vld [vmem:[%s938_s3] sm:$0xff]   ;;  %v694_v10 = vld [vmem:[%s938_s3 + $0x8] sm:$0xff]   ;;  %v695_v12 = vld [vmem:[%s938_s3 + $0x10] sm:$0xff]  }
   0x5   :  { %624 = vmatprep.subr.bf16.mxu1 %v693_v9  ;;  %v665_v13 = vld [vmem:[%s936_s1 + $0x40] sm:$0xff]   ;;  %v696_v14 = vld [vmem:[%s938_s3 + $0x18] sm:$0xff]   ;;  %v666_v15 = vld [vmem:[%s936_s1 + $0x48] sm:$0xff]  }
   0x6   :  { %240 = vmatpush1.bf16.msra.mxu0 %v658_v2  ;;  %625 = vmatpush3.bf16.msra.mxu1 %v693_v9  ;;  %v667_v16 = vld [vmem:[%s936_s1 + $0x50] sm:$0xff]   ;;  %v668_v17 = vld [vmem:[%s936_s1 + $0x58] sm:$0xff]   ;;  %v669_v18 = vld [vmem:[%s937_s0] ss:$8 sps:$4 sm:$0xff]  }
   0x7   :  { %241 = vmatprep.subr.bf16.mxu0 %v701_v0  ;;  %626 = vmatprep.subr.bf16.mxu1 %v694_v10  ;;  %v672_v19 = vld [vmem:[%s937_s0 + $0x14] ss:$8 sps:$4 sm:$0xff]   ;;  %v674_v20 = vld [vmem:[%s937_s0 + $0x10] ss:$8 sps:$4 sm:$0xff]   ;;  %v675_v21 = vld [vmem:[%s937_s0 + $0x24] ss:$8 sps:$4 sm:$0xff]  }
   0x8   :  { %v677_v22 = vld [vmem:[%s937_s0 + $0x20] ss:$8 sps:$4 sm:$0xff]   ;;  %v678_v23 = vld [vmem:[%s937_s0 + $0x34] ss:$8 sps:$4 sm:$0xff]   ;;  %v680_v24 = vld [vmem:[%s937_s0 + $0x30] ss:$8 sps:$4 sm:$0xff]  }
   0x9   :  { %v681_v25 = vld [vmem:[%s937_s0 + $0x44] ss:$8 sps:$4 sm:$0xff]   ;;  %v683_v26 = vld [vmem:[%s937_s0 + $0x40] ss:$8 sps:$4 sm:$0xff]   ;;  %v684_v27 = vld [vmem:[%s937_s0 + $0x54] ss:$8 sps:$4 sm:$0xff]  }
   0xa   :  { %242 = vmatpush1.bf16.msra.mxu0 %v659_v3  ;;  %627 = vmatpush3.bf16.msra.mxu1 %v694_v10  ;;  %v686_v28 = vld [vmem:[%s937_s0 + $0x50] ss:$8 sps:$4 sm:$0xff]   ;;  %v687_v29 = vld [vmem:[%s937_s0 + $0x64] ss:$8 sps:$4 sm:$0xff]   ;;  %v689_v30 = vld [vmem:[%s937_s0 + $0x60] ss:$8 sps:$4 sm:$0xff]  }
   0xb   :  { %243 = vmatprep.subr.bf16.mxu0 %v701_v0  ;;  %628 = vmatprep.subr.bf16.mxu1 %v695_v12  ;;  %v690_v31 = vld [vmem:[%s937_s0 + $0x74] ss:$8 sps:$4 sm:$0xff]   ;;  %v692_v32 = vld [vmem:[%s937_s0 + $0x70] ss:$8 sps:$4 sm:$0xff]   ;;  %v697_v33 = vld [vmem:[%s938_s3 + $0x20] sm:$0xff]  }
   0xc   :  { %v698_v34 = vld [vmem:[%s938_s3 + $0x28] sm:$0xff]   ;;  %v699_v35 = vld [vmem:[%s938_s3 + $0x30] sm:$0xff]   ;;  %v700_v36 = vld [vmem:[%s938_s3 + $0x38] sm:$0xff]  }
   0xd   :  { %v851_v37 = vld [vmem:[%s939_s2] ss:$0 sm:$0xff] }
   0xe   :  { %244 = vmatpush1.bf16.msra.mxu0 %v660_v4  ;;  %629 = vmatpush3.bf16.msra.mxu1 %v695_v12 }
   0xf   :  { %245 = vmatprep.subr.bf16.mxu0 %v701_v0  ;;  %630 = vmatprep.subr.bf16.mxu1 %v696_v14 }
  0x12   :  { %246 = vmatpush1.bf16.msra.mxu0 %v661_v6  ;;  %631 = vmatpush3.bf16.msra.mxu1 %v696_v14 }
  0x13   :  { %247 = vmatprep.subr.bf16.mxu0 %v701_v0  ;;  %632 = vmatprep.subr.bf16.mxu1 %v697_v33 }
  0x16   :  { %248 = vmatpush1.bf16.msra.mxu0 %v662_v7  ;;  %633 = vmatpush3.bf16.msra.mxu1 %v697_v33 }
  0x17   :  { %249 = vmatprep.subr.bf16.mxu0 %v701_v0  ;;  %634 = vmatprep.subr.bf16.mxu1 %v698_v34 }
  0x1a   :  { %250 = vmatpush1.bf16.msra.mxu0 %v663_v8  ;;  %635 = vmatpush3.bf16.msra.mxu1 %v698_v34 }
  0x1b   :  { %251 = vmatprep.subr.bf16.mxu0 %v701_v0  ;;  %636 = vmatprep.subr.bf16.mxu1 %v699_v35 }
  0x1e   :  { %252 = vmatpush1.bf16.msra.mxu0 %v664_v11  ;;  %637 = vmatpush3.bf16.msra.mxu1 %v699_v35 }
  0x1f   :  { %253 = vmatprep.subr.bf16.mxu0 %v701_v0  ;;  %638 = vmatprep.subr.bf16.mxu1 %v700_v36 }
  0x22   :  { %254 = vmatpush1.bf16.msra.mxu0 %v665_v13  ;;  %639 = vmatpush3.bf16.msra.mxu1 %v700_v36 }
  0x23   :  { %255 = vmatprep.subr.bf16.mxu0 %v701_v0 }
  0x26   :  { %256 = vmatpush1.bf16.msra.mxu0 %v666_v15 }
  0x27   :  { %257 = vmatprep.subr.bf16.mxu0 %v701_v0 }
  0x2a   :  { %258 = vmatpush1.bf16.msra.mxu0 %v667_v16 }
  0x2b   :  { %259 = vmatprep.subr.bf16.mxu0 %v701_v0 }
  0x2e   :  { %260 = vmatpush1.bf16.msra.mxu0 %v668_v17 }
  0x31   :  { %270 = vmatmul.mubr.bf16.vlgmr.msra.gmra.mrb[0].mxu0 %v669_v18 }
  0x32   :  { %592 = vmatprep.mubr.msk.bf16.mxu0 %vm212_vm0, %v672_v19 }
  0x39   :  { %278 = vmatmul.mubr.bf16.gmra.mrb[4].mxu0 %v674_v20 }
  0x3a   :  { %593 = vmatprep.mubr.msk.bf16.mxu0 %vm212_vm0, %v675_v21 }
  0x41   :  { %286 = vmatmul.mubr.bf16.gmra.mrb[8].mxu0 %v677_v22 }
  0x42   :  { %594 = vmatprep.mubr.msk.bf16.mxu0 %vm212_vm0, %v678_v23 }
  0x49   :  { %294 = vmatmul.mubr.bf16.gmra.mrb[12].mxu0 %v680_v24 }
  0x4a   :  { %595 = vmatprep.mubr.msk.bf16.mxu0 %vm212_vm0, %v681_v25 }
  0x51   :  { %302 = vmatmul.mubr.bf16.gmra.mrb[16].mxu0 %v683_v26 }
  0x52   :  { %596 = vmatprep.mubr.msk.bf16.mxu0 %vm212_vm0, %v684_v27 }
  0x59   :  { %310 = vmatmul.mubr.bf16.gmra.mrb[20].mxu0 %v686_v28 }
  0x5a   :  { %597 = vmatprep.mubr.msk.bf16.mxu0 %vm212_vm0, %v687_v29 }
  0x61   :  { %318 = vmatmul.mubr.bf16.gmra.mrb[24].mxu0 %v689_v30 }
  0x62   :  { %598 = vmatprep.mubr.msk.bf16.mxu0 %vm212_vm0, %v690_v31 }
  0x69   :  { %326 = vmatmul.mubr.bf16.gmra.mrb[28].mxu0 %v692_v32 }
 0x104   :  { %v271_v38 = vpop.f32.mrb[0].mxu0 }
 0x105   :  { %v272_v39 = vadd.f32 %v851_v37, %v271_v38  ;;  %v273_v40 = vpop.f32.mrb[1].mxu0 }
 0x106   :  { %v274_v41 = vpop.f32.mrb[2].mxu0 }
 0x107   :  { %v275_v42 = vadd.f32 %v851_v37, %v274_v41  ;;  %v276_v43 = vpop.f32.mrb[3].mxu0  ;;  %v334_v44 = vmax.f32 %v272_v39, 0.0 }
 0x109   :  { %v335_v45 = vmax.f32 %v275_v42, 0.0 }
 0x10b   :  { %v350_v46 = vpack.c.bf16 %v335_v45, %v334_v44 }
 0x10c   :  { %v279_v47 = vpop.f32.mrb[4].mxu0 }
 0x10d   :  { %v280_v48 = vadd.f32 %v851_v37, %v279_v47  ;;  %v281_v49 = vpop.f32.mrb[5].mxu0  ;;  %640 = vmatprep.mubr.bf16.mxu1 %v350_v46  ;;  %v599_v47 = vld [vmem:[%s940_s4] ss:$0 sm:$0xff] }
 0x10e   :  { %v282_v50 = vpop.f32.mrb[6].mxu0 }
 0x10f   :  { %v283_v51 = vadd.f32 %v851_v37, %v282_v50  ;;  %v284_v52 = vpop.f32.mrb[7].mxu0  ;;  %v336_v53 = vmax.f32 %v280_v48, 0.0 }
 0x111   :  { %v337_v54 = vmax.f32 %v283_v51, 0.0 }
 0x113   :  { %v351_v55 = vpack.c.bf16 %v337_v54, %v336_v53 }
 0x114   :  { %v287_v56 = vpop.f32.mrb[8].mxu0 }
 0x115   :  { %v288_v57 = vadd.f32 %v851_v37, %v287_v56  ;;  %v289_v58 = vpop.f32.mrb[9].mxu0  ;;  %641 = vmatmul.mubr.bf16.vlgmr.msra.gmra.mrb[0].mxu1 %v351_v55 }
 0x116   :  { %v290_v59 = vpop.f32.mrb[10].mxu0 }
 0x117   :  { %v291_v60 = vadd.f32 %v851_v37, %v290_v59  ;;  %v292_v61 = vpop.f32.mrb[11].mxu0  ;;  %v338_v62 = vmax.f32 %v288_v57, 0.0 }
 0x119   :  { %v339_v63 = vmax.f32 %v291_v60, 0.0 }
 0x11b   :  { %v352_v0 = vpack.c.bf16 %v339_v63, %v338_v62 }
 0x11c   :  { %v295_v1 = vpop.f32.mrb[12].mxu0 }
 0x11d   :  { %v296_v2 = vadd.f32 %v851_v37, %v295_v1  ;;  %v297_v3 = vpop.f32.mrb[13].mxu0  ;;  %644 = vmatprep.mubr.bf16.mxu1 %v352_v0 }
 0x11e   :  { %v298_v4 = vpop.f32.mrb[14].mxu0 }
 0x11f   :  { %v299_v5 = vadd.f32 %v851_v37, %v298_v4  ;;  %v300_v6 = vpop.f32.mrb[15].mxu0  ;;  %v340_v7 = vmax.f32 %v296_v2, 0.0 }
 0x121   :  { %v341_v8 = vmax.f32 %v299_v5, 0.0 }
 0x123   :  { %v353_v9 = vpack.c.bf16 %v341_v8, %v340_v7 }
 0x124   :  { %v303_v10 = vpop.f32.mrb[16].mxu0 }
 0x125   :  { %v304_v11 = vadd.f32 %v851_v37, %v303_v10  ;;  %v305_v12 = vpop.f32.mrb[17].mxu0  ;;  %645 = vmatmul.mubr.bf16.gmra.mrb[4].mxu1 %v353_v9 }
 0x126   :  { %v306_v13 = vpop.f32.mrb[18].mxu0 }
 0x127   :  { %v307_v14 = vadd.f32 %v851_v37, %v306_v13  ;;  %v308_v15 = vpop.f32.mrb[19].mxu0  ;;  %v342_v16 = vmax.f32 %v304_v11, 0.0 }
 0x129   :  { %v343_v17 = vmax.f32 %v307_v14, 0.0 }
 0x12b   :  { %v354_v18 = vpack.c.bf16 %v343_v17, %v342_v16 }
 0x12c   :  { %v311_v19 = vpop.f32.mrb[20].mxu0 }
 0x12d   :  { %v312_v20 = vadd.f32 %v851_v37, %v311_v19  ;;  %v313_v21 = vpop.f32.mrb[21].mxu0  ;;  %648 = vmatprep.mubr.bf16.mxu1 %v354_v18 }
 0x12e   :  { %v314_v22 = vpop.f32.mrb[22].mxu0 }
 0x12f   :  { %v315_v23 = vadd.f32 %v851_v37, %v314_v22  ;;  %v316_v24 = vpop.f32.mrb[23].mxu0  ;;  %v344_v25 = vmax.f32 %v312_v20, 0.0 }
 0x131   :  { %v345_v26 = vmax.f32 %v315_v23, 0.0 }
 0x133   :  { %v355_v27 = vpack.c.bf16 %v345_v26, %v344_v25 }
 0x134   :  { %v319_v28 = vpop.f32.mrb[24].mxu0 }
 0x135   :  { %v320_v29 = vadd.f32 %v851_v37, %v319_v28  ;;  %v321_v30 = vpop.f32.mrb[25].mxu0  ;;  %649 = vmatmul.mubr.bf16.gmra.mrb[8].mxu1 %v355_v27 }
 0x136   :  { %v322_v31 = vpop.f32.mrb[26].mxu0 }
 0x137   :  { %v323_v32 = vadd.f32 %v851_v37, %v322_v31  ;;  %v324_v33 = vpop.f32.mrb[27].mxu0  ;;  %v346_v34 = vmax.f32 %v320_v29, 0.0 }
 0x139   :  { %v347_v35 = vmax.f32 %v323_v32, 0.0 }
 0x13b   :  { %v356_v36 = vpack.c.bf16 %v347_v35, %v346_v34 }
 0x13c   :  { %v327_v38 = vpop.f32.mrb[28].mxu0 }
 0x13d   :  { %v328_v39 = vadd.f32 %v851_v37, %v327_v38  ;;  %v329_v40 = vpop.f32.mrb[29].mxu0  ;;  %652 = vmatprep.mubr.bf16.mxu1 %v356_v36 }
 0x13e   :  { %v330_v41 = vpop.f32.mrb[30].mxu0 }
 0x13f   :  { %v331_v42 = vadd.f32 %v851_v37, %v330_v41  ;;  %v332_v43 = vpop.f32.mrb[31].mxu0  ;;  %v348_v44 = vmax.f32 %v328_v39, 0.0 }
 0x141   :  { %v349_v45 = vmax.f32 %v331_v42, 0.0 }
 0x143   :  { %v357_v46 = vpack.c.bf16 %v349_v45, %v348_v44 }
 0x145   :  { %653 = vmatmul.mubr.bf16.gmra.mrb[12].mxu1 %v357_v46 }
 0x1e8   :  { %v642_v48 = vpop.f32.mrb[0].mxu1 }
 0x1e9   :  { %v472_v49 = vadd.f32 %v642_v48, %v599_v47  ;;  %v463_v50 = vpop.f32.mrb[1].mxu1 }
 0x1ea   :  { %v464_v51 = vadd.f32 %v599_v47, %v463_v50  ;;  %v643_v52 = vpop.f32.mrb[2].mxu1 }
 0x1eb   :  { %v528_v53 = vmax.f32 %v472_v49, 0.0  ;;  %v475_v54 = vadd.f32 %v643_v52, %v599_v47  ;;  %v466_v55 = vpop.f32.mrb[3].mxu1 }
 0x1ec   :  { %v526_v56 = vmax.f32 %v464_v51, 0.0  ;;  %v467_v57 = vadd.f32 %v599_v47, %v466_v55 }
 0x1ed   :  { %544 = vst.msk [vmem:[%s941_s5 + $0x10] sm:$0xff] %vm212_vm0, %v528_v53  ;;  %v529_v37 = vmax.f32 %v475_v54, 0.0 }
 0x1ee   :  { %542 = vst.msk [vmem:[%s941_s5] sm:$0xff] %vm212_vm0, %v526_v56  ;;  %v527_v58 = vmax.f32 %v467_v57, 0.0 }
 0x1ef   :  { %545 = vst.msk [vmem:[%s941_s5 + $0x18] sm:$0xff] %vm212_vm0, %v529_v37 }
 0x1f0   :  { %543 = vst.msk [vmem:[%s941_s5 + $0x8] sm:$0xff] %vm212_vm0, %v527_v58 }
 0x1f8   :  { %v646_v59 = vpop.f32.mrb[4].mxu1 }
 0x1f9   :  { %v488_v60 = vadd.f32 %v646_v59, %v599_v47  ;;  %v479_v61 = vpop.f32.mrb[5].mxu1 }
 0x1fa   :  { %v480_v62 = vadd.f32 %v599_v47, %v479_v61  ;;  %v647_v63 = vpop.f32.mrb[6].mxu1 }
 0x1fb   :  { %v532_v0 = vmax.f32 %v488_v60, 0.0  ;;  %v491_v1 = vadd.f32 %v647_v63, %v599_v47  ;;  %v482_v2 = vpop.f32.mrb[7].mxu1 }
 0x1fc   :  { %v530_v3 = vmax.f32 %v480_v62, 0.0  ;;  %v483_v4 = vadd.f32 %v599_v47, %v482_v2 }
 0x1fd   :  { %548 = vst.msk [vmem:[%s941_s5 + $0x30] sm:$0xff] %vm212_vm0, %v532_v0  ;;  %v533_v5 = vmax.f32 %v491_v1, 0.0 }
 0x1fe   :  { %546 = vst.msk [vmem:[%s941_s5 + $0x20] sm:$0xff] %vm212_vm0, %v530_v3  ;;  %v531_v6 = vmax.f32 %v483_v4, 0.0 }
 0x1ff   :  { %549 = vst.msk [vmem:[%s941_s5 + $0x38] sm:$0xff] %vm212_vm0, %v533_v5 }
 0x200   :  { %547 = vst.msk [vmem:[%s941_s5 + $0x28] sm:$0xff] %vm212_vm0, %v531_v6 }
 0x208   :  { %v650_v7 = vpop.f32.mrb[8].mxu1 }
 0x209   :  { %v504_v8 = vadd.f32 %v650_v7, %v599_v47  ;;  %v495_v9 = vpop.f32.mrb[9].mxu1 }
 0x20a   :  { %v496_v10 = vadd.f32 %v599_v47, %v495_v9  ;;  %v651_v11 = vpop.f32.mrb[10].mxu1 }
 0x20b   :  { %v536_v12 = vmax.f32 %v504_v8, 0.0  ;;  %v507_v13 = vadd.f32 %v651_v11, %v599_v47  ;;  %v498_v14 = vpop.f32.mrb[11].mxu1 }
 0x20c   :  { %v534_v15 = vmax.f32 %v496_v10, 0.0  ;;  %v499_v16 = vadd.f32 %v599_v47, %v498_v14 }
 0x20d   :  { %552 = vst.msk [vmem:[%s941_s5 + $0x50] sm:$0xff] %vm212_vm0, %v536_v12  ;;  %v537_v17 = vmax.f32 %v507_v13, 0.0 }
 0x20e   :  { %550 = vst.msk [vmem:[%s941_s5 + $0x40] sm:$0xff] %vm212_vm0, %v534_v15  ;;  %v535_v18 = vmax.f32 %v499_v16, 0.0 }
 0x20f   :  { %553 = vst.msk [vmem:[%s941_s5 + $0x58] sm:$0xff] %vm212_vm0, %v537_v17 }
 0x210   :  { %551 = vst.msk [vmem:[%s941_s5 + $0x48] sm:$0xff] %vm212_vm0, %v535_v18 }
 0x218   :  { %v654_v19 = vpop.f32.mrb[12].mxu1 }
 0x219   :  { %v520_v20 = vadd.f32 %v654_v19, %v599_v47  ;;  %v511_v21 = vpop.f32.mrb[13].mxu1 }
 0x21a   :  { %v512_v22 = vadd.f32 %v599_v47, %v511_v21  ;;  %v655_v23 = vpop.f32.mrb[14].mxu1 }
 0x21b   :  { %v540_v24 = vmax.f32 %v520_v20, 0.0  ;;  %v523_v25 = vadd.f32 %v655_v23, %v599_v47  ;;  %v514_v26 = vpop.f32.mrb[15].mxu1 }
 0x21c   :  { %v538_v27 = vmax.f32 %v512_v22, 0.0  ;;  %v515_v28 = vadd.f32 %v599_v47, %v514_v26 }
 0x21d   :  { %556 = vst.msk [vmem:[%s941_s5 + $0x70] sm:$0xff] %vm212_vm0, %v540_v24  ;;  %v541_v29 = vmax.f32 %v523_v25, 0.0 }
 0x21e   :  { %554 = vst.msk [vmem:[%s941_s5 + $0x60] sm:$0xff] %vm212_vm0, %v538_v27  ;;  %v539_v30 = vmax.f32 %v515_v28, 0.0 }
 0x21f   :  { %557 = vst.msk [vmem:[%s941_s5 + $0x78] sm:$0xff] %vm212_vm0, %v541_v29 }
 0x220   :  { %555 = vst.msk [vmem:[%s941_s5 + $0x68] sm:$0xff] %vm212_vm0, %v539_v30 }

// kernel: contact_graspnet_forward.16
= control target key start
LH: loop header
LB: loop body
LE: loop exit
PB: predicated region body
PF: predicated region fallthrough
CT: control target
= control target key end

     0   :  { %s1249_s24 = smov 0   ;;  %s1400_s0 = inlined_call_operand.vmem [shape: bf16[256,72], index: 0, kind: input, shape index: {}]   ;;  %s1401_s1 = inlined_call_operand.vmem [shape: bf16[72,64], index: 1, kind: input, shape index: {}]   ;;  %s1402_s2 = inlined_call_operand.vmem [shape: f32[1,64], index: 2, kind: input, shape index: {}]   ;;  %s1403_s3 = inlined_call_operand.vmem [shape: bf16[64,128], index: 3, kind: input, shape index: {}]   ;;  %s1404_s4 = inlined_call_operand.vmem [shape: f32[1,128], index: 4, kind: input, shape index: {}]   ;;  %s1405_s5 = inlined_call_operand.vmem [shape: bf16[128,128], index: 5, kind: input, shape index: {}]   ;;  %s1406_s6 = inlined_call_operand.vmem [shape: f32[1,128], index: 6, kind: input, shape index: {}]   ;;  %s1407_s7 = inlined_call_operand.vmem [shape: f32[256,128], index: 7, kind: output, shape index: {}]  }
   0x1 LB: > { %s973_s25 = sadd.s32 4294967295, %s1207_s24   ;;  %p977_p0 = scmp.ge.s32.totalorder %s1207_s24, 1  ;;  %s1207_s24 = sphi %s1249_s24, %s17_s24  }
   0x2   : > { %p238_p1 = scmp.lt.s32.totalorder %s1207_s24, 3 }
   0x4   : > { %p239_p2 = pnand %p977_p0, %p238_p1 }
   0x5   : > { %v1176_v0 = vld [vmem:[%s1401_s1] sm:$0xff] (!%p239_p2)   ;;  %v1177_v1 = vld [vmem:[%s1401_s1 + $0x8] sm:$0xff] (!%p239_p2)   ;;  %s978_s30 = sshll.u32 (!%p239_p2), %s973_s25, 4  ;;  %v1178_v2 = vld [vmem:[%s1401_s1 + $0x10] sm:$0xff] (!%p239_p2)   ;;  %vm382_vm0 = vcmask (!%p239_p2), 588800   ;;  %vm407_vm1 = vcmask (!%p239_p2), 1043456  }
   0x6   : > { %242 = sbr.rel (%p239_p2) target bundleno = 714 (0x2ca), region = 48  ;;  %1069 = vmatprep.subr.bf16.mxu0 (!%p239_p2), %v1176_v0  ;;  %p271_p3 = scmp.lt.s32.totalorder (!%p239_p2), %s978_s30, 31  ;;  %v1189_v3 = vld [vmem:[%s1403_s3] sm:$0xff] (!%p239_p2)   ;;  %v1179_v4 = vld [vmem:[%s1401_s1 + $0x18] sm:$0xff] (!%p239_p2)   ;;  %v1190_v5 = vld [vmem:[%s1403_s3 + $0x8] sm:$0xff] (!%p239_p2)   ;;  %vm571_vm2 = vcmask (!%p239_p2), 523264  }
   0x7   : > { %1070 = vmatpush3.bf16.msra.mxu0 (!%p239_p2), %v1176_v0  ;;  %1095 = vmatprep.subr.bf16.mxu1 (!%p239_p2), %v1189_v3  ;;  %v1180_v7 = vld [vmem:[%s1401_s1 + $0x20] ss:$0 sps:$4 sm:$0xff] (!%p239_p2)   ;;  %v1191_v16 = vld [vmem:[%s1403_s3 + $0x10] sm:$0xff] (!%p239_p2)   ;;  %v1192_v17 = vld [vmem:[%s1403_s3 + $0x18] sm:$0xff] (!%p239_p2)  }
   0x8   : > { %1071 = vmatprep.subr.bf16.mxu0 (!%p239_p2), %v1177_v1  ;;  %1096 = vmatpush3.bf16.msra.mxu1 (!%p239_p2), %v1189_v3  ;;  %v409_v8 = vsel (!%p239_p2), %vm407_vm1, %v1180_v7, 0  ;;  %v1193_v18 = vld [vmem:[%s1405_s5] sm:$0xff] (!%p239_p2)   ;;  %v1194_v19 = vld [vmem:[%s1405_s5 + $0x8] sm:$0xff] (!%p239_p2)   ;;  %v1195_v20 = vld [vmem:[%s1405_s5 + $0x10] sm:$0xff] (!%p239_p2)  }
   0x9   : > { %1097 = vmatprep.subr.bf16.mxu1 (!%p239_p2), %v1190_v5  ;;  %v1310_v21 = vld [vmem:[%s1405_s5 + $0x18] sm:$0xff] (!%p239_p2)   ;;  %v1316_v22 = vld [vmem:[%s1405_s5 + $0x20] sm:$0xff] (!%p239_p2)   ;;  %v1323_v23 = vld [vmem:[%s1405_s5 + $0x28] sm:$0xff] (!%p239_p2)  }
   0xa   : > { %v1331_v24 = vld [vmem:[%s1402_s2] ss:$0 sm:$0xff] (!%p239_p2) }
   0xb   : > { %1072 = vmatpush3.bf16.msra.mxu0 (!%p239_p2), %v1177_v1 }
   0xc   : > { %1073 = vmatprep.subr.bf16.mxu0 (!%p239_p2), %v1178_v2  ;;  %1098 = vmatpush3.bf16.msra.mxu1 (!%p239_p2), %v1190_v5 }
   0xd   : > { %s1409_s30 = smov (!%p271_p3, %s978_s30), 31  ;;  %1099 = vmatprep.subr.bf16.mxu1 %v1191_v16 }
   0xe   : > { %s979_s14 = sshll.u32 %s1409_s30, 2  ;;  %s981_s28 = sshll.u32 %s1409_s30, 3 }
   0xf   : > { %s274_s19 = scalar_lea.vmem %s1400_s0, %s979_s14  ;;  %1074 = vmatpush3.bf16.msra.mxu0 %v1178_v2  ;;  %s1379_s9 = scalar_lea.vmem %s1407_s7, %s981_s28 }
  0x10   : > { %v1181_v6 = vld [vmem:[%s274_s19] sm:$0xff]   ;;  %1075 = vmatprep.subr.bf16.mxu0 %v1179_v4  ;;  %v1182_v9 = vld [vmem:[%s274_s19 + $0x8] sm:$0xff]   ;;  %v1183_v10 = vld [vmem:[%s274_s19 + $0x10] sm:$0xff]   ;;  %1100 = vmatpush3.bf16.msra.mxu1 %v1191_v16 }
  0x11   : > { %1079 = vmatprep.mubr.msk.bf16.mxu0 %vm382_vm0, %v1181_v6  ;;  %v1184_v11 = vld [vmem:[%s274_s19 + $0x18] sm:$0xff]   ;;  %v1185_v12 = vld [vmem:[%s274_s19 + $0x20] sm:$0xff]   ;;  %v1186_v13 = vld [vmem:[%s274_s19 + $0x28] sm:$0xff]   ;;  %1101 = vmatprep.subr.bf16.mxu1 %v1192_v17 }
  0x12   : > { %v1187_v14 = vld [vmem:[%s274_s19 + $0x30] sm:$0xff]   ;;  %v1188_v15 = vld [vmem:[%s274_s19 + $0x38] sm:$0xff]  }
  0x13   : > { %1076 = vmatpush3.bf16.msra.mxu0 %v1179_v4 }
  0x14   : > { %1167 = vmatprep.subr.msk.bf16.mxu0 %vm407_vm1, %v1180_v7  ;;  %1102 = vmatpush3.bf16.msra.mxu1 %v1192_v17  ;;  %v1199_v17 = vld [vmem:[%s1405_s5 + $0x30] sm:$0xff]  }
  0x15   : > { %1151 = vmatprep.subr.bf16.mxu1 %v1193_v18 }
  0x17   : > { %1078 = vmatpush3.bf16.msra.mxu0 %v409_v8 }
  0x18   : > { %1119 = vmatprep.subr.bf16.mxu0 %v1193_v18 }
  0x1a   : > { %1080 = vmatmul.mubr.msk.bf16.vlgmr.msra.gmra.mrb[0].mxu0 %vm382_vm0, %v1182_v9 }
  0x1b   : > { %1083 = vmatprep.mubr.msk.bf16.mxu0 %vm382_vm0, %v1183_v10  ;;  %1120 = vmatpush3.bf16.msra.mxu0 %v1193_v18 }
  0x1c   : > { %1121 = vmatprep.subr.bf16.mxu0 %v1194_v19 }
  0x1f   : > { %1122 = vmatpush3.bf16.msra.mxu0 %v1194_v19 }
  0x20   : > { %1123 = vmatprep.subr.bf16.mxu0 %v1195_v20 }
  0x22   : > { %1084 = vmatmul.mubr.msk.bf16.gmra.mrb[4].mxu0 %vm382_vm0, %v1184_v11 }
  0x23   : > { %1087 = vmatprep.mubr.msk.bf16.mxu0 %vm382_vm0, %v1185_v12  ;;  %1124 = vmatpush3.bf16.msra.mxu0 %v1195_v20 }
  0x24   : > { %1125 = vmatprep.subr.bf16.mxu0 %v1310_v21 }
  0x27   : > { %1126 = vmatpush3.bf16.msra.mxu0 %v1310_v21 }
  0x28   : > { %1127 = vmatprep.subr.bf16.mxu0 %v1316_v22 }
  0x2a   : > { %1088 = vmatmul.mubr.msk.bf16.gmra.mrb[8].mxu0 %vm382_vm0, %v1186_v13 }
  0x2b   : > { %1091 = vmatprep.mubr.msk.bf16.mxu0 %vm382_vm0, %v1187_v14  ;;  %1128 = vmatpush3.bf16.msra.mxu0 %v1316_v22 }
  0x2c   : > { %1129 = vmatprep.subr.bf16.mxu0 %v1323_v23 }
  0x2f   : > { %1130 = vmatpush3.bf16.msra.mxu0 %v1323_v23 }
  0x30   : > { %1131 = vmatprep.subr.bf16.mxu0 %v1199_v17 }
  0x32   : > { %1092 = vmatmul.mubr.msk.bf16.gmra.mrb[12].mxu0 %vm382_vm0, %v1188_v15 }
  0x33   : > { %1132 = vmatpush3.bf16.msra.mxu0 %v1199_v17 }
  0xed   : > { %v1081_v25 = vpop.f32.mrb[0].mxu0 }
  0xee   : > { %v454_v26 = vadd.f32 %v1081_v25, %v1331_v24  ;;  %v445_v27 = vpop.f32.mrb[1].mxu0 }
  0xef   : > { %v446_v28 = vadd.f32 %v1331_v24, %v445_v27  ;;  %v1082_v29 = vpop.f32.mrb[2].mxu0 }
  0xf0   : > { %v457_v30 = vadd.f32 %v1082_v29, %v1331_v24  ;;  %v448_v31 = vpop.f32.mrb[3].mxu0  ;;  %v510_v33 = vmax.f32 %v454_v26, 0.0 }
  0xf1   : > { %v449_v32 = vadd.f32 %v1331_v24, %v448_v31  ;;  %v508_v35 = vmax.f32 %v446_v28, 0.0 }
  0xf2   : > { %v511_v34 = vmax.f32 %v457_v30, 0.0 }
  0xf3   : > { %v509_v36 = vmax.f32 %v449_v32, 0.0 }
  0xf4   : > { %v525_v37 = vpack.c.bf16 %v511_v34, %v510_v33 }
  0xf5   : > { %v1085_v38 = vpop.f32.mrb[4].mxu0  ;;  %v524_v39 = vpack.c.bf16 %v509_v36, %v508_v35 }
  0xf6   : > { %v470_v40 = vadd.f32 %v1085_v38, %v1331_v24  ;;  %v461_v41 = vpop.f32.mrb[5].mxu0 }
  0xf7   : > { %v462_v42 = vadd.f32 %v1331_v24, %v461_v41  ;;  %v1086_v43 = vpop.f32.mrb[6].mxu0  ;;  %1103 = vmatprep.mubr.msk.bf16.mxu1 %vm571_vm2, %v524_v39 }
  0xf8   : > { %v473_v44 = vadd.f32 %v1086_v43, %v1331_v24  ;;  %v464_v45 = vpop.f32.mrb[7].mxu0  ;;  %1104 = vmatmul.mubr.msk.bf16.vlgmr.msra.gmra.mrb[0].mxu1 %vm571_vm2, %v525_v37  ;;  %v514_v47 = vmax.f32 %v470_v40, 0.0 }
  0xf9   : > { %v465_v46 = vadd.f32 %v1331_v24, %v464_v45  ;;  %1159 = vmatpush3.bf16.msra.mxu1 %v1193_v18  ;;  %v512_v49 = vmax.f32 %v462_v42, 0.0  ;;  %v1200_v18 = vld [vmem:[%s1405_s5 + $0x38] sm:$0xff]  }
  0xfa   : > { %v515_v48 = vmax.f32 %v473_v44, 0.0  ;;  %1152 = vmatprep.subr.bf16.mxu1 %v1194_v19  ;;  %1133 = vmatprep.subr.bf16.mxu0 %v1200_v18 }
  0xfb   : > { %v513_v50 = vmax.f32 %v465_v46, 0.0  ;;  %1134 = vmatpush3.bf16.msra.mxu0 %v1200_v18 }
  0xfc   : > { %v527_v51 = vpack.c.bf16 %v515_v48, %v514_v47 }
  0xfd   : > { %v526_v52 = vpack.c.bf16 %v513_v50, %v512_v49  ;;  %v1089_v53 = vpop.f32.mrb[8].mxu0  ;;  %1160 = vmatpush3.bf16.msra.mxu1 %v1194_v19  ;;  %v1004_v19 = vld [vmem:[%s1404_s4] ss:$0 sm:$0xff] }
  0xfe   : > { %v486_v54 = vadd.f32 %v1089_v53, %v1331_v24  ;;  %v477_v55 = vpop.f32.mrb[9].mxu0  ;;  %1153 = vmatprep.subr.bf16.mxu1 %v1195_v20 }
  0xff   : > { %v478_v56 = vadd.f32 %v1331_v24, %v477_v55  ;;  %v1090_v57 = vpop.f32.mrb[10].mxu0  ;;  %1107 = vmatprep.mubr.msk.bf16.mxu1 %vm571_vm2, %v526_v52 }
 0x100   : > { %v489_v58 = vadd.f32 %v1090_v57, %v1331_v24  ;;  %v480_v59 = vpop.f32.mrb[11].mxu0  ;;  %1108 = vmatmul.mubr.msk.bf16.gmra.mrb[4].mxu1 %vm571_vm2, %v527_v51  ;;  %v518_v61 = vmax.f32 %v486_v54, 0.0 }
 0x101   : > { %v481_v60 = vadd.f32 %v1331_v24, %v480_v59  ;;  %1161 = vmatpush3.bf16.msra.mxu1 %v1195_v20  ;;  %v516_v63 = vmax.f32 %v478_v56, 0.0 }
 0x102   : > { %v519_v62 = vmax.f32 %v489_v58, 0.0  ;;  %1154 = vmatprep.subr.bf16.mxu1 %v1310_v21 }
 0x103   : > { %v517_v0 = vmax.f32 %v481_v60, 0.0 }
 0x104   : > { %v529_v1 = vpack.c.bf16 %v519_v62, %v518_v61 }
 0x105   : > { %v528_v2 = vpack.c.bf16 %v517_v0, %v516_v63  ;;  %v1093_v3 = vpop.f32.mrb[12].mxu0  ;;  %1162 = vmatpush3.bf16.msra.mxu1 %v1310_v21 }
 0x106   : > { %v502_v4 = vadd.f32 %v1093_v3, %v1331_v24  ;;  %v493_v5 = vpop.f32.mrb[13].mxu0  ;;  %1155 = vmatprep.subr.bf16.mxu1 %v1316_v22 }
 0x107   : > { %v494_v6 = vadd.f32 %v1331_v24, %v493_v5  ;;  %v1094_v7 = vpop.f32.mrb[14].mxu0  ;;  %1111 = vmatprep.mubr.msk.bf16.mxu1 %vm571_vm2, %v528_v2 }
 0x108   : > { %v505_v8 = vadd.f32 %v1094_v7, %v1331_v24  ;;  %v496_v9 = vpop.f32.mrb[15].mxu0  ;;  %1112 = vmatmul.mubr.msk.bf16.gmra.mrb[8].mxu1 %vm571_vm2, %v529_v1  ;;  %v522_v11 = vmax.f32 %v502_v4, 0.0 }
 0x109   : > { %v497_v10 = vadd.f32 %v1331_v24, %v496_v9  ;;  %1163 = vmatpush3.bf16.msra.mxu1 %v1316_v22  ;;  %v520_v13 = vmax.f32 %v494_v6, 0.0 }
 0x10a   : > { %v523_v12 = vmax.f32 %v505_v8, 0.0  ;;  %1156 = vmatprep.subr.bf16.mxu1 %v1323_v23 }
 0x10b   : > { %v521_v14 = vmax.f32 %v497_v10, 0.0 }
 0x10c   : > { %v531_v15 = vpack.c.bf16 %v523_v12, %v522_v11  ;;  %v1017_v12 = vld [vmem:[%s1406_s6] ss:$0 sm:$0xff] }
 0x10d   : > { %v530_v16 = vpack.c.bf16 %v521_v14, %v520_v13  ;;  %1164 = vmatpush3.bf16.msra.mxu1 %v1323_v23 }
 0x10e   : > { %1157 = vmatprep.subr.bf16.mxu1 %v1199_v17 }
 0x10f   : > { %1115 = vmatprep.mubr.msk.bf16.mxu1 %vm571_vm2, %v530_v16 }
 0x110   : > { %1116 = vmatmul.mubr.msk.bf16.gmra.mrb[12].mxu1 %vm571_vm2, %v531_v15 }
 0x111   : > { %1165 = vmatpush3.bf16.msra.mxu1 %v1199_v17 }
 0x112   : > { %1158 = vmatprep.subr.bf16.mxu1 %v1200_v18 }
 0x115   : > { %1166 = vmatpush3.bf16.msra.mxu1 %v1200_v18 }
 0x1cb   : > { %v1105_v20 = vpop.f32.mrb[0].mxu1 }
 0x1cc   : > { %v639_v21 = vadd.f32 %v1105_v20, %v1004_v19  ;;  %v630_v22 = vpop.f32.mrb[1].mxu1 }
 0x1cd   : > { %v631_v23 = vadd.f32 %v1004_v19, %v630_v22  ;;  %v1106_v24 = vpop.f32.mrb[2].mxu1 }
 0x1ce   : > { %v642_v25 = vadd.f32 %v1106_v24, %v1004_v19  ;;  %v633_v26 = vpop.f32.mrb[3].mxu1  ;;  %v695_v28 = vmax.f32 %v639_v21, 0.0 }
 0x1cf   : > { %v634_v27 = vadd.f32 %v1004_v19, %v633_v26  ;;  %v693_v30 = vmax.f32 %v631_v23, 0.0 }
 0x1d0   : > { %v696_v29 = vmax.f32 %v642_v25, 0.0 }
 0x1d1   : > { %v694_v31 = vmax.f32 %v634_v27, 0.0 }
 0x1d2   : > { %v710_v32 = vpack.c.bf16 %v696_v29, %v695_v28 }
 0x1d3   : > { %v709_v33 = vpack.c.bf16 %v694_v31, %v693_v30  ;;  %v1109_v34 = vpop.f32.mrb[4].mxu1 }
 0x1d4   : > { %v655_v35 = vadd.f32 %v1109_v34, %v1004_v19  ;;  %v646_v36 = vpop.f32.mrb[5].mxu1 }
 0x1d5   : > { %v647_v37 = vadd.f32 %v1004_v19, %v646_v36  ;;  %v1110_v38 = vpop.f32.mrb[6].mxu1  ;;  %1135 = vmatprep.mubr.bf16.mxu0 %v709_v33 }
 0x1d6   : > { %v658_v39 = vadd.f32 %v1110_v38, %v1004_v19  ;;  %v649_v40 = vpop.f32.mrb[7].mxu1  ;;  %1136 = vmatmul.mubr.bf16.vlgmr.msra.gmra.mrb[16].mxu0 %v710_v32  ;;  %v699_v42 = vmax.f32 %v655_v35, 0.0 }
 0x1d7   : > { %v650_v41 = vadd.f32 %v1004_v19, %v649_v40  ;;  %v697_v44 = vmax.f32 %v647_v37, 0.0 }
 0x1d8   : > { %v700_v43 = vmax.f32 %v658_v39, 0.0 }
 0x1d9   : > { %v698_v45 = vmax.f32 %v650_v41, 0.0 }
 0x1da   : > { %v712_v46 = vpack.c.bf16 %v700_v43, %v699_v42 }
 0x1db   : > { %v711_v47 = vpack.c.bf16 %v698_v45, %v697_v44  ;;  %v1113_v48 = vpop.f32.mrb[8].mxu1 }
 0x1dc   : > { %v671_v49 = vadd.f32 %v1113_v48, %v1004_v19  ;;  %v662_v50 = vpop.f32.mrb[9].mxu1 }
 0x1dd   : > { %v663_v51 = vadd.f32 %v1004_v19, %v662_v50  ;;  %v1114_v52 = vpop.f32.mrb[10].mxu1  ;;  %1139 = vmatprep.mubr.bf16.mxu1 %v711_v47 }
 0x1de   : > { %v674_v53 = vadd.f32 %v1114_v52, %v1004_v19  ;;  %v665_v54 = vpop.f32.mrb[11].mxu1  ;;  %1140 = vmatmul.mubr.bf16.vlgmr.msra.gmra.mrb[16].mxu1 %v712_v46  ;;  %v703_v56 = vmax.f32 %v671_v49, 0.0 }
 0x1df   : > { %v666_v55 = vadd.f32 %v1004_v19, %v665_v54  ;;  %v701_v58 = vmax.f32 %v663_v51, 0.0 }
 0x1e0   : > { %v704_v57 = vmax.f32 %v674_v53, 0.0 }
 0x1e1   : > { %v702_v59 = vmax.f32 %v666_v55, 0.0 }
 0x1e2   : > { %v714_v60 = vpack.c.bf16 %v704_v57, %v703_v56 }
 0x1e3   : > { %v713_v61 = vpack.c.bf16 %v702_v59, %v701_v58  ;;  %v1117_v62 = vpop.f32.mrb[12].mxu1 }
 0x1e4   : > { %v687_v63 = vadd.f32 %v1117_v62, %v1004_v19  ;;  %v678_v0 = vpop.f32.mrb[13].mxu1 }
 0x1e5   : > { %v679_v1 = vadd.f32 %v1004_v19, %v678_v0  ;;  %v1118_v2 = vpop.f32.mrb[14].mxu1  ;;  %1143 = vmatprep.mubr.bf16.mxu1 %v713_v61 }
 0x1e6   : > { %v690_v3 = vadd.f32 %v1118_v2, %v1004_v19  ;;  %v681_v4 = vpop.f32.mrb[15].mxu1  ;;  %1144 = vmatmul.mubr.bf16.gmra.mrb[20].mxu1 %v714_v60  ;;  %v707_v6 = vmax.f32 %v687_v63, 0.0 }
 0x1e7   : > { %v682_v5 = vadd.f32 %v1004_v19, %v681_v4  ;;  %v705_v8 = vmax.f32 %v679_v1, 0.0 }
 0x1e8   : > { %v708_v7 = vmax.f32 %v690_v3, 0.0 }
 0x1e9   : > { %v706_v9 = vmax.f32 %v682_v5, 0.0 }
 0x1ea   : > { %v716_v10 = vpack.c.bf16 %v708_v7, %v707_v6 }
 0x1eb   : > { %v715_v11 = vpack.c.bf16 %v706_v9, %v705_v8 }
 0x1ed   : > { %1147 = vmatprep.mubr.bf16.mxu1 %v715_v11 }
 0x1ee   : > { %1148 = vmatmul.mubr.bf16.gmra.mrb[24].mxu1 %v716_v10 }
 0x2a9   : > { %v1137_v13 = vpop.f32.mrb[16].mxu0 }
 0x2aa   : > { %v831_v14 = vadd.f32 %v1137_v13, %v1017_v12  ;;  %v822_v15 = vpop.f32.mrb[17].mxu0 }
 0x2ab   : > { %v823_v16 = vadd.f32 %v1017_v12, %v822_v15  ;;  %v1138_v17 = vpop.f32.mrb[18].mxu0 }
 0x2ac   : > { %v887_v18 = vmax.f32 %v831_v14, 0.0  ;;  %v834_v19 = vadd.f32 %v1138_v17, %v1017_v12  ;;  %v825_v20 = vpop.f32.mrb[19].mxu0 }
 0x2ad   : > { %v885_v21 = vmax.f32 %v823_v16, 0.0  ;;  %v826_v22 = vadd.f32 %v1017_v12, %v825_v20 }
 0x2ae   : > { %903 = vst [vmem:[%s1379_s9 + $0x10] sm:$0xff] %v887_v18  ;;  %v888_v23 = vmax.f32 %v834_v19, 0.0 }
 0x2af   : > { %901 = vst [vmem:[%s1379_s9] sm:$0xff] %v885_v21  ;;  %v886_v24 = vmax.f32 %v826_v22, 0.0 }
 0x2b0   : > { %904 = vst [vmem:[%s1379_s9 + $0x18] sm:$0xff] %v888_v23 }
 0x2b1   : > { %902 = vst [vmem:[%s1379_s9 + $0x8] sm:$0xff] %v886_v24  ;;  %v1141_v25 = vpop.f32.mrb[16].mxu1 }
 0x2b2   : > { %v847_v26 = vadd.f32 %v1141_v25, %v1017_v12  ;;  %v838_v27 = vpop.f32.mrb[17].mxu1 }
 0x2b3   : > { %v839_v28 = vadd.f32 %v1017_v12, %v838_v27  ;;  %v1142_v29 = vpop.f32.mrb[18].mxu1 }
 0x2b4   : > { %v891_v30 = vmax.f32 %v847_v26, 0.0  ;;  %v850_v31 = vadd.f32 %v1142_v29, %v1017_v12  ;;  %v841_v32 = vpop.f32.mrb[19].mxu1 }
 0x2b5   : > { %v889_v33 = vmax.f32 %v839_v28, 0.0  ;;  %v842_v34 = vadd.f32 %v1017_v12, %v841_v32 }
 0x2b6   : > { %907 = vst [vmem:[%s1379_s9 + $0x30] sm:$0xff] %v891_v30  ;;  %v892_v35 = vmax.f32 %v850_v31, 0.0 }
 0x2b7   : > { %905 = vst [vmem:[%s1379_s9 + $0x20] sm:$0xff] %v889_v33  ;;  %v890_v36 = vmax.f32 %v842_v34, 0.0 }
 0x2b8   : > { %908 = vst [vmem:[%s1379_s9 + $0x38] sm:$0xff] %v892_v35 }
 0x2b9   : > { %906 = vst [vmem:[%s1379_s9 + $0x28] sm:$0xff] %v890_v36  ;;  %v1145_v37 = vpop.f32.mrb[20].mxu1 }
 0x2ba   : > { %v863_v38 = vadd.f32 %v1145_v37, %v1017_v12  ;;  %v854_v39 = vpop.f32.mrb[21].mxu1 }
 0x2bb   : > { %v855_v40 = vadd.f32 %v1017_v12, %v854_v39  ;;  %v1146_v41 = vpop.f32.mrb[22].mxu1 }
 0x2bc   : > { %v895_v42 = vmax.f32 %v863_v38, 0.0  ;;  %v866_v43 = vadd.f32 %v1146_v41, %v1017_v12  ;;  %v857_v44 = vpop.f32.mrb[23].mxu1 }
 0x2bd   : > { %v893_v45 = vmax.f32 %v855_v40, 0.0  ;;  %v858_v46 = vadd.f32 %v1017_v12, %v857_v44 }
 0x2be   : > { %911 = vst [vmem:[%s1379_s9 + $0x50] sm:$0xff] %v895_v42  ;;  %v896_v47 = vmax.f32 %v866_v43, 0.0 }
 0x2bf   : > { %909 = vst [vmem:[%s1379_s9 + $0x40] sm:$0xff] %v893_v45  ;;  %v894_v48 = vmax.f32 %v858_v46, 0.0 }
 0x2c0   : > { %912 = vst [vmem:[%s1379_s9 + $0x58] sm:$0xff] %v896_v47 }
 0x2c1   : > { %910 = vst [vmem:[%s1379_s9 + $0x48] sm:$0xff] %v894_v48  ;;  %v1149_v49 = vpop.f32.mrb[24].mxu1 }
 0x2c2   : > { %v879_v50 = vadd.f32 %v1149_v49, %v1017_v12  ;;  %v870_v51 = vpop.f32.mrb[25].mxu1 }
 0x2c3   : > { %v871_v52 = vadd.f32 %v1017_v12, %v870_v51  ;;  %v1150_v53 = vpop.f32.mrb[26].mxu1 }
 0x2c4   : > { %v899_v54 = vmax.f32 %v879_v50, 0.0  ;;  %v882_v55 = vadd.f32 %v1150_v53, %v1017_v12  ;;  %v873_v56 = vpop.f32.mrb[27].mxu1 }
 0x2c5   : > { %v897_v57 = vmax.f32 %v871_v52, 0.0  ;;  %v874_v58 = vadd.f32 %v1017_v12, %v873_v56 }
 0x2c6   : > { %915 = vst [vmem:[%s1379_s9 + $0x70] sm:$0xff] %v899_v54  ;;  %v900_v59 = vmax.f32 %v882_v55, 0.0 }
 0x2c7   : > { %913 = vst [vmem:[%s1379_s9 + $0x60] sm:$0xff] %v897_v57  ;;  %v898_v60 = vmax.f32 %v874_v58, 0.0 }
 0x2c8   : > { %916 = vst [vmem:[%s1379_s9 + $0x78] sm:$0xff] %v900_v59 }
 0x2c9   : > { %914 = vst [vmem:[%s1379_s9 + $0x68] sm:$0xff] %v898_v60 }
 0x2ca PF: > { %s17_s24 = sadd.s32 1, %s1207_s24  }
 0x2cb   : > { %p14_p4 = scmp.ge.s32.totalorder %s17_s24, 4  }
 0x2cd   :  { %16 = sbr.rel (!%p14_p4) target bundleno = 1 (0x1), region = 78 }

// kernel: contact_graspnet_forward.17
= control target key start
LH: loop header
LB: loop body
LE: loop exit
PB: predicated region body
PF: predicated region fallthrough
CT: control target
= control target key end

     0   :  { %s1707_s18 = smov 0   ;;  %s2076_s0 = inlined_call_operand.vmem [shape: bf16[256,128], index: 0, kind: input, shape index: {}]   ;;  %s2077_s1 = inlined_call_operand.vmem [shape: bf16[128,512], index: 1, kind: input, shape index: {}]   ;;  %s2078_s2 = inlined_call_operand.vmem [shape: f32[1,512], index: 2, kind: input, shape index: {}]   ;;  %s2079_s3 = inlined_call_operand.vmem [shape: bf16[512,17], index: 3, kind: input, shape index: {}]   ;;  %s2080_s4 = inlined_call_operand.vmem [shape: f32[1,17], index: 4, kind: input, shape index: {}]   ;;  %s2081_s5 = inlined_call_operand.vmem [shape: f32[256,17], index: 5, kind: output, shape index: {}]  }
   0x1 LB: > { %s1359_s19 = sadd.s32 4294967295, %s1674_s18   ;;  %p1363_p0 = scmp.ge.s32.totalorder %s1674_s18, 1  ;;  %s1674_s18 = sphi %s1707_s18, %s15_s18  }
   0x2   : > { %p188_p1 = scmp.lt.s32.totalorder %s1674_s18, 3 }
   0x4   : > { %p189_p2 = pnand %p1363_p0, %p188_p1 }
   0x5   : > { %v1580_v0 = vld [vmem:[%s2077_s1 + $0x4] ss:$16 sps:$4 sm:$0xff] (!%p189_p2)   ;;  %v1582_v1 = vld [vmem:[%s2077_s1 + $0xc] ss:$16 sps:$4 sm:$0xff] (!%p189_p2)   ;;  %v1676_v2 = vmov (!%p189_p2), 0   ;;  %s1364_s13 = sshll.u32 (!%p189_p2), %s1359_s19, 4 }
   0x6   : > { %192 = sbr.rel (%p189_p2) target bundleno = 539 (0x21b), region = 40  ;;  %539 = vmatprep.mubr.bf16.mxu0 (!%p189_p2), %v1676_v2  ;;  %652 = vmatprep.mubr.bf16.mxu1 (!%p189_p2), %v1676_v2  ;;  %v1584_v3 = vld [vmem:[%s2077_s1] ss:$16 sps:$4 sm:$0xff] (!%p189_p2)   ;;  %v1585_v4 = vld [vmem:[%s2077_s1 + $0x8] ss:$16 sps:$4 sm:$0xff] (!%p189_p2)   ;;  %p217_p3 = scmp.lt.s32.totalorder (!%p189_p2), %s1364_s13, 31 }
   0x7   : > { %507 = vmatprep.subr.bf16.mxu0 (!%p189_p2), %v1580_v0  ;;  %620 = vmatprep.subr.bf16.mxu1 (!%p189_p2), %v1582_v1  ;;  %v1586_v5 = vld [vmem:[%s2077_s1 + $0x24] ss:$16 sps:$4 sm:$0xff] (!%p189_p2)   ;;  %v1588_v6 = vld [vmem:[%s2077_s1 + $0x2c] ss:$16 sps:$4 sm:$0xff] (!%p189_p2)   ;;  %v1590_v7 = vld [vmem:[%s2077_s1 + $0x20] ss:$16 sps:$4 sm:$0xff] (!%p189_p2)  }
   0x8   : > { %508 = vmatpush1.bf16.msra.mxu0 (!%p189_p2), %v1584_v3  ;;  %621 = vmatpush1.bf16.msra.mxu1 (!%p189_p2), %v1585_v4  ;;  %v1591_v8 = vld [vmem:[%s2077_s1 + $0x28] ss:$16 sps:$4 sm:$0xff] (!%p189_p2)   ;;  %v1592_v9 = vld [vmem:[%s2077_s1 + $0x44] ss:$16 sps:$4 sm:$0xff] (!%p189_p2)   ;;  %v1594_v10 = vld [vmem:[%s2077_s1 + $0x4c] ss:$16 sps:$4 sm:$0xff] (!%p189_p2)  }
   0x9   : > { %509 = vmatprep.subr.bf16.mxu0 (!%p189_p2), %v1586_v5  ;;  %622 = vmatprep.subr.bf16.mxu1 (!%p189_p2), %v1588_v6  ;;  %v1596_v11 = vld [vmem:[%s2077_s1 + $0x40] ss:$16 sps:$4 sm:$0xff] (!%p189_p2)   ;;  %v1597_v12 = vld [vmem:[%s2077_s1 + $0x48] ss:$16 sps:$4 sm:$0xff] (!%p189_p2)   ;;  %v1598_v13 = vld [vmem:[%s2077_s1 + $0x64] ss:$16 sps:$4 sm:$0xff] (!%p189_p2)  }
   0xa   : > { %v1600_v14 = vld [vmem:[%s2077_s1 + $0x6c] ss:$16 sps:$4 sm:$0xff] (!%p189_p2)   ;;  %v1602_v15 = vld [vmem:[%s2077_s1 + $0x60] ss:$16 sps:$4 sm:$0xff] (!%p189_p2)   ;;  %v1603_v16 = vld [vmem:[%s2077_s1 + $0x68] ss:$16 sps:$4 sm:$0xff] (!%p189_p2)  }
   0xb   : > { %v1604_v17 = vld [vmem:[%s2077_s1 + $0x84] ss:$16 sps:$4 sm:$0xff] (!%p189_p2)   ;;  %v1606_v18 = vld [vmem:[%s2077_s1 + $0x8c] ss:$16 sps:$4 sm:$0xff] (!%p189_p2)   ;;  %v1608_v19 = vld [vmem:[%s2077_s1 + $0x80] ss:$16 sps:$4 sm:$0xff] (!%p189_p2)  }
   0xc   : > { %510 = vmatpush1.bf16.msra.mxu0 (!%p189_p2), %v1590_v7  ;;  %623 = vmatpush1.bf16.msra.mxu1 (!%p189_p2), %v1591_v8  ;;  %v1609_v20 = vld [vmem:[%s2077_s1 + $0x88] ss:$16 sps:$4 sm:$0xff] (!%p189_p2)   ;;  %v1610_v21 = vld [vmem:[%s2077_s1 + $0xa4] ss:$16 sps:$4 sm:$0xff] (!%p189_p2)   ;;  %v1612_v22 = vld [vmem:[%s2077_s1 + $0xac] ss:$16 sps:$4 sm:$0xff] (!%p189_p2)  }
   0xd   : > { %511 = vmatprep.subr.bf16.mxu0 %v1592_v9  ;;  %624 = vmatprep.subr.bf16.mxu1 %v1594_v10  ;;  %s2083_s13 = smov (!%p217_p3, %s1364_s13), 31  ;;  %v1614_v23 = vld [vmem:[%s2077_s1 + $0xa0] ss:$16 sps:$4 sm:$0xff]   ;;  %v1615_v24 = vld [vmem:[%s2077_s1 + $0xa8] ss:$16 sps:$4 sm:$0xff]   ;;  %vm1286_vm0 = vcmask 138240  }
   0xe   : > { %s1365_s17 = sshll.u32 %s2083_s13, 2  ;;  %v1616_v25 = vld [vmem:[%s2077_s1 + $0xc4] ss:$16 sps:$4 sm:$0xff]   ;;  %v1618_v26 = vld [vmem:[%s2077_s1 + $0xcc] ss:$16 sps:$4 sm:$0xff]   ;;  %s1367_s21 = sshll.u32 %s2083_s13, 3 }
   0xf   : > { %s1798_s27 = scalar_lea.vmem %s2076_s0, %s1365_s17  ;;  %v1620_v27 = vld [vmem:[%s2077_s1 + $0xc0] ss:$16 sps:$4 sm:$0xff]   ;;  %v1621_v28 = vld [vmem:[%s2077_s1 + $0xc8] ss:$16 sps:$4 sm:$0xff]   ;;  %v1622_v29 = vld [vmem:[%s2077_s1 + $0xe4] ss:$16 sps:$4 sm:$0xff]   ;;  %s2024_s19 = scalar_lea.vmem %s2081_s5, %s1367_s21 }
  0x10   : > { %512 = vmatpush1.bf16.msra.mxu0 %v1596_v11  ;;  %625 = vmatpush1.bf16.msra.mxu1 %v1597_v12  ;;  %v1624_v30 = vld [vmem:[%s2077_s1 + $0xec] ss:$16 sps:$4 sm:$0xff]   ;;  %v1626_v31 = vld [vmem:[%s2077_s1 + $0xe0] ss:$16 sps:$4 sm:$0xff]   ;;  %v1627_v32 = vld [vmem:[%s2077_s1 + $0xe8] ss:$16 sps:$4 sm:$0xff]  }
  0x11   : > { %513 = vmatprep.subr.bf16.mxu0 %v1598_v13  ;;  %626 = vmatprep.subr.bf16.mxu1 %v1600_v14  ;;  %v1628_v33 = vld [vmem:[%s1798_s27] sm:$0xff]   ;;  %v1640_v38 = vld [vmem:[%s2079_s3 + $0x48] sm:$0xff]   ;;  %v1644_v43 = vld [vmem:[%s2079_s3 + $0x50] sm:$0xff]  }
  0x12   : > { %v1636_v34 = vld [vmem:[%s2079_s3 + $0x40] sm:$0xff]   ;;  %v1641_v39 = vld [vmem:[%s2079_s3 + $0x8] sm:$0xff]   ;;  %v1645_v44 = vld [vmem:[%s2079_s3 + $0x10] sm:$0xff]  }
  0x13   : > { %v1637_v35 = vld [vmem:[%s2079_s3] sm:$0xff]   ;;  %v1642_v40 = vld [vmem:[%s2079_s3 + $0xc8] sm:$0xff]   ;;  %v1646_v45 = vld [vmem:[%s2079_s3 + $0xd0] sm:$0xff]  }
  0x14   : > { %514 = vmatpush1.bf16.msra.mxu0 %v1602_v15  ;;  %627 = vmatpush1.bf16.msra.mxu1 %v1603_v16  ;;  %v1638_v36 = vld [vmem:[%s2079_s3 + $0xc0] sm:$0xff]   ;;  %v1629_v41 = vld [vmem:[%s1798_s27 + $0x8] sm:$0xff]   ;;  %v1647_v46 = vld [vmem:[%s2079_s3 + $0x90] sm:$0xff]  }
  0x15   : > { %515 = vmatprep.subr.bf16.mxu0 %v1604_v17  ;;  %628 = vmatprep.subr.bf16.mxu1 %v1606_v18  ;;  %v1639_v37 = vld [vmem:[%s2079_s3 + $0x80] sm:$0xff]   ;;  %v1643_v42 = vld [vmem:[%s2079_s3 + $0x88] sm:$0xff]   ;;  %v1648_v47 = vld [vmem:[%s2079_s3 + $0x58] sm:$0xff]  }
  0x16   : > { %v1649_v48 = vld [vmem:[%s2079_s3 + $0x18] sm:$0xff]   ;;  %v1630_v50 = vld [vmem:[%s1798_s27 + $0x10] sm:$0xff]   ;;  %v1652_v52 = vld [vmem:[%s2079_s3 + $0x60] sm:$0xff]  }
  0x17   : > { %v1650_v49 = vld [vmem:[%s2079_s3 + $0xd8] sm:$0xff]   ;;  %v1653_v53 = vld [vmem:[%s2079_s3 + $0x20] sm:$0xff]   ;;  %v1656_v56 = vld [vmem:[%s2079_s3 + $0x68] sm:$0xff]  }
  0x18   : > { %516 = vmatpush1.bf16.msra.mxu0 %v1608_v19  ;;  %629 = vmatpush1.bf16.msra.mxu1 %v1609_v20  ;;  %v1651_v51 = vld [vmem:[%s2079_s3 + $0x98] sm:$0xff]   ;;  %v1654_v54 = vld [vmem:[%s2079_s3 + $0xe0] sm:$0xff]   ;;  %v1657_v57 = vld [vmem:[%s2079_s3 + $0x28] sm:$0xff]  }
  0x19   : > { %517 = vmatprep.subr.bf16.mxu0 %v1610_v21  ;;  %630 = vmatprep.subr.bf16.mxu1 %v1612_v22  ;;  %v1655_v55 = vld [vmem:[%s2079_s3 + $0xa0] sm:$0xff]   ;;  %v1658_v58 = vld [vmem:[%s2079_s3 + $0xe8] sm:$0xff]   ;;  %v1660_v60 = vld [vmem:[%s2079_s3 + $0x70] sm:$0xff]  }
  0x1a   : > { %v1659_v59 = vld [vmem:[%s2079_s3 + $0xa8] sm:$0xff]   ;;  %v1631_v61 = vld [vmem:[%s1798_s27 + $0x18] sm:$0xff]   ;;  %v1662_v62 = vld [vmem:[%s2079_s3 + $0xf0] sm:$0xff]  }
  0x1b   : > { %v1661_v63 = vld [vmem:[%s2079_s3 + $0x30] sm:$0xff]   ;;  %v1632_v1 = vld [vmem:[%s1798_s27 + $0x20] sm:$0xff]   ;;  %v1633_v3 = vld [vmem:[%s1798_s27 + $0x28] sm:$0xff]  }
  0x1c   : > { %518 = vmatpush1.bf16.msra.mxu0 %v1614_v23  ;;  %631 = vmatpush1.bf16.msra.mxu1 %v1615_v24  ;;  %v1663_v0 = vld [vmem:[%s2079_s3 + $0xb0] sm:$0xff]   ;;  %v1635_v5 = vld [vmem:[%s1798_s27 + $0x38] sm:$0xff]   ;;  %v277_v13 = vld [vmem:[%s2078_s2] sm:$0xf] }
  0x1d   : > { %519 = vmatprep.subr.bf16.mxu0 %v1616_v25  ;;  %632 = vmatprep.subr.bf16.mxu1 %v1618_v26  ;;  %v1634_v4 = vld [vmem:[%s1798_s27 + $0x30] sm:$0xff]   ;;  %v1664_v6 = vld [vmem:[%s2079_s3 + $0x78] sm:$0xff]  }
  0x1e   : > { %v1666_v7 = vld [vmem:[%s2079_s3 + $0xf8] sm:$0xff]  }
  0x1f   : > { %v1665_v8 = vld [vmem:[%s2079_s3 + $0x38] sm:$0xff]  }
  0x20   : > { %520 = vmatpush1.bf16.msra.mxu0 %v1620_v27  ;;  %633 = vmatpush1.bf16.msra.mxu1 %v1621_v28  ;;  %v1667_v9 = vld [vmem:[%s2079_s3 + $0xb8] sm:$0xff]  }
  0x21   : > { %521 = vmatprep.subr.bf16.mxu0 %v1622_v29  ;;  %634 = vmatprep.subr.bf16.mxu1 %v1624_v30 }
  0x24   : > { %522 = vmatpush1.bf16.msra.mxu0 %v1626_v31  ;;  %635 = vmatpush1.bf16.msra.mxu1 %v1627_v32 }
  0x25   : > { %1443 = vmatprep.subr.bf16.mxu0 %v1636_v34  ;;  %1507 = vmatprep.subr.bf16.mxu1 %v1638_v36 }
  0x27   : > { %540 = vmatmul.mubr.bf16.vlgmr.msra.gmra.mrb[0].mxu0 %v1628_v33  ;;  %653 = vmatmul.mubr.bf16.vlgmr.msra.gmra.mrb[0].mxu1 %v1628_v33 }
  0x28   : > { %549 = vmatprep.mubr.bf16.mxu0 %v1676_v2  ;;  %662 = vmatprep.mubr.bf16.mxu1 %v1676_v2 }
  0x29   : > { %1444 = vmatpush3.bf16.msra.mxu0 %v1637_v35  ;;  %1508 = vmatpush3.bf16.msra.mxu1 %v1639_v37 }
  0x2a   : > { %1445 = vmatprep.subr.bf16.mxu0 %v1640_v38  ;;  %1509 = vmatprep.subr.bf16.mxu1 %v1642_v40 }
  0x2d   : > { %1446 = vmatpush3.bf16.msra.mxu0 %v1641_v39  ;;  %1510 = vmatpush3.bf16.msra.mxu1 %v1643_v42 }
  0x2e   : > { %1447 = vmatprep.subr.bf16.mxu0 %v1644_v43  ;;  %1511 = vmatprep.subr.bf16.mxu1 %v1646_v45 }
  0x2f   : > { %550 = vmatmul.mubr.bf16.gmra.mrb[4].mxu0 %v1629_v41  ;;  %663 = vmatmul.mubr.bf16.gmra.mrb[4].mxu1 %v1629_v41 }
  0x30   : > { %559 = vmatprep.mubr.bf16.mxu0 %v1676_v2  ;;  %672 = vmatprep.mubr.bf16.mxu1 %v1676_v2 }
  0x31   : > { %1448 = vmatpush3.bf16.msra.mxu0 %v1645_v44  ;;  %1512 = vmatpush3.bf16.msra.mxu1 %v1647_v46 }
  0x32   : > { %1449 = vmatprep.subr.bf16.mxu0 %v1648_v47  ;;  %1513 = vmatprep.subr.bf16.mxu1 %v1650_v49 }
  0x35   : > { %1450 = vmatpush3.bf16.msra.mxu0 %v1649_v48  ;;  %1514 = vmatpush3.bf16.msra.mxu1 %v1651_v51 }
  0x36   : > { %1451 = vmatprep.subr.bf16.mxu0 %v1652_v52  ;;  %1515 = vmatprep.subr.bf16.mxu1 %v1654_v54 }
  0x37   : > { %560 = vmatmul.mubr.bf16.gmra.mrb[8].mxu0 %v1630_v50  ;;  %673 = vmatmul.mubr.bf16.gmra.mrb[8].mxu1 %v1630_v50 }
  0x38   : > { %569 = vmatprep.mubr.bf16.mxu0 %v1676_v2  ;;  %682 = vmatprep.mubr.bf16.mxu1 %v1676_v2 }
  0x39   : > { %1452 = vmatpush3.bf16.msra.mxu0 %v1653_v53  ;;  %1516 = vmatpush3.bf16.msra.mxu1 %v1655_v55 }
  0x3a   : > { %1453 = vmatprep.subr.bf16.mxu0 %v1656_v56  ;;  %1517 = vmatprep.subr.bf16.mxu1 %v1658_v58 }
  0x3d   : > { %1454 = vmatpush3.bf16.msra.mxu0 %v1657_v57  ;;  %1518 = vmatpush3.bf16.msra.mxu1 %v1659_v59 }
  0x3e   : > { %1455 = vmatprep.subr.bf16.mxu0 %v1660_v60  ;;  %1519 = vmatprep.subr.bf16.mxu1 %v1662_v62 }
  0x3f   : > { %570 = vmatmul.mubr.bf16.gmra.mrb[12].mxu0 %v1631_v61  ;;  %683 = vmatmul.mubr.bf16.gmra.mrb[12].mxu1 %v1631_v61 }
  0x40   : > { %579 = vmatprep.mubr.bf16.mxu0 %v1676_v2  ;;  %692 = vmatprep.mubr.bf16.mxu1 %v1676_v2 }
  0x41   : > { %1456 = vmatpush3.bf16.msra.mxu0 %v1661_v63  ;;  %1520 = vmatpush3.bf16.msra.mxu1 %v1663_v0 }
  0x42   : > { %1457 = vmatprep.subr.bf16.mxu0 %v1664_v6  ;;  %1521 = vmatprep.subr.bf16.mxu1 %v1666_v7 }
  0x45   : > { %1458 = vmatpush3.bf16.msra.mxu0 %v1665_v8  ;;  %1522 = vmatpush3.bf16.msra.mxu1 %v1667_v9 }
  0x47   : > { %580 = vmatmul.mubr.bf16.gmra.mrb[16].mxu0 %v1632_v1  ;;  %693 = vmatmul.mubr.bf16.gmra.mrb[16].mxu1 %v1632_v1 }
  0x48   : > { %589 = vmatprep.mubr.bf16.mxu0 %v1676_v2  ;;  %702 = vmatprep.mubr.bf16.mxu1 %v1676_v2 }
  0x4f   : > { %590 = vmatmul.mubr.bf16.gmra.mrb[20].mxu0 %v1633_v3  ;;  %703 = vmatmul.mubr.bf16.gmra.mrb[20].mxu1 %v1633_v3 }
  0x50   : > { %599 = vmatprep.mubr.bf16.mxu0 %v1676_v2  ;;  %712 = vmatprep.mubr.bf16.mxu1 %v1676_v2 }
  0x57   : > { %600 = vmatmul.mubr.bf16.gmra.mrb[24].mxu0 %v1634_v4  ;;  %713 = vmatmul.mubr.bf16.gmra.mrb[24].mxu1 %v1634_v4 }
  0x58   : > { %609 = vmatprep.mubr.bf16.mxu0 %v1676_v2  ;;  %722 = vmatprep.mubr.bf16.mxu1 %v1676_v2  ;;  %v279_v2 = vlaneseq }
  0x5a   : > { %v280_v10 = vshrl.u32 %v279_v2, 7 }
  0x5c   : > { %v281_v11 = vsub.s32 0, %v280_v10  ;;  %v289_v12 = vsub.s32 2, %v280_v10  ;;  %v285_v14 = vsub.s32 1, %v280_v10  ;;  %v293_v15 = vsub.s32 3, %v280_v10 }
  0x5e   : > { %v1942_v16 = vrot.slane %v277_v13, %v281_v11  ;;  %v1944_v17 = vrot.slane %v277_v13, %v289_v12  ;;  %v1946_v18 = vrot.slane %v277_v13, %v285_v14  ;;  %v1948_v19 = vrot.slane %v277_v13, %v293_v15 }
  0x5f   : > { %610 = vmatmul.mubr.bf16.gmra.mrb[28].mxu0 %v1635_v5  ;;  %723 = vmatmul.mubr.bf16.gmra.mrb[28].mxu1 %v1635_v5 }
  0xfa   : > { %v541_v20 = vpop.f32.mrb[0].mxu0  ;;  %v654_v21 = vpop.f32.mrb[0].mxu1 }
  0xfb   : > { %v542_v22 = vadd.f32 %v541_v20, %v1942_v16  ;;  %v655_v23 = vadd.f32 %v654_v21, %v1944_v17  ;;  %v543_v24 = vpop.f32.mrb[1].mxu0  ;;  %v656_v25 = vpop.f32.mrb[1].mxu1 }
  0xfc   : > { %v544_v26 = vadd.f32 %v543_v24, %v1946_v18  ;;  %v657_v27 = vadd.f32 %v656_v25, %v1948_v19  ;;  %v545_v28 = vpop.f32.mrb[2].mxu0  ;;  %v658_v29 = vpop.f32.mrb[2].mxu1 }
  0xfd   : > { %v735_v30 = vmax.f32 %v655_v23, 0.0  ;;  %v546_v31 = vadd.f32 %v545_v28, %v1942_v16  ;;  %v659_v32 = vadd.f32 %v658_v29, %v1944_v17  ;;  %v547_v33 = vpop.f32.mrb[3].mxu0  ;;  %v660_v34 = vpop.f32.mrb[3].mxu1  ;;  %v733_v38 = vmax.f32 %v542_v22, 0.0 }
  0xfe   : > { %v736_v35 = vmax.f32 %v657_v27, 0.0  ;;  %v548_v36 = vadd.f32 %v547_v33, %v1946_v18  ;;  %v661_v37 = vadd.f32 %v660_v34, %v1948_v19  ;;  %v734_v41 = vmax.f32 %v544_v26, 0.0 }
  0xff   : > { %v737_v39 = vmax.f32 %v546_v31, 0.0  ;;  %v739_v40 = vmax.f32 %v659_v32, 0.0 }
 0x100   : > { %v738_v42 = vmax.f32 %v548_v36, 0.0  ;;  %v740_v43 = vmax.f32 %v661_v37, 0.0 }
 0x101   : > { %v797_v44 = vpack.c.bf16 %v737_v39, %v733_v38  ;;  %v799_v45 = vpack.c.bf16 %v739_v40, %v735_v30 }
 0x102   : > { %v798_v46 = vpack.c.bf16 %v738_v42, %v734_v41  ;;  %v800_v47 = vpack.c.bf16 %v740_v43, %v736_v35  ;;  %v551_v48 = vpop.f32.mrb[4].mxu0  ;;  %v664_v49 = vpop.f32.mrb[4].mxu1 }
 0x103   : > { %v552_v50 = vadd.f32 %v551_v48, %v1942_v16  ;;  %v665_v51 = vadd.f32 %v664_v49, %v1944_v17  ;;  %v553_v52 = vpop.f32.mrb[5].mxu0  ;;  %v666_v53 = vpop.f32.mrb[5].mxu1 }
 0x104   : > { %v554_v54 = vadd.f32 %v553_v52, %v1946_v18  ;;  %v667_v55 = vadd.f32 %v666_v53, %v1948_v19  ;;  %v555_v56 = vpop.f32.mrb[6].mxu0  ;;  %v668_v57 = vpop.f32.mrb[6].mxu1  ;;  %1124 = vmatprep.mubr.bf16.mxu0 %v798_v46  ;;  %1221 = vmatprep.mubr.bf16.mxu1 %v800_v47 }
 0x105   : > { %v743_v58 = vmax.f32 %v665_v51, 0.0  ;;  %v556_v59 = vadd.f32 %v555_v56, %v1942_v16  ;;  %v669_v60 = vadd.f32 %v668_v57, %v1944_v17  ;;  %v557_v61 = vpop.f32.mrb[7].mxu0  ;;  %v670_v62 = vpop.f32.mrb[7].mxu1  ;;  %1125 = vmatmul.mubr.bf16.vlgmr.msra.gmra.mrb[32].mxu0 %v797_v44  ;;  %1222 = vmatmul.mubr.bf16.vlgmr.msra.gmra.mrb[32].mxu1 %v799_v45  ;;  %v741_v3 = vmax.f32 %v552_v50, 0.0 }
 0x106   : > { %v744_v63 = vmax.f32 %v667_v55, 0.0  ;;  %v558_v0 = vadd.f32 %v557_v61, %v1946_v18  ;;  %v671_v1 = vadd.f32 %v670_v62, %v1948_v19  ;;  %v742_v6 = vmax.f32 %v554_v54, 0.0 }
 0x107   : > { %v745_v4 = vmax.f32 %v556_v59, 0.0  ;;  %v747_v5 = vmax.f32 %v669_v60, 0.0 }
 0x108   : > { %v746_v7 = vmax.f32 %v558_v0, 0.0  ;;  %v748_v8 = vmax.f32 %v671_v1, 0.0 }
 0x109   : > { %v801_v9 = vpack.c.bf16 %v745_v4, %v741_v3  ;;  %v803_v2 = vpack.c.bf16 %v747_v5, %v743_v58 }
 0x10a   : > { %v802_v10 = vpack.c.bf16 %v746_v7, %v742_v6  ;;  %v804_v11 = vpack.c.bf16 %v748_v8, %v744_v63  ;;  %v561_v12 = vpop.f32.mrb[8].mxu0  ;;  %v674_v13 = vpop.f32.mrb[8].mxu1 }
 0x10b   : > { %v562_v14 = vadd.f32 %v561_v12, %v1942_v16  ;;  %v675_v15 = vadd.f32 %v674_v13, %v1944_v17  ;;  %v563_v20 = vpop.f32.mrb[9].mxu0  ;;  %v676_v21 = vpop.f32.mrb[9].mxu1 }
 0x10c   : > { %v564_v22 = vadd.f32 %v563_v20, %v1946_v18  ;;  %v677_v23 = vadd.f32 %v676_v21, %v1948_v19  ;;  %v565_v24 = vpop.f32.mrb[10].mxu0  ;;  %v678_v25 = vpop.f32.mrb[10].mxu1  ;;  %1132 = vmatprep.mubr.bf16.mxu0 %v802_v10  ;;  %1229 = vmatprep.mubr.bf16.mxu1 %v804_v11 }
 0x10d   : > { %v751_v26 = vmax.f32 %v675_v15, 0.0  ;;  %v566_v27 = vadd.f32 %v565_v24, %v1942_v16  ;;  %v679_v28 = vadd.f32 %v678_v25, %v1944_v17  ;;  %v567_v29 = vpop.f32.mrb[11].mxu0  ;;  %v680_v30 = vpop.f32.mrb[11].mxu1  ;;  %1133 = vmatmul.mubr.bf16.gmra.mrb[36].mxu0 %v801_v9  ;;  %1230 = vmatmul.mubr.bf16.gmra.mrb[36].mxu1 %v803_v2  ;;  %v749_v34 = vmax.f32 %v562_v14, 0.0 }
 0x10e   : > { %v752_v31 = vmax.f32 %v677_v23, 0.0  ;;  %v568_v32 = vadd.f32 %v567_v29, %v1946_v18  ;;  %v681_v33 = vadd.f32 %v680_v30, %v1948_v19  ;;  %v750_v37 = vmax.f32 %v564_v22, 0.0 }
 0x10f   : > { %v753_v35 = vmax.f32 %v566_v27, 0.0  ;;  %v755_v36 = vmax.f32 %v679_v28, 0.0 }
 0x110   : > { %v754_v38 = vmax.f32 %v568_v32, 0.0  ;;  %v756_v39 = vmax.f32 %v681_v33, 0.0 }
 0x111   : > { %v805_v40 = vpack.c.bf16 %v753_v35, %v749_v34  ;;  %v807_v41 = vpack.c.bf16 %v755_v36, %v751_v26 }
 0x112   : > { %v806_v42 = vpack.c.bf16 %v754_v38, %v750_v37  ;;  %v808_v43 = vpack.c.bf16 %v756_v39, %v752_v31  ;;  %v571_v44 = vpop.f32.mrb[12].mxu0  ;;  %v684_v45 = vpop.f32.mrb[12].mxu1 }
 0x113   : > { %v572_v46 = vadd.f32 %v571_v44, %v1942_v16  ;;  %v685_v47 = vadd.f32 %v684_v45, %v1944_v17  ;;  %v573_v48 = vpop.f32.mrb[13].mxu0  ;;  %v686_v49 = vpop.f32.mrb[13].mxu1 }
 0x114   : > { %v574_v50 = vadd.f32 %v573_v48, %v1946_v18  ;;  %v687_v51 = vadd.f32 %v686_v49, %v1948_v19  ;;  %v575_v52 = vpop.f32.mrb[14].mxu0  ;;  %v688_v53 = vpop.f32.mrb[14].mxu1  ;;  %1140 = vmatprep.mubr.bf16.mxu0 %v806_v42  ;;  %1237 = vmatprep.mubr.bf16.mxu1 %v808_v43 }
 0x115   : > { %v759_v54 = vmax.f32 %v685_v47, 0.0  ;;  %v576_v55 = vadd.f32 %v575_v52, %v1942_v16  ;;  %v689_v56 = vadd.f32 %v688_v53, %v1944_v17  ;;  %v577_v57 = vpop.f32.mrb[15].mxu0  ;;  %v690_v58 = vpop.f32.mrb[15].mxu1  ;;  %1141 = vmatmul.mubr.bf16.gmra.mrb[40].mxu0 %v805_v40  ;;  %1238 = vmatmul.mubr.bf16.gmra.mrb[40].mxu1 %v807_v41  ;;  %v757_v62 = vmax.f32 %v572_v46, 0.0 }
 0x116   : > { %v760_v59 = vmax.f32 %v687_v51, 0.0  ;;  %v578_v60 = vadd.f32 %v577_v57, %v1946_v18  ;;  %v691_v61 = vadd.f32 %v690_v58, %v1948_v19  ;;  %v758_v1 = vmax.f32 %v574_v50, 0.0 }
 0x117   : > { %v761_v63 = vmax.f32 %v576_v55, 0.0  ;;  %v763_v0 = vmax.f32 %v689_v56, 0.0 }
 0x118   : > { %v762_v3 = vmax.f32 %v578_v60, 0.0  ;;  %v764_v4 = vmax.f32 %v691_v61, 0.0 }
 0x119   : > { %v809_v5 = vpack.c.bf16 %v761_v63, %v757_v62  ;;  %v811_v6 = vpack.c.bf16 %v763_v0, %v759_v54 }
 0x11a   : > { %v810_v7 = vpack.c.bf16 %v762_v3, %v758_v1  ;;  %v812_v8 = vpack.c.bf16 %v764_v4, %v760_v59  ;;  %v581_v9 = vpop.f32.mrb[16].mxu0  ;;  %v694_v2 = vpop.f32.mrb[16].mxu1 }
 0x11b   : > { %v582_v10 = vadd.f32 %v581_v9, %v1942_v16  ;;  %v695_v11 = vadd.f32 %v694_v2, %v1944_v17  ;;  %v583_v12 = vpop.f32.mrb[17].mxu0  ;;  %v696_v13 = vpop.f32.mrb[17].mxu1 }
 0x11c   : > { %v584_v14 = vadd.f32 %v583_v12, %v1946_v18  ;;  %v697_v15 = vadd.f32 %v696_v13, %v1948_v19  ;;  %v585_v20 = vpop.f32.mrb[18].mxu0  ;;  %v698_v21 = vpop.f32.mrb[18].mxu1  ;;  %1148 = vmatprep.mubr.bf16.mxu0 %v810_v7  ;;  %1245 = vmatprep.mubr.bf16.mxu1 %v812_v8 }
 0x11d   : > { %v767_v22 = vmax.f32 %v695_v11, 0.0  ;;  %v586_v23 = vadd.f32 %v585_v20, %v1942_v16  ;;  %v699_v24 = vadd.f32 %v698_v21, %v1944_v17  ;;  %v587_v25 = vpop.f32.mrb[19].mxu0  ;;  %v700_v26 = vpop.f32.mrb[19].mxu1  ;;  %1149 = vmatmul.mubr.bf16.gmra.mrb[44].mxu0 %v809_v5  ;;  %1246 = vmatmul.mubr.bf16.gmra.mrb[44].mxu1 %v811_v6  ;;  %v765_v30 = vmax.f32 %v582_v10, 0.0 }
 0x11e   : > { %v768_v27 = vmax.f32 %v697_v15, 0.0  ;;  %v588_v28 = vadd.f32 %v587_v25, %v1946_v18  ;;  %v701_v29 = vadd.f32 %v700_v26, %v1948_v19  ;;  %v766_v33 = vmax.f32 %v584_v14, 0.0 }
 0x11f   : > { %v769_v31 = vmax.f32 %v586_v23, 0.0  ;;  %v771_v32 = vmax.f32 %v699_v24, 0.0 }
 0x120   : > { %v770_v34 = vmax.f32 %v588_v28, 0.0  ;;  %v772_v35 = vmax.f32 %v701_v29, 0.0 }
 0x121   : > { %v813_v36 = vpack.c.bf16 %v769_v31, %v765_v30  ;;  %v815_v37 = vpack.c.bf16 %v771_v32, %v767_v22 }
 0x122   : > { %v814_v38 = vpack.c.bf16 %v770_v34, %v766_v33  ;;  %v816_v39 = vpack.c.bf16 %v772_v35, %v768_v27  ;;  %v591_v40 = vpop.f32.mrb[20].mxu0  ;;  %v704_v41 = vpop.f32.mrb[20].mxu1 }
 0x123   : > { %v592_v42 = vadd.f32 %v591_v40, %v1942_v16  ;;  %v705_v43 = vadd.f32 %v704_v41, %v1944_v17  ;;  %v593_v44 = vpop.f32.mrb[21].mxu0  ;;  %v706_v45 = vpop.f32.mrb[21].mxu1 }
 0x124   : > { %v594_v46 = vadd.f32 %v593_v44, %v1946_v18  ;;  %v707_v47 = vadd.f32 %v706_v45, %v1948_v19  ;;  %v595_v48 = vpop.f32.mrb[22].mxu0  ;;  %v708_v49 = vpop.f32.mrb[22].mxu1  ;;  %1156 = vmatprep.mubr.bf16.mxu0 %v814_v38  ;;  %1253 = vmatprep.mubr.bf16.mxu1 %v816_v39 }
 0x125   : > { %v775_v50 = vmax.f32 %v705_v43, 0.0  ;;  %v596_v51 = vadd.f32 %v595_v48, %v1942_v16  ;;  %v709_v52 = vadd.f32 %v708_v49, %v1944_v17  ;;  %v597_v53 = vpop.f32.mrb[23].mxu0  ;;  %v710_v54 = vpop.f32.mrb[23].mxu1  ;;  %1157 = vmatmul.mubr.bf16.gmra.mrb[48].mxu0 %v813_v36  ;;  %1254 = vmatmul.mubr.bf16.gmra.mrb[48].mxu1 %v815_v37  ;;  %v773_v58 = vmax.f32 %v592_v42, 0.0 }
 0x126   : > { %v776_v55 = vmax.f32 %v707_v47, 0.0  ;;  %v598_v56 = vadd.f32 %v597_v53, %v1946_v18  ;;  %v711_v57 = vadd.f32 %v710_v54, %v1948_v19  ;;  %v774_v61 = vmax.f32 %v594_v46, 0.0 }
 0x127   : > { %v777_v59 = vmax.f32 %v596_v51, 0.0  ;;  %v779_v60 = vmax.f32 %v709_v52, 0.0 }
 0x128   : > { %v778_v62 = vmax.f32 %v598_v56, 0.0  ;;  %v780_v63 = vmax.f32 %v711_v57, 0.0 }
 0x129   : > { %v817_v0 = vpack.c.bf16 %v777_v59, %v773_v58  ;;  %v819_v1 = vpack.c.bf16 %v779_v60, %v775_v50 }
 0x12a   : > { %v818_v3 = vpack.c.bf16 %v778_v62, %v774_v61  ;;  %v820_v4 = vpack.c.bf16 %v780_v63, %v776_v55  ;;  %v601_v5 = vpop.f32.mrb[24].mxu0  ;;  %v714_v6 = vpop.f32.mrb[24].mxu1 }
 0x12b   : > { %v602_v7 = vadd.f32 %v601_v5, %v1942_v16  ;;  %v715_v8 = vadd.f32 %v714_v6, %v1944_v17  ;;  %v603_v9 = vpop.f32.mrb[25].mxu0  ;;  %v716_v2 = vpop.f32.mrb[25].mxu1 }
 0x12c   : > { %v604_v10 = vadd.f32 %v603_v9, %v1946_v18  ;;  %v717_v11 = vadd.f32 %v716_v2, %v1948_v19  ;;  %v605_v12 = vpop.f32.mrb[26].mxu0  ;;  %v718_v13 = vpop.f32.mrb[26].mxu1  ;;  %1164 = vmatprep.mubr.bf16.mxu0 %v818_v3  ;;  %1261 = vmatprep.mubr.bf16.mxu1 %v820_v4 }
 0x12d   : > { %v783_v14 = vmax.f32 %v715_v8, 0.0  ;;  %v606_v15 = vadd.f32 %v605_v12, %v1942_v16  ;;  %v719_v20 = vadd.f32 %v718_v13, %v1944_v17  ;;  %v607_v21 = vpop.f32.mrb[27].mxu0  ;;  %v720_v22 = vpop.f32.mrb[27].mxu1  ;;  %1165 = vmatmul.mubr.bf16.gmra.mrb[52].mxu0 %v817_v0  ;;  %1262 = vmatmul.mubr.bf16.gmra.mrb[52].mxu1 %v819_v1  ;;  %v781_v26 = vmax.f32 %v602_v7, 0.0 }
 0x12e   : > { %v784_v23 = vmax.f32 %v717_v11, 0.0  ;;  %v608_v24 = vadd.f32 %v607_v21, %v1946_v18  ;;  %v721_v25 = vadd.f32 %v720_v22, %v1948_v19  ;;  %v782_v29 = vmax.f32 %v604_v10, 0.0 }
 0x12f   : > { %v785_v27 = vmax.f32 %v606_v15, 0.0  ;;  %v787_v28 = vmax.f32 %v719_v20, 0.0 }
 0x130   : > { %v786_v30 = vmax.f32 %v608_v24, 0.0  ;;  %v788_v31 = vmax.f32 %v721_v25, 0.0 }
 0x131   : > { %v821_v32 = vpack.c.bf16 %v785_v27, %v781_v26  ;;  %v823_v33 = vpack.c.bf16 %v787_v28, %v783_v14 }
 0x132   : > { %v822_v34 = vpack.c.bf16 %v786_v30, %v782_v29  ;;  %v824_v35 = vpack.c.bf16 %v788_v31, %v784_v23  ;;  %v611_v36 = vpop.f32.mrb[28].mxu0  ;;  %v724_v37 = vpop.f32.mrb[28].mxu1 }
 0x133   : > { %v612_v38 = vadd.f32 %v611_v36, %v1942_v16  ;;  %v725_v39 = vadd.f32 %v724_v37, %v1944_v17  ;;  %v613_v40 = vpop.f32.mrb[29].mxu0  ;;  %v726_v41 = vpop.f32.mrb[29].mxu1 }
 0x134   : > { %v614_v42 = vadd.f32 %v613_v40, %v1946_v18  ;;  %v727_v43 = vadd.f32 %v726_v41, %v1948_v19  ;;  %v615_v44 = vpop.f32.mrb[30].mxu0  ;;  %v728_v45 = vpop.f32.mrb[30].mxu1  ;;  %1172 = vmatprep.mubr.bf16.mxu0 %v822_v34  ;;  %1269 = vmatprep.mubr.bf16.mxu1 %v824_v35 }
 0x135   : > { %v791_v46 = vmax.f32 %v725_v39, 0.0  ;;  %v616_v47 = vadd.f32 %v615_v44, %v1942_v16  ;;  %v729_v48 = vadd.f32 %v728_v45, %v1944_v17  ;;  %v617_v49 = vpop.f32.mrb[31].mxu0  ;;  %v730_v50 = vpop.f32.mrb[31].mxu1  ;;  %1173 = vmatmul.mubr.bf16.gmra.mrb[56].mxu0 %v821_v32  ;;  %1270 = vmatmul.mubr.bf16.gmra.mrb[56].mxu1 %v823_v33  ;;  %v789_v54 = vmax.f32 %v612_v38, 0.0 }
 0x136   : > { %v792_v51 = vmax.f32 %v727_v43, 0.0  ;;  %v618_v52 = vadd.f32 %v617_v49, %v1946_v18  ;;  %v731_v53 = vadd.f32 %v730_v50, %v1948_v19  ;;  %v790_v57 = vmax.f32 %v614_v42, 0.0  ;;  %v2017_v18 = vld [vmem:[%s2080_s4] ss:$0 sm:$0xff] }
 0x137   : > { %v793_v55 = vmax.f32 %v616_v47, 0.0  ;;  %v795_v56 = vmax.f32 %v729_v48, 0.0 }
 0x138   : > { %v794_v58 = vmax.f32 %v618_v52, 0.0  ;;  %v796_v59 = vmax.f32 %v731_v53, 0.0 }
 0x139   : > { %v825_v60 = vpack.c.bf16 %v793_v55, %v789_v54  ;;  %v827_v16 = vpack.c.bf16 %v795_v56, %v791_v46 }
 0x13a   : > { %v826_v61 = vpack.c.bf16 %v794_v58, %v790_v57  ;;  %v828_v17 = vpack.c.bf16 %v796_v59, %v792_v51 }
 0x13c   : > { %1180 = vmatprep.mubr.bf16.mxu0 %v826_v61  ;;  %1277 = vmatprep.mubr.bf16.mxu1 %v828_v17 }
 0x13d   : > { %1181 = vmatmul.mubr.bf16.gmra.mrb[60].mxu0 %v825_v60  ;;  %1278 = vmatmul.mubr.bf16.gmra.mrb[60].mxu1 %v827_v16 }
 0x1d8   : > { %v1459_v62 = vpop.f32.mrb[32].mxu0  ;;  %v1523_v63 = vpop.f32.mrb[32].mxu1 }
 0x1d9   : > { %v1460_v19 = vpop.f32.mrb[33].mxu0  ;;  %v1524_v0 = vpop.f32.mrb[33].mxu1 }
 0x1da   : > { %v1461_v1 = vadd.f32 %v1460_v19, %v1459_v62  ;;  %v1525_v3 = vadd.f32 %v1524_v0, %v1523_v63  ;;  %v1462_v4 = vpop.f32.mrb[34].mxu0  ;;  %v1526_v5 = vpop.f32.mrb[34].mxu1 }
 0x1db   : > { %v1463_v6 = vpop.f32.mrb[35].mxu0  ;;  %v1527_v7 = vpop.f32.mrb[35].mxu1 }
 0x1dc   : > { %v1127_v8 = vadd.f32 %v1461_v1, %v2017_v18  ;;  %v1464_v9 = vadd.f32 %v1463_v6, %v1462_v4  ;;  %v1528_v2 = vadd.f32 %v1527_v7, %v1526_v5 }
 0x1de   : > { %v1224_v10 = vadd.f32 %v1525_v3, %v1127_v8  ;;  %v1130_v11 = vadd.f32 %v1464_v9, %v2017_v18 }
 0x1e0   : > { %1287 = vst.msk [vmem:[%s2024_s19] sm:$0xff] %vm1286_vm0, %v1224_v10  ;;  %v1227_v12 = vadd.f32 %v1528_v2, %v1130_v11  ;;  %v1465_v13 = vpop.f32.mrb[36].mxu0  ;;  %v1529_v14 = vpop.f32.mrb[36].mxu1 }
 0x1e1   : > { %v1466_v15 = vpop.f32.mrb[37].mxu0  ;;  %v1530_v20 = vpop.f32.mrb[37].mxu1 }
 0x1e2   : > { %1288 = vst.msk [vmem:[%s2024_s19 + $0x8] sm:$0xff] %vm1286_vm0, %v1227_v12  ;;  %v1467_v21 = vadd.f32 %v1466_v15, %v1465_v13  ;;  %v1531_v22 = vadd.f32 %v1530_v20, %v1529_v14  ;;  %v1468_v23 = vpop.f32.mrb[38].mxu0  ;;  %v1532_v24 = vpop.f32.mrb[38].mxu1 }
 0x1e3   : > { %v1469_v25 = vpop.f32.mrb[39].mxu0  ;;  %v1533_v26 = vpop.f32.mrb[39].mxu1 }
 0x1e4   : > { %v1135_v27 = vadd.f32 %v1467_v21, %v2017_v18  ;;  %v1470_v28 = vadd.f32 %v1469_v25, %v1468_v23  ;;  %v1534_v29 = vadd.f32 %v1533_v26, %v1532_v24 }
 0x1e6   : > { %v1232_v30 = vadd.f32 %v1531_v22, %v1135_v27  ;;  %v1138_v31 = vadd.f32 %v1470_v28, %v2017_v18 }
 0x1e8   : > { %1289 = vst.msk [vmem:[%s2024_s19 + $0x10] sm:$0xff] %vm1286_vm0, %v1232_v30  ;;  %v1235_v32 = vadd.f32 %v1534_v29, %v1138_v31  ;;  %v1471_v33 = vpop.f32.mrb[40].mxu0  ;;  %v1535_v34 = vpop.f32.mrb[40].mxu1 }
 0x1e9   : > { %v1472_v35 = vpop.f32.mrb[41].mxu0  ;;  %v1536_v36 = vpop.f32.mrb[41].mxu1 }
 0x1ea   : > { %1290 = vst.msk [vmem:[%s2024_s19 + $0x18] sm:$0xff] %vm1286_vm0, %v1235_v32  ;;  %v1473_v37 = vadd.f32 %v1472_v35, %v1471_v33  ;;  %v1537_v38 = vadd.f32 %v1536_v36, %v1535_v34  ;;  %v1474_v39 = vpop.f32.mrb[42].mxu0  ;;  %v1538_v40 = vpop.f32.mrb[42].mxu1 }
 0x1eb   : > { %v1475_v41 = vpop.f32.mrb[43].mxu0  ;;  %v1539_v42 = vpop.f32.mrb[43].mxu1 }
 0x1ec   : > { %v1143_v43 = vadd.f32 %v1473_v37, %v2017_v18  ;;  %v1476_v44 = vadd.f32 %v1475_v41, %v1474_v39  ;;  %v1540_v45 = vadd.f32 %v1539_v42, %v1538_v40 }
 0x1ee   : > { %v1240_v46 = vadd.f32 %v1537_v38, %v1143_v43  ;;  %v1146_v47 = vadd.f32 %v1476_v44, %v2017_v18 }
 0x1f0   : > { %1291 = vst.msk [vmem:[%s2024_s19 + $0x20] sm:$0xff] %vm1286_vm0, %v1240_v46  ;;  %v1243_v48 = vadd.f32 %v1540_v45, %v1146_v47  ;;  %v1477_v49 = vpop.f32.mrb[44].mxu0  ;;  %v1541_v50 = vpop.f32.mrb[44].mxu1 }
 0x1f1   : > { %v1478_v51 = vpop.f32.mrb[45].mxu0  ;;  %v1542_v52 = vpop.f32.mrb[45].mxu1 }
 0x1f2   : > { %1292 = vst.msk [vmem:[%s2024_s19 + $0x28] sm:$0xff] %vm1286_vm0, %v1243_v48  ;;  %v1479_v53 = vadd.f32 %v1478_v51, %v1477_v49  ;;  %v1543_v54 = vadd.f32 %v1542_v52, %v1541_v50  ;;  %v1480_v55 = vpop.f32.mrb[46].mxu0  ;;  %v1544_v56 = vpop.f32.mrb[46].mxu1 }
 0x1f3   : > { %v1481_v57 = vpop.f32.mrb[47].mxu0  ;;  %v1545_v58 = vpop.f32.mrb[47].mxu1 }
 0x1f4   : > { %v1151_v59 = vadd.f32 %v1479_v53, %v2017_v18  ;;  %v1482_v60 = vadd.f32 %v1481_v57, %v1480_v55  ;;  %v1546_v16 = vadd.f32 %v1545_v58, %v1544_v56 }
 0x1f6   : > { %v1248_v61 = vadd.f32 %v1543_v54, %v1151_v59  ;;  %v1154_v17 = vadd.f32 %v1482_v60, %v2017_v18 }
 0x1f8   : > { %1293 = vst.msk [vmem:[%s2024_s19 + $0x30] sm:$0xff] %vm1286_vm0, %v1248_v61  ;;  %v1251_v62 = vadd.f32 %v1546_v16, %v1154_v17  ;;  %v1483_v63 = vpop.f32.mrb[48].mxu0  ;;  %v1547_v19 = vpop.f32.mrb[48].mxu1 }
 0x1f9   : > { %v1484_v0 = vpop.f32.mrb[49].mxu0  ;;  %v1548_v1 = vpop.f32.mrb[49].mxu1 }
 0x1fa   : > { %1294 = vst.msk [vmem:[%s2024_s19 + $0x38] sm:$0xff] %vm1286_vm0, %v1251_v62  ;;  %v1485_v3 = vadd.f32 %v1484_v0, %v1483_v63  ;;  %v1549_v4 = vadd.f32 %v1548_v1, %v1547_v19  ;;  %v1486_v5 = vpop.f32.mrb[50].mxu0  ;;  %v1550_v6 = vpop.f32.mrb[50].mxu1 }
 0x1fb   : > { %v1487_v7 = vpop.f32.mrb[51].mxu0  ;;  %v1551_v8 = vpop.f32.mrb[51].mxu1 }
 0x1fc   : > { %v1159_v9 = vadd.f32 %v1485_v3, %v2017_v18  ;;  %v1488_v2 = vadd.f32 %v1487_v7, %v1486_v5  ;;  %v1552_v10 = vadd.f32 %v1551_v8, %v1550_v6 }
 0x1fe   : > { %v1256_v11 = vadd.f32 %v1549_v4, %v1159_v9  ;;  %v1162_v12 = vadd.f32 %v1488_v2, %v2017_v18 }
 0x200   : > { %1295 = vst.msk [vmem:[%s2024_s19 + $0x40] sm:$0xff] %vm1286_vm0, %v1256_v11  ;;  %v1259_v13 = vadd.f32 %v1552_v10, %v1162_v12  ;;  %v1489_v14 = vpop.f32.mrb[52].mxu0  ;;  %v1553_v15 = vpop.f32.mrb[52].mxu1 }
 0x201   : > { %v1490_v20 = vpop.f32.mrb[53].mxu0  ;;  %v1554_v21 = vpop.f32.mrb[53].mxu1 }
 0x202   : > { %1296 = vst.msk [vmem:[%s2024_s19 + $0x48] sm:$0xff] %vm1286_vm0, %v1259_v13  ;;  %v1491_v22 = vadd.f32 %v1490_v20, %v1489_v14  ;;  %v1555_v23 = vadd.f32 %v1554_v21, %v1553_v15  ;;  %v1492_v24 = vpop.f32.mrb[54].mxu0  ;;  %v1556_v25 = vpop.f32.mrb[54].mxu1 }
 0x203   : > { %v1493_v26 = vpop.f32.mrb[55].mxu0  ;;  %v1557_v27 = vpop.f32.mrb[55].mxu1 }
 0x204   : > { %v1167_v28 = vadd.f32 %v1491_v22, %v2017_v18  ;;  %v1494_v29 = vadd.f32 %v1493_v26, %v1492_v24  ;;  %v1558_v30 = vadd.f32 %v1557_v27, %v1556_v25 }
 0x206   : > { %v1264_v31 = vadd.f32 %v1555_v23, %v1167_v28  ;;  %v1170_v32 = vadd.f32 %v1494_v29, %v2017_v18 }
 0x208   : > { %1297 = vst.msk [vmem:[%s2024_s19 + $0x50] sm:$0xff] %vm1286_vm0, %v1264_v31  ;;  %v1267_v33 = vadd.f32 %v1558_v30, %v1170_v32  ;;  %v1495_v34 = vpop.f32.mrb[56].mxu0  ;;  %v1559_v35 = vpop.f32.mrb[56].mxu1 }
 0x209   : > { %v1496_v36 = vpop.f32.mrb[57].mxu0  ;;  %v1560_v37 = vpop.f32.mrb[57].mxu1 }
 0x20a   : > { %1298 = vst.msk [vmem:[%s2024_s19 + $0x58] sm:$0xff] %vm1286_vm0, %v1267_v33  ;;  %v1497_v38 = vadd.f32 %v1496_v36, %v1495_v34  ;;  %v1561_v39 = vadd.f32 %v1560_v37, %v1559_v35  ;;  %v1498_v40 = vpop.f32.mrb[58].mxu0  ;;  %v1562_v41 = vpop.f32.mrb[58].mxu1 }
 0x20b   : > { %v1499_v42 = vpop.f32.mrb[59].mxu0  ;;  %v1563_v43 = vpop.f32.mrb[59].mxu1 }
 0x20c   : > { %v1175_v44 = vadd.f32 %v1497_v38, %v2017_v18  ;;  %v1500_v45 = vadd.f32 %v1499_v42, %v1498_v40  ;;  %v1564_v46 = vadd.f32 %v1563_v43, %v1562_v41 }
 0x20e   : > { %v1272_v47 = vadd.f32 %v1561_v39, %v1175_v44  ;;  %v1178_v48 = vadd.f32 %v1500_v45, %v2017_v18 }
 0x210   : > { %1299 = vst.msk [vmem:[%s2024_s19 + $0x60] sm:$0xff] %vm1286_vm0, %v1272_v47  ;;  %v1275_v49 = vadd.f32 %v1564_v46, %v1178_v48  ;;  %v1501_v50 = vpop.f32.mrb[60].mxu0  ;;  %v1565_v51 = vpop.f32.mrb[60].mxu1 }
 0x211   : > { %v1502_v52 = vpop.f32.mrb[61].mxu0  ;;  %v1566_v53 = vpop.f32.mrb[61].mxu1 }
 0x212   : > { %1300 = vst.msk [vmem:[%s2024_s19 + $0x68] sm:$0xff] %vm1286_vm0, %v1275_v49  ;;  %v1503_v54 = vadd.f32 %v1502_v52, %v1501_v50  ;;  %v1567_v55 = vadd.f32 %v1566_v53, %v1565_v51  ;;  %v1504_v56 = vpop.f32.mrb[62].mxu0  ;;  %v1568_v57 = vpop.f32.mrb[62].mxu1 }
 0x213   : > { %v1505_v58 = vpop.f32.mrb[63].mxu0  ;;  %v1569_v59 = vpop.f32.mrb[63].mxu1 }
 0x214   : > { %v1183_v60 = vadd.f32 %v1503_v54, %v2017_v18  ;;  %v1506_v16 = vadd.f32 %v1505_v58, %v1504_v56  ;;  %v1570_v61 = vadd.f32 %v1569_v59, %v1568_v57 }
 0x216   : > { %v1280_v17 = vadd.f32 %v1567_v55, %v1183_v60  ;;  %v1186_v62 = vadd.f32 %v1506_v16, %v2017_v18 }
 0x218   : > { %1301 = vst.msk [vmem:[%s2024_s19 + $0x70] sm:$0xff] %vm1286_vm0, %v1280_v17  ;;  %v1283_v63 = vadd.f32 %v1570_v61, %v1186_v62 }
 0x21a   : > { %1302 = vst.msk [vmem:[%s2024_s19 + $0x78] sm:$0xff] %vm1286_vm0, %v1283_v63 }
 0x21b PF: > { %s15_s18 = sadd.s32 1, %s1674_s18  }
 0x21c   : > { %p12_p4 = scmp.ge.s32.totalorder %s15_s18, 4  }
 0x21e   :  { %14 = sbr.rel (!%p12_p4) target bundleno = 1 (0x1), region = 70 }

</bundles_post_ra>
